<compile_context>
chip_gen: v7x
topology: tpu7x:2x2x1
jax: 0.10.0
libtpu: 0.0.40
codegen_flags: <defaults>
</compile_context>

<pallas_src>
import jax
import jax.numpy as jnp
from jax import lax
from jax.experimental import pallas as pl
from jax.experimental.pallas import tpu as pltpu

EPS = 1e-5
NUM_CLASSES = 10
B_BLK = 32   # batch tile: makes B*Mp a multiple of 128 for all three blocks
             # (Mp = 196 needs B%32==0; Mp=64 needs B%2==0; Mp=16 needs B%8==0)

# Static per-block conv configuration (kernel size, padding, channels).
CONV_CFGS = (
    dict(k=5, pad=2, cin=1, cout=6),
    dict(k=3, pad=2, cin=6, cout=16),
    dict(k=3, pad=1, cin=16, cout=32),
)


def _round_up(x, m):
    return (x + m - 1) // m * m


# --------------------------------------------------------------------------
# Pallas kernels
# --------------------------------------------------------------------------
def _conv_block_kernel(p_ref, w_ref, b_ref, o_ref):
    # p_ref: (Kpad, 4*BM) bf16 -- im2col patches; 4 pool corners concatenated
    #        on the lane axis, each corner block BM = B_BLK*Mp (128-multiple),
    #        lanes ordered (corner, batch, y, x).
    # w_ref: (Cout, Kpad) bf16 -- conv weight with BN scale folded in.
    # b_ref: (Cout, 1)  f32    -- conv bias + BN shift folded.
    # o_ref: (Cout, BM) bf16   -- pooled activation, lane-dense store.
    bm = o_ref.shape[-1]
    # One long systolic run instead of four short push/drain sequences.
    z = jnp.dot(w_ref[...], p_ref[...], preferred_element_type=jnp.float32)
    # 2x2 max-pool over four 128-aligned static lane slices
    # (bias add & ReLU commute with max).
    m = jnp.maximum(jnp.maximum(z[:, 0 * bm:1 * bm], z[:, 1 * bm:2 * bm]),
                    jnp.maximum(z[:, 2 * bm:3 * bm], z[:, 3 * bm:4 * bm]))
    o_ref[...] = jnp.maximum(m + b_ref[...], 0.0).astype(o_ref.dtype)


def _linear_kernel(x_ref, w_ref, b_ref, o_ref):
    # x_ref: (TN, 512) bf16, w_ref: (512, 128) bf16 (classes zero-padded to
    # 128), b_ref: (1, 128) f32, o_ref: (TN, 128) f32 (unmasked lane-dense).
    o_ref[...] = (jnp.dot(x_ref[...], w_ref[...],
                          preferred_element_type=jnp.float32) + b_ref[...])


# --------------------------------------------------------------------------
# XLA glue: build the 4 pool-corner im2col patch matrices, batch-blocked and
# corner-concatenated so each grid step sees one lane-dense (Kpad, 4*B*Mp)
# slab.  (Weight prep is one-time; this runs per forward on small tensors.)
# --------------------------------------------------------------------------
def build_pool_patches(x_nchw, k, pad, kpad):
    """(N,C,H,W) -> (G, Kpad, 4*B_BLK*Mp) bf16, lanes = (corner, b, y, x)."""
    n, c, h, w = x_nchw.shape
    xp = jnp.pad(x_nchw, ((0, 0), (0, 0), (pad, pad), (pad, pad)))
    oh = h + 2 * pad - k + 1
    ow = w + 2 * pad - k + 1
    ohp, owp = oh // 2, ow // 2
    mp = ohp * owp
    corners = []
    for cy in range(2):
        for cx in range(2):
            cols = []
            for di in range(k):
                for dj in range(k):
                    ys, xs = cy + di, cx + dj
                    sl = lax.slice(
                        xp,
                        (0, 0, ys, xs),
                        (n, c, ys + 2 * (ohp - 1) + 1, xs + 2 * (owp - 1) + 1),
                        (1, 1, 2, 2))                      # (n, c, ohp, owp)
                    cols.append(sl)
            pc = jnp.stack(cols, axis=1)                   # (n, k*k, c, ohp, owp)
            corners.append(pc.reshape(n, k * k * c, mp))   # K order = (di,dj,ci)
    patches = jnp.stack(corners, axis=1)                   # (n, 4, K, Mp)
    kk = k * k * c
    if kpad > kk:
        patches = jnp.pad(patches, ((0, 0), (0, 0), (0, kpad - kk), (0, 0)))
    g = n // B_BLK
    patches = patches.reshape(g, B_BLK, 4, kpad, mp)
    patches = jnp.transpose(patches, (0, 3, 2, 1, 4))      # (g, Kpad, 4, B, Mp)
    patches = patches.reshape(g, kpad, 4 * B_BLK * mp)
    return patches.astype(jnp.bfloat16), ohp, owp


# --------------------------------------------------------------------------
# Wrappers around pallas_call
# --------------------------------------------------------------------------
def conv_block(x_nchw, w_scaled, bias, cfg):
    """Fused Conv2d + BatchNorm(eval) + ReLU + MaxPool2d(2,2) on a batch tile."""
    k, pad, cout = cfg["k"], cfg["pad"], cfg["cout"]
    kpad = w_scaled.shape[1]
    n = x_nchw.shape[0]                                    # multiple of B_BLK
    patches, ohp, owp = build_pool_patches(x_nchw, k, pad, kpad)
    g = n // B_BLK
    mp = ohp * owp
    bm = B_BLK * mp                                        # multiple of 128
    cost = pl.CostEstimate(
        flops=2 * g * cout * kpad * 4 * bm,
        transcendentals=0,
        bytes_accessed=(patches.size * 2 + w_scaled.size * 2 + bias.size * 4
                        + g * cout * bm * 2))
    out = pl.pallas_call(
        _conv_block_kernel,
        out_shape=jax.ShapeDtypeStruct((g, cout, bm), jnp.bfloat16),
        grid=(g,),
        in_specs=[
            pl.BlockSpec((None, kpad, 4 * bm), lambda i: (i, 0, 0)),
            pl.BlockSpec((cout, kpad), lambda i: (0, 0)),
            pl.BlockSpec((cout, 1), lambda i: (0, 0)),
        ],
        out_specs=pl.BlockSpec((None, cout, bm), lambda i: (i, 0, 0)),
        compiler_params=pltpu.CompilerParams(
            dimension_semantics=("parallel",)),
        cost_estimate=cost,
    )(patches, w_scaled, bias)
    # (g, Cout, B*Mp) lanes ordered (b, y, x) -> canonical NCHW for next block.
    out = out.reshape(g, cout, B_BLK, ohp, owp)
    out = jnp.transpose(out, (0, 2, 1, 3, 4)).reshape(n, cout, ohp, owp)
    return out


def linear(x, w_kn, bias):
    n, kf = x.shape
    ncls_pad = w_kn.shape[1]
    tile_n = B_BLK                                         # n is a B_BLK multiple
    cost = pl.CostEstimate(
        flops=2 * n * kf * ncls_pad,
        transcendentals=0,
        bytes_accessed=x.size * 2 + w_kn.size * 2 + bias.size * 4
                       + n * ncls_pad * 4)
    return pl.pallas_call(
        _linear_kernel,
        out_shape=jax.ShapeDtypeStruct((n, ncls_pad), jnp.float32),
        grid=(n // tile_n,),
        in_specs=[
            pl.BlockSpec((tile_n, kf), lambda i: (i, 0)),
            pl.BlockSpec((kf, ncls_pad), lambda i: (0, 0)),
            pl.BlockSpec((1, ncls_pad), lambda i: (0, 0)),
        ],
        out_specs=pl.BlockSpec((tile_n, ncls_pad), lambda i: (i, 0)),
        compiler_params=pltpu.CompilerParams(
            dimension_semantics=("parallel",)),
        cost_estimate=cost,
    )(x, w_kn, bias)


def convnet_forward(x_nchw, prep):
    n = x_nchw.shape[0]
    n_pad = _round_up(n, B_BLK)
    x = x_nchw.astype(jnp.bfloat16)
    if n_pad > n:                                          # pad batch to tile
        x = jnp.pad(x, ((0, n_pad - n), (0, 0), (0, 0), (0, 0)))
    x = conv_block(x, prep["w1"], prep["b1"], CONV_CFGS[0])   # (Np, 6, 14, 14)
    x = conv_block(x, prep["w2"], prep["b2"], CONV_CFGS[1])   # (Np, 16, 8, 8)
    x = conv_block(x, prep["w3"], prep["b3"], CONV_CFGS[2])   # (Np, 32, 4, 4)
    feat = x.reshape(n_pad, -1)                            # NCHW flatten == PyTorch
    logits = linear(feat, prep["wl"], prep["bl"])          # (Np, 128) f32
    return logits[:n, :NUM_CLASSES]                        # (N, num_classes)


# --------------------------------------------------------------------------
# One-time parameter preparation: BN folding, weight repack, K padding, bf16.
# --------------------------------------------------------------------------
def prepare_params(p):
    prep = {}
    for idx, cfg in enumerate(CONV_CFGS, start=1):
        k, cin, cout = cfg["k"], cfg["cin"], cfg["cout"]
        w_pt, b_pt = p[f"w{idx}"], p[f"b{idx}"]
        gamma, beta = p[f"g{idx}"], p[f"be{idx}"]
        rmean, rvar = p[f"m{idx}"], p[f"v{idx}"]
        scale = gamma / jnp.sqrt(rvar + EPS)                         # (cout,)
        # (Cout, Cin, KH, KW) -> (Cout, KH, KW, Cin) -> (Cout, KH*KW*Cin)
        w_km = jnp.transpose(w_pt, (0, 2, 3, 1)).reshape(cout, k * k * cin)
        w_km = w_km * scale[:, None]                                 # fold BN scale
        kk = k * k * cin
        kpad = _round_up(kk, 16)                                     # bf16 sublanes
        if kpad > kk:
            w_km = jnp.pad(w_km, ((0, 0), (0, kpad - kk)))
        prep[f"w{idx}"] = w_km.astype(jnp.bfloat16)
        prep[f"b{idx}"] = ((b_pt - rmean) * scale + beta).reshape(cout, 1).astype(jnp.float32)
    ncls, nfeat = p["wl"].shape
    ncls_pad = _round_up(ncls, 128)                                  # lane-dense out
    wl = jnp.zeros((nfeat, ncls_pad), jnp.float32).at[:, :ncls].set(p["wl"].T)
    bl = jnp.zeros((1, ncls_pad), jnp.float32).at[0, :ncls].set(p["bl"])
    prep["wl"] = wl.astype(jnp.bfloat16)
    prep["bl"] = bl
    return prep


# --------------------------------------------------------------------------
# Deterministic parameter init (PyTorch-like uniform(-1/sqrt(fan_in), ...))
# --------------------------------------------------------------------------
def init_params(key, num_classes=10):
    ks = jax.random.split(key, 8)

    def uni(k, shape, fan_in):
        bound = 1.0 / float(fan_in) ** 0.5
        return jax.random.uniform(k, shape, jnp.float32, -bound, bound)

    def bn(c):
        return (jnp.ones((c,), jnp.float32), jnp.zeros((c,), jnp.float32),
                jnp.zeros((c,), jnp.float32), jnp.ones((c,), jnp.float32))

    p = {}
    p["w1"], p["b1"] = uni(ks[0], (6, 1, 5, 5), 25), uni(ks[1], (6,), 25)
    p["g1"], p["be1"], p["m1"], p["v1"] = bn(6)
    p["w2"], p["b2"] = uni(ks[2], (16, 6, 3, 3), 54), uni(ks[3], (16,), 54)
    p["g2"], p["be2"], p["m2"], p["v2"] = bn(16)
    p["w3"], p["b3"] = uni(ks[4], (32, 16, 3, 3), 144), uni(ks[5], (32,), 144)
    p["g3"], p["be3"], p["m3"], p["v3"] = bn(32)
    p["wl"] = uni(ks[6], (num_classes, 4 * 4 * 32), 512)
    p["bl"] = uni(ks[7], (num_classes,), 512)
    return p


if __name__ == "__main__":
    key = jax.random.PRNGKey(0)
    kx, kp = jax.random.split(key)
    # The module's flatten (4*4*32) implies 28x28 single-channel input (MNIST).
    x = jax.random.normal(kx, (2, 1, 28, 28), dtype=jnp.float32)   # NCHW
    params = init_params(kp, num_classes=NUM_CLASSES)
    prep = prepare_params(params)

    fwd = jax.jit(convnet_forward)
    out = jax.block_until_ready(fwd(x, prep))
    assert out.shape == (2, NUM_CLASSES) and out.dtype == jnp.float32
    print("KERNEL_OK")
</pallas_src>

<mosaic_0001>
module attributes {stable_mosaic.version = 11 : i64} {
  func.func @_conv_block_kernel(%arg0: i32, %arg1: memref<1x32x25088xbf16, #tpu.memory_space<vmem>>, %arg2: memref<6x32xbf16, #tpu.memory_space<vmem>>, %arg3: memref<6x1xf32, #tpu.memory_space<vmem>>, %arg4: memref<1x6x6272xbf16, #tpu.memory_space<vmem>>) attributes {dimension_semantics = [#tpu.dimension_semantics<parallel>], iteration_bounds = array<i64: 1>, scalar_prefetch = 0 : i64, scratch_operands = 0 : i64, tpu.core_type = #tpu.core_type<tc>, window_params = [{transform_indices = @transform_0, window_bounds = array<i64: 1, 32, 25088>}, {pipeline_mode = #tpu.pipeline_mode<synchronous>, transform_indices = @transform_1, window_bounds = array<i64: 6, 32>}, {pipeline_mode = #tpu.pipeline_mode<synchronous>, transform_indices = @transform_2, window_bounds = array<i64: 6, 1>}, {transform_indices = @transform_3, window_bounds = array<i64: 1, 6, 6272>}]} {
    %c0 = arith.constant 0 : index
    %c0_0 = arith.constant 0 : index
    %0 = vector.load %arg2[%c0, %c0_0] : memref<6x32xbf16, #tpu.memory_space<vmem>>, vector<6x32xbf16>
    %c0_1 = arith.constant 0 : index
    %c0_2 = arith.constant 0 : index
    %c0_3 = arith.constant 0 : index
    %1 = vector.load %arg1[%c0_1, %c0_2, %c0_3] : memref<1x32x25088xbf16, #tpu.memory_space<vmem>>, vector<1x32x25088xbf16>
    %2 = vector.shape_cast %1 : vector<1x32x25088xbf16> to vector<32x25088xbf16>
    %cst = arith.constant dense<0.000000e+00> : vector<6x25088xf32>
    %3 = tpu.matmul %0, %2, %cst {dimension_numbers = #tpu.dot_dimension_numbers<[1], [0], [0], [1], [0, 0, 1, 1], [], []>} : vector<6x32xbf16>, vector<32x25088xbf16>, vector<6x25088xf32> -> vector<6x25088xf32>
    %4 = vector.extract_strided_slice %3 {offsets = [0, 0], sizes = [6, 6272], strides = [1, 1]} : vector<6x25088xf32> to vector<6x6272xf32>
    %5 = vector.extract_strided_slice %3 {offsets = [0, 6272], sizes = [6, 6272], strides = [1, 1]} : vector<6x25088xf32> to vector<6x6272xf32>
    %6 = arith.maximumf %4, %5 : vector<6x6272xf32>
    %7 = vector.extract_strided_slice %3 {offsets = [0, 12544], sizes = [6, 6272], strides = [1, 1]} : vector<6x25088xf32> to vector<6x6272xf32>
    %8 = vector.extract_strided_slice %3 {offsets = [0, 18816], sizes = [6, 6272], strides = [1, 1]} : vector<6x25088xf32> to vector<6x6272xf32>
    %9 = arith.maximumf %7, %8 : vector<6x6272xf32>
    %10 = arith.maximumf %6, %9 : vector<6x6272xf32>
    %c0_4 = arith.constant 0 : index
    %c0_5 = arith.constant 0 : index
    %11 = vector.load %arg3[%c0_4, %c0_5] : memref<6x1xf32, #tpu.memory_space<vmem>>, vector<6x1xf32>
    %12 = vector.broadcast %11 : vector<6x1xf32> to vector<6x6272xf32>
    %13 = arith.addf %10, %12 : vector<6x6272xf32>
    %cst_6 = arith.constant 0.000000e+00 : f32
    %14 = vector.broadcast %cst_6 : f32 to vector<6x6272xf32>
    %15 = arith.maximumf %13, %14 : vector<6x6272xf32>
    %16 = arith.truncf %15 : vector<6x6272xf32> to vector<6x6272xbf16>
    %c0_7 = arith.constant 0 : index
    %c0_8 = arith.constant 0 : index
    %c0_9 = arith.constant 0 : index
    %17 = vector.load %arg4[%c0_7, %c0_8, %c0_9] : memref<1x6x6272xbf16, #tpu.memory_space<vmem>>, vector<1x6x6272xbf16>
    %18 = vector.shape_cast %17 : vector<1x6x6272xbf16> to vector<6x6272xbf16>
    %19 = vector.shape_cast %16 : vector<6x6272xbf16> to vector<1x6x6272xbf16>
    tpu.vector_store %arg4[%c0_7, %c0_8, %c0_9], %19 {strides = array<i32>} : memref<1x6x6272xbf16, #tpu.memory_space<vmem>>, vector<1x6x6272xbf16>,
    return
  }
  func.func @transform_0(%arg0: i32) -> (i32, i32, i32) {
    %c0_i32 = arith.constant 0 : i32
    %c0_i32_0 = arith.constant 0 : i32
    %c0_i32_1 = arith.constant 0 : i32
    return %arg0, %c0_i32, %c0_i32_0 : i32, i32, i32
  }
  func.func @transform_1(%arg0: i32) -> (i32, i32) {
    %c0_i32 = arith.constant 0 : i32
    %c0_i32_0 = arith.constant 0 : i32
    %c0_i32_1 = arith.constant 0 : i32
    return %c0_i32, %c0_i32_0 : i32, i32
  }
  func.func @transform_2(%arg0: i32) -> (i32, i32) {
    %c0_i32 = arith.constant 0 : i32
    %c0_i32_0 = arith.constant 0 : i32
    %c0_i32_1 = arith.constant 0 : i32
    return %c0_i32, %c0_i32_0 : i32, i32
  }
  func.func @transform_3(%arg0: i32) -> (i32, i32, i32) {
    %c0_i32 = arith.constant 0 : i32
    %c0_i32_0 = arith.constant 0 : i32
    %c0_i32_1 = arith.constant 0 : i32
    return %arg0, %c0_i32, %c0_i32_0 : i32, i32, i32
  }
}

module attributes {stable_mosaic.version = 11 : i64} {
  func.func @_conv_block_kernel(%arg0: i32, %arg1: memref<1x64x8192xbf16, #tpu.memory_space<vmem>>, %arg2: memref<16x64xbf16, #tpu.memory_space<vmem>>, %arg3: memref<16x1xf32, #tpu.memory_space<vmem>>, %arg4: memref<1x16x2048xbf16, #tpu.memory_space<vmem>>) attributes {dimension_semantics = [#tpu.dimension_semantics<parallel>], iteration_bounds = array<i64: 1>, scalar_prefetch = 0 : i64, scratch_operands = 0 : i64, tpu.core_type = #tpu.core_type<tc>, window_params = [{transform_indices = @transform_0, window_bounds = array<i64: 1, 64, 8192>}, {pipeline_mode = #tpu.pipeline_mode<synchronous>, transform_indices = @transform_1, window_bounds = array<i64: 16, 64>}, {pipeline_mode = #tpu.pipeline_mode<synchronous>, transform_indices = @transform_2, window_bounds = array<i64: 16, 1>}, {transform_indices = @transform_3, window_bounds = array<i64: 1, 16, 2048>}]} {
    %c0 = arith.constant 0 : index
    %c0_0 = arith.constant 0 : index
    %0 = vector.load %arg2[%c0, %c0_0] : memref<16x64xbf16, #tpu.memory_space<vmem>>, vector<16x64xbf16>
    %c0_1 = arith.constant 0 : index
    %c0_2 = arith.constant 0 : index
    %c0_3 = arith.constant 0 : index
    %1 = vector.load %arg1[%c0_1, %c0_2, %c0_3] : memref<1x64x8192xbf16, #tpu.memory_space<vmem>>, vector<1x64x8192xbf16>
    %2 = vector.shape_cast %1 : vector<1x64x8192xbf16> to vector<64x8192xbf16>
    %cst = arith.constant dense<0.000000e+00> : vector<16x8192xf32>
    %3 = tpu.matmul %0, %2, %cst {dimension_numbers = #tpu.dot_dimension_numbers<[1], [0], [0], [1], [0, 0, 1, 1], [], []>} : vector<16x64xbf16>, vector<64x8192xbf16>, vector<16x8192xf32> -> vector<16x8192xf32>
    %4 = vector.extract_strided_slice %3 {offsets = [0, 0], sizes = [16, 2048], strides = [1, 1]} : vector<16x8192xf32> to vector<16x2048xf32>
    %5 = vector.extract_strided_slice %3 {offsets = [0, 2048], sizes = [16, 2048], strides = [1, 1]} : vector<16x8192xf32> to vector<16x2048xf32>
    %6 = arith.maximumf %4, %5 : vector<16x2048xf32>
    %7 = vector.extract_strided_slice %3 {offsets = [0, 4096], sizes = [16, 2048], strides = [1, 1]} : vector<16x8192xf32> to vector<16x2048xf32>
    %8 = vector.extract_strided_slice %3 {offsets = [0, 6144], sizes = [16, 2048], strides = [1, 1]} : vector<16x8192xf32> to vector<16x2048xf32>
    %9 = arith.maximumf %7, %8 : vector<16x2048xf32>
    %10 = arith.maximumf %6, %9 : vector<16x2048xf32>
    %c0_4 = arith.constant 0 : index
    %c0_5 = arith.constant 0 : index
    %11 = vector.load %arg3[%c0_4, %c0_5] : memref<16x1xf32, #tpu.memory_space<vmem>>, vector<16x1xf32>
    %12 = vector.broadcast %11 : vector<16x1xf32> to vector<16x2048xf32>
    %13 = arith.addf %10, %12 : vector<16x2048xf32>
    %cst_6 = arith.constant 0.000000e+00 : f32
    %14 = vector.broadcast %cst_6 : f32 to vector<16x2048xf32>
    %15 = arith.maximumf %13, %14 : vector<16x2048xf32>
    %16 = arith.truncf %15 : vector<16x2048xf32> to vector<16x2048xbf16>
    %c0_7 = arith.constant 0 : index
    %c0_8 = arith.constant 0 : index
    %c0_9 = arith.constant 0 : index
    %17 = vector.load %arg4[%c0_7, %c0_8, %c0_9] : memref<1x16x2048xbf16, #tpu.memory_space<vmem>>, vector<1x16x2048xbf16>
    %18 = vector.shape_cast %17 : vector<1x16x2048xbf16> to vector<16x2048xbf16>
    %19 = vector.shape_cast %16 : vector<16x2048xbf16> to vector<1x16x2048xbf16>
    tpu.vector_store %arg4[%c0_7, %c0_8, %c0_9], %19 {strides = array<i32>} : memref<1x16x2048xbf16, #tpu.memory_space<vmem>>, vector<1x16x2048xbf16>,
    return
  }
  func.func @transform_0(%arg0: i32) -> (i32, i32, i32) {
    %c0_i32 = arith.constant 0 : i32
    %c0_i32_0 = arith.constant 0 : i32
    %c0_i32_1 = arith.constant 0 : i32
    return %arg0, %c0_i32, %c0_i32_0 : i32, i32, i32
  }
  func.func @transform_1(%arg0: i32) -> (i32, i32) {
    %c0_i32 = arith.constant 0 : i32
    %c0_i32_0 = arith.constant 0 : i32
    %c0_i32_1 = arith.constant 0 : i32
    return %c0_i32, %c0_i32_0 : i32, i32
  }
  func.func @transform_2(%arg0: i32) -> (i32, i32) {
    %c0_i32 = arith.constant 0 : i32
    %c0_i32_0 = arith.constant 0 : i32
    %c0_i32_1 = arith.constant 0 : i32
    return %c0_i32, %c0_i32_0 : i32, i32
  }
  func.func @transform_3(%arg0: i32) -> (i32, i32, i32) {
    %c0_i32 = arith.constant 0 : i32
    %c0_i32_0 = arith.constant 0 : i32
    %c0_i32_1 = arith.constant 0 : i32
    return %arg0, %c0_i32, %c0_i32_0 : i32, i32, i32
  }
}

module attributes {stable_mosaic.version = 11 : i64} {
  func.func @_conv_block_kernel(%arg0: i32, %arg1: memref<1x144x2048xbf16, #tpu.memory_space<vmem>>, %arg2: memref<32x144xbf16, #tpu.memory_space<vmem>>, %arg3: memref<32x1xf32, #tpu.memory_space<vmem>>, %arg4: memref<1x32x512xbf16, #tpu.memory_space<vmem>>) attributes {dimension_semantics = [#tpu.dimension_semantics<parallel>], iteration_bounds = array<i64: 1>, scalar_prefetch = 0 : i64, scratch_operands = 0 : i64, tpu.core_type = #tpu.core_type<tc>, window_params = [{transform_indices = @transform_0, window_bounds = array<i64: 1, 144, 2048>}, {pipeline_mode = #tpu.pipeline_mode<synchronous>, transform_indices = @transform_1, window_bounds = array<i64: 32, 144>}, {pipeline_mode = #tpu.pipeline_mode<synchronous>, transform_indices = @transform_2, window_bounds = array<i64: 32, 1>}, {transform_indices = @transform_3, window_bounds = array<i64: 1, 32, 512>}]} {
    %c0 = arith.constant 0 : index
    %c0_0 = arith.constant 0 : index
    %0 = vector.load %arg2[%c0, %c0_0] : memref<32x144xbf16, #tpu.memory_space<vmem>>, vector<32x144xbf16>
    %c0_1 = arith.constant 0 : index
    %c0_2 = arith.constant 0 : index
    %c0_3 = arith.constant 0 : index
    %1 = vector.load %arg1[%c0_1, %c0_2, %c0_3] : memref<1x144x2048xbf16, #tpu.memory_space<vmem>>, vector<1x144x2048xbf16>
    %2 = vector.shape_cast %1 : vector<1x144x2048xbf16> to vector<144x2048xbf16>
    %cst = arith.constant dense<0.000000e+00> : vector<32x2048xf32>
    %3 = tpu.matmul %0, %2, %cst {dimension_numbers = #tpu.dot_dimension_numbers<[1], [0], [0], [1], [0, 0, 1, 1], [], []>} : vector<32x144xbf16>, vector<144x2048xbf16>, vector<32x2048xf32> -> vector<32x2048xf32>
    %4 = vector.extract_strided_slice %3 {offsets = [0, 0], sizes = [32, 512], strides = [1, 1]} : vector<32x2048xf32> to vector<32x512xf32>
    %5 = vector.extract_strided_slice %3 {offsets = [0, 512], sizes = [32, 512], strides = [1, 1]} : vector<32x2048xf32> to vector<32x512xf32>
    %6 = arith.maximumf %4, %5 : vector<32x512xf32>
    %7 = vector.extract_strided_slice %3 {offsets = [0, 1024], sizes = [32, 512], strides = [1, 1]} : vector<32x2048xf32> to vector<32x512xf32>
    %8 = vector.extract_strided_slice %3 {offsets = [0, 1536], sizes = [32, 512], strides = [1, 1]} : vector<32x2048xf32> to vector<32x512xf32>
    %9 = arith.maximumf %7, %8 : vector<32x512xf32>
    %10 = arith.maximumf %6, %9 : vector<32x512xf32>
    %c0_4 = arith.constant 0 : index
    %c0_5 = arith.constant 0 : index
    %11 = vector.load %arg3[%c0_4, %c0_5] : memref<32x1xf32, #tpu.memory_space<vmem>>, vector<32x1xf32>
    %12 = vector.broadcast %11 : vector<32x1xf32> to vector<32x512xf32>
    %13 = arith.addf %10, %12 : vector<32x512xf32>
    %cst_6 = arith.constant 0.000000e+00 : f32
    %14 = vector.broadcast %cst_6 : f32 to vector<32x512xf32>
    %15 = arith.maximumf %13, %14 : vector<32x512xf32>
    %16 = arith.truncf %15 : vector<32x512xf32> to vector<32x512xbf16>
    %c0_7 = arith.constant 0 : index
    %c0_8 = arith.constant 0 : index
    %c0_9 = arith.constant 0 : index
    %17 = vector.load %arg4[%c0_7, %c0_8, %c0_9] : memref<1x32x512xbf16, #tpu.memory_space<vmem>>, vector<1x32x512xbf16>
    %18 = vector.shape_cast %17 : vector<1x32x512xbf16> to vector<32x512xbf16>
    %19 = vector.shape_cast %16 : vector<32x512xbf16> to vector<1x32x512xbf16>
    tpu.vector_store %arg4[%c0_7, %c0_8, %c0_9], %19 {strides = array<i32>} : memref<1x32x512xbf16, #tpu.memory_space<vmem>>, vector<1x32x512xbf16>,
    return
  }
  func.func @transform_0(%arg0: i32) -> (i32, i32, i32) {
    %c0_i32 = arith.constant 0 : i32
    %c0_i32_0 = arith.constant 0 : i32
    %c0_i32_1 = arith.constant 0 : i32
    return %arg0, %c0_i32, %c0_i32_0 : i32, i32, i32
  }
  func.func @transform_1(%arg0: i32) -> (i32, i32) {
    %c0_i32 = arith.constant 0 : i32
    %c0_i32_0 = arith.constant 0 : i32
    %c0_i32_1 = arith.constant 0 : i32
    return %c0_i32, %c0_i32_0 : i32, i32
  }
  func.func @transform_2(%arg0: i32) -> (i32, i32) {
    %c0_i32 = arith.constant 0 : i32
    %c0_i32_0 = arith.constant 0 : i32
    %c0_i32_1 = arith.constant 0 : i32
    return %c0_i32, %c0_i32_0 : i32, i32
  }
  func.func @transform_3(%arg0: i32) -> (i32, i32, i32) {
    %c0_i32 = arith.constant 0 : i32
    %c0_i32_0 = arith.constant 0 : i32
    %c0_i32_1 = arith.constant 0 : i32
    return %arg0, %c0_i32, %c0_i32_0 : i32, i32, i32
  }
}

module attributes {stable_mosaic.version = 11 : i64} {
  func.func @_linear_kernel(%arg0: i32, %arg1: memref<32x512xbf16, #tpu.memory_space<vmem>>, %arg2: memref<512x128xbf16, #tpu.memory_space<vmem>>, %arg3: memref<1x128xf32, #tpu.memory_space<vmem>>, %arg4: memref<32x128xf32, #tpu.memory_space<vmem>>) attributes {dimension_semantics = [#tpu.dimension_semantics<parallel>], iteration_bounds = array<i64: 1>, scalar_prefetch = 0 : i64, scratch_operands = 0 : i64, tpu.core_type = #tpu.core_type<tc>, window_params = [{transform_indices = @transform_0, window_bounds = array<i64: 32, 512>}, {pipeline_mode = #tpu.pipeline_mode<synchronous>, transform_indices = @transform_1, window_bounds = array<i64: 512, 128>}, {pipeline_mode = #tpu.pipeline_mode<synchronous>, transform_indices = @transform_2, window_bounds = array<i64: 1, 128>}, {transform_indices = @transform_3, window_bounds = array<i64: 32, 128>}]} {
    %c0 = arith.constant 0 : index
    %c0_0 = arith.constant 0 : index
    %0 = vector.load %arg1[%c0, %c0_0] : memref<32x512xbf16, #tpu.memory_space<vmem>>, vector<32x512xbf16>
    %c0_1 = arith.constant 0 : index
    %c0_2 = arith.constant 0 : index
    %1 = vector.load %arg2[%c0_1, %c0_2] : memref<512x128xbf16, #tpu.memory_space<vmem>>, vector<512x128xbf16>
    %cst = arith.constant dense<0.000000e+00> : vector<32x128xf32>
    %2 = tpu.matmul %0, %1, %cst {dimension_numbers = #tpu.dot_dimension_numbers<[1], [0], [0], [1], [0, 0, 1, 1], [], []>} : vector<32x512xbf16>, vector<512x128xbf16>, vector<32x128xf32> -> vector<32x128xf32>
    %c0_3 = arith.constant 0 : index
    %c0_4 = arith.constant 0 : index
    %3 = vector.load %arg3[%c0_3, %c0_4] : memref<1x128xf32, #tpu.memory_space<vmem>>, vector<1x128xf32>
    %4 = vector.broadcast %3 : vector<1x128xf32> to vector<32x128xf32>
    %5 = arith.addf %2, %4 : vector<32x128xf32>
    %c0_5 = arith.constant 0 : index
    %c0_6 = arith.constant 0 : index
    %6 = vector.load %arg4[%c0_5, %c0_6] : memref<32x128xf32, #tpu.memory_space<vmem>>, vector<32x128xf32>
    tpu.vector_store %arg4[%c0_5, %c0_6], %5 {strides = array<i32>} : memref<32x128xf32, #tpu.memory_space<vmem>>, vector<32x128xf32>,
    return
  }
  func.func @transform_0(%arg0: i32) -> (i32, i32) {
    %c0_i32 = arith.constant 0 : i32
    %c0_i32_0 = arith.constant 0 : i32
    return %arg0, %c0_i32 : i32, i32
  }
  func.func @transform_1(%arg0: i32) -> (i32, i32) {
    %c0_i32 = arith.constant 0 : i32
    %c0_i32_0 = arith.constant 0 : i32
    %c0_i32_1 = arith.constant 0 : i32
    return %c0_i32, %c0_i32_0 : i32, i32
  }
  func.func @transform_2(%arg0: i32) -> (i32, i32) {
    %c0_i32 = arith.constant 0 : i32
    %c0_i32_0 = arith.constant 0 : i32
    %c0_i32_1 = arith.constant 0 : i32
    return %c0_i32, %c0_i32_0 : i32, i32
  }
  func.func @transform_3(%arg0: i32) -> (i32, i32) {
    %c0_i32 = arith.constant 0 : i32
    %c0_i32_0 = arith.constant 0 : i32
    return %arg0, %c0_i32 : i32, i32
  }
}

</mosaic_0001>

<bundles_post_ra>
// kernel: convnet_forward.4
= control target key start
LH: loop header
LB: loop body
LE: loop exit
PB: predicated region body
PF: predicated region fallthrough
CT: control target
= control target key end

     0   :  { %v10229_v1 = vmov 0   ;;  %vm2368_vm0 = vcmask 261120   ;;  %s10225_s0 = inlined_call_operand.vmem [shape: bf16[1,32,25088], index: 0, kind: input, shape index: {}]   ;;  %s10226_s1 = inlined_call_operand.vmem [shape: bf16[6,32], index: 1, kind: input, shape index: {}]   ;;  %s10227_s2 = inlined_call_operand.vmem [shape: f32[6,1], index: 2, kind: input, shape index: {}]   ;;  %s10228_s3 = inlined_call_operand.vmem [shape: bf16[1,6,6272], index: 3, kind: output, shape index: {}]  }
   0x1   :  { %v7409_v0 = vld [vmem:[%s10225_s0 + $0x4] ss:$784 sps:$4 sm:$0xff]   ;;  %2404 = vmatprep.mubr.bf16.mxu0 %v10229_v1  ;;  %2445 = vmatprep.mubr.bf16.mxu1 %v10229_v1  ;;  %v7411_v2 = vld [vmem:[%s10225_s0 + $0xc] ss:$784 sps:$4 sm:$0xff]   ;;  %v7413_v3 = vld [vmem:[%s10225_s0] ss:$784 sps:$4 sm:$0xff]  }
   0x2   :  { %7408 = vset.pattern.permute.xlu0 %v10229_v1  ;;  %2372 = vmatprep.subr.bf16.mxu0 %v7409_v0  ;;  %v7414_v4 = vld [vmem:[%s10225_s0 + $0x8] ss:$784 sps:$4 sm:$0xff]   ;;  %v7415_v5 = vld [vmem:[%s10225_s0 + $0x624] ss:$784 sps:$4 sm:$0xff]   ;;  %v7417_v6 = vld [vmem:[%s10225_s0 + $0x62c] ss:$784 sps:$4 sm:$0xff]  }
   0x3   :  { %2413 = vmatprep.subr.bf16.mxu1 %v7411_v2  ;;  %2373 = vmatpush1.bf16.msra.mxu0 %v7413_v3  ;;  %v7419_v7 = vld [vmem:[%s10225_s0 + $0x620] ss:$784 sps:$4 sm:$0xff]   ;;  %v7420_v8 = vld [vmem:[%s10225_s0 + $0x628] ss:$784 sps:$4 sm:$0xff]   ;;  %v7423_v11 = vld [vmem:[%s10225_s0 + $0x14] ss:$784 sps:$4 sm:$0xff]  }
   0x4   :  { %2414 = vmatpush1.bf16.msra.mxu1 %v7414_v4  ;;  %2374 = vmatprep.subr.bf16.mxu0 %v7415_v5  ;;  %v8051_v9 = vld [vmem:[%s10226_s1] sm:$0x7]  ;;  %v7424_v12 = vld [vmem:[%s10225_s0 + $0x18] ss:$784 sps:$4 sm:$0xff]   ;;  %v7426_v13 = vld [vmem:[%s10225_s0 + $0x1c] ss:$784 sps:$4 sm:$0xff]  }
   0x5   :  { %2415 = vmatprep.subr.bf16.mxu1 %v7417_v6  ;;  %v7421_v10 = vld [vmem:[%s10225_s0 + $0x10] ss:$784 sps:$4 sm:$0xff]   ;;  %v7429_v14 = vld [vmem:[%s10225_s0 + $0x634] ss:$784 sps:$4 sm:$0xff]   ;;  %v7432_v15 = vld [vmem:[%s10225_s0 + $0x63c] ss:$784 sps:$4 sm:$0xff]  }
   0x6   :  { %v7427_v16 = vld [vmem:[%s10225_s0 + $0x630] ss:$784 sps:$4 sm:$0xff]   ;;  %v7430_v17 = vld [vmem:[%s10225_s0 + $0x638] ss:$784 sps:$4 sm:$0xff]   ;;  %v7435_v18 = vld [vmem:[%s10225_s0 + $0x24] ss:$784 sps:$4 sm:$0xff]  }
   0x7   :  { %2375 = vmatpush1.bf16.msra.mxu0 %v7419_v7  ;;  %v7438_v19 = vld [vmem:[%s10225_s0 + $0x2c] ss:$784 sps:$4 sm:$0xff]   ;;  %v7433_v20 = vld [vmem:[%s10225_s0 + $0x20] ss:$784 sps:$4 sm:$0xff]   ;;  %v7436_v21 = vld [vmem:[%s10225_s0 + $0x28] ss:$784 sps:$4 sm:$0xff]  }
   0x8   :  { %2416 = vmatpush1.bf16.msra.mxu1 %v7420_v8  ;;  %2454 = vmatprep.subr.bf16.mxu0 %v7423_v11  ;;  %v7441_v22 = vld [vmem:[%s10225_s0 + $0x644] ss:$784 sps:$4 sm:$0xff]   ;;  %v7444_v23 = vld [vmem:[%s10225_s0 + $0x64c] ss:$784 sps:$4 sm:$0xff]   ;;  %v7439_v24 = vld [vmem:[%s10225_s0 + $0x640] ss:$784 sps:$4 sm:$0xff]  }
   0x9   :  { %2495 = vmatprep.subr.bf16.mxu1 %v7426_v13  ;;  %v7442_v25 = vld [vmem:[%s10225_s0 + $0x648] ss:$784 sps:$4 sm:$0xff]   ;;  %v7447_v26 = vld [vmem:[%s10225_s0 + $0x34] ss:$784 sps:$4 sm:$0xff]   ;;  %v7450_v27 = vld [vmem:[%s10225_s0 + $0x3c] ss:$784 sps:$4 sm:$0xff]  }
   0xa   :  { %7259 = vmatmul.mubr.msk.bf16.vlgmr.msra.gmra.mrb[0].mxu0 %vm2368_vm0, %v8051_v9  ;;  %v7445_v28 = vld [vmem:[%s10225_s0 + $0x30] ss:$784 sps:$4 sm:$0xff]   ;;  %v7448_v29 = vld [vmem:[%s10225_s0 + $0x38] ss:$784 sps:$4 sm:$0xff]   ;;  %v7453_v30 = vld [vmem:[%s10225_s0 + $0x654] ss:$784 sps:$4 sm:$0xff]  }
   0xb   :  { %7260 = vmatmul.mubr.msk.bf16.vlgmr.msra.gmra.mrb[0].mxu1 %vm2368_vm0, %v8051_v9  ;;  %2455 = vmatpush1.bf16.msra.mxu0 %v7421_v10  ;;  %v7456_v31 = vld [vmem:[%s10225_s0 + $0x65c] ss:$784 sps:$4 sm:$0xff]   ;;  %v7451_v32 = vld [vmem:[%s10225_s0 + $0x650] ss:$784 sps:$4 sm:$0xff]   ;;  %v7454_v33 = vld [vmem:[%s10225_s0 + $0x658] ss:$784 sps:$4 sm:$0xff]  }
   0xc   :  { %2496 = vmatpush1.bf16.msra.mxu1 %v7424_v12  ;;  %2456 = vmatprep.subr.bf16.mxu0 %v7429_v14  ;;  %v7459_v34 = vld [vmem:[%s10225_s0 + $0x44] ss:$784 sps:$4 sm:$0xff]   ;;  %v7462_v35 = vld [vmem:[%s10225_s0 + $0x4c] ss:$784 sps:$4 sm:$0xff]   ;;  %v7457_v36 = vld [vmem:[%s10225_s0 + $0x40] ss:$784 sps:$4 sm:$0xff]  }
   0xd   :  { %2497 = vmatprep.subr.bf16.mxu1 %v7432_v15  ;;  %2486 = vmatprep.mubr.bf16.mxu0 %v10229_v1  ;;  %v7460_v37 = vld [vmem:[%s10225_s0 + $0x48] ss:$784 sps:$4 sm:$0xff]   ;;  %v7465_v38 = vld [vmem:[%s10225_s0 + $0x664] ss:$784 sps:$4 sm:$0xff]   ;;  %v7468_v39 = vld [vmem:[%s10225_s0 + $0x66c] ss:$784 sps:$4 sm:$0xff]  }
   0xe   :  { %2527 = vmatprep.mubr.bf16.mxu1 %v10229_v1  ;;  %v7463_v40 = vld [vmem:[%s10225_s0 + $0x660] ss:$784 sps:$4 sm:$0xff]   ;;  %v7466_v41 = vld [vmem:[%s10225_s0 + $0x668] ss:$784 sps:$4 sm:$0xff]   ;;  %v7471_v42 = vld [vmem:[%s10225_s0 + $0x54] ss:$784 sps:$4 sm:$0xff]  }
   0xf   :  { %2457 = vmatpush1.bf16.msra.mxu0 %v7427_v16  ;;  %v7474_v43 = vld [vmem:[%s10225_s0 + $0x5c] ss:$784 sps:$4 sm:$0xff]   ;;  %v7469_v44 = vld [vmem:[%s10225_s0 + $0x50] ss:$784 sps:$4 sm:$0xff]   ;;  %v7472_v45 = vld [vmem:[%s10225_s0 + $0x58] ss:$784 sps:$4 sm:$0xff]  }
  0x10   :  { %2498 = vmatpush1.bf16.msra.mxu1 %v7430_v17  ;;  %2536 = vmatprep.subr.bf16.mxu0 %v7435_v18  ;;  %v7477_v46 = vld [vmem:[%s10225_s0 + $0x674] ss:$784 sps:$4 sm:$0xff]   ;;  %v7480_v47 = vld [vmem:[%s10225_s0 + $0x67c] ss:$784 sps:$4 sm:$0xff]   ;;  %v7475_v48 = vld [vmem:[%s10225_s0 + $0x670] ss:$784 sps:$4 sm:$0xff]  }
  0x11   :  { %2577 = vmatprep.subr.bf16.mxu1 %v7438_v19  ;;  %v7478_v49 = vld [vmem:[%s10225_s0 + $0x678] ss:$784 sps:$4 sm:$0xff]   ;;  %v7483_v50 = vld [vmem:[%s10225_s0 + $0x64] ss:$784 sps:$4 sm:$0xff]   ;;  %v7486_v51 = vld [vmem:[%s10225_s0 + $0x6c] ss:$784 sps:$4 sm:$0xff]  }
  0x12   :  { %7261 = vmatmul.mubr.msk.bf16.vlgmr.msra.gmra.mrb[4].mxu0 %vm2368_vm0, %v8051_v9  ;;  %v7481_v52 = vld [vmem:[%s10225_s0 + $0x60] ss:$784 sps:$4 sm:$0xff]   ;;  %v7484_v53 = vld [vmem:[%s10225_s0 + $0x68] ss:$784 sps:$4 sm:$0xff]   ;;  %v7489_v54 = vld [vmem:[%s10225_s0 + $0x684] ss:$784 sps:$4 sm:$0xff]  }
  0x13   :  { %7262 = vmatmul.mubr.msk.bf16.vlgmr.msra.gmra.mrb[4].mxu1 %vm2368_vm0, %v8051_v9  ;;  %2537 = vmatpush1.bf16.msra.mxu0 %v7433_v20  ;;  %v7492_v55 = vld [vmem:[%s10225_s0 + $0x68c] ss:$784 sps:$4 sm:$0xff]   ;;  %v7487_v56 = vld [vmem:[%s10225_s0 + $0x680] ss:$784 sps:$4 sm:$0xff]   ;;  %v7490_v57 = vld [vmem:[%s10225_s0 + $0x688] ss:$784 sps:$4 sm:$0xff]  }
  0x14   :  { %2578 = vmatpush1.bf16.msra.mxu1 %v7436_v21  ;;  %2538 = vmatprep.subr.bf16.mxu0 %v7441_v22  ;;  %v7495_v58 = vld [vmem:[%s10225_s0 + $0x74] ss:$784 sps:$4 sm:$0xff]   ;;  %v7498_v59 = vld [vmem:[%s10225_s0 + $0x7c] ss:$784 sps:$4 sm:$0xff]   ;;  %v7493_v60 = vld [vmem:[%s10225_s0 + $0x70] ss:$784 sps:$4 sm:$0xff]  }
  0x15   :  { %2579 = vmatprep.subr.bf16.mxu1 %v7444_v23  ;;  %2568 = vmatprep.mubr.bf16.mxu0 %v10229_v1  ;;  %v7496_v61 = vld [vmem:[%s10225_s0 + $0x78] ss:$784 sps:$4 sm:$0xff]   ;;  %v7501_v62 = vld [vmem:[%s10225_s0 + $0x694] ss:$784 sps:$4 sm:$0xff]   ;;  %v7504_v63 = vld [vmem:[%s10225_s0 + $0x69c] ss:$784 sps:$4 sm:$0xff]  }
  0x16   :  { %2609 = vmatprep.mubr.bf16.mxu1 %v10229_v1  ;;  %v7499_v0 = vld [vmem:[%s10225_s0 + $0x690] ss:$784 sps:$4 sm:$0xff]   ;;  %v7502_v2 = vld [vmem:[%s10225_s0 + $0x698] ss:$784 sps:$4 sm:$0xff]   ;;  %v7507_v3 = vld [vmem:[%s10225_s0 + $0x84] ss:$784 sps:$4 sm:$0xff]  }
  0x17   :  { %2539 = vmatpush1.bf16.msra.mxu0 %v7439_v24  ;;  %v7510_v4 = vld [vmem:[%s10225_s0 + $0x8c] ss:$784 sps:$4 sm:$0xff]   ;;  %v7505_v5 = vld [vmem:[%s10225_s0 + $0x80] ss:$784 sps:$4 sm:$0xff]   ;;  %v7508_v6 = vld [vmem:[%s10225_s0 + $0x88] ss:$784 sps:$4 sm:$0xff]  }
  0x18   :  { %2580 = vmatpush1.bf16.msra.mxu1 %v7442_v25  ;;  %2618 = vmatprep.subr.bf16.mxu0 %v7447_v26  ;;  %v7513_v7 = vld [vmem:[%s10225_s0 + $0x6a4] ss:$784 sps:$4 sm:$0xff]   ;;  %v7516_v8 = vld [vmem:[%s10225_s0 + $0x6ac] ss:$784 sps:$4 sm:$0xff]   ;;  %v7511_v10 = vld [vmem:[%s10225_s0 + $0x6a0] ss:$784 sps:$4 sm:$0xff]  }
  0x19   :  { %2659 = vmatprep.subr.bf16.mxu1 %v7450_v27  ;;  %v7514_v11 = vld [vmem:[%s10225_s0 + $0x6a8] ss:$784 sps:$4 sm:$0xff]   ;;  %v7519_v12 = vld [vmem:[%s10225_s0 + $0x94] ss:$784 sps:$4 sm:$0xff]   ;;  %v7522_v13 = vld [vmem:[%s10225_s0 + $0x9c] ss:$784 sps:$4 sm:$0xff]  }
  0x1a   :  { %7263 = vmatmul.mubr.msk.bf16.vlgmr.msra.gmra.mrb[8].mxu0 %vm2368_vm0, %v8051_v9  ;;  %v7517_v14 = vld [vmem:[%s10225_s0 + $0x90] ss:$784 sps:$4 sm:$0xff]   ;;  %v7520_v15 = vld [vmem:[%s10225_s0 + $0x98] ss:$784 sps:$4 sm:$0xff]   ;;  %v7525_v16 = vld [vmem:[%s10225_s0 + $0x6b4] ss:$784 sps:$4 sm:$0xff]  }
  0x1b   :  { %7264 = vmatmul.mubr.msk.bf16.vlgmr.msra.gmra.mrb[8].mxu1 %vm2368_vm0, %v8051_v9  ;;  %2619 = vmatpush1.bf16.msra.mxu0 %v7445_v28  ;;  %v7528_v17 = vld [vmem:[%s10225_s0 + $0x6bc] ss:$784 sps:$4 sm:$0xff]   ;;  %v7523_v18 = vld [vmem:[%s10225_s0 + $0x6b0] ss:$784 sps:$4 sm:$0xff]   ;;  %v7526_v19 = vld [vmem:[%s10225_s0 + $0x6b8] ss:$784 sps:$4 sm:$0xff]  }
  0x1c   :  { %2660 = vmatpush1.bf16.msra.mxu1 %v7448_v29  ;;  %2620 = vmatprep.subr.bf16.mxu0 %v7453_v30  ;;  %v7531_v20 = vld [vmem:[%s10225_s0 + $0xa4] ss:$784 sps:$4 sm:$0xff]   ;;  %v7534_v21 = vld [vmem:[%s10225_s0 + $0xac] ss:$784 sps:$4 sm:$0xff]   ;;  %v7529_v22 = vld [vmem:[%s10225_s0 + $0xa0] ss:$784 sps:$4 sm:$0xff]  }
  0x1d   :  { %2661 = vmatprep.subr.bf16.mxu1 %v7456_v31  ;;  %2650 = vmatprep.mubr.bf16.mxu0 %v10229_v1  ;;  %v7532_v23 = vld [vmem:[%s10225_s0 + $0xa8] ss:$784 sps:$4 sm:$0xff]   ;;  %v7537_v24 = vld [vmem:[%s10225_s0 + $0x6c4] ss:$784 sps:$4 sm:$0xff]   ;;  %v7540_v25 = vld [vmem:[%s10225_s0 + $0x6cc] ss:$784 sps:$4 sm:$0xff]  }
  0x1e   :  { %2691 = vmatprep.mubr.bf16.mxu1 %v10229_v1  ;;  %v7535_v26 = vld [vmem:[%s10225_s0 + $0x6c0] ss:$784 sps:$4 sm:$0xff]   ;;  %v7538_v27 = vld [vmem:[%s10225_s0 + $0x6c8] ss:$784 sps:$4 sm:$0xff]   ;;  %v7543_v28 = vld [vmem:[%s10225_s0 + $0xb4] ss:$784 sps:$4 sm:$0xff]  }
  0x1f   :  { %2621 = vmatpush1.bf16.msra.mxu0 %v7451_v32  ;;  %v7546_v29 = vld [vmem:[%s10225_s0 + $0xbc] ss:$784 sps:$4 sm:$0xff]   ;;  %v7541_v30 = vld [vmem:[%s10225_s0 + $0xb0] ss:$784 sps:$4 sm:$0xff]   ;;  %v7544_v31 = vld [vmem:[%s10225_s0 + $0xb8] ss:$784 sps:$4 sm:$0xff]  }
  0x20   :  { %2662 = vmatpush1.bf16.msra.mxu1 %v7454_v33  ;;  %2700 = vmatprep.subr.bf16.mxu0 %v7459_v34  ;;  %v7549_v32 = vld [vmem:[%s10225_s0 + $0x6d4] ss:$784 sps:$4 sm:$0xff]   ;;  %v7552_v33 = vld [vmem:[%s10225_s0 + $0x6dc] ss:$784 sps:$4 sm:$0xff]   ;;  %v7547_v34 = vld [vmem:[%s10225_s0 + $0x6d0] ss:$784 sps:$4 sm:$0xff]  }
  0x21   :  { %2741 = vmatprep.subr.bf16.mxu1 %v7462_v35  ;;  %v7550_v35 = vld [vmem:[%s10225_s0 + $0x6d8] ss:$784 sps:$4 sm:$0xff]  }
  0x22   :  { %7265 = vmatmul.mubr.msk.bf16.vlgmr.msra.gmra.mrb[12].mxu0 %vm2368_vm0, %v8051_v9 }
  0x23   :  { %7266 = vmatmul.mubr.msk.bf16.vlgmr.msra.gmra.mrb[12].mxu1 %vm2368_vm0, %v8051_v9  ;;  %2701 = vmatpush1.bf16.msra.mxu0 %v7457_v36  ;;  %v7555_v36 = vld [vmem:[%s10225_s0 + $0xc4] ss:$784 sps:$4 sm:$0xff]  }
  0x24   :  { %2742 = vmatpush1.bf16.msra.mxu1 %v7460_v37  ;;  %2702 = vmatprep.subr.bf16.mxu0 %v7465_v38  ;;  %v7558_v37 = vld [vmem:[%s10225_s0 + $0xcc] ss:$784 sps:$4 sm:$0xff]   ;;  %v7553_v38 = vld [vmem:[%s10225_s0 + $0xc0] ss:$784 sps:$4 sm:$0xff]  }
  0x25   :  { %2743 = vmatprep.subr.bf16.mxu1 %v7468_v39  ;;  %2732 = vmatprep.mubr.bf16.mxu0 %v10229_v1  ;;  %v7556_v39 = vld [vmem:[%s10225_s0 + $0xc8] ss:$784 sps:$4 sm:$0xff]  }
  0x26   :  { %2773 = vmatprep.mubr.bf16.mxu1 %v10229_v1 }
  0x27   :  { %2703 = vmatpush1.bf16.msra.mxu0 %v7463_v40  ;;  %v7561_v40 = vld [vmem:[%s10225_s0 + $0x6e4] ss:$784 sps:$4 sm:$0xff]  }
  0x28   :  { %2744 = vmatpush1.bf16.msra.mxu1 %v7466_v41  ;;  %2782 = vmatprep.subr.bf16.mxu0 %v7471_v42  ;;  %v7564_v41 = vld [vmem:[%s10225_s0 + $0x6ec] ss:$784 sps:$4 sm:$0xff]   ;;  %v7559_v42 = vld [vmem:[%s10225_s0 + $0x6e0] ss:$784 sps:$4 sm:$0xff]  }
  0x29   :  { %2823 = vmatprep.subr.bf16.mxu1 %v7474_v43  ;;  %v7562_v43 = vld [vmem:[%s10225_s0 + $0x6e8] ss:$784 sps:$4 sm:$0xff]  }
  0x2a   :  { %7267 = vmatmul.mubr.msk.bf16.vlgmr.msra.gmra.mrb[16].mxu0 %vm2368_vm0, %v8051_v9 }
  0x2b   :  { %7268 = vmatmul.mubr.msk.bf16.vlgmr.msra.gmra.mrb[16].mxu1 %vm2368_vm0, %v8051_v9  ;;  %2783 = vmatpush1.bf16.msra.mxu0 %v7469_v44  ;;  %v7567_v44 = vld [vmem:[%s10225_s0 + $0xd4] ss:$784 sps:$4 sm:$0xff]  }
  0x2c   :  { %2824 = vmatpush1.bf16.msra.mxu1 %v7472_v45  ;;  %2784 = vmatprep.subr.bf16.mxu0 %v7477_v46  ;;  %v7570_v45 = vld [vmem:[%s10225_s0 + $0xdc] ss:$784 sps:$4 sm:$0xff]   ;;  %v7565_v46 = vld [vmem:[%s10225_s0 + $0xd0] ss:$784 sps:$4 sm:$0xff]  }
  0x2d   :  { %2825 = vmatprep.subr.bf16.mxu1 %v7480_v47  ;;  %2814 = vmatprep.mubr.bf16.mxu0 %v10229_v1  ;;  %v7568_v47 = vld [vmem:[%s10225_s0 + $0xd8] ss:$784 sps:$4 sm:$0xff]  }
  0x2e   :  { %2855 = vmatprep.mubr.bf16.mxu1 %v10229_v1 }
  0x2f   :  { %2785 = vmatpush1.bf16.msra.mxu0 %v7475_v48  ;;  %v7573_v48 = vld [vmem:[%s10225_s0 + $0x6f4] ss:$784 sps:$4 sm:$0xff]  }
  0x30   :  { %2826 = vmatpush1.bf16.msra.mxu1 %v7478_v49  ;;  %2864 = vmatprep.subr.bf16.mxu0 %v7483_v50  ;;  %v7576_v49 = vld [vmem:[%s10225_s0 + $0x6fc] ss:$784 sps:$4 sm:$0xff]   ;;  %v7571_v50 = vld [vmem:[%s10225_s0 + $0x6f0] ss:$784 sps:$4 sm:$0xff]  }
  0x31   :  { %2905 = vmatprep.subr.bf16.mxu1 %v7486_v51  ;;  %v7574_v51 = vld [vmem:[%s10225_s0 + $0x6f8] ss:$784 sps:$4 sm:$0xff]  }
  0x32   :  { %7269 = vmatmul.mubr.msk.bf16.vlgmr.msra.gmra.mrb[20].mxu0 %vm2368_vm0, %v8051_v9 }
  0x33   :  { %7270 = vmatmul.mubr.msk.bf16.vlgmr.msra.gmra.mrb[20].mxu1 %vm2368_vm0, %v8051_v9  ;;  %2865 = vmatpush1.bf16.msra.mxu0 %v7481_v52  ;;  %v7579_v52 = vld [vmem:[%s10225_s0 + $0xe4] ss:$784 sps:$4 sm:$0xff]  }
  0x34   :  { %2906 = vmatpush1.bf16.msra.mxu1 %v7484_v53  ;;  %2866 = vmatprep.subr.bf16.mxu0 %v7489_v54  ;;  %v7582_v53 = vld [vmem:[%s10225_s0 + $0xec] ss:$784 sps:$4 sm:$0xff]   ;;  %v7577_v54 = vld [vmem:[%s10225_s0 + $0xe0] ss:$784 sps:$4 sm:$0xff]  }
  0x35   :  { %2907 = vmatprep.subr.bf16.mxu1 %v7492_v55  ;;  %2896 = vmatprep.mubr.bf16.mxu0 %v10229_v1  ;;  %v7580_v55 = vld [vmem:[%s10225_s0 + $0xe8] ss:$784 sps:$4 sm:$0xff]  }
  0x36   :  { %2937 = vmatprep.mubr.bf16.mxu1 %v10229_v1 }
  0x37   :  { %2867 = vmatpush1.bf16.msra.mxu0 %v7487_v56  ;;  %v7585_v56 = vld [vmem:[%s10225_s0 + $0x704] ss:$784 sps:$4 sm:$0xff]  }
  0x38   :  { %2908 = vmatpush1.bf16.msra.mxu1 %v7490_v57  ;;  %2946 = vmatprep.subr.bf16.mxu0 %v7495_v58  ;;  %v7588_v57 = vld [vmem:[%s10225_s0 + $0x70c] ss:$784 sps:$4 sm:$0xff]   ;;  %v7583_v58 = vld [vmem:[%s10225_s0 + $0x700] ss:$784 sps:$4 sm:$0xff]  }
  0x39   :  { %2987 = vmatprep.subr.bf16.mxu1 %v7498_v59  ;;  %v7586_v59 = vld [vmem:[%s10225_s0 + $0x708] ss:$784 sps:$4 sm:$0xff]  }
  0x3a   :  { %7271 = vmatmul.mubr.msk.bf16.vlgmr.msra.gmra.mrb[24].mxu0 %vm2368_vm0, %v8051_v9 }
  0x3b   :  { %7272 = vmatmul.mubr.msk.bf16.vlgmr.msra.gmra.mrb[24].mxu1 %vm2368_vm0, %v8051_v9  ;;  %2947 = vmatpush1.bf16.msra.mxu0 %v7493_v60  ;;  %v7591_v60 = vld [vmem:[%s10225_s0 + $0xf4] ss:$784 sps:$4 sm:$0xff]  }
  0x3c   :  { %2988 = vmatpush1.bf16.msra.mxu1 %v7496_v61  ;;  %2948 = vmatprep.subr.bf16.mxu0 %v7501_v62  ;;  %v7594_v61 = vld [vmem:[%s10225_s0 + $0xfc] ss:$784 sps:$4 sm:$0xff]   ;;  %v7589_v62 = vld [vmem:[%s10225_s0 + $0xf0] ss:$784 sps:$4 sm:$0xff]  }
  0x3d   :  { %2989 = vmatprep.subr.bf16.mxu1 %v7504_v63  ;;  %2978 = vmatprep.mubr.bf16.mxu0 %v10229_v1  ;;  %v7592_v63 = vld [vmem:[%s10225_s0 + $0xf8] ss:$784 sps:$4 sm:$0xff]  }
  0x3e   :  { %3019 = vmatprep.mubr.bf16.mxu1 %v10229_v1 }
  0x3f   :  { %2949 = vmatpush1.bf16.msra.mxu0 %v7499_v0  ;;  %v7597_v0 = vld [vmem:[%s10225_s0 + $0x714] ss:$784 sps:$4 sm:$0xff]  }
  0x40   :  { %2990 = vmatpush1.bf16.msra.mxu1 %v7502_v2  ;;  %3028 = vmatprep.subr.bf16.mxu0 %v7507_v3  ;;  %v7600_v2 = vld [vmem:[%s10225_s0 + $0x71c] ss:$784 sps:$4 sm:$0xff]   ;;  %v7595_v3 = vld [vmem:[%s10225_s0 + $0x710] ss:$784 sps:$4 sm:$0xff]  }
  0x41   :  { %3069 = vmatprep.subr.bf16.mxu1 %v7510_v4  ;;  %v7598_v4 = vld [vmem:[%s10225_s0 + $0x718] ss:$784 sps:$4 sm:$0xff]  }
  0x42   :  { %7273 = vmatmul.mubr.msk.bf16.vlgmr.msra.gmra.mrb[28].mxu0 %vm2368_vm0, %v8051_v9 }
  0x43   :  { %7274 = vmatmul.mubr.msk.bf16.vlgmr.msra.gmra.mrb[28].mxu1 %vm2368_vm0, %v8051_v9  ;;  %3029 = vmatpush1.bf16.msra.mxu0 %v7505_v5  ;;  %v7603_v5 = vld [vmem:[%s10225_s0 + $0x104] ss:$784 sps:$4 sm:$0xff]  }
  0x44   :  { %3070 = vmatpush1.bf16.msra.mxu1 %v7508_v6  ;;  %3030 = vmatprep.subr.bf16.mxu0 %v7513_v7  ;;  %v7606_v6 = vld [vmem:[%s10225_s0 + $0x10c] ss:$784 sps:$4 sm:$0xff]   ;;  %v7601_v7 = vld [vmem:[%s10225_s0 + $0x100] ss:$784 sps:$4 sm:$0xff]  }
  0x45   :  { %3071 = vmatprep.subr.bf16.mxu1 %v7516_v8  ;;  %3060 = vmatprep.mubr.bf16.mxu0 %v10229_v1  ;;  %v7604_v8 = vld [vmem:[%s10225_s0 + $0x108] ss:$784 sps:$4 sm:$0xff]  }
  0x46   :  { %3101 = vmatprep.mubr.bf16.mxu1 %v10229_v1 }
  0x47   :  { %3031 = vmatpush1.bf16.msra.mxu0 %v7511_v10  ;;  %v7609_v10 = vld [vmem:[%s10225_s0 + $0x724] ss:$784 sps:$4 sm:$0xff]  }
  0x48   :  { %3072 = vmatpush1.bf16.msra.mxu1 %v7514_v11  ;;  %3110 = vmatprep.subr.bf16.mxu0 %v7519_v12  ;;  %v7612_v11 = vld [vmem:[%s10225_s0 + $0x72c] ss:$784 sps:$4 sm:$0xff]   ;;  %v7607_v12 = vld [vmem:[%s10225_s0 + $0x720] ss:$784 sps:$4 sm:$0xff]  }
  0x49   :  { %3151 = vmatprep.subr.bf16.mxu1 %v7522_v13  ;;  %v7610_v13 = vld [vmem:[%s10225_s0 + $0x728] ss:$784 sps:$4 sm:$0xff]  }
  0x4a   :  { %7275 = vmatmul.mubr.msk.bf16.vlgmr.msra.gmra.mrb[32].mxu0 %vm2368_vm0, %v8051_v9 }
  0x4b   :  { %7276 = vmatmul.mubr.msk.bf16.vlgmr.msra.gmra.mrb[32].mxu1 %vm2368_vm0, %v8051_v9  ;;  %3111 = vmatpush1.bf16.msra.mxu0 %v7517_v14  ;;  %v7615_v14 = vld [vmem:[%s10225_s0 + $0x114] ss:$784 sps:$4 sm:$0xff]  }
  0x4c   :  { %3152 = vmatpush1.bf16.msra.mxu1 %v7520_v15  ;;  %3112 = vmatprep.subr.bf16.mxu0 %v7525_v16  ;;  %v7613_v15 = vld [vmem:[%s10225_s0 + $0x110] ss:$784 sps:$4 sm:$0xff]   ;;  %v7616_v16 = vld [vmem:[%s10225_s0 + $0x118] ss:$784 sps:$4 sm:$0xff]  }
  0x4d   :  { %3153 = vmatprep.subr.bf16.mxu1 %v7528_v17  ;;  %3142 = vmatprep.mubr.bf16.mxu0 %v10229_v1  ;;  %v7621_v17 = vld [vmem:[%s10225_s0 + $0x734] ss:$784 sps:$4 sm:$0xff]  }
  0x4e   :  { %3183 = vmatprep.mubr.bf16.mxu1 %v10229_v1 }
  0x4f   :  { %3113 = vmatpush1.bf16.msra.mxu0 %v7523_v18  ;;  %v7624_v18 = vld [vmem:[%s10225_s0 + $0x73c] ss:$784 sps:$4 sm:$0xff]  }
  0x50   :  { %3154 = vmatpush1.bf16.msra.mxu1 %v7526_v19  ;;  %3192 = vmatprep.subr.bf16.mxu0 %v7531_v20  ;;  %v8554_v19 = vld [vmem:[%s10226_s1] sm:$0x7] }
  0x51   :  { %3233 = vmatprep.subr.bf16.mxu1 %v7534_v21  ;;  %v7619_v20 = vld [vmem:[%s10225_s0 + $0x730] ss:$784 sps:$4 sm:$0xff]   ;;  %v7622_v21 = vld [vmem:[%s10225_s0 + $0x738] ss:$784 sps:$4 sm:$0xff]  }
  0x52   :  { %7277 = vmatmul.mubr.msk.bf16.vlgmr.msra.gmra.mrb[36].mxu0 %vm2368_vm0, %v8051_v9 }
  0x53   :  { %7278 = vmatmul.mubr.msk.bf16.vlgmr.msra.gmra.mrb[36].mxu1 %vm2368_vm0, %v8051_v9  ;;  %3193 = vmatpush1.bf16.msra.mxu0 %v7529_v22  ;;  %v7627_v22 = vld [vmem:[%s10225_s0 + $0x124] ss:$784 sps:$4 sm:$0xff]  }
  0x54   :  { %3234 = vmatpush1.bf16.msra.mxu1 %v7532_v23  ;;  %3194 = vmatprep.subr.bf16.mxu0 %v7537_v24  ;;  %v7630_v23 = vld [vmem:[%s10225_s0 + $0x12c] ss:$784 sps:$4 sm:$0xff]   ;;  %v7625_v24 = vld [vmem:[%s10225_s0 + $0x120] ss:$784 sps:$4 sm:$0xff]  }
  0x55   :  { %3235 = vmatprep.subr.bf16.mxu1 %v7540_v25  ;;  %3224 = vmatprep.mubr.bf16.mxu0 %v10229_v1  ;;  %v7628_v25 = vld [vmem:[%s10225_s0 + $0x128] ss:$784 sps:$4 sm:$0xff]  }
  0x56   :  { %3265 = vmatprep.mubr.bf16.mxu1 %v10229_v1 }
  0x57   :  { %3195 = vmatpush1.bf16.msra.mxu0 %v7535_v26  ;;  %v7633_v26 = vld [vmem:[%s10225_s0 + $0x744] ss:$784 sps:$4 sm:$0xff]  }
  0x58   :  { %3236 = vmatpush1.bf16.msra.mxu1 %v7538_v27  ;;  %3274 = vmatprep.subr.bf16.mxu0 %v7543_v28  ;;  %v7636_v27 = vld [vmem:[%s10225_s0 + $0x74c] ss:$784 sps:$4 sm:$0xff]   ;;  %v7631_v28 = vld [vmem:[%s10225_s0 + $0x740] ss:$784 sps:$4 sm:$0xff]  }
  0x59   :  { %3315 = vmatprep.subr.bf16.mxu1 %v7546_v29  ;;  %v7634_v29 = vld [vmem:[%s10225_s0 + $0x748] ss:$784 sps:$4 sm:$0xff]  }
  0x5a   :  { %7279 = vmatmul.mubr.msk.bf16.vlgmr.msra.gmra.mrb[40].mxu0 %vm2368_vm0, %v8051_v9 }
  0x5b   :  { %7280 = vmatmul.mubr.msk.bf16.vlgmr.msra.gmra.mrb[40].mxu1 %vm2368_vm0, %v8051_v9  ;;  %3275 = vmatpush1.bf16.msra.mxu0 %v7541_v30  ;;  %v7639_v30 = vld [vmem:[%s10225_s0 + $0x134] ss:$784 sps:$4 sm:$0xff]  }
  0x5c   :  { %3316 = vmatpush1.bf16.msra.mxu1 %v7544_v31  ;;  %3276 = vmatprep.subr.bf16.mxu0 %v7549_v32  ;;  %v7642_v31 = vld [vmem:[%s10225_s0 + $0x13c] ss:$784 sps:$4 sm:$0xff]   ;;  %v7637_v32 = vld [vmem:[%s10225_s0 + $0x130] ss:$784 sps:$4 sm:$0xff]  }
  0x5d   :  { %3317 = vmatprep.subr.bf16.mxu1 %v7552_v33  ;;  %3306 = vmatprep.mubr.bf16.mxu0 %v10229_v1  ;;  %v7640_v33 = vld [vmem:[%s10225_s0 + $0x138] ss:$784 sps:$4 sm:$0xff]  }
  0x5e   :  { %3347 = vmatprep.mubr.bf16.mxu1 %v10229_v1 }
  0x5f   :  { %3277 = vmatpush1.bf16.msra.mxu0 %v7547_v34  ;;  %v7645_v34 = vld [vmem:[%s10225_s0 + $0x754] ss:$784 sps:$4 sm:$0xff]  }
  0x60   :  { %3318 = vmatpush1.bf16.msra.mxu1 %v7550_v35  ;;  %3356 = vmatprep.subr.bf16.mxu0 %v7555_v36  ;;  %v7648_v35 = vld [vmem:[%s10225_s0 + $0x75c] ss:$784 sps:$4 sm:$0xff]   ;;  %v7643_v36 = vld [vmem:[%s10225_s0 + $0x750] ss:$784 sps:$4 sm:$0xff]  }
  0x61   :  { %3397 = vmatprep.subr.bf16.mxu1 %v7558_v37  ;;  %v7646_v37 = vld [vmem:[%s10225_s0 + $0x758] ss:$784 sps:$4 sm:$0xff]  }
  0x62   :  { %7281 = vmatmul.mubr.msk.bf16.vlgmr.msra.gmra.mrb[44].mxu0 %vm2368_vm0, %v8051_v9 }
  0x63   :  { %7282 = vmatmul.mubr.msk.bf16.vlgmr.msra.gmra.mrb[44].mxu1 %vm2368_vm0, %v8051_v9  ;;  %3357 = vmatpush1.bf16.msra.mxu0 %v7553_v38  ;;  %v7651_v38 = vld [vmem:[%s10225_s0 + $0x144] ss:$784 sps:$4 sm:$0xff]  }
  0x64   :  { %3398 = vmatpush1.bf16.msra.mxu1 %v7556_v39  ;;  %3358 = vmatprep.subr.bf16.mxu0 %v7561_v40  ;;  %v7654_v39 = vld [vmem:[%s10225_s0 + $0x14c] ss:$784 sps:$4 sm:$0xff]   ;;  %v7649_v40 = vld [vmem:[%s10225_s0 + $0x140] ss:$784 sps:$4 sm:$0xff]  }
  0x65   :  { %3399 = vmatprep.subr.bf16.mxu1 %v7564_v41  ;;  %3388 = vmatprep.mubr.bf16.mxu0 %v10229_v1  ;;  %v7652_v41 = vld [vmem:[%s10225_s0 + $0x148] ss:$784 sps:$4 sm:$0xff]  }
  0x66   :  { %3429 = vmatprep.mubr.bf16.mxu1 %v10229_v1 }
  0x67   :  { %3359 = vmatpush1.bf16.msra.mxu0 %v7559_v42  ;;  %v7657_v42 = vld [vmem:[%s10225_s0 + $0x764] ss:$784 sps:$4 sm:$0xff]  }
  0x68   :  { %3400 = vmatpush1.bf16.msra.mxu1 %v7562_v43  ;;  %3438 = vmatprep.subr.bf16.mxu0 %v7567_v44  ;;  %v7660_v43 = vld [vmem:[%s10225_s0 + $0x76c] ss:$784 sps:$4 sm:$0xff]   ;;  %v7655_v44 = vld [vmem:[%s10225_s0 + $0x760] ss:$784 sps:$4 sm:$0xff]  }
  0x69   :  { %3479 = vmatprep.subr.bf16.mxu1 %v7570_v45  ;;  %v7658_v45 = vld [vmem:[%s10225_s0 + $0x768] ss:$784 sps:$4 sm:$0xff]  }
  0x6a   :  { %7283 = vmatmul.mubr.msk.bf16.vlgmr.msra.gmra.mrb[48].mxu0 %vm2368_vm0, %v8051_v9 }
  0x6b   :  { %7284 = vmatmul.mubr.msk.bf16.vlgmr.msra.gmra.mrb[48].mxu1 %vm2368_vm0, %v8051_v9  ;;  %3439 = vmatpush1.bf16.msra.mxu0 %v7565_v46  ;;  %v7663_v46 = vld [vmem:[%s10225_s0 + $0x154] ss:$784 sps:$4 sm:$0xff]  }
  0x6c   :  { %3480 = vmatpush1.bf16.msra.mxu1 %v7568_v47  ;;  %3440 = vmatprep.subr.bf16.mxu0 %v7573_v48  ;;  %v7666_v47 = vld [vmem:[%s10225_s0 + $0x15c] ss:$784 sps:$4 sm:$0xff]   ;;  %v7661_v48 = vld [vmem:[%s10225_s0 + $0x150] ss:$784 sps:$4 sm:$0xff]  }
  0x6d   :  { %3481 = vmatprep.subr.bf16.mxu1 %v7576_v49  ;;  %3470 = vmatprep.mubr.bf16.mxu0 %v10229_v1  ;;  %v7664_v49 = vld [vmem:[%s10225_s0 + $0x158] ss:$784 sps:$4 sm:$0xff]  }
  0x6e   :  { %3511 = vmatprep.mubr.bf16.mxu1 %v10229_v1 }
  0x6f   :  { %3441 = vmatpush1.bf16.msra.mxu0 %v7571_v50  ;;  %v7669_v50 = vld [vmem:[%s10225_s0 + $0x774] ss:$784 sps:$4 sm:$0xff]  }
  0x70   :  { %3482 = vmatpush1.bf16.msra.mxu1 %v7574_v51  ;;  %3520 = vmatprep.subr.bf16.mxu0 %v7579_v52  ;;  %v7672_v51 = vld [vmem:[%s10225_s0 + $0x77c] ss:$784 sps:$4 sm:$0xff]   ;;  %v7667_v52 = vld [vmem:[%s10225_s0 + $0x770] ss:$784 sps:$4 sm:$0xff]  }
  0x71   :  { %3561 = vmatprep.subr.bf16.mxu1 %v7582_v53  ;;  %v7670_v53 = vld [vmem:[%s10225_s0 + $0x778] ss:$784 sps:$4 sm:$0xff]  }
  0x72   :  { %7285 = vmatmul.mubr.msk.bf16.vlgmr.msra.gmra.mrb[52].mxu0 %vm2368_vm0, %v8051_v9 }
  0x73   :  { %7286 = vmatmul.mubr.msk.bf16.vlgmr.msra.gmra.mrb[52].mxu1 %vm2368_vm0, %v8051_v9  ;;  %3521 = vmatpush1.bf16.msra.mxu0 %v7577_v54  ;;  %v7675_v54 = vld [vmem:[%s10225_s0 + $0x164] ss:$784 sps:$4 sm:$0xff]  }
  0x74   :  { %3562 = vmatpush1.bf16.msra.mxu1 %v7580_v55  ;;  %3522 = vmatprep.subr.bf16.mxu0 %v7585_v56  ;;  %v7678_v55 = vld [vmem:[%s10225_s0 + $0x16c] ss:$784 sps:$4 sm:$0xff]   ;;  %v7673_v56 = vld [vmem:[%s10225_s0 + $0x160] ss:$784 sps:$4 sm:$0xff]  }
  0x75   :  { %3563 = vmatprep.subr.bf16.mxu1 %v7588_v57  ;;  %3552 = vmatprep.mubr.bf16.mxu0 %v10229_v1  ;;  %v7676_v57 = vld [vmem:[%s10225_s0 + $0x168] ss:$784 sps:$4 sm:$0xff]  }
  0x76   :  { %3593 = vmatprep.mubr.bf16.mxu1 %v10229_v1 }
  0x77   :  { %3523 = vmatpush1.bf16.msra.mxu0 %v7583_v58  ;;  %v7681_v58 = vld [vmem:[%s10225_s0 + $0x784] ss:$784 sps:$4 sm:$0xff]  }
  0x78   :  { %3564 = vmatpush1.bf16.msra.mxu1 %v7586_v59  ;;  %3602 = vmatprep.subr.bf16.mxu0 %v7591_v60  ;;  %v7684_v59 = vld [vmem:[%s10225_s0 + $0x78c] ss:$784 sps:$4 sm:$0xff]   ;;  %v7679_v60 = vld [vmem:[%s10225_s0 + $0x780] ss:$784 sps:$4 sm:$0xff]  }
  0x79   :  { %3643 = vmatprep.subr.bf16.mxu1 %v7594_v61  ;;  %v7682_v61 = vld [vmem:[%s10225_s0 + $0x788] ss:$784 sps:$4 sm:$0xff]  }
  0x7a   :  { %7287 = vmatmul.mubr.msk.bf16.vlgmr.msra.gmra.mrb[56].mxu0 %vm2368_vm0, %v8051_v9 }
  0x7b   :  { %7288 = vmatmul.mubr.msk.bf16.vlgmr.msra.gmra.mrb[56].mxu1 %vm2368_vm0, %v8051_v9  ;;  %3603 = vmatpush1.bf16.msra.mxu0 %v7589_v62  ;;  %v7687_v62 = vld [vmem:[%s10225_s0 + $0x174] ss:$784 sps:$4 sm:$0xff]  }
  0x7c   :  { %3644 = vmatpush1.bf16.msra.mxu1 %v7592_v63  ;;  %3604 = vmatprep.subr.bf16.mxu0 %v7597_v0  ;;  %v7690_v63 = vld [vmem:[%s10225_s0 + $0x17c] ss:$784 sps:$4 sm:$0xff]   ;;  %v7685_v0 = vld [vmem:[%s10225_s0 + $0x170] ss:$784 sps:$4 sm:$0xff]  }
  0x7d   :  { %3645 = vmatprep.subr.bf16.mxu1 %v7600_v2  ;;  %3634 = vmatprep.mubr.bf16.mxu0 %v10229_v1  ;;  %v7688_v2 = vld [vmem:[%s10225_s0 + $0x178] ss:$784 sps:$4 sm:$0xff]  }
  0x7e   :  { %3675 = vmatprep.mubr.bf16.mxu1 %v10229_v1 }
  0x7f   :  { %3605 = vmatpush1.bf16.msra.mxu0 %v7595_v3  ;;  %v7693_v3 = vld [vmem:[%s10225_s0 + $0x794] ss:$784 sps:$4 sm:$0xff]  }
  0x80   :  { %3646 = vmatpush1.bf16.msra.mxu1 %v7598_v4  ;;  %3684 = vmatprep.subr.bf16.mxu0 %v7603_v5  ;;  %v7696_v4 = vld [vmem:[%s10225_s0 + $0x79c] ss:$784 sps:$4 sm:$0xff]   ;;  %v7691_v5 = vld [vmem:[%s10225_s0 + $0x790] ss:$784 sps:$4 sm:$0xff]  }
  0x81   :  { %3725 = vmatprep.subr.bf16.mxu1 %v7606_v6  ;;  %v7694_v6 = vld [vmem:[%s10225_s0 + $0x798] ss:$784 sps:$4 sm:$0xff]  }
  0x82   :  { %7289 = vmatmul.mubr.msk.bf16.vlgmr.msra.gmra.mrb[60].mxu0 %vm2368_vm0, %v8051_v9 }
  0x83   :  { %7290 = vmatmul.mubr.msk.bf16.vlgmr.msra.gmra.mrb[60].mxu1 %vm2368_vm0, %v8051_v9  ;;  %3685 = vmatpush1.bf16.msra.mxu0 %v7601_v7  ;;  %v7618_v9 = vld [vmem:[%s10225_s0 + $0x11c] ss:$784 sps:$4 sm:$0xff]   ;;  %v7699_v7 = vld [vmem:[%s10225_s0 + $0x184] ss:$784 sps:$4 sm:$0xff]  }
  0x84   :  { %3726 = vmatpush1.bf16.msra.mxu1 %v7604_v8  ;;  %3686 = vmatprep.subr.bf16.mxu0 %v7609_v10  ;;  %v7702_v8 = vld [vmem:[%s10225_s0 + $0x18c] ss:$784 sps:$4 sm:$0xff]   ;;  %v7697_v10 = vld [vmem:[%s10225_s0 + $0x180] ss:$784 sps:$4 sm:$0xff]  }
  0x85   :  { %3727 = vmatprep.subr.bf16.mxu1 %v7612_v11  ;;  %3716 = vmatprep.mubr.bf16.mxu0 %v10229_v1  ;;  %v7700_v11 = vld [vmem:[%s10225_s0 + $0x188] ss:$784 sps:$4 sm:$0xff]  }
  0x86   :  { %3757 = vmatprep.mubr.bf16.mxu1 %v10229_v1 }
  0x87   :  { %3687 = vmatpush1.bf16.msra.mxu0 %v7607_v12  ;;  %v7705_v12 = vld [vmem:[%s10225_s0 + $0x7a4] ss:$784 sps:$4 sm:$0xff]  }
  0x88   :  { %3728 = vmatpush1.bf16.msra.mxu1 %v7610_v13  ;;  %3766 = vmatprep.subr.bf16.mxu0 %v7615_v14  ;;  %v7708_v13 = vld [vmem:[%s10225_s0 + $0x7ac] ss:$784 sps:$4 sm:$0xff]   ;;  %v7703_v14 = vld [vmem:[%s10225_s0 + $0x7a0] ss:$784 sps:$4 sm:$0xff]  }
  0x89   :  { %3807 = vmatprep.subr.bf16.mxu1 %v7618_v9  ;;  %v7706_v9 = vld [vmem:[%s10225_s0 + $0x7a8] ss:$784 sps:$4 sm:$0xff]  }
  0x8a   :  { %7291 = vmatmul.mubr.msk.bf16.vlgmr.msra.gmra.mrb[64].mxu0 %vm2368_vm0, %v8554_v19 }
  0x8b   :  { %7292 = vmatmul.mubr.msk.bf16.vlgmr.msra.gmra.mrb[64].mxu1 %vm2368_vm0, %v8554_v19  ;;  %3767 = vmatpush1.bf16.msra.mxu0 %v7613_v15  ;;  %v7711_v15 = vld [vmem:[%s10225_s0 + $0x194] ss:$784 sps:$4 sm:$0xff]  }
  0x8c   :  { %3808 = vmatpush1.bf16.msra.mxu1 %v7616_v16  ;;  %3768 = vmatprep.subr.bf16.mxu0 %v7621_v17  ;;  %v7714_v16 = vld [vmem:[%s10225_s0 + $0x19c] ss:$784 sps:$4 sm:$0xff]   ;;  %v7709_v17 = vld [vmem:[%s10225_s0 + $0x190] ss:$784 sps:$4 sm:$0xff]  }
  0x8d   :  { %3809 = vmatprep.subr.bf16.mxu1 %v7624_v18  ;;  %3798 = vmatprep.mubr.bf16.mxu0 %v10229_v1  ;;  %v7712_v18 = vld [vmem:[%s10225_s0 + $0x198] ss:$784 sps:$4 sm:$0xff]  }
  0x8e   :  { %3839 = vmatprep.mubr.bf16.mxu1 %v10229_v1 }
  0x8f   :  { %3769 = vmatpush1.bf16.msra.mxu0 %v7619_v20  ;;  %v7717_v20 = vld [vmem:[%s10225_s0 + $0x7b4] ss:$784 sps:$4 sm:$0xff]  }
  0x90   :  { %3810 = vmatpush1.bf16.msra.mxu1 %v7622_v21  ;;  %3848 = vmatprep.subr.bf16.mxu0 %v7627_v22  ;;  %v7720_v21 = vld [vmem:[%s10225_s0 + $0x7bc] ss:$784 sps:$4 sm:$0xff]   ;;  %v7715_v22 = vld [vmem:[%s10225_s0 + $0x7b0] ss:$784 sps:$4 sm:$0xff]  }
  0x91   :  { %3889 = vmatprep.subr.bf16.mxu1 %v7630_v23  ;;  %v7718_v23 = vld [vmem:[%s10225_s0 + $0x7b8] ss:$784 sps:$4 sm:$0xff]  }
  0x92   :  { %7293 = vmatmul.mubr.msk.bf16.vlgmr.msra.gmra.mrb[68].mxu0 %vm2368_vm0, %v8554_v19 }
  0x93   :  { %7294 = vmatmul.mubr.msk.bf16.vlgmr.msra.gmra.mrb[68].mxu1 %vm2368_vm0, %v8554_v19  ;;  %3849 = vmatpush1.bf16.msra.mxu0 %v7625_v24  ;;  %v7723_v24 = vld [vmem:[%s10225_s0 + $0x1a4] ss:$784 sps:$4 sm:$0xff]  }
  0x94   :  { %3890 = vmatpush1.bf16.msra.mxu1 %v7628_v25  ;;  %3850 = vmatprep.subr.bf16.mxu0 %v7633_v26  ;;  %v7726_v25 = vld [vmem:[%s10225_s0 + $0x1ac] ss:$784 sps:$4 sm:$0xff]   ;;  %v7721_v26 = vld [vmem:[%s10225_s0 + $0x1a0] ss:$784 sps:$4 sm:$0xff]  }
  0x95   :  { %3891 = vmatprep.subr.bf16.mxu1 %v7636_v27  ;;  %3880 = vmatprep.mubr.bf16.mxu0 %v10229_v1  ;;  %v7724_v27 = vld [vmem:[%s10225_s0 + $0x1a8] ss:$784 sps:$4 sm:$0xff]  }
  0x96   :  { %3921 = vmatprep.mubr.bf16.mxu1 %v10229_v1 }
  0x97   :  { %3851 = vmatpush1.bf16.msra.mxu0 %v7631_v28  ;;  %v7729_v28 = vld [vmem:[%s10225_s0 + $0x7c4] ss:$784 sps:$4 sm:$0xff]  }
  0x98   :  { %3892 = vmatpush1.bf16.msra.mxu1 %v7634_v29  ;;  %3930 = vmatprep.subr.bf16.mxu0 %v7639_v30  ;;  %v7732_v29 = vld [vmem:[%s10225_s0 + $0x7cc] ss:$784 sps:$4 sm:$0xff]   ;;  %v7727_v30 = vld [vmem:[%s10225_s0 + $0x7c0] ss:$784 sps:$4 sm:$0xff]  }
  0x99   :  { %3971 = vmatprep.subr.bf16.mxu1 %v7642_v31  ;;  %v7730_v31 = vld [vmem:[%s10225_s0 + $0x7c8] ss:$784 sps:$4 sm:$0xff]  }
  0x9a   :  { %7295 = vmatmul.mubr.msk.bf16.vlgmr.msra.gmra.mrb[72].mxu0 %vm2368_vm0, %v8554_v19 }
  0x9b   :  { %7296 = vmatmul.mubr.msk.bf16.vlgmr.msra.gmra.mrb[72].mxu1 %vm2368_vm0, %v8554_v19  ;;  %3931 = vmatpush1.bf16.msra.mxu0 %v7637_v32  ;;  %v7735_v32 = vld [vmem:[%s10225_s0 + $0x1b4] ss:$784 sps:$4 sm:$0xff]  }
  0x9c   :  { %3972 = vmatpush1.bf16.msra.mxu1 %v7640_v33  ;;  %3932 = vmatprep.subr.bf16.mxu0 %v7645_v34  ;;  %v7738_v33 = vld [vmem:[%s10225_s0 + $0x1bc] ss:$784 sps:$4 sm:$0xff]   ;;  %v7733_v34 = vld [vmem:[%s10225_s0 + $0x1b0] ss:$784 sps:$4 sm:$0xff]  }
  0x9d   :  { %3973 = vmatprep.subr.bf16.mxu1 %v7648_v35  ;;  %3962 = vmatprep.mubr.bf16.mxu0 %v10229_v1  ;;  %v7736_v35 = vld [vmem:[%s10225_s0 + $0x1b8] ss:$784 sps:$4 sm:$0xff]  }
  0x9e   :  { %4003 = vmatprep.mubr.bf16.mxu1 %v10229_v1 }
  0x9f   :  { %3933 = vmatpush1.bf16.msra.mxu0 %v7643_v36  ;;  %v7741_v36 = vld [vmem:[%s10225_s0 + $0x7d4] ss:$784 sps:$4 sm:$0xff]  }
  0xa0   :  { %3974 = vmatpush1.bf16.msra.mxu1 %v7646_v37  ;;  %4012 = vmatprep.subr.bf16.mxu0 %v7651_v38  ;;  %v7744_v37 = vld [vmem:[%s10225_s0 + $0x7dc] ss:$784 sps:$4 sm:$0xff]   ;;  %v7739_v38 = vld [vmem:[%s10225_s0 + $0x7d0] ss:$784 sps:$4 sm:$0xff]  }
  0xa1   :  { %4053 = vmatprep.subr.bf16.mxu1 %v7654_v39  ;;  %v7742_v39 = vld [vmem:[%s10225_s0 + $0x7d8] ss:$784 sps:$4 sm:$0xff]  }
  0xa2   :  { %7297 = vmatmul.mubr.msk.bf16.vlgmr.msra.gmra.mrb[76].mxu0 %vm2368_vm0, %v8554_v19 }
  0xa3   :  { %7298 = vmatmul.mubr.msk.bf16.vlgmr.msra.gmra.mrb[76].mxu1 %vm2368_vm0, %v8554_v19  ;;  %4013 = vmatpush1.bf16.msra.mxu0 %v7649_v40  ;;  %v7747_v40 = vld [vmem:[%s10225_s0 + $0x1c4] ss:$784 sps:$4 sm:$0xff]  }
  0xa4   :  { %4054 = vmatpush1.bf16.msra.mxu1 %v7652_v41  ;;  %4014 = vmatprep.subr.bf16.mxu0 %v7657_v42  ;;  %v7750_v41 = vld [vmem:[%s10225_s0 + $0x1cc] ss:$784 sps:$4 sm:$0xff]  }
  0xa5   :  { %4055 = vmatprep.subr.bf16.mxu1 %v7660_v43  ;;  %4044 = vmatprep.mubr.bf16.mxu0 %v10229_v1 }
  0xa6   :  { %4085 = vmatprep.mubr.bf16.mxu1 %v10229_v1 }
  0xa7   :  { %4015 = vmatpush1.bf16.msra.mxu0 %v7655_v44 }
  0xa8   :  { %4056 = vmatpush1.bf16.msra.mxu1 %v7658_v45  ;;  %4094 = vmatprep.subr.bf16.mxu0 %v7663_v46  ;;  %v7745_v46 = vld [vmem:[%s10225_s0 + $0x1c0] ss:$784 sps:$4 sm:$0xff]  }
  0xa9   :  { %4135 = vmatprep.subr.bf16.mxu1 %v7666_v47 }
  0xaa   :  { %7299 = vmatmul.mubr.msk.bf16.vlgmr.msra.gmra.mrb[80].mxu0 %vm2368_vm0, %v8554_v19 }
  0xab   :  { %7300 = vmatmul.mubr.msk.bf16.vlgmr.msra.gmra.mrb[80].mxu1 %vm2368_vm0, %v8554_v19  ;;  %4095 = vmatpush1.bf16.msra.mxu0 %v7661_v48 }
  0xac   :  { %4136 = vmatpush1.bf16.msra.mxu1 %v7664_v49  ;;  %4096 = vmatprep.subr.bf16.mxu0 %v7669_v50  ;;  %v7748_v49 = vld [vmem:[%s10225_s0 + $0x1c8] ss:$784 sps:$4 sm:$0xff]   ;;  %v7753_v50 = vld [vmem:[%s10225_s0 + $0x7e4] ss:$784 sps:$4 sm:$0xff]  }
  0xad   :  { %4137 = vmatprep.subr.bf16.mxu1 %v7672_v51  ;;  %4126 = vmatprep.mubr.bf16.mxu0 %v10229_v1 }
  0xae   :  { %4167 = vmatprep.mubr.bf16.mxu1 %v10229_v1 }
  0xaf   :  { %4097 = vmatpush1.bf16.msra.mxu0 %v7667_v52 }
  0xb0   :  { %4138 = vmatpush1.bf16.msra.mxu1 %v7670_v53  ;;  %4176 = vmatprep.subr.bf16.mxu0 %v7675_v54  ;;  %v7756_v53 = vld [vmem:[%s10225_s0 + $0x7ec] ss:$784 sps:$4 sm:$0xff]   ;;  %v7751_v54 = vld [vmem:[%s10225_s0 + $0x7e0] ss:$784 sps:$4 sm:$0xff]  }
  0xb1   :  { %4217 = vmatprep.subr.bf16.mxu1 %v7678_v55  ;;  %v7754_v55 = vld [vmem:[%s10225_s0 + $0x7e8] ss:$784 sps:$4 sm:$0xff]  }
  0xb2   :  { %7301 = vmatmul.mubr.msk.bf16.vlgmr.msra.gmra.mrb[84].mxu0 %vm2368_vm0, %v8554_v19 }
  0xb3   :  { %7302 = vmatmul.mubr.msk.bf16.vlgmr.msra.gmra.mrb[84].mxu1 %vm2368_vm0, %v8554_v19  ;;  %4177 = vmatpush1.bf16.msra.mxu0 %v7673_v56  ;;  %v7759_v56 = vld [vmem:[%s10225_s0 + $0x1d4] ss:$784 sps:$4 sm:$0xff]  }
  0xb4   :  { %4218 = vmatpush1.bf16.msra.mxu1 %v7676_v57  ;;  %4178 = vmatprep.subr.bf16.mxu0 %v7681_v58  ;;  %v7762_v57 = vld [vmem:[%s10225_s0 + $0x1dc] ss:$784 sps:$4 sm:$0xff]  }
  0xb5   :  { %4219 = vmatprep.subr.bf16.mxu1 %v7684_v59  ;;  %4208 = vmatprep.mubr.bf16.mxu0 %v10229_v1 }
  0xb6   :  { %4249 = vmatprep.mubr.bf16.mxu1 %v10229_v1 }
  0xb7   :  { %4179 = vmatpush1.bf16.msra.mxu0 %v7679_v60 }
  0xb8   :  { %4220 = vmatpush1.bf16.msra.mxu1 %v7682_v61  ;;  %4258 = vmatprep.subr.bf16.mxu0 %v7687_v62  ;;  %v7757_v62 = vld [vmem:[%s10225_s0 + $0x1d0] ss:$784 sps:$4 sm:$0xff]  }
  0xb9   :  { %4299 = vmatprep.subr.bf16.mxu1 %v7690_v63 }
  0xba   :  { %7303 = vmatmul.mubr.msk.bf16.vlgmr.msra.gmra.mrb[88].mxu0 %vm2368_vm0, %v8554_v19 }
  0xbb   :  { %7304 = vmatmul.mubr.msk.bf16.vlgmr.msra.gmra.mrb[88].mxu1 %vm2368_vm0, %v8554_v19  ;;  %4259 = vmatpush1.bf16.msra.mxu0 %v7685_v0 }
  0xbc   :  { %4300 = vmatpush1.bf16.msra.mxu1 %v7688_v2  ;;  %4260 = vmatprep.subr.bf16.mxu0 %v7693_v3  ;;  %v7760_v2 = vld [vmem:[%s10225_s0 + $0x1d8] ss:$784 sps:$4 sm:$0xff]   ;;  %v7765_v3 = vld [vmem:[%s10225_s0 + $0x7f4] ss:$784 sps:$4 sm:$0xff]  }
  0xbd   :  { %4301 = vmatprep.subr.bf16.mxu1 %v7696_v4  ;;  %4290 = vmatprep.mubr.bf16.mxu0 %v10229_v1 }
  0xbe   :  { %4331 = vmatprep.mubr.bf16.mxu1 %v10229_v1 }
  0xbf   :  { %4261 = vmatpush1.bf16.msra.mxu0 %v7691_v5 }
  0xc0   :  { %4302 = vmatpush1.bf16.msra.mxu1 %v7694_v6  ;;  %4340 = vmatprep.subr.bf16.mxu0 %v7699_v7  ;;  %v7768_v6 = vld [vmem:[%s10225_s0 + $0x7fc] ss:$784 sps:$4 sm:$0xff]   ;;  %v7763_v7 = vld [vmem:[%s10225_s0 + $0x7f0] ss:$784 sps:$4 sm:$0xff]  }
  0xc1   :  { %4381 = vmatprep.subr.bf16.mxu1 %v7702_v8  ;;  %v7766_v8 = vld [vmem:[%s10225_s0 + $0x7f8] ss:$784 sps:$4 sm:$0xff]  }
  0xc2   :  { %7305 = vmatmul.mubr.msk.bf16.vlgmr.msra.gmra.mrb[92].mxu0 %vm2368_vm0, %v8554_v19 }
  0xc3   :  { %7306 = vmatmul.mubr.msk.bf16.vlgmr.msra.gmra.mrb[92].mxu1 %vm2368_vm0, %v8554_v19  ;;  %4341 = vmatpush1.bf16.msra.mxu0 %v7697_v10  ;;  %v7771_v10 = vld [vmem:[%s10225_s0 + $0x1e4] ss:$784 sps:$4 sm:$0xff]  }
  0xc4   :  { %4382 = vmatpush1.bf16.msra.mxu1 %v7700_v11  ;;  %4342 = vmatprep.subr.bf16.mxu0 %v7705_v12  ;;  %v7774_v11 = vld [vmem:[%s10225_s0 + $0x1ec] ss:$784 sps:$4 sm:$0xff]  }
  0xc5   :  { %4383 = vmatprep.subr.bf16.mxu1 %v7708_v13  ;;  %4372 = vmatprep.mubr.bf16.mxu0 %v10229_v1 }
  0xc6   :  { %4413 = vmatprep.mubr.bf16.mxu1 %v10229_v1 }
  0xc7   :  { %4343 = vmatpush1.bf16.msra.mxu0 %v7703_v14 }
  0xc8   :  { %4384 = vmatpush1.bf16.msra.mxu1 %v7706_v9  ;;  %4422 = vmatprep.subr.bf16.mxu0 %v7711_v15  ;;  %v7769_v15 = vld [vmem:[%s10225_s0 + $0x1e0] ss:$784 sps:$4 sm:$0xff]  }
  0xc9   :  { %4463 = vmatprep.subr.bf16.mxu1 %v7714_v16  ;;  %v7772_v16 = vld [vmem:[%s10225_s0 + $0x1e8] ss:$784 sps:$4 sm:$0xff]  }
  0xca   :  { %7307 = vmatmul.mubr.msk.bf16.vlgmr.msra.gmra.mrb[96].mxu0 %vm2368_vm0, %v8554_v19 }
  0xcb   :  { %7308 = vmatmul.mubr.msk.bf16.vlgmr.msra.gmra.mrb[96].mxu1 %vm2368_vm0, %v8554_v19  ;;  %4423 = vmatpush1.bf16.msra.mxu0 %v7709_v17 }
  0xcc   :  { %4464 = vmatpush1.bf16.msra.mxu1 %v7712_v18  ;;  %4424 = vmatprep.subr.bf16.mxu0 %v7717_v20  ;;  %v7777_v20 = vld [vmem:[%s10225_s0 + $0x804] ss:$784 sps:$4 sm:$0xff]  }
  0xcd   :  { %4465 = vmatprep.subr.bf16.mxu1 %v7720_v21  ;;  %4454 = vmatprep.mubr.bf16.mxu0 %v10229_v1 }
  0xce   :  { %4495 = vmatprep.mubr.bf16.mxu1 %v10229_v1 }
  0xcf   :  { %4425 = vmatpush1.bf16.msra.mxu0 %v7715_v22 }
  0xd0   :  { %4466 = vmatpush1.bf16.msra.mxu1 %v7718_v23  ;;  %4504 = vmatprep.subr.bf16.mxu0 %v7723_v24  ;;  %v7780_v23 = vld [vmem:[%s10225_s0 + $0x80c] ss:$784 sps:$4 sm:$0xff]   ;;  %v7775_v24 = vld [vmem:[%s10225_s0 + $0x800] ss:$784 sps:$4 sm:$0xff]  }
  0xd1   :  { %4545 = vmatprep.subr.bf16.mxu1 %v7726_v25  ;;  %v7778_v25 = vld [vmem:[%s10225_s0 + $0x808] ss:$784 sps:$4 sm:$0xff]  }
  0xd2   :  { %7309 = vmatmul.mubr.msk.bf16.vlgmr.msra.gmra.mrb[100].mxu0 %vm2368_vm0, %v8554_v19 }
  0xd3   :  { %7310 = vmatmul.mubr.msk.bf16.vlgmr.msra.gmra.mrb[100].mxu1 %vm2368_vm0, %v8554_v19  ;;  %4505 = vmatpush1.bf16.msra.mxu0 %v7721_v26  ;;  %v7783_v26 = vld [vmem:[%s10225_s0 + $0x1f4] ss:$784 sps:$4 sm:$0xff]  }
  0xd4   :  { %4546 = vmatpush1.bf16.msra.mxu1 %v7724_v27  ;;  %4506 = vmatprep.subr.bf16.mxu0 %v7729_v28  ;;  %v7786_v27 = vld [vmem:[%s10225_s0 + $0x1fc] ss:$784 sps:$4 sm:$0xff]  }
  0xd5   :  { %4547 = vmatprep.subr.bf16.mxu1 %v7732_v29  ;;  %4536 = vmatprep.mubr.bf16.mxu0 %v10229_v1 }
  0xd6   :  { %4577 = vmatprep.mubr.bf16.mxu1 %v10229_v1 }
  0xd7   :  { %4507 = vmatpush1.bf16.msra.mxu0 %v7727_v30 }
  0xd8   :  { %4548 = vmatpush1.bf16.msra.mxu1 %v7730_v31  ;;  %4586 = vmatprep.subr.bf16.mxu0 %v7735_v32  ;;  %v7781_v32 = vld [vmem:[%s10225_s0 + $0x1f0] ss:$784 sps:$4 sm:$0xff]  }
  0xd9   :  { %4627 = vmatprep.subr.bf16.mxu1 %v7738_v33 }
  0xda   :  { %7311 = vmatmul.mubr.msk.bf16.vlgmr.msra.gmra.mrb[104].mxu0 %vm2368_vm0, %v8554_v19 }
  0xdb   :  { %7312 = vmatmul.mubr.msk.bf16.vlgmr.msra.gmra.mrb[104].mxu1 %vm2368_vm0, %v8554_v19  ;;  %4587 = vmatpush1.bf16.msra.mxu0 %v7733_v34 }
  0xdc   :  { %4628 = vmatpush1.bf16.msra.mxu1 %v7736_v35  ;;  %4588 = vmatprep.subr.bf16.mxu0 %v7741_v36  ;;  %v7784_v35 = vld [vmem:[%s10225_s0 + $0x1f8] ss:$784 sps:$4 sm:$0xff]  }
  0xdd   :  { %4629 = vmatprep.subr.bf16.mxu1 %v7744_v37  ;;  %v8872_v42 = vpop.f32.mrb[0].mxu0  ;;  %4618 = vmatprep.mubr.bf16.mxu0 %v10229_v1 }
  0xde   :  { %v8874_v43 = vpop.f32.mrb[0].mxu1  ;;  %4659 = vmatprep.mubr.bf16.mxu1 %v10229_v1  ;;  %v8878_v44 = vpop.f32.mrb[1].mxu0 }
  0xdf   :  { %10307 = vst [vmem:[#allocation2_spill] sm:$0xff] %v8874_v43  ;;  %10308 = vst [vmem:[#allocation3_spill] sm:$0xff] %v8878_v44  ;;  %v8880_v45 = vpop.f32.mrb[1].mxu1  ;;  %v2410_v47 = vpop.f32.mrb[2].mxu0  ;;  %4589 = vmatpush1.bf16.msra.mxu0 %v7739_v38  ;;  %v7789_v38 = vld [vmem:[%s10225_s0 + $0x814] ss:$784 sps:$4 sm:$0xff]  }
  0xe0   :  { %v2451_v48 = vpop.f32.mrb[2].mxu1  ;;  %4630 = vmatpush1.bf16.msra.mxu1 %v7742_v39  ;;  %v2411_v51 = vpop.f32.mrb[3].mxu0  ;;  %4668 = vmatprep.subr.bf16.mxu0 %v7747_v40  ;;  %v7792_v39 = vld [vmem:[%s10225_s0 + $0x81c] ss:$784 sps:$4 sm:$0xff]   ;;  %v7787_v40 = vld [vmem:[%s10225_s0 + $0x810] ss:$784 sps:$4 sm:$0xff]  }
  0xe1   :  { %v2452_v52 = vpop.f32.mrb[3].mxu1  ;;  %4709 = vmatprep.subr.bf16.mxu1 %v7750_v41  ;;  %v7790_v41 = vld [vmem:[%s10225_s0 + $0x818] ss:$784 sps:$4 sm:$0xff]   ;;  %v7793_v51 = vld [vmem:[%s10225_s0 + $0x200] ss:$784 sps:$4 sm:$0xff]  }
  0xe2   :  { %7313 = vmatmul.mubr.msk.bf16.vlgmr.msra.gmra.mrb[108].mxu0 %vm2368_vm0, %v8554_v19 }
  0xe3   :  { %7314 = vmatmul.mubr.msk.bf16.vlgmr.msra.gmra.mrb[108].mxu1 %vm2368_vm0, %v8554_v19  ;;  %4669 = vmatpush1.bf16.msra.mxu0 %v7745_v46  ;;  %v7795_v46 = vld [vmem:[%s10225_s0 + $0x204] ss:$784 sps:$4 sm:$0xff]  }
  0xe4   :  { %4710 = vmatpush1.bf16.msra.mxu1 %v7748_v49  ;;  %4670 = vmatprep.subr.bf16.mxu0 %v7753_v50 }
  0xe5   :  { %4711 = vmatprep.subr.bf16.mxu1 %v7756_v53  ;;  %v8910_v58 = vpop.f32.mrb[4].mxu0  ;;  %4700 = vmatprep.mubr.bf16.mxu0 %v10229_v1 }
  0xe6   :  { %v8912_v59 = vpop.f32.mrb[4].mxu1  ;;  %4741 = vmatprep.mubr.bf16.mxu1 %v10229_v1  ;;  %v8916_v60 = vpop.f32.mrb[5].mxu0 }
  0xe7   :  { %10309 = vst [vmem:[#allocation4_spill] sm:$0xff] %v8912_v59  ;;  %10310 = vst [vmem:[#allocation5_spill] sm:$0xff] %v8916_v60  ;;  %v8918_v61 = vpop.f32.mrb[5].mxu1  ;;  %v2492_v63 = vpop.f32.mrb[6].mxu0  ;;  %4671 = vmatpush1.bf16.msra.mxu0 %v7751_v54  ;;  %v7796_v54 = vld [vmem:[%s10225_s0 + $0x208] ss:$784 sps:$4 sm:$0xff]  }
  0xe8   :  { %v2533_v0 = vpop.f32.mrb[6].mxu1  ;;  %4712 = vmatpush1.bf16.msra.mxu1 %v7754_v55  ;;  %v2493_v4 = vpop.f32.mrb[7].mxu0  ;;  %4750 = vmatprep.subr.bf16.mxu0 %v7759_v56  ;;  %v7801_v55 = vld [vmem:[%s10225_s0 + $0x824] ss:$784 sps:$4 sm:$0xff]   ;;  %v9049_v63 = vld [vmem:[%s10226_s1] sm:$0x7] }
  0xe9   :  { %v2534_v5 = vpop.f32.mrb[7].mxu1  ;;  %4791 = vmatprep.subr.bf16.mxu1 %v7762_v57  ;;  %v7799_v0 = vld [vmem:[%s10225_s0 + $0x820] ss:$784 sps:$4 sm:$0xff]   ;;  %v7810_v4 = vld [vmem:[%s10225_s0 + $0x21c] ss:$784 sps:$4 sm:$0xff]  }
  0xea   :  { %7315 = vmatmul.mubr.msk.bf16.vlgmr.msra.gmra.mrb[112].mxu0 %vm2368_vm0, %v8554_v19  ;;  %v6537_v5 = vld [vmem:[%s10227_s2] sm:$0x3f] }
  0xeb   :  { %7316 = vmatmul.mubr.msk.bf16.vlgmr.msra.gmra.mrb[112].mxu1 %vm2368_vm0, %v8554_v19  ;;  %4751 = vmatpush1.bf16.msra.mxu0 %v7757_v62  ;;  %v7804_v62 = vld [vmem:[%s10225_s0 + $0x82c] ss:$784 sps:$4 sm:$0xff]  }
  0xec   :  { %4792 = vmatpush1.bf16.msra.mxu1 %v7760_v2  ;;  %4752 = vmatprep.subr.bf16.mxu0 %v7765_v3  ;;  %v7802_v2 = vld [vmem:[%s10225_s0 + $0x828] ss:$784 sps:$4 sm:$0xff]   ;;  %v7807_v3 = vld [vmem:[%s10225_s0 + $0x214] ss:$784 sps:$4 sm:$0xff]  }
  0xed   :  { %4793 = vmatprep.subr.bf16.mxu1 %v7768_v6  ;;  %v8948_v12 = vpop.f32.mrb[8].mxu0  ;;  %4782 = vmatprep.mubr.bf16.mxu0 %v10229_v1 }
  0xee   :  { %v8950_v13 = vpop.f32.mrb[8].mxu1  ;;  %4823 = vmatprep.mubr.bf16.mxu1 %v10229_v1  ;;  %v8954_v14 = vpop.f32.mrb[9].mxu0  ;;  %6540 = vperm.xlu0 %7408, %v6537_v5  }
  0xef   :  { %10311 = vst [vmem:[#allocation6_spill] sm:$0xff] %v8950_v13  ;;  %10312 = vst [vmem:[#allocation7_spill] sm:$0xff] %v8954_v14  ;;  %v8956_v9 = vpop.f32.mrb[9].mxu1  ;;  %v2574_v17 = vpop.f32.mrb[10].mxu0  ;;  %4753 = vmatpush1.bf16.msra.mxu0 %v7763_v7 }
  0xf0   :  { %v2615_v18 = vpop.f32.mrb[10].mxu1  ;;  %4794 = vmatpush1.bf16.msra.mxu1 %v7766_v8  ;;  %v2575_v21 = vpop.f32.mrb[11].mxu0  ;;  %4832 = vmatprep.subr.bf16.mxu0 %v7771_v10  ;;  %v7808_v17 = vld [vmem:[%s10225_s0 + $0x218] ss:$784 sps:$4 sm:$0xff]  }
  0xf1   :  { %v2616_v22 = vpop.f32.mrb[11].mxu1  ;;  %4873 = vmatprep.subr.bf16.mxu1 %v7774_v11  ;;  %v7813_v21 = vld [vmem:[%s10225_s0 + $0x834] ss:$784 sps:$4 sm:$0xff]  }
  0xf2   :  { %7317 = vmatmul.mubr.msk.bf16.vlgmr.msra.gmra.mrb[116].mxu0 %vm2368_vm0, %v8554_v19  ;;  %v7816_v22 = vld [vmem:[%s10225_s0 + $0x83c] ss:$784 sps:$4 sm:$0xff]  }
  0xf3   :  { %7318 = vmatmul.mubr.msk.bf16.vlgmr.msra.gmra.mrb[116].mxu1 %vm2368_vm0, %v8554_v19  ;;  %4833 = vmatpush1.bf16.msra.mxu0 %v7769_v15 }
  0xf4   :  { %4874 = vmatpush1.bf16.msra.mxu1 %v7772_v16  ;;  %4834 = vmatprep.subr.bf16.mxu0 %v7777_v20  ;;  %v7805_v16 = vld [vmem:[%s10225_s0 + $0x210] ss:$784 sps:$4 sm:$0xff]  }
  0xf5   :  { %4875 = vmatprep.subr.bf16.mxu1 %v7780_v23  ;;  %v8986_v28 = vpop.f32.mrb[12].mxu0  ;;  %4864 = vmatprep.mubr.bf16.mxu0 %v10229_v1  ;;  %v7811_v23 = vld [vmem:[%s10225_s0 + $0x830] ss:$784 sps:$4 sm:$0xff]  }
  0xf6   :  { %v8988_v29 = vpop.f32.mrb[12].mxu1  ;;  %4905 = vmatprep.mubr.bf16.mxu1 %v10229_v1  ;;  %v8992_v30 = vpop.f32.mrb[13].mxu0 }
  0xf7   :  { %10313 = vst [vmem:[#allocation8_spill] sm:$0xff] %v8988_v29  ;;  %10314 = vst [vmem:[#allocation9_spill] sm:$0xff] %v8992_v30  ;;  %v8994_v31 = vpop.f32.mrb[13].mxu1  ;;  %v2656_v33 = vpop.f32.mrb[14].mxu0  ;;  %4835 = vmatpush1.bf16.msra.mxu0 %v7775_v24  ;;  %v7814_v24 = vld [vmem:[%s10225_s0 + $0x838] ss:$784 sps:$4 sm:$0xff]  }
  0xf8   :  { %v2697_v34 = vpop.f32.mrb[14].mxu1  ;;  %4876 = vmatpush1.bf16.msra.mxu1 %v7778_v25  ;;  %v2657_v36 = vpop.f32.mrb[15].mxu0  ;;  %4914 = vmatprep.subr.bf16.mxu0 %v7783_v26  ;;  %v7819_v25 = vld [vmem:[%s10225_s0 + $0x224] ss:$784 sps:$4 sm:$0xff]   ;;  %v7822_v26 = vld [vmem:[%s10225_s0 + $0x22c] ss:$784 sps:$4 sm:$0xff]  }
  0xf9   :  { %v2698_v37 = vpop.f32.mrb[15].mxu1  ;;  %4955 = vmatprep.subr.bf16.mxu1 %v7786_v27 }
  0xfa   :  { %7319 = vmatmul.mubr.msk.bf16.vlgmr.msra.gmra.mrb[120].mxu0 %vm2368_vm0, %v8554_v19  ;;  %v7817_v37 = vld [vmem:[%s10225_s0 + $0x220] ss:$784 sps:$4 sm:$0xff]  }
  0xfb   :  { %7320 = vmatmul.mubr.msk.bf16.vlgmr.msra.gmra.mrb[120].mxu1 %vm2368_vm0, %v8554_v19  ;;  %4915 = vmatpush1.bf16.msra.mxu0 %v7781_v32  ;;  %v7798_v19 = vld [vmem:[%s10225_s0 + $0x20c] ss:$784 sps:$4 sm:$0xff]  }
  0xfc   :  { %4956 = vmatpush1.bf16.msra.mxu1 %v7784_v35  ;;  %4916 = vmatprep.subr.bf16.mxu0 %v7789_v38  ;;  %v7820_v38 = vld [vmem:[%s10225_s0 + $0x228] ss:$784 sps:$4 sm:$0xff]  }
  0xfd   :  { %4957 = vmatprep.subr.bf16.mxu1 %v7792_v39  ;;  %v9024_v47 = vpop.f32.mrb[16].mxu0  ;;  %4946 = vmatprep.mubr.bf16.mxu0 %v10229_v1 }
  0xfe   :  { %v9026_v48 = vpop.f32.mrb[16].mxu1  ;;  %4987 = vmatprep.mubr.bf16.mxu1 %v10229_v1  ;;  %v9030_v49 = vpop.f32.mrb[17].mxu0 }
  0xff   :  { %10315 = vst [vmem:[#allocation10_spill] sm:$0xff] %v9026_v48  ;;  %10316 = vst [vmem:[#allocation11_spill] sm:$0xff] %v9030_v49  ;;  %v9032_v50 = vpop.f32.mrb[17].mxu1  ;;  %v2738_v52 = vpop.f32.mrb[18].mxu0  ;;  %4917 = vmatpush1.bf16.msra.mxu0 %v7787_v40 }
 0x100   :  { %v2779_v53 = vpop.f32.mrb[18].mxu1  ;;  %4958 = vmatpush1.bf16.msra.mxu1 %v7790_v41  ;;  %v2739_v56 = vpop.f32.mrb[19].mxu0  ;;  %4996 = vmatprep.subr.bf16.mxu0 %v7795_v46  ;;  %v7825_v41 = vld [vmem:[%s10225_s0 + $0x844] ss:$784 sps:$4 sm:$0xff]   ;;  %v7828_v46 = vld [vmem:[%s10225_s0 + $0x84c] ss:$784 sps:$4 sm:$0xff]  }
 0x101   :  { %v2780_v57 = vpop.f32.mrb[19].mxu1  ;;  %5037 = vmatprep.subr.bf16.mxu1 %v7798_v19  ;;  %v7823_v19 = vld [vmem:[%s10225_s0 + $0x840] ss:$784 sps:$4 sm:$0xff]   ;;  %v7831_v52 = vld [vmem:[%s10225_s0 + $0x234] ss:$784 sps:$4 sm:$0xff]  }
 0x102   :  { %7321 = vmatmul.mubr.msk.bf16.vlgmr.msra.gmra.mrb[124].mxu0 %vm2368_vm0, %v9049_v63  ;;  %v7834_v53 = vld [vmem:[%s10225_s0 + $0x23c] ss:$784 sps:$4 sm:$0xff]  }
 0x103   :  { %7322 = vmatmul.mubr.msk.bf16.vlgmr.msra.gmra.mrb[124].mxu1 %vm2368_vm0, %v9049_v63  ;;  %4997 = vmatpush1.bf16.msra.mxu0 %v7793_v51  ;;  %v7826_v51 = vld [vmem:[%s10225_s0 + $0x848] ss:$784 sps:$4 sm:$0xff]  }
 0x104   :  { %5038 = vmatpush1.bf16.msra.mxu1 %v7796_v54  ;;  %4998 = vmatprep.subr.bf16.mxu0 %v7801_v55 }
 0x105   :  { %5039 = vmatprep.subr.bf16.mxu1 %v7804_v62  ;;  %v9070_v6 = vpop.f32.mrb[20].mxu0  ;;  %5028 = vmatprep.mubr.bf16.mxu0 %v10229_v1 }
 0x106   :  { %v9072_v7 = vpop.f32.mrb[20].mxu1  ;;  %5069 = vmatprep.mubr.bf16.mxu1 %v10229_v1  ;;  %v9076_v8 = vpop.f32.mrb[21].mxu0 }
 0x107   :  { %10317 = vst [vmem:[#allocation12_spill] sm:$0xff] %v9072_v7  ;;  %10318 = vst [vmem:[#allocation13_spill] sm:$0xff] %v9076_v8  ;;  %v9078_v10 = vpop.f32.mrb[21].mxu1  ;;  %v2820_v11 = vpop.f32.mrb[22].mxu0  ;;  %4999 = vmatpush1.bf16.msra.mxu0 %v7799_v0 }
 0x108   :  { %10319 = vst [vmem:[#allocation14_spill] sm:$0xff] %v9078_v10  ;;  %v2861_v15 = vpop.f32.mrb[22].mxu1  ;;  %5040 = vmatpush1.bf16.msra.mxu1 %v7802_v2  ;;  %v2821_v18 = vpop.f32.mrb[23].mxu0  ;;  %5078 = vmatprep.subr.bf16.mxu0 %v7807_v3  ;;  %v7829_v2 = vld [vmem:[%s10225_s0 + $0x230] ss:$784 sps:$4 sm:$0xff]  }
 0x109   :  { %v2862_v20 = vpop.f32.mrb[23].mxu1  ;;  %5119 = vmatprep.subr.bf16.mxu1 %v7810_v4  ;;  %v7832_v3 = vld [vmem:[%s10225_s0 + $0x238] ss:$784 sps:$4 sm:$0xff]   ;;  %v7837_v11 = vld [vmem:[%s10225_s0 + $0x854] ss:$784 sps:$4 sm:$0xff]  }
 0x10a   :  { %7323 = vmatmul.mubr.msk.bf16.vlgmr.msra.gmra.mrb[128].mxu0 %vm2368_vm0, %v9049_v63  ;;  %v7840_v15 = vld [vmem:[%s10225_s0 + $0x85c] ss:$784 sps:$4 sm:$0xff]   ;;  %v7843_v18 = vld [vmem:[%s10225_s0 + $0x244] ss:$784 sps:$4 sm:$0xff]  }
 0x10b   :  { %7324 = vmatmul.mubr.msk.bf16.vlgmr.msra.gmra.mrb[128].mxu1 %vm2368_vm0, %v9049_v63  ;;  %5079 = vmatpush1.bf16.msra.mxu0 %v7805_v16  ;;  %v7835_v16 = vld [vmem:[%s10225_s0 + $0x850] ss:$784 sps:$4 sm:$0xff]   ;;  %v7846_v20 = vld [vmem:[%s10225_s0 + $0x24c] ss:$784 sps:$4 sm:$0xff]  }
 0x10c   :  { %5120 = vmatpush1.bf16.msra.mxu1 %v7808_v17  ;;  %5080 = vmatprep.subr.bf16.mxu0 %v7813_v21  ;;  %v7838_v17 = vld [vmem:[%s10225_s0 + $0x858] ss:$784 sps:$4 sm:$0xff]  }
 0x10d   :  { %5121 = vmatprep.subr.bf16.mxu1 %v7816_v22  ;;  %v9108_v27 = vpop.f32.mrb[24].mxu0  ;;  %5110 = vmatprep.mubr.bf16.mxu0 %v10229_v1 }
 0x10e   :  { %10320 = vst [vmem:[#allocation15_spill] sm:$0xff] %v9108_v27  ;;  %v9110_v32 = vpop.f32.mrb[24].mxu1  ;;  %5151 = vmatprep.mubr.bf16.mxu1 %v10229_v1  ;;  %v9114_v33 = vpop.f32.mrb[25].mxu0 }
 0x10f   :  { %10321 = vst [vmem:[#allocation16_spill] sm:$0xff] %v9110_v32  ;;  %10322 = vst [vmem:[#allocation17_spill] sm:$0xff] %v9114_v33  ;;  %v9116_v34 = vpop.f32.mrb[25].mxu1  ;;  %v2902_v35 = vpop.f32.mrb[26].mxu0  ;;  %5081 = vmatpush1.bf16.msra.mxu0 %v7811_v23 }
 0x110   :  { %10323 = vst [vmem:[#allocation18_spill] sm:$0xff] %v9116_v34  ;;  %v2943_v36 = vpop.f32.mrb[26].mxu1  ;;  %5122 = vmatpush1.bf16.msra.mxu1 %v7814_v24  ;;  %v2903_v39 = vpop.f32.mrb[27].mxu0  ;;  %5160 = vmatprep.subr.bf16.mxu0 %v7819_v25  ;;  %v7841_v35 = vld [vmem:[%s10225_s0 + $0x240] ss:$784 sps:$4 sm:$0xff]  }
 0x111   :  { %v2944_v40 = vpop.f32.mrb[27].mxu1  ;;  %5201 = vmatprep.subr.bf16.mxu1 %v7822_v26  ;;  %v7844_v36 = vld [vmem:[%s10225_s0 + $0x248] ss:$784 sps:$4 sm:$0xff]   ;;  %v7849_v39 = vld [vmem:[%s10225_s0 + $0x864] ss:$784 sps:$4 sm:$0xff]  }
 0x112   :  { %7325 = vmatmul.mubr.msk.bf16.vlgmr.msra.gmra.mrb[132].mxu0 %vm2368_vm0, %v9049_v63  ;;  %v7852_v40 = vld [vmem:[%s10225_s0 + $0x86c] ss:$784 sps:$4 sm:$0xff]  }
 0x113   :  { %7326 = vmatmul.mubr.msk.bf16.vlgmr.msra.gmra.mrb[132].mxu1 %vm2368_vm0, %v9049_v63  ;;  %5161 = vmatpush1.bf16.msra.mxu0 %v7817_v37 }
 0x114   :  { %5202 = vmatpush1.bf16.msra.mxu1 %v7820_v38  ;;  %5162 = vmatprep.subr.bf16.mxu0 %v7825_v41  ;;  %v7847_v41 = vld [vmem:[%s10225_s0 + $0x860] ss:$784 sps:$4 sm:$0xff]  }
 0x115   :  { %5203 = vmatprep.subr.bf16.mxu1 %v7828_v46  ;;  %v9146_v54 = vpop.f32.mrb[28].mxu0  ;;  %5192 = vmatprep.mubr.bf16.mxu0 %v10229_v1  ;;  %v7850_v46 = vld [vmem:[%s10225_s0 + $0x868] ss:$784 sps:$4 sm:$0xff]  }
 0x116   :  { %10324 = vst [vmem:[#allocation19_spill] sm:$0xff] %v9146_v54  ;;  %v9148_v55 = vpop.f32.mrb[28].mxu1  ;;  %5233 = vmatprep.mubr.bf16.mxu1 %v10229_v1  ;;  %v9152_v56 = vpop.f32.mrb[29].mxu0 }
 0x117   :  { %10325 = vst [vmem:[#allocation20_spill] sm:$0xff] %v9148_v55  ;;  %10326 = vst [vmem:[#allocation21_spill] sm:$0xff] %v9152_v56  ;;  %v9154_v57 = vpop.f32.mrb[29].mxu1  ;;  %v2984_v62 = vpop.f32.mrb[30].mxu0  ;;  %5163 = vmatpush1.bf16.msra.mxu0 %v7823_v19  ;;  %v7855_v19 = vld [vmem:[%s10225_s0 + $0x254] ss:$784 sps:$4 sm:$0xff]  }
 0x118   :  { %10327 = vst [vmem:[#allocation22_spill] sm:$0xff] %v9154_v57  ;;  %v3025_v0 = vpop.f32.mrb[30].mxu1  ;;  %5204 = vmatpush1.bf16.msra.mxu1 %v7826_v51  ;;  %v2985_v4 = vpop.f32.mrb[31].mxu0  ;;  %5242 = vmatprep.subr.bf16.mxu0 %v7831_v52  ;;  %v7858_v51 = vld [vmem:[%s10225_s0 + $0x25c] ss:$784 sps:$4 sm:$0xff]  }
 0x119   :  { %v3026_v5 = vpop.f32.mrb[31].mxu1  ;;  %5283 = vmatprep.subr.bf16.mxu1 %v7834_v53  ;;  %v7853_v4 = vld [vmem:[%s10225_s0 + $0x250] ss:$784 sps:$4 sm:$0xff]  }
 0x11a   :  { %7327 = vmatmul.mubr.msk.bf16.vlgmr.msra.gmra.mrb[136].mxu0 %vm2368_vm0, %v9049_v63  ;;  %v7856_v5 = vld [vmem:[%s10225_s0 + $0x258] ss:$784 sps:$4 sm:$0xff]  }
 0x11b   :  { %7328 = vmatmul.mubr.msk.bf16.vlgmr.msra.gmra.mrb[136].mxu1 %vm2368_vm0, %v9049_v63  ;;  %5243 = vmatpush1.bf16.msra.mxu0 %v7829_v2 }
 0x11c   :  { %5284 = vmatpush1.bf16.msra.mxu1 %v7832_v3  ;;  %5244 = vmatprep.subr.bf16.mxu0 %v7837_v11 }
 0x11d   :  { %5285 = vmatprep.subr.bf16.mxu1 %v7840_v15  ;;  %v9184_v21 = vpop.f32.mrb[32].mxu0  ;;  %5274 = vmatprep.mubr.bf16.mxu0 %v10229_v1 }
 0x11e   :  { %10328 = vst [vmem:[#allocation23_spill] sm:$0xff] %v9184_v21  ;;  %v9186_v22 = vpop.f32.mrb[32].mxu1  ;;  %5315 = vmatprep.mubr.bf16.mxu1 %v10229_v1  ;;  %v9190_v23 = vpop.f32.mrb[33].mxu0 }
 0x11f   :  { %10329 = vst [vmem:[#allocation24_spill] sm:$0xff] %v9186_v22  ;;  %10330 = vst [vmem:[#allocation25_spill] sm:$0xff] %v9190_v23  ;;  %v9192_v24 = vpop.f32.mrb[33].mxu1  ;;  %v3066_v25 = vpop.f32.mrb[34].mxu0  ;;  %5245 = vmatpush1.bf16.msra.mxu0 %v7835_v16  ;;  %v7861_v16 = vld [vmem:[%s10225_s0 + $0x874] ss:$784 sps:$4 sm:$0xff]  }
 0x120   :  { %10331 = vst [vmem:[#allocation26_spill] sm:$0xff] %v9192_v24  ;;  %v3107_v26 = vpop.f32.mrb[34].mxu1  ;;  %5286 = vmatpush1.bf16.msra.mxu1 %v7838_v17  ;;  %v3067_v37 = vpop.f32.mrb[35].mxu0  ;;  %5324 = vmatprep.subr.bf16.mxu0 %v7843_v18  ;;  %v7864_v17 = vld [vmem:[%s10225_s0 + $0x87c] ss:$784 sps:$4 sm:$0xff]  }
 0x121   :  { %v3108_v38 = vpop.f32.mrb[35].mxu1  ;;  %5365 = vmatprep.subr.bf16.mxu1 %v7846_v20  ;;  %v7859_v18 = vld [vmem:[%s10225_s0 + $0x870] ss:$784 sps:$4 sm:$0xff]   ;;  %v7862_v20 = vld [vmem:[%s10225_s0 + $0x878] ss:$784 sps:$4 sm:$0xff]  }
 0x122   :  { %7329 = vmatmul.mubr.msk.bf16.vlgmr.msra.gmra.mrb[140].mxu0 %vm2368_vm0, %v9049_v63  ;;  %v7867_v25 = vld [vmem:[%s10225_s0 + $0x264] ss:$784 sps:$4 sm:$0xff]   ;;  %v7870_v26 = vld [vmem:[%s10225_s0 + $0x26c] ss:$784 sps:$4 sm:$0xff]  }
 0x123   :  { %7330 = vmatmul.mubr.msk.bf16.vlgmr.msra.gmra.mrb[140].mxu1 %vm2368_vm0, %v9049_v63  ;;  %5325 = vmatpush1.bf16.msra.mxu0 %v7841_v35 }
 0x124   :  { %5366 = vmatpush1.bf16.msra.mxu1 %v7844_v36  ;;  %5326 = vmatprep.subr.bf16.mxu0 %v7849_v39 }
 0x125   :  { %5367 = vmatprep.subr.bf16.mxu1 %v7852_v40  ;;  %v9222_v52 = vpop.f32.mrb[36].mxu0  ;;  %5356 = vmatprep.mubr.bf16.mxu0 %v10229_v1 }
 0x126   :  { %10332 = vst [vmem:[#allocation27_spill] sm:$0xff] %v9222_v52  ;;  %v9224_v53 = vpop.f32.mrb[36].mxu1  ;;  %5397 = vmatprep.mubr.bf16.mxu1 %v10229_v1  ;;  %v9228_v62 = vpop.f32.mrb[37].mxu0 }
 0x127   :  { %10333 = vst [vmem:[#allocation28_spill] sm:$0xff] %v9224_v53  ;;  %10334 = vst [vmem:[#allocation29_spill] sm:$0xff] %v9228_v62  ;;  %v9230_v0 = vpop.f32.mrb[37].mxu1  ;;  %v3148_v2 = vpop.f32.mrb[38].mxu0  ;;  %5327 = vmatpush1.bf16.msra.mxu0 %v7847_v41  ;;  %v7865_v41 = vld [vmem:[%s10225_s0 + $0x260] ss:$784 sps:$4 sm:$0xff]  }
 0x128   :  { %10335 = vst [vmem:[#allocation30_spill] sm:$0xff] %v9230_v0  ;;  %v3189_v3 = vpop.f32.mrb[38].mxu1  ;;  %5368 = vmatpush1.bf16.msra.mxu1 %v7850_v46  ;;  %v3149_v11 = vpop.f32.mrb[39].mxu0  ;;  %5406 = vmatprep.subr.bf16.mxu0 %v7855_v19  ;;  %v7868_v46 = vld [vmem:[%s10225_s0 + $0x268] ss:$784 sps:$4 sm:$0xff]  }
 0x129   :  { %v3190_v15 = vpop.f32.mrb[39].mxu1  ;;  %5447 = vmatprep.subr.bf16.mxu1 %v7858_v51  ;;  %v7873_v2 = vld [vmem:[%s10225_s0 + $0x884] ss:$784 sps:$4 sm:$0xff]   ;;  %v7876_v3 = vld [vmem:[%s10225_s0 + $0x88c] ss:$784 sps:$4 sm:$0xff]  }
 0x12a   :  { %7331 = vmatmul.mubr.msk.bf16.vlgmr.msra.gmra.mrb[144].mxu0 %vm2368_vm0, %v9049_v63  ;;  %v7879_v11 = vld [vmem:[%s10225_s0 + $0x274] ss:$784 sps:$4 sm:$0xff]   ;;  %v7882_v15 = vld [vmem:[%s10225_s0 + $0x27c] ss:$784 sps:$4 sm:$0xff]  }
 0x12b   :  { %7332 = vmatmul.mubr.msk.bf16.vlgmr.msra.gmra.mrb[144].mxu1 %vm2368_vm0, %v9049_v63  ;;  %5407 = vmatpush1.bf16.msra.mxu0 %v7853_v4  ;;  %v7871_v4 = vld [vmem:[%s10225_s0 + $0x880] ss:$784 sps:$4 sm:$0xff]  }
 0x12c   :  { %5448 = vmatpush1.bf16.msra.mxu1 %v7856_v5  ;;  %5408 = vmatprep.subr.bf16.mxu0 %v7861_v16  ;;  %v7874_v5 = vld [vmem:[%s10225_s0 + $0x888] ss:$784 sps:$4 sm:$0xff]  }
 0x12d   :  { %5449 = vmatprep.subr.bf16.mxu1 %v7864_v17  ;;  %v9260_v35 = vpop.f32.mrb[40].mxu0  ;;  %5438 = vmatprep.mubr.bf16.mxu0 %v10229_v1 }
 0x12e   :  { %10336 = vst [vmem:[#allocation31_spill] sm:$0xff] %v9260_v35  ;;  %v9262_v36 = vpop.f32.mrb[40].mxu1  ;;  %5479 = vmatprep.mubr.bf16.mxu1 %v10229_v1  ;;  %v9266_v37 = vpop.f32.mrb[41].mxu0 }
 0x12f   :  { %10337 = vst [vmem:[#allocation32_spill] sm:$0xff] %v9262_v36  ;;  %10338 = vst [vmem:[#allocation33_spill] sm:$0xff] %v9266_v37  ;;  %v9268_v38 = vpop.f32.mrb[41].mxu1  ;;  %v3230_v39 = vpop.f32.mrb[42].mxu0  ;;  %5409 = vmatpush1.bf16.msra.mxu0 %v7859_v18 }
 0x130   :  { %10339 = vst [vmem:[#allocation34_spill] sm:$0xff] %v9268_v38  ;;  %v3271_v40 = vpop.f32.mrb[42].mxu1  ;;  %5450 = vmatpush1.bf16.msra.mxu1 %v7862_v20  ;;  %v3231_v19 = vpop.f32.mrb[43].mxu0  ;;  %5488 = vmatprep.subr.bf16.mxu0 %v7867_v25  ;;  %v7877_v39 = vld [vmem:[%s10225_s0 + $0x270] ss:$784 sps:$4 sm:$0xff]  }
 0x131   :  { %v3272_v51 = vpop.f32.mrb[43].mxu1  ;;  %5529 = vmatprep.subr.bf16.mxu1 %v7870_v26  ;;  %v7880_v40 = vld [vmem:[%s10225_s0 + $0x278] ss:$784 sps:$4 sm:$0xff]   ;;  %v7885_v19 = vld [vmem:[%s10225_s0 + $0x894] ss:$784 sps:$4 sm:$0xff]  }
 0x132   :  { %7333 = vmatmul.mubr.msk.bf16.vlgmr.msra.gmra.mrb[148].mxu0 %vm2368_vm0, %v9049_v63  ;;  %v7888_v51 = vld [vmem:[%s10225_s0 + $0x89c] ss:$784 sps:$4 sm:$0xff]  }
 0x133   :  { %7334 = vmatmul.mubr.msk.bf16.vlgmr.msra.gmra.mrb[148].mxu1 %vm2368_vm0, %v9049_v63  ;;  %5489 = vmatpush1.bf16.msra.mxu0 %v7865_v41 }
 0x134   :  { %5530 = vmatpush1.bf16.msra.mxu1 %v7868_v46  ;;  %5490 = vmatprep.subr.bf16.mxu0 %v7873_v2  ;;  %v7883_v2 = vld [vmem:[%s10225_s0 + $0x890] ss:$784 sps:$4 sm:$0xff]  }
 0x135   :  { %5531 = vmatprep.subr.bf16.mxu1 %v7876_v3  ;;  %v9298_v16 = vpop.f32.mrb[44].mxu0  ;;  %5520 = vmatprep.mubr.bf16.mxu0 %v10229_v1  ;;  %v7886_v3 = vld [vmem:[%s10225_s0 + $0x898] ss:$784 sps:$4 sm:$0xff]  }
 0x136   :  { %10340 = vst [vmem:[#allocation35_spill] sm:$0xff] %v9298_v16  ;;  %v9300_v17 = vpop.f32.mrb[44].mxu1  ;;  %5561 = vmatprep.mubr.bf16.mxu1 %v10229_v1  ;;  %v9304_v18 = vpop.f32.mrb[45].mxu0 }
 0x137   :  { %10341 = vst [vmem:[#allocation36_spill] sm:$0xff] %v9300_v17  ;;  %10342 = vst [vmem:[#allocation37_spill] sm:$0xff] %v9304_v18  ;;  %v9306_v20 = vpop.f32.mrb[45].mxu1  ;;  %v3312_v25 = vpop.f32.mrb[46].mxu0  ;;  %5491 = vmatpush1.bf16.msra.mxu0 %v7871_v4  ;;  %v7891_v4 = vld [vmem:[%s10225_s0 + $0x284] ss:$784 sps:$4 sm:$0xff]  }
 0x138   :  { %10343 = vst [vmem:[#allocation38_spill] sm:$0xff] %v9306_v20  ;;  %v3353_v26 = vpop.f32.mrb[46].mxu1  ;;  %5532 = vmatpush1.bf16.msra.mxu1 %v7874_v5  ;;  %v3313_v41 = vpop.f32.mrb[47].mxu0  ;;  %5570 = vmatprep.subr.bf16.mxu0 %v7879_v11  ;;  %v7894_v5 = vld [vmem:[%s10225_s0 + $0x28c] ss:$784 sps:$4 sm:$0xff]  }
 0x139   :  { %v3354_v46 = vpop.f32.mrb[47].mxu1  ;;  %5611 = vmatprep.subr.bf16.mxu1 %v7882_v15  ;;  %v7892_v25 = vld [vmem:[%s10225_s0 + $0x288] ss:$784 sps:$4 sm:$0xff]   ;;  %v7897_v41 = vld [vmem:[%s10225_s0 + $0x8a4] ss:$784 sps:$4 sm:$0xff]  }
 0x13a   :  { %7335 = vmatmul.mubr.msk.bf16.vlgmr.msra.gmra.mrb[152].mxu0 %vm2368_vm0, %v9049_v63 }
 0x13b   :  { %7336 = vmatmul.mubr.msk.bf16.vlgmr.msra.gmra.mrb[152].mxu1 %vm2368_vm0, %v9049_v63  ;;  %5571 = vmatpush1.bf16.msra.mxu0 %v7877_v39 }
 0x13c   :  { %5612 = vmatpush1.bf16.msra.mxu1 %v7880_v40  ;;  %5572 = vmatprep.subr.bf16.mxu0 %v7885_v19  ;;  %v7921_v40 = vld [vmem:[%s10225_s0 + $0x8c4] ss:$784 sps:$4 sm:$0xff]  }
 0x13d   :  { %5613 = vmatprep.subr.bf16.mxu1 %v7888_v51  ;;  %v9336_v11 = vpop.f32.mrb[48].mxu0  ;;  %5602 = vmatprep.mubr.bf16.mxu0 %v10229_v1  ;;  %v7889_v51 = vld [vmem:[%s10225_s0 + $0x280] ss:$784 sps:$4 sm:$0xff]  }
 0x13e   :  { %10344 = vst [vmem:[#allocation39_spill] sm:$0xff] %v9336_v11  ;;  %v9338_v15 = vpop.f32.mrb[48].mxu1  ;;  %5643 = vmatprep.mubr.bf16.mxu1 %v10229_v1  ;;  %v9344_v26 = vpop.f32.mrb[49].mxu0 }
 0x13f   :  { %10345 = vst [vmem:[#allocation40_spill] sm:$0xff] %v9338_v15  ;;  %v9346_v39 = vpop.f32.mrb[49].mxu1  ;;  %v3394_v46 = vpop.f32.mrb[50].mxu0  ;;  %5573 = vmatpush1.bf16.msra.mxu0 %v7883_v2  ;;  %v7900_v2 = vld [vmem:[%s10225_s0 + $0x8ac] ss:$784 sps:$4 sm:$0xff]  }
 0x140   :  { %10346 = vst [vmem:[#allocation41_spill] sm:$0xff] %v9346_v39  ;;  %v3435_v19 = vpop.f32.mrb[50].mxu1  ;;  %5614 = vmatpush1.bf16.msra.mxu1 %v7886_v3  ;;  %v3395_v1 = vpop.f32.mrb[51].mxu0  ;;  %5652 = vmatprep.subr.bf16.mxu0 %v7891_v4  ;;  %v7898_v3 = vld [vmem:[%s10225_s0 + $0x8a8] ss:$784 sps:$4 sm:$0xff]   ;;  %v10348_v46 = vmov 0  }
 0x141   :  { %v3436_v15 = vpop.f32.mrb[51].mxu1  ;;  %5693 = vmatprep.subr.bf16.mxu1 %v7894_v5  ;;  %v7895_v1 = vld [vmem:[%s10225_s0 + $0x8a0] ss:$784 sps:$4 sm:$0xff]   ;;  %v7903_v4 = vld [vmem:[%s10225_s0 + $0x294] ss:$784 sps:$4 sm:$0xff]  }
 0x142   :  { %7337 = vmatmul.mubr.msk.bf16.vlgmr.msra.gmra.mrb[156].mxu0 %vm2368_vm0, %v9049_v63  ;;  %v7906_v5 = vld [vmem:[%s10225_s0 + $0x29c] ss:$784 sps:$4 sm:$0xff]   ;;  %v7904_v19 = vld [vmem:[%s10225_s0 + $0x298] ss:$784 sps:$4 sm:$0xff]   ;;  %v7909_v39 = vld [vmem:[%s10225_s0 + $0x8b4] ss:$784 sps:$4 sm:$0xff]  }
 0x143   :  { %7338 = vmatmul.mubr.msk.bf16.vlgmr.msra.gmra.mrb[156].mxu1 %vm2368_vm0, %v9049_v63  ;;  %5653 = vmatpush1.bf16.msra.mxu0 %v7889_v51 }
 0x144   :  { %5694 = vmatpush1.bf16.msra.mxu1 %v7892_v25  ;;  %5654 = vmatprep.subr.bf16.mxu0 %v7897_v41  ;;  %v7901_v41 = vld [vmem:[%s10225_s0 + $0x290] ss:$784 sps:$4 sm:$0xff]  }
 0x145   :  { %5695 = vmatprep.subr.bf16.mxu1 %v7900_v2  ;;  %v9380_v15 = vpop.f32.mrb[52].mxu0  ;;  %5684 = vmatprep.mubr.bf16.mxu0 %v10348_v46 }
 0x146   :  { %v9382_v25 = vpop.f32.mrb[52].mxu1  ;;  %5725 = vmatprep.mubr.bf16.mxu1 %v10348_v46  ;;  %v9390_v51 = vpop.f32.mrb[53].mxu0 }
 0x147   :  { %10347 = vst [vmem:[#allocation42_spill] sm:$0xff] %v9382_v25  ;;  %v9392_v2 = vpop.f32.mrb[53].mxu1  ;;  %v3476_v43 = vpop.f32.mrb[54].mxu0  ;;  %5655 = vmatpush1.bf16.msra.mxu0 %v7895_v1  ;;  %v7915_v1 = vld [vmem:[%s10225_s0 + $0x2a4] ss:$784 sps:$4 sm:$0xff]  }
 0x148   :  { %10349 = vst [vmem:[#allocation43_spill] sm:$0xff] %v9392_v2  ;;  %v3517_v44 = vpop.f32.mrb[54].mxu1  ;;  %5696 = vmatpush1.bf16.msra.mxu1 %v7898_v3  ;;  %v3477_v25 = vpop.f32.mrb[55].mxu0  ;;  %5734 = vmatprep.subr.bf16.mxu0 %v7903_v4  ;;  %v7912_v43 = vld [vmem:[%s10225_s0 + $0x8bc] ss:$784 sps:$4 sm:$0xff]  }
 0x149   :  { %v3518_v60 = vpop.f32.mrb[55].mxu1  ;;  %5775 = vmatprep.subr.bf16.mxu1 %v7906_v5  ;;  %v7907_v44 = vld [vmem:[%s10225_s0 + $0x8b0] ss:$784 sps:$4 sm:$0xff]   ;;  %v7918_v3 = vld [vmem:[%s10225_s0 + $0x2ac] ss:$784 sps:$4 sm:$0xff]  }
 0x14a   :  { %7339 = vmatmul.mubr.msk.bf16.vlgmr.msra.gmra.mrb[160].mxu0 %vm2368_vm0, %v9049_v63  ;;  %v7910_v60 = vld [vmem:[%s10225_s0 + $0x8b8] ss:$784 sps:$4 sm:$0xff]  }
 0x14b   :  { %7340 = vmatmul.mubr.msk.bf16.vlgmr.msra.gmra.mrb[160].mxu1 %vm2368_vm0, %v9049_v63  ;;  %5735 = vmatpush1.bf16.msra.mxu0 %v7901_v41  ;;  %v7916_v25 = vld [vmem:[%s10225_s0 + $0x2a8] ss:$784 sps:$4 sm:$0xff]  }
 0x14c   :  { %5776 = vmatpush1.bf16.msra.mxu1 %v7904_v19  ;;  %5736 = vmatprep.subr.bf16.mxu0 %v7909_v39  ;;  %v7913_v39 = vld [vmem:[%s10225_s0 + $0x2a0] ss:$784 sps:$4 sm:$0xff]  }
 0x14d   :  { %5777 = vmatprep.subr.bf16.mxu1 %v7912_v43  ;;  %v9426_v4 = vpop.f32.mrb[56].mxu0  ;;  %5766 = vmatprep.mubr.bf16.mxu0 %v10348_v46  ;;  %v7933_v43 = vld [vmem:[%s10225_s0 + $0x8d4] ss:$784 sps:$4 sm:$0xff]  }
 0x14e   :  { %v9428_v5 = vpop.f32.mrb[56].mxu1  ;;  %5807 = vmatprep.mubr.bf16.mxu1 %v10348_v46  ;;  %v9436_v41 = vpop.f32.mrb[57].mxu0 }
 0x14f   :  { %10350 = vst [vmem:[#allocation44_spill] sm:$0xff] %v9428_v5  ;;  %v9438_v19 = vpop.f32.mrb[57].mxu1  ;;  %v3558_v2 = vpop.f32.mrb[58].mxu0  ;;  %5737 = vmatpush1.bf16.msra.mxu0 %v7907_v44  ;;  %v7927_v44 = vld [vmem:[%s10225_s0 + $0x2b4] ss:$784 sps:$4 sm:$0xff]  }
 0x150   :  { %10351 = vst [vmem:[#allocation45_spill] sm:$0xff] %v9438_v19  ;;  %v3599_v59 = vpop.f32.mrb[58].mxu1  ;;  %5778 = vmatpush1.bf16.msra.mxu1 %v7910_v60  ;;  %v3559_v5 = vpop.f32.mrb[59].mxu0  ;;  %5816 = vmatprep.subr.bf16.mxu0 %v7915_v1  ;;  %v7922_v2 = vld [vmem:[%s10225_s0 + $0x8c8] ss:$784 sps:$4 sm:$0xff]  }
 0x151   :  { %v3600_v14 = vpop.f32.mrb[59].mxu1  ;;  %5857 = vmatprep.subr.bf16.mxu1 %v7918_v3  ;;  %v7924_v59 = vld [vmem:[%s10225_s0 + $0x8cc] ss:$784 sps:$4 sm:$0xff]   ;;  %v7928_v5 = vld [vmem:[%s10225_s0 + $0x2b8] ss:$784 sps:$4 sm:$0xff]  }
 0x152   :  { %7341 = vmatmul.mubr.msk.bf16.vlgmr.msra.gmra.mrb[164].mxu0 %vm2368_vm0, %v9049_v63  ;;  %v7919_v14 = vld [vmem:[%s10225_s0 + $0x8c0] ss:$784 sps:$4 sm:$0xff]   ;;  %v7930_v60 = vld [vmem:[%s10225_s0 + $0x2bc] ss:$784 sps:$4 sm:$0xff]  }
 0x153   :  { %7342 = vmatmul.mubr.msk.bf16.vlgmr.msra.gmra.mrb[164].mxu1 %vm2368_vm0, %v9049_v63  ;;  %5817 = vmatpush1.bf16.msra.mxu0 %v7913_v39 }
 0x154   :  { %5858 = vmatpush1.bf16.msra.mxu1 %v7916_v25  ;;  %5818 = vmatprep.subr.bf16.mxu0 %v7921_v40  ;;  %v7925_v40 = vld [vmem:[%s10225_s0 + $0x2b0] ss:$784 sps:$4 sm:$0xff]  }
 0x155   :  { %5859 = vmatprep.subr.bf16.mxu1 %v7924_v59  ;;  %v9472_v1 = vpop.f32.mrb[60].mxu0  ;;  %5848 = vmatprep.mubr.bf16.mxu0 %v10348_v46  ;;  %v7945_v59 = vld [vmem:[%s10225_s0 + $0x8e4] ss:$784 sps:$4 sm:$0xff]  }
 0x156   :  { %v9474_v3 = vpop.f32.mrb[60].mxu1  ;;  %5889 = vmatprep.mubr.bf16.mxu1 %v10348_v46  ;;  %v9482_v39 = vpop.f32.mrb[61].mxu0 }
 0x157   :  { %10352 = vst [vmem:[#allocation46_spill] sm:$0xff] %v9474_v3  ;;  %v9484_v25 = vpop.f32.mrb[61].mxu1  ;;  %v3640_v19 = vpop.f32.mrb[62].mxu0  ;;  %5819 = vmatpush1.bf16.msra.mxu0 %v7919_v14  ;;  %v7939_v14 = vld [vmem:[%s10225_s0 + $0x2c4] ss:$784 sps:$4 sm:$0xff]  }
 0x158   :  { %10353 = vst [vmem:[#allocation47_spill] sm:$0xff] %v9484_v25  ;;  %v3681_v13 = vpop.f32.mrb[62].mxu1  ;;  %5860 = vmatpush1.bf16.msra.mxu1 %v7922_v2  ;;  %v3641_v3 = vpop.f32.mrb[63].mxu0  ;;  %5898 = vmatprep.subr.bf16.mxu0 %v7927_v44  ;;  %v7934_v19 = vld [vmem:[%s10225_s0 + $0x8d8] ss:$784 sps:$4 sm:$0xff]  }
 0x159   :  { %v3682_v30 = vpop.f32.mrb[63].mxu1  ;;  %5939 = vmatprep.subr.bf16.mxu1 %v7930_v60  ;;  %v7936_v13 = vld [vmem:[%s10225_s0 + $0x8dc] ss:$784 sps:$4 sm:$0xff]   ;;  %v7940_v3 = vld [vmem:[%s10225_s0 + $0x2c8] ss:$784 sps:$4 sm:$0xff]  }
 0x15a   :  { %7343 = vmatmul.mubr.msk.bf16.vlgmr.msra.gmra.mrb[168].mxu0 %vm2368_vm0, %v9049_v63  ;;  %v7931_v30 = vld [vmem:[%s10225_s0 + $0x8d0] ss:$784 sps:$4 sm:$0xff]   ;;  %v7942_v2 = vld [vmem:[%s10225_s0 + $0x2cc] ss:$784 sps:$4 sm:$0xff]  }
 0x15b   :  { %7344 = vmatmul.mubr.msk.bf16.vlgmr.msra.gmra.mrb[168].mxu1 %vm2368_vm0, %v9049_v63  ;;  %5899 = vmatpush1.bf16.msra.mxu0 %v7925_v40 }
 0x15c   :  { %5940 = vmatpush1.bf16.msra.mxu1 %v7928_v5  ;;  %5900 = vmatprep.subr.bf16.mxu0 %v7933_v43  ;;  %v7937_v43 = vld [vmem:[%s10225_s0 + $0x2c0] ss:$784 sps:$4 sm:$0xff]  }
 0x15d   :  { %5941 = vmatprep.subr.bf16.mxu1 %v7936_v13  ;;  %v9518_v44 = vpop.f32.mrb[64].mxu0  ;;  %5930 = vmatprep.mubr.bf16.mxu0 %v10348_v46  ;;  %v7957_v13 = vld [vmem:[%s10225_s0 + $0x8f4] ss:$784 sps:$4 sm:$0xff]  }
 0x15e   :  { %v9520_v60 = vpop.f32.mrb[64].mxu1  ;;  %5971 = vmatprep.mubr.bf16.mxu1 %v10348_v46  ;;  %v9528_v40 = vpop.f32.mrb[65].mxu0 }
 0x15f   :  { %10354 = vst [vmem:[#allocation48_spill] sm:$0xff] %v9520_v60  ;;  %v9530_v5 = vpop.f32.mrb[65].mxu1  ;;  %v3722_v25 = vpop.f32.mrb[66].mxu0  ;;  %5901 = vmatpush1.bf16.msra.mxu0 %v7931_v30  ;;  %v7951_v30 = vld [vmem:[%s10225_s0 + $0x2d4] ss:$784 sps:$4 sm:$0xff]  }
 0x160   :  { %10355 = vst [vmem:[#allocation49_spill] sm:$0xff] %v9530_v5  ;;  %v3763_v29 = vpop.f32.mrb[66].mxu1  ;;  %5942 = vmatpush1.bf16.msra.mxu1 %v7934_v19  ;;  %v3723_v60 = vpop.f32.mrb[67].mxu0  ;;  %5980 = vmatprep.subr.bf16.mxu0 %v7939_v14  ;;  %v7946_v25 = vld [vmem:[%s10225_s0 + $0x8e8] ss:$784 sps:$4 sm:$0xff]  }
 0x161   :  { %v3764_v49 = vpop.f32.mrb[67].mxu1  ;;  %6021 = vmatprep.subr.bf16.mxu1 %v7942_v2  ;;  %v7948_v29 = vld [vmem:[%s10225_s0 + $0x8ec] ss:$784 sps:$4 sm:$0xff]   ;;  %v7952_v60 = vld [vmem:[%s10225_s0 + $0x2d8] ss:$784 sps:$4 sm:$0xff]  }
 0x162   :  { %7345 = vmatmul.mubr.msk.bf16.vlgmr.msra.gmra.mrb[172].mxu0 %vm2368_vm0, %v9049_v63  ;;  %v7943_v49 = vld [vmem:[%s10225_s0 + $0x8e0] ss:$784 sps:$4 sm:$0xff]   ;;  %v7954_v19 = vld [vmem:[%s10225_s0 + $0x2dc] ss:$784 sps:$4 sm:$0xff]  }
 0x163   :  { %7346 = vmatmul.mubr.msk.bf16.vlgmr.msra.gmra.mrb[172].mxu1 %vm2368_vm0, %v9049_v63  ;;  %5981 = vmatpush1.bf16.msra.mxu0 %v7937_v43 }
 0x164   :  { %6022 = vmatpush1.bf16.msra.mxu1 %v7940_v3  ;;  %5982 = vmatprep.subr.bf16.mxu0 %v7945_v59  ;;  %v7949_v59 = vld [vmem:[%s10225_s0 + $0x2d0] ss:$784 sps:$4 sm:$0xff]  }
 0x165   :  { %6023 = vmatprep.subr.bf16.mxu1 %v7948_v29  ;;  %v9564_v14 = vpop.f32.mrb[68].mxu0  ;;  %6012 = vmatprep.mubr.bf16.mxu0 %v10348_v46  ;;  %v7969_v29 = vld [vmem:[%s10225_s0 + $0x904] ss:$784 sps:$4 sm:$0xff]  }
 0x166   :  { %v9566_v2 = vpop.f32.mrb[68].mxu1  ;;  %6053 = vmatprep.mubr.bf16.mxu1 %v10348_v46  ;;  %v9574_v43 = vpop.f32.mrb[69].mxu0 }
 0x167   :  { %10356 = vst [vmem:[#allocation50_spill] sm:$0xff] %v9566_v2  ;;  %v9576_v3 = vpop.f32.mrb[69].mxu1  ;;  %v3804_v5 = vpop.f32.mrb[70].mxu0  ;;  %5983 = vmatpush1.bf16.msra.mxu0 %v7943_v49  ;;  %v7963_v49 = vld [vmem:[%s10225_s0 + $0x2e4] ss:$784 sps:$4 sm:$0xff]  }
 0x168   :  { %10357 = vst [vmem:[#allocation51_spill] sm:$0xff] %v9576_v3  ;;  %v3845_v48 = vpop.f32.mrb[70].mxu1  ;;  %6024 = vmatpush1.bf16.msra.mxu1 %v7946_v25  ;;  %v3805_v2 = vpop.f32.mrb[71].mxu0  ;;  %6062 = vmatprep.subr.bf16.mxu0 %v7951_v30  ;;  %v7958_v5 = vld [vmem:[%s10225_s0 + $0x8f8] ss:$784 sps:$4 sm:$0xff]  }
 0x169   :  { %v3846_v8 = vpop.f32.mrb[71].mxu1  ;;  %6103 = vmatprep.subr.bf16.mxu1 %v7954_v19  ;;  %v7960_v48 = vld [vmem:[%s10225_s0 + $0x8fc] ss:$784 sps:$4 sm:$0xff]   ;;  %v7964_v2 = vld [vmem:[%s10225_s0 + $0x2e8] ss:$784 sps:$4 sm:$0xff]  }
 0x16a   :  { %7347 = vmatmul.mubr.msk.bf16.vlgmr.msra.gmra.mrb[176].mxu0 %vm2368_vm0, %v9049_v63  ;;  %v7955_v8 = vld [vmem:[%s10225_s0 + $0x8f0] ss:$784 sps:$4 sm:$0xff]   ;;  %v7966_v25 = vld [vmem:[%s10225_s0 + $0x2ec] ss:$784 sps:$4 sm:$0xff]  }
 0x16b   :  { %7348 = vmatmul.mubr.msk.bf16.vlgmr.msra.gmra.mrb[176].mxu1 %vm2368_vm0, %v9049_v63  ;;  %6063 = vmatpush1.bf16.msra.mxu0 %v7949_v59 }
 0x16c   :  { %6104 = vmatpush1.bf16.msra.mxu1 %v7952_v60  ;;  %6064 = vmatprep.subr.bf16.mxu0 %v7957_v13  ;;  %v7961_v13 = vld [vmem:[%s10225_s0 + $0x2e0] ss:$784 sps:$4 sm:$0xff]  }
 0x16d   :  { %6105 = vmatprep.subr.bf16.mxu1 %v7960_v48  ;;  %v9610_v30 = vpop.f32.mrb[72].mxu0  ;;  %6094 = vmatprep.mubr.bf16.mxu0 %v10348_v46  ;;  %v7981_v48 = vld [vmem:[%s10225_s0 + $0x914] ss:$784 sps:$4 sm:$0xff]  }
 0x16e   :  { %10358 = vst [vmem:[#allocation52_spill] sm:$0xff] %v9610_v30  ;;  %v9612_v19 = vpop.f32.mrb[72].mxu1  ;;  %6135 = vmatprep.mubr.bf16.mxu1 %v10348_v46  ;;  %v9620_v59 = vpop.f32.mrb[73].mxu0  ;;  %v10414_v30 = vld [vmem:[#allocation41_spill] sm:$0xff] }
 0x16f   :  { %10359 = vst [vmem:[#allocation53_spill] sm:$0xff] %v9612_v19  ;;  %10360 = vst [vmem:[#allocation54_spill] sm:$0xff] %v9620_v59  ;;  %v9622_v60 = vpop.f32.mrb[73].mxu1  ;;  %v3886_v3 = vpop.f32.mrb[74].mxu0  ;;  %6065 = vmatpush1.bf16.msra.mxu0 %v7955_v8  ;;  %v7975_v8 = vld [vmem:[%s10225_s0 + $0x2f4] ss:$784 sps:$4 sm:$0xff]  }
 0x170   :  { %10361 = vst [vmem:[#allocation55_spill] sm:$0xff] %v9622_v60  ;;  %v3927_v7 = vpop.f32.mrb[74].mxu1  ;;  %6106 = vmatpush1.bf16.msra.mxu1 %v7958_v5  ;;  %v3887_v19 = vpop.f32.mrb[75].mxu0  ;;  %6144 = vmatprep.subr.bf16.mxu0 %v7963_v49  ;;  %v7970_v3 = vld [vmem:[%s10225_s0 + $0x908] ss:$784 sps:$4 sm:$0xff]  }
 0x171   :  { %v3928_v33 = vpop.f32.mrb[75].mxu1  ;;  %6185 = vmatprep.subr.bf16.mxu1 %v7966_v25  ;;  %v7972_v7 = vld [vmem:[%s10225_s0 + $0x90c] ss:$784 sps:$4 sm:$0xff]   ;;  %v7976_v19 = vld [vmem:[%s10225_s0 + $0x2f8] ss:$784 sps:$4 sm:$0xff]  }
 0x172   :  { %7349 = vmatmul.mubr.msk.bf16.vlgmr.msra.gmra.mrb[180].mxu0 %vm2368_vm0, %v9049_v63  ;;  %v7967_v33 = vld [vmem:[%s10225_s0 + $0x900] ss:$784 sps:$4 sm:$0xff]   ;;  %v7978_v5 = vld [vmem:[%s10225_s0 + $0x2fc] ss:$784 sps:$4 sm:$0xff]  }
 0x173   :  { %7350 = vmatmul.mubr.msk.bf16.vlgmr.msra.gmra.mrb[180].mxu1 %vm2368_vm0, %v9049_v63  ;;  %6145 = vmatpush1.bf16.msra.mxu0 %v7961_v13 }
 0x174   :  { %6186 = vmatpush1.bf16.msra.mxu1 %v7964_v2  ;;  %6146 = vmatprep.subr.bf16.mxu0 %v7969_v29  ;;  %v7973_v29 = vld [vmem:[%s10225_s0 + $0x2f0] ss:$784 sps:$4 sm:$0xff]  }
 0x175   :  { %6187 = vmatprep.subr.bf16.mxu1 %v7972_v7  ;;  %v9656_v49 = vpop.f32.mrb[76].mxu0  ;;  %6176 = vmatprep.mubr.bf16.mxu0 %v10348_v46  ;;  %v7993_v7 = vld [vmem:[%s10225_s0 + $0x924] ss:$784 sps:$4 sm:$0xff]  }
 0x176   :  { %10362 = vst [vmem:[#allocation56_spill] sm:$0xff] %v9656_v49  ;;  %v9658_v25 = vpop.f32.mrb[76].mxu1  ;;  %6217 = vmatprep.mubr.bf16.mxu1 %v10348_v46  ;;  %v9666_v13 = vpop.f32.mrb[77].mxu0 }
 0x177   :  { %10363 = vst [vmem:[#allocation57_spill] sm:$0xff] %v9658_v25  ;;  %10364 = vst [vmem:[#allocation58_spill] sm:$0xff] %v9666_v13  ;;  %v9668_v2 = vpop.f32.mrb[77].mxu1  ;;  %v3968_v60 = vpop.f32.mrb[78].mxu0  ;;  %6147 = vmatpush1.bf16.msra.mxu0 %v7967_v33  ;;  %v7987_v33 = vld [vmem:[%s10225_s0 + $0x304] ss:$784 sps:$4 sm:$0xff]  }
 0x178   :  { %10365 = vst [vmem:[#allocation59_spill] sm:$0xff] %v9668_v2  ;;  %v4009_v32 = vpop.f32.mrb[78].mxu1  ;;  %6188 = vmatpush1.bf16.msra.mxu1 %v7970_v3  ;;  %v3969_v25 = vpop.f32.mrb[79].mxu0  ;;  %6226 = vmatprep.subr.bf16.mxu0 %v7975_v8  ;;  %v7982_v60 = vld [vmem:[%s10225_s0 + $0x918] ss:$784 sps:$4 sm:$0xff]  }
 0x179   :  { %v4010_v56 = vpop.f32.mrb[79].mxu1  ;;  %6267 = vmatprep.subr.bf16.mxu1 %v7978_v5  ;;  %v7984_v32 = vld [vmem:[%s10225_s0 + $0x91c] ss:$784 sps:$4 sm:$0xff]   ;;  %v7988_v25 = vld [vmem:[%s10225_s0 + $0x308] ss:$784 sps:$4 sm:$0xff]  }
 0x17a   :  { %7351 = vmatmul.mubr.msk.bf16.vlgmr.msra.gmra.mrb[184].mxu0 %vm2368_vm0, %v9049_v63  ;;  %v7979_v56 = vld [vmem:[%s10225_s0 + $0x910] ss:$784 sps:$4 sm:$0xff]   ;;  %v7990_v3 = vld [vmem:[%s10225_s0 + $0x30c] ss:$784 sps:$4 sm:$0xff]  }
 0x17b   :  { %7352 = vmatmul.mubr.msk.bf16.vlgmr.msra.gmra.mrb[184].mxu1 %vm2368_vm0, %v9049_v63  ;;  %6227 = vmatpush1.bf16.msra.mxu0 %v7973_v29 }
 0x17c   :  { %6268 = vmatpush1.bf16.msra.mxu1 %v7976_v19  ;;  %6228 = vmatprep.subr.bf16.mxu0 %v7981_v48  ;;  %v7985_v48 = vld [vmem:[%s10225_s0 + $0x300] ss:$784 sps:$4 sm:$0xff]  }
 0x17d   :  { %6269 = vmatprep.subr.bf16.mxu1 %v7984_v32  ;;  %v9702_v8 = vpop.f32.mrb[80].mxu0  ;;  %6258 = vmatprep.mubr.bf16.mxu0 %v10348_v46 }
 0x17e   :  { %10366 = vst [vmem:[#allocation60_spill] sm:$0xff] %v9702_v8  ;;  %v9704_v5 = vpop.f32.mrb[80].mxu1  ;;  %6299 = vmatprep.mubr.bf16.mxu1 %v10348_v46  ;;  %v9712_v29 = vpop.f32.mrb[81].mxu0 }
 0x17f   :  { %10367 = vst [vmem:[#allocation61_spill] sm:$0xff] %v9704_v5  ;;  %10368 = vst [vmem:[#allocation62_spill] sm:$0xff] %v9712_v29  ;;  %v9714_v19 = vpop.f32.mrb[81].mxu1  ;;  %v4050_v2 = vpop.f32.mrb[82].mxu0  ;;  %6229 = vmatpush1.bf16.msra.mxu0 %v7979_v56 }
 0x180   :  { %10369 = vst [vmem:[#allocation63_spill] sm:$0xff] %v9714_v19  ;;  %v4091_v55 = vpop.f32.mrb[82].mxu1  ;;  %6270 = vmatpush1.bf16.msra.mxu1 %v7982_v60  ;;  %v4051_v5 = vpop.f32.mrb[83].mxu0  ;;  %6308 = vmatprep.subr.bf16.mxu0 %v7987_v33  ;;  %v7994_v2 = vld [vmem:[%s10225_s0 + $0x928] ss:$784 sps:$4 sm:$0xff]  }
 0x181   :  { %v4092_v23 = vpop.f32.mrb[83].mxu1  ;;  %6349 = vmatprep.subr.bf16.mxu1 %v7990_v3  ;;  %v7996_v55 = vld [vmem:[%s10225_s0 + $0x92c] ss:$784 sps:$4 sm:$0xff]   ;;  %v7999_v33 = vld [vmem:[%s10226_s1] sm:$0x7] }
 0x182   :  { %7353 = vmatmul.mubr.msk.bf16.vlgmr.msra.gmra.mrb[188].mxu0 %vm2368_vm0, %v9049_v63  ;;  %v7991_v23 = vld [vmem:[%s10225_s0 + $0x920] ss:$784 sps:$4 sm:$0xff]  }
 0x183   :  { %7354 = vmatmul.mubr.msk.bf16.vlgmr.msra.gmra.mrb[188].mxu1 %vm2368_vm0, %v9049_v63  ;;  %6309 = vmatpush1.bf16.msra.mxu0 %v7985_v48 }
 0x184   :  { %6350 = vmatpush1.bf16.msra.mxu1 %v7988_v25  ;;  %6310 = vmatprep.subr.bf16.mxu0 %v7993_v7 }
 0x185   :  { %6351 = vmatprep.subr.bf16.mxu1 %v7996_v55  ;;  %v9742_v56 = vpop.f32.mrb[84].mxu0  ;;  %6340 = vmatprep.mubr.bf16.mxu0 %v10348_v46 }
 0x186   :  { %10370 = vst [vmem:[#allocation64_spill] sm:$0xff] %v9742_v56  ;;  %v9744_v60 = vpop.f32.mrb[84].mxu1  ;;  %6381 = vmatprep.mubr.bf16.mxu1 %v10348_v46  ;;  %v9752_v3 = vpop.f32.mrb[85].mxu0 }
 0x187   :  { %10371 = vst [vmem:[#allocation65_spill] sm:$0xff] %v9744_v60  ;;  %10372 = vst [vmem:[#allocation66_spill] sm:$0xff] %v9752_v3  ;;  %v9754_v5 = vpop.f32.mrb[85].mxu1  ;;  %v4132_v25 = vpop.f32.mrb[86].mxu0  ;;  %6311 = vmatpush1.bf16.msra.mxu0 %v7991_v23 }
 0x188   :  { %10373 = vst [vmem:[#allocation67_spill] sm:$0xff] %v9754_v5  ;;  %v4173_v55 = vpop.f32.mrb[86].mxu1  ;;  %6352 = vmatpush1.bf16.msra.mxu1 %v7994_v2  ;;  %v4133_v46 = vpop.f32.mrb[87].mxu0 }
 0x189   :  { %v4174_v32 = vpop.f32.mrb[87].mxu1 }
 0x18a   :  { %7355 = vmatmul.mubr.msk.bf16.vlgmr.msra.gmra.mrb[192].mxu0 %vm2368_vm0, %v7999_v33 }
 0x18b   :  { %7356 = vmatmul.mubr.msk.bf16.vlgmr.msra.gmra.mrb[192].mxu1 %vm2368_vm0, %v7999_v33 }
 0x18d   :  { %v9765_v63 = vpop.f32.mrb[88].mxu0 }
 0x18e   :  { %10374 = vst [vmem:[#allocation68_spill] sm:$0xff] %v9765_v63  ;;  %v9767_v7 = vpop.f32.mrb[88].mxu1  ;;  %v9773_v2 = vpop.f32.mrb[89].mxu0 }
 0x18f   :  { %10375 = vst [vmem:[#allocation69_spill] sm:$0xff] %v9767_v7  ;;  %10376 = vst [vmem:[#allocation70_spill] sm:$0xff] %v9773_v2  ;;  %v9775_v32 = vpop.f32.mrb[89].mxu1  ;;  %v4214_v46 = vpop.f32.mrb[90].mxu0 }
 0x190   :  { %10377 = vst [vmem:[#allocation71_spill] sm:$0xff] %v9775_v32  ;;  %v4255_v48 = vpop.f32.mrb[90].mxu1  ;;  %v4215_v5 = vpop.f32.mrb[91].mxu0 }
 0x191   :  { %v4256_v53 = vpop.f32.mrb[91].mxu1 }
 0x195   :  { %v9781_v60 = vpop.f32.mrb[92].mxu0 }
 0x196   :  { %10378 = vst [vmem:[#allocation72_spill] sm:$0xff] %v9781_v60  ;;  %v9783_v25 = vpop.f32.mrb[92].mxu1  ;;  %v9789_v37 = vpop.f32.mrb[93].mxu0 }
 0x197   :  { %10379 = vst [vmem:[#allocation73_spill] sm:$0xff] %v9783_v25  ;;  %10380 = vst [vmem:[#allocation74_spill] sm:$0xff] %v9789_v37  ;;  %v9791_v55 = vpop.f32.mrb[93].mxu1  ;;  %v4296_v5 = vpop.f32.mrb[94].mxu0 }
 0x198   :  { %10381 = vst [vmem:[#allocation75_spill] sm:$0xff] %v9791_v55  ;;  %v4337_v48 = vpop.f32.mrb[94].mxu1  ;;  %v4297_v33 = vpop.f32.mrb[95].mxu0 }
 0x199   :  { %v4338_v32 = vpop.f32.mrb[95].mxu1 }
 0x19d   :  { %v9797_v36 = vpop.f32.mrb[96].mxu0 }
 0x19e   :  { %10382 = vst [vmem:[#allocation76_spill] sm:$0xff] %v9797_v36  ;;  %v9799_v23 = vpop.f32.mrb[96].mxu1  ;;  %v9803_v25 = vpop.f32.mrb[97].mxu0 }
 0x19f   :  { %10383 = vst [vmem:[#allocation77_spill] sm:$0xff] %v9803_v25  ;;  %v9805_v18 = vpop.f32.mrb[97].mxu1  ;;  %v4378_v37 = vpop.f32.mrb[98].mxu0 }
 0x1a0   :  { %v4419_v53 = vpop.f32.mrb[98].mxu1  ;;  %v4379_v5 = vpop.f32.mrb[99].mxu0 }
 0x1a1   :  { %v4420_v48 = vpop.f32.mrb[99].mxu1 }
 0x1a5   :  { %v9809_v33 = vpop.f32.mrb[100].mxu0 }
 0x1a6   :  { %v9811_v32 = vpop.f32.mrb[100].mxu1  ;;  %v9813_v55 = vpop.f32.mrb[101].mxu0 }
 0x1a7   :  { %v9815_v17 = vpop.f32.mrb[101].mxu1  ;;  %v4460_v7 = vpop.f32.mrb[102].mxu0 }
 0x1a8   :  { %v4501_v36 = vpop.f32.mrb[102].mxu1  ;;  %v4461_v20 = vpop.f32.mrb[103].mxu0 }
 0x1a9   :  { %v4502_v16 = vpop.f32.mrb[103].mxu1 }
 0x1ad   :  { %v9817_v60 = vpop.f32.mrb[104].mxu0 }
 0x1ae   :  { %v9819_v38 = vpop.f32.mrb[104].mxu1  ;;  %v9821_v37 = vpop.f32.mrb[105].mxu0 }
 0x1af   :  { %v9823_v53 = vpop.f32.mrb[105].mxu1  ;;  %v4542_v5 = vpop.f32.mrb[106].mxu0 }
 0x1b0   :  { %v4583_v48 = vpop.f32.mrb[106].mxu1  ;;  %v4543_v46 = vpop.f32.mrb[107].mxu0 }
 0x1b1   :  { %v4584_v25 = vpop.f32.mrb[107].mxu1 }
 0x1b5   :  { %v9825_v11 = vpop.f32.mrb[108].mxu0 }
 0x1b6   :  { %v9827_v2 = vpop.f32.mrb[108].mxu1  ;;  %v9829_v7 = vpop.f32.mrb[109].mxu0 }
 0x1b7   :  { %v9831_v36 = vpop.f32.mrb[109].mxu1  ;;  %v4624_v16 = vpop.f32.mrb[110].mxu0 }
 0x1b8   :  { %v4665_v20 = vpop.f32.mrb[110].mxu1  ;;  %v4625_v35 = vpop.f32.mrb[111].mxu0 }
 0x1b9   :  { %v4666_v63 = vpop.f32.mrb[111].mxu1 }
 0x1bd   :  { %v9833_v0 = vpop.f32.mrb[112].mxu0 }
 0x1be   :  { %v9835_v62 = vpop.f32.mrb[112].mxu1  ;;  %v9837_v5 = vpop.f32.mrb[113].mxu0 }
 0x1bf   :  { %v9839_v46 = vpop.f32.mrb[113].mxu1  ;;  %v4706_v25 = vpop.f32.mrb[114].mxu0 }
 0x1c0   :  { %v4747_v48 = vpop.f32.mrb[114].mxu1  ;;  %v4707_v3 = vpop.f32.mrb[115].mxu0 }
 0x1c1   :  { %v4748_v52 = vpop.f32.mrb[115].mxu1 }
 0x1c5   :  { %v9841_v19 = vpop.f32.mrb[116].mxu0 }
 0x1c6   :  { %v9843_v22 = vpop.f32.mrb[116].mxu1  ;;  %v9845_v16 = vpop.f32.mrb[117].mxu0 }
 0x1c7   :  { %v9847_v35 = vpop.f32.mrb[117].mxu1  ;;  %v4788_v63 = vpop.f32.mrb[118].mxu0 }
 0x1c8   :  { %v4829_v20 = vpop.f32.mrb[118].mxu1  ;;  %v4789_v56 = vpop.f32.mrb[119].mxu0 }
 0x1c9   :  { %v4830_v24 = vpop.f32.mrb[119].mxu1 }
 0x1cd   :  { %v9849_v29 = vpop.f32.mrb[120].mxu0 }
 0x1ce   :  { %v9851_v21 = vpop.f32.mrb[120].mxu1  ;;  %v9853_v25 = vpop.f32.mrb[121].mxu0 }
 0x1cf   :  { %v9855_v3 = vpop.f32.mrb[121].mxu1  ;;  %v4870_v52 = vpop.f32.mrb[122].mxu0 }
 0x1d0   :  { %10384 = vst [vmem:[#allocation78_spill] sm:$0xff] %v9855_v3  ;;  %v4911_v48 = vpop.f32.mrb[122].mxu1  ;;  %v4871_v8 = vpop.f32.mrb[123].mxu0 }
 0x1d1   :  { %v4912_v57 = vpop.f32.mrb[123].mxu1 }
 0x1d5   :  { %v9857_v13 = vpop.f32.mrb[124].mxu0 }
 0x1d6   :  { %10385 = vst [vmem:[#allocation79_spill] sm:$0xff] %v9857_v13  ;;  %v9859_v54 = vpop.f32.mrb[124].mxu1  ;;  %v9861_v63 = vpop.f32.mrb[125].mxu0 }
 0x1d7   :  { %10386 = vst [vmem:[#allocation80_spill] sm:$0xff] %v9859_v54  ;;  %10387 = vst [vmem:[#allocation81_spill] sm:$0xff] %v9861_v63  ;;  %v9863_v56 = vpop.f32.mrb[125].mxu1  ;;  %v4952_v24 = vpop.f32.mrb[126].mxu0 }
 0x1d8   :  { %10388 = vst [vmem:[#allocation82_spill] sm:$0xff] %v9863_v56  ;;  %v4993_v20 = vpop.f32.mrb[126].mxu1  ;;  %v4953_v49 = vpop.f32.mrb[127].mxu0 }
 0x1d9   :  { %v4994_v34 = vpop.f32.mrb[127].mxu1 }
 0x1dd   :  { %v9865_v59 = vpop.f32.mrb[128].mxu0 }
 0x1de   :  { %10389 = vst [vmem:[#allocation83_spill] sm:$0xff] %v9865_v59  ;;  %v9867_v27 = vpop.f32.mrb[128].mxu1  ;;  %v9869_v52 = vpop.f32.mrb[129].mxu0 }
 0x1df   :  { %10390 = vst [vmem:[#allocation84_spill] sm:$0xff] %v9867_v27  ;;  %10391 = vst [vmem:[#allocation85_spill] sm:$0xff] %v9869_v52  ;;  %v9871_v8 = vpop.f32.mrb[129].mxu1  ;;  %v5034_v57 = vpop.f32.mrb[130].mxu0 }
 0x1e0   :  { %10392 = vst [vmem:[#allocation86_spill] sm:$0xff] %v9871_v8  ;;  %v5075_v48 = vpop.f32.mrb[130].mxu1  ;;  %v5035_v13 = vpop.f32.mrb[131].mxu0 }
 0x1e1   :  { %v5076_v54 = vpop.f32.mrb[131].mxu1 }
 0x1e5   :  { %v9873_v3 = vpop.f32.mrb[132].mxu0 }
 0x1e6   :  { %10393 = vst [vmem:[#allocation87_spill] sm:$0xff] %v9873_v3  ;;  %v9875_v63 = vpop.f32.mrb[132].mxu1  ;;  %v9877_v24 = vpop.f32.mrb[133].mxu0 }
 0x1e7   :  { %10394 = vst [vmem:[#allocation88_spill] sm:$0xff] %v9875_v63  ;;  %10395 = vst [vmem:[#allocation89_spill] sm:$0xff] %v9877_v24  ;;  %v9879_v49 = vpop.f32.mrb[133].mxu1  ;;  %v5116_v34 = vpop.f32.mrb[134].mxu0 }
 0x1e8   :  { %10396 = vst [vmem:[#allocation90_spill] sm:$0xff] %v9879_v49  ;;  %v5157_v20 = vpop.f32.mrb[134].mxu1  ;;  %v5117_v59 = vpop.f32.mrb[135].mxu0 }
 0x1e9   :  { %v5158_v27 = vpop.f32.mrb[135].mxu1 }
 0x1ed   :  { %v9881_v56 = vpop.f32.mrb[136].mxu0 }
 0x1ee   :  { %10397 = vst [vmem:[#allocation91_spill] sm:$0xff] %v9881_v56  ;;  %v9883_v52 = vpop.f32.mrb[136].mxu1  ;;  %v9885_v57 = vpop.f32.mrb[137].mxu0 }
 0x1ef   :  { %10398 = vst [vmem:[#allocation92_spill] sm:$0xff] %v9883_v52  ;;  %10399 = vst [vmem:[#allocation93_spill] sm:$0xff] %v9885_v57  ;;  %v9887_v13 = vpop.f32.mrb[137].mxu1  ;;  %v5198_v54 = vpop.f32.mrb[138].mxu0 }
 0x1f0   :  { %10400 = vst [vmem:[#allocation94_spill] sm:$0xff] %v9887_v13  ;;  %v5239_v48 = vpop.f32.mrb[138].mxu1  ;;  %v5199_v3 = vpop.f32.mrb[139].mxu0 }
 0x1f1   :  { %v5240_v63 = vpop.f32.mrb[139].mxu1 }
 0x1f5   :  { %v9889_v8 = vpop.f32.mrb[140].mxu0 }
 0x1f6   :  { %10401 = vst [vmem:[#allocation95_spill] sm:$0xff] %v9889_v8  ;;  %v9891_v24 = vpop.f32.mrb[140].mxu1  ;;  %v9893_v34 = vpop.f32.mrb[141].mxu0 }
 0x1f7   :  { %10402 = vst [vmem:[#allocation96_spill] sm:$0xff] %v9891_v24  ;;  %10403 = vst [vmem:[#allocation97_spill] sm:$0xff] %v9893_v34  ;;  %v9895_v59 = vpop.f32.mrb[141].mxu1  ;;  %v5280_v27 = vpop.f32.mrb[142].mxu0 }
 0x1f8   :  { %10404 = vst [vmem:[#allocation98_spill] sm:$0xff] %v9895_v59  ;;  %v5321_v20 = vpop.f32.mrb[142].mxu1  ;;  %v5281_v56 = vpop.f32.mrb[143].mxu0  ;;  %v10408_v59 = vmax.f32 %v8872_v42, %v9344_v26 }
 0x1f9   :  { %v5322_v52 = vpop.f32.mrb[143].mxu1  ;;  %v9907_v20 = vpop.permute.xlu0 %6540 }
 0x1fd   :  { %v9897_v49 = vpop.f32.mrb[144].mxu0 }
 0x1fe   :  { %10405 = vst [vmem:[#allocation99_spill] sm:$0xff] %v9897_v49  ;;  %v9899_v57 = vpop.f32.mrb[144].mxu1  ;;  %v9901_v54 = vpop.f32.mrb[145].mxu0 }
 0x1ff   :  { %10406 = vst [vmem:[#allocation100_spill] sm:$0xff] %v9899_v57  ;;  %10407 = vst [vmem:[#allocation101_spill] sm:$0xff] %v9901_v54  ;;  %v5401_v3 = vpop.f32.mrb[145].mxu1  ;;  %v5362_v48 = vpop.f32.mrb[146].mxu0 }
 0x200   :  { %v6439_v63 = vmax.f32 %v9799_v23, %v5401_v3  ;;  %v5403_v8 = vpop.f32.mrb[146].mxu1  ;;  %v5363_v24 = vpop.f32.mrb[147].mxu0  ;;  %v10409_v3 = vld [vmem:[#allocation3_spill] sm:$0xff]  ;;  %v10410_v48 = vld [vmem:[#allocation40_spill] sm:$0xff] }
 0x201   :  { %v5404_v13 = vpop.f32.mrb[147].mxu1  ;;  %v10411_v42 = vmax.f32 %v10409_v3, %v10410_v48 }
 0x202   :  { %v6488_v27 = vmax.f32 %v10408_v59, %v6439_v63  ;;  %v10412_v63 = vmax.f32 %v8880_v45, %v9380_v15 }
 0x204   :  { %v6543_v59 = vadd.f32 %v9907_v20, %v6488_v27 }
 0x205   :  { %v5440_v56 = vpop.f32.mrb[148].mxu0 }
 0x206   :  { %v5481_v52 = vpop.f32.mrb[148].mxu1  ;;  %v6440_v49 = vmax.f32 %v9805_v18, %v5440_v56  ;;  %v5442_v54 = vpop.f32.mrb[149].mxu0 }
 0x207   :  { %v6442_v57 = vmax.f32 %v9813_v55, %v5481_v52  ;;  %v5483_v34 = vpop.f32.mrb[149].mxu1  ;;  %v6441_v23 = vmax.f32 %v9809_v33, %v5442_v54  ;;  %v5444_v24 = vpop.f32.mrb[150].mxu0  ;;  %v10413_v52 = vld [vmem:[#allocation2_spill] sm:$0xff] }
 0x208   :  { %v6443_v8 = vmax.f32 %v9811_v32, %v5483_v34  ;;  %v5485_v13 = vpop.f32.mrb[150].mxu1  ;;  %v6489_v26 = vmax.f32 %v10411_v42, %v6440_v49  ;;  %v5445_v56 = vpop.f32.mrb[151].mxu0  ;;  %v10415_v10 = vmax.f32 %v10413_v52, %v10414_v30  ;;  %v10416_v32 = vmax.f32 %v8910_v58, %v9390_v51 }
 0x209   :  { %v6491_v18 = vmax.f32 %v10412_v63, %v6442_v57  ;;  %v5486_v55 = vpop.f32.mrb[151].mxu1  ;;  %v6592_v24 = vmax.f32 %v6543_v59, 0.0  ;;  %v10418_v56 = vld [vmem:[#allocation42_spill] sm:$0xff] }
 0x20a   :  { %v6490_v33 = vmax.f32 %v10415_v10, %v6441_v23  ;;  %v6492_v34 = vmax.f32 %v10416_v32, %v6443_v8  ;;  %v6544_v54 = vadd.f32 %v9907_v20, %v6489_v26  ;;  %v10422_v32 = vld [vmem:[#allocation43_spill] sm:$0xff] }
 0x20b   :  { %v6546_v49 = vadd.f32 %v9907_v20, %v6491_v18  ;;  %v10417_v18 = vld [vmem:[#allocation5_spill] sm:$0xff] }
 0x20c   :  { %v6545_v27 = vadd.f32 %v9907_v20, %v6490_v33  ;;  %v6593_v13 = vmax.f32 %v6544_v54, 0.0  ;;  %v6547_v59 = vadd.f32 %v9907_v20, %v6492_v34  ;;  %v10424_v34 = vmax.f32 %v8948_v12, %v9436_v41 }
 0x20d   :  { %v6595_v45 = vmax.f32 %v6546_v49, 0.0  ;;  %v5522_v57 = vpop.f32.mrb[152].mxu0 }
 0x20e   :  { %v6594_v15 = vmax.f32 %v6545_v27, 0.0  ;;  %v5563_v3 = vpop.f32.mrb[152].mxu1  ;;  %v7382_v48 = vpack.c.bf16 %v6593_v13, %v6592_v24  ;;  %v6444_v30 = vmax.f32 %v9815_v17, %v5522_v57  ;;  %v5524_v23 = vpop.f32.mrb[153].mxu0  ;;  %v10419_v17 = vmax.f32 %v10417_v18, %v10418_v56  ;;  %v10426_v18 = vld [vmem:[#allocation44_spill] sm:$0xff] }
 0x20f   :  { %v6446_v10 = vmax.f32 %v9821_v37, %v5563_v3  ;;  %v5565_v58 = vpop.f32.mrb[153].mxu1  ;;  %v6445_v8 = vmax.f32 %v9817_v60, %v5524_v23  ;;  %v5526_v26 = vpop.f32.mrb[154].mxu0  ;;  %v10420_v37 = vmax.f32 %v8918_v61, %v9426_v4  ;;  %v6596_v4 = vmax.f32 %v6547_v59, 0.0  ;;  %v10425_v59 = vld [vmem:[#allocation7_spill] sm:$0xff] }
 0x210   :  { %v7383_v51 = vpack.c.bf16 %v6595_v45, %v6594_v15  ;;  %v6447_v42 = vmax.f32 %v9819_v38, %v5565_v58  ;;  %v5567_v63 = vpop.f32.mrb[154].mxu1  ;;  %6838 = vst [vmem:[%s10228_s3] sm:$0x77] %v7382_v48  ;;  %v6493_v55 = vmax.f32 %v10419_v17, %v6444_v30  ;;  %v5527_v33 = vpop.f32.mrb[155].mxu0  ;;  %v10421_v38 = vld [vmem:[#allocation4_spill] sm:$0xff] }
 0x211   :  { %v6495_v52 = vmax.f32 %v10420_v37, %v6446_v10  ;;  %v5568_v60 = vpop.f32.mrb[155].mxu1  ;;  %v10423_v54 = vmax.f32 %v10421_v38, %v10422_v32  ;;  %v10430_v37 = vld [vmem:[#allocation45_spill] sm:$0xff] }
 0x212   :  { %6839 = vst [vmem:[%s10228_s3 + $0x8] sm:$0x77] %v7383_v51  ;;  %v6496_v27 = vmax.f32 %v10424_v34, %v6447_v42  ;;  %v6548_v24 = vadd.f32 %v9907_v20, %v6493_v55  ;;  %v10432_v60 = vmax.f32 %v8986_v28, %v9482_v39 }
 0x213   :  { %v6494_v49 = vmax.f32 %v10423_v54, %v6445_v8  ;;  %v6550_v13 = vadd.f32 %v9907_v20, %v6495_v52 }
 0x214   :  { %v6597_v45 = vmax.f32 %v6548_v24, 0.0  ;;  %v6551_v63 = vadd.f32 %v9907_v20, %v6496_v27 }
 0x215   :  { %v6549_v61 = vadd.f32 %v9907_v20, %v6494_v49  ;;  %v6599_v15 = vmax.f32 %v6550_v13, 0.0  ;;  %v5604_v3 = vpop.f32.mrb[156].mxu0 }
 0x216   :  { %v5645_v48 = vpop.f32.mrb[156].mxu1  ;;  %v7384_v30 = vpack.c.bf16 %v6597_v45, %v6596_v4  ;;  %v6448_v10 = vmax.f32 %v9823_v53, %v5604_v3  ;;  %v5606_v58 = vpop.f32.mrb[157].mxu0  ;;  %v10427_v53 = vmax.f32 %v10425_v59, %v10426_v18 }
 0x217   :  { %v6598_v57 = vmax.f32 %v6549_v61, 0.0  ;;  %v6450_v23 = vmax.f32 %v9829_v7, %v5645_v48  ;;  %v5647_v12 = vpop.f32.mrb[157].mxu1  ;;  %v6449_v51 = vmax.f32 %v9825_v11, %v5606_v58  ;;  %v5608_v42 = vpop.f32.mrb[158].mxu0  ;;  %v10428_v7 = vmax.f32 %v8956_v9, %v9472_v1  ;;  %v10434_v58 = vld [vmem:[#allocation46_spill] sm:$0xff] }
 0x218   :  { %v6451_v8 = vmax.f32 %v9827_v2, %v5647_v12  ;;  %v5649_v26 = vpop.f32.mrb[158].mxu1  ;;  %6840 = vst [vmem:[%s10228_s3 + $0x10] sm:$0x77] %v7384_v30  ;;  %v6497_v56 = vmax.f32 %v10427_v53, %v6448_v10  ;;  %v5609_v55 = vpop.f32.mrb[159].mxu0  ;;  %v10429_v2 = vld [vmem:[#allocation6_spill] sm:$0xff]  ;;  %v6600_v1 = vmax.f32 %v6551_v63, 0.0  ;;  %v10440_v63 = vmax.f32 %v9024_v47, %v9528_v40 }
 0x219   :  { %v7385_v41 = vpack.c.bf16 %v6599_v15, %v6598_v57  ;;  %v6499_v17 = vmax.f32 %v10428_v7, %v6450_v23  ;;  %v5650_v11 = vpop.f32.mrb[159].mxu1  ;;  %v10431_v52 = vmax.f32 %v10429_v2, %v10430_v37  ;;  %v10433_v23 = vld [vmem:[#allocation9_spill] sm:$0xff] }
 0x21a   :  { %v6500_v38 = vmax.f32 %v10432_v60, %v6451_v8  ;;  %v6552_v32 = vadd.f32 %v9907_v20, %v6497_v56  ;;  %v10438_v8 = vld [vmem:[#allocation47_spill] sm:$0xff] }
 0x21b   :  { %6841 = vst [vmem:[%s10228_s3 + $0x18] sm:$0x77] %v7385_v41  ;;  %v6498_v33 = vmax.f32 %v10431_v52, %v6449_v51  ;;  %v6554_v54 = vadd.f32 %v9907_v20, %v6499_v17 }
 0x21c   :  { %v6601_v49 = vmax.f32 %v6552_v32, 0.0  ;;  %v6555_v10 = vadd.f32 %v9907_v20, %v6500_v38 }
 0x21d   :  { %v6553_v9 = vadd.f32 %v9907_v20, %v6498_v33  ;;  %v6603_v34 = vmax.f32 %v6554_v54, 0.0  ;;  %v5686_v24 = vpop.f32.mrb[160].mxu0 }
 0x21e   :  { %v5727_v13 = vpop.f32.mrb[160].mxu1  ;;  %v7386_v61 = vpack.c.bf16 %v6601_v49, %v6600_v1  ;;  %v6452_v4 = vmax.f32 %v9831_v36, %v5686_v24  ;;  %v5688_v15 = vpop.f32.mrb[161].mxu0  ;;  %v10435_v36 = vmax.f32 %v10433_v23, %v10434_v58  ;;  %v10441_v1 = vld [vmem:[#allocation11_spill] sm:$0xff]  ;;  %v10442_v49 = vld [vmem:[#allocation48_spill] sm:$0xff] }
 0x21f   :  { %v6602_v27 = vmax.f32 %v6553_v9, 0.0  ;;  %v6454_v45 = vmax.f32 %v9837_v5, %v5727_v13  ;;  %v5729_v28 = vpop.f32.mrb[161].mxu1  ;;  %v6453_v57 = vmax.f32 %v9833_v0, %v5688_v15  ;;  %v5690_v48 = vpop.f32.mrb[162].mxu0  ;;  %v10436_v5 = vmax.f32 %v8994_v31, %v9518_v44  ;;  %v10446_v13 = vld [vmem:[#allocation49_spill] sm:$0xff] }
 0x220   :  { %v6455_v3 = vmax.f32 %v9835_v62, %v5729_v28  ;;  %v5731_v30 = vpop.f32.mrb[162].mxu1  ;;  %6842 = vst [vmem:[%s10228_s3 + $0x20] sm:$0x77] %v7386_v61  ;;  %v6501_v12 = vmax.f32 %v10435_v36, %v6452_v4  ;;  %v5691_v51 = vpop.f32.mrb[163].mxu0  ;;  %v10437_v62 = vld [vmem:[#allocation8_spill] sm:$0xff]  ;;  %v6604_v44 = vmax.f32 %v6555_v10, 0.0 }
 0x221   :  { %v7387_v39 = vpack.c.bf16 %v6603_v34, %v6602_v27  ;;  %v6503_v41 = vmax.f32 %v10436_v5, %v6454_v45  ;;  %v5732_v0 = vpop.f32.mrb[163].mxu1  ;;  %v10439_v42 = vmax.f32 %v10437_v62, %v10438_v8  ;;  %v10448_v45 = vmax.f32 %v9070_v6, %v9574_v43  ;;  %v10449_v8 = vld [vmem:[#allocation13_spill] sm:$0xff] }
 0x222   :  { %v6504_v59 = vmax.f32 %v10440_v63, %v6455_v3  ;;  %v6556_v18 = vadd.f32 %v9907_v20, %v6501_v12  ;;  %v10453_v63 = vld [vmem:[#allocation52_spill] sm:$0xff] }
 0x223   :  { %6843 = vst [vmem:[%s10228_s3 + $0x28] sm:$0x77] %v7387_v39  ;;  %v6502_v26 = vmax.f32 %v10439_v42, %v6453_v57  ;;  %v6558_v53 = vadd.f32 %v9907_v20, %v6503_v41  ;;  %v10450_v42 = vld [vmem:[#allocation50_spill] sm:$0xff] }
 0x224   :  { %v6605_v56 = vmax.f32 %v6556_v18, 0.0  ;;  %v6559_v9 = vadd.f32 %v9907_v20, %v6504_v59 }
 0x225   :  { %v6557_v31 = vadd.f32 %v9907_v20, %v6502_v26  ;;  %v6607_v7 = vmax.f32 %v6558_v53, 0.0  ;;  %v5768_v55 = vpop.f32.mrb[164].mxu0 }
 0x226   :  { %v5809_v11 = vpop.f32.mrb[164].mxu1  ;;  %v7388_v2 = vpack.c.bf16 %v6605_v56, %v6604_v44  ;;  %v6456_v37 = vmax.f32 %v9839_v46, %v5768_v55  ;;  %v5770_v33 = vpop.f32.mrb[165].mxu0  ;;  %v10443_v46 = vmax.f32 %v10441_v1, %v10442_v49  ;;  %v10462_v49 = vld [vmem:[#allocation81_spill] sm:$0xff] }
 0x227   :  { %v6606_v17 = vmax.f32 %v6557_v31, 0.0  ;;  %v6458_v52 = vmax.f32 %v9845_v16, %v5809_v11  ;;  %v5811_v47 = vpop.f32.mrb[165].mxu1  ;;  %v6457_v60 = vmax.f32 %v9841_v19, %v5770_v33  ;;  %v5772_v32 = vpop.f32.mrb[166].mxu0  ;;  %v10444_v16 = vmax.f32 %v9032_v50, %v9564_v14  ;;  %v10456_v31 = vld [vmem:[#allocation51_spill] sm:$0xff] }
 0x228   :  { %v6459_v38 = vmax.f32 %v9843_v22, %v5811_v47  ;;  %v5813_v54 = vpop.f32.mrb[166].mxu1  ;;  %6844 = vst [vmem:[%s10228_s3 + $0x30] sm:$0x77] %v7388_v2  ;;  %v6505_v34 = vmax.f32 %v10443_v46, %v6456_v37  ;;  %v5773_v24 = vpop.f32.mrb[167].mxu0  ;;  %v10445_v22 = vld [vmem:[#allocation10_spill] sm:$0xff]  ;;  %v6608_v14 = vmax.f32 %v6559_v9, 0.0 }
 0x229   :  { %v7389_v40 = vpack.c.bf16 %v6607_v7, %v6606_v17  ;;  %v6507_v27 = vmax.f32 %v10444_v16, %v6458_v52  ;;  %v5814_v19 = vpop.f32.mrb[167].mxu1  ;;  %v10447_v61 = vmax.f32 %v10445_v22, %v10446_v13  ;;  %v10458_v7 = vld [vmem:[#allocation15_spill] sm:$0xff]  ;;  %v10459_v17 = vld [vmem:[#allocation54_spill] sm:$0xff]  ;;  %v10464_v22 = vld [vmem:[#allocation80_spill] sm:$0xff] }
 0x22a   :  { %v6508_v15 = vmax.f32 %v10448_v45, %v6459_v38  ;;  %v6560_v28 = vadd.f32 %v9907_v20, %v6505_v34  ;;  %v10460_v55 = vmax.f32 %v10458_v7, %v10459_v17  ;;  %v10461_v9 = vld [vmem:[#allocation78_spill] sm:$0xff]  ;;  %v10463_v24 = vld [vmem:[#allocation79_spill] sm:$0xff] }
 0x22b   :  { %6845 = vst [vmem:[%s10228_s3 + $0x38] sm:$0x77] %v7389_v40  ;;  %v6506_v4 = vmax.f32 %v10447_v61, %v6457_v60  ;;  %v6562_v39 = vadd.f32 %v9907_v20, %v6507_v27  ;;  %v10479_v7 = vld [vmem:[#allocation83_spill] sm:$0xff] }
 0x22c   :  { %v6609_v57 = vmax.f32 %v6560_v28, 0.0  ;;  %v6563_v62 = vadd.f32 %v9907_v20, %v6508_v15  ;;  %v10465_v15 = vld [vmem:[#allocation17_spill] sm:$0xff] }
 0x22d   :  { %v6561_v50 = vadd.f32 %v9907_v20, %v6506_v4  ;;  %v6611_v3 = vmax.f32 %v6562_v39, 0.0  ;;  %v5850_v30 = vpop.f32.mrb[168].mxu0  ;;  %v10466_v28 = vld [vmem:[#allocation53_spill] sm:$0xff] }
 0x22e   :  { %v5891_v10 = vpop.f32.mrb[168].mxu1  ;;  %v7390_v23 = vpack.c.bf16 %v6609_v57, %v6608_v14  ;;  %v6460_v58 = vmax.f32 %v9847_v35, %v5850_v30  ;;  %v5852_v12 = vpop.f32.mrb[169].mxu0  ;;  %v10451_v35 = vmax.f32 %v10449_v8, %v10450_v42  ;;  %v6612_v33 = vmax.f32 %v6563_v62, 0.0  ;;  %v10468_v14 = vld [vmem:[#allocation18_spill] sm:$0xff]  ;;  %v10469_v57 = vld [vmem:[#allocation56_spill] sm:$0xff] }
 0x22f   :  { %v6610_v48 = vmax.f32 %v6561_v50, 0.0  ;;  %v6462_v36 = vmax.f32 %v9853_v25, %v5891_v10  ;;  %v5893_v6 = vpop.f32.mrb[169].mxu1  ;;  %v6461_v5 = vmax.f32 %v9849_v29, %v5852_v12  ;;  %v5854_v51 = vpop.f32.mrb[170].mxu0  ;;  %v10452_v25 = vld [vmem:[#allocation14_spill] sm:$0xff]  ;;  %v10467_v39 = vmax.f32 %v10465_v15, %v10466_v28 }
 0x230   :  { %v6463_v41 = vmax.f32 %v9851_v21, %v5893_v6  ;;  %v5895_v0 = vpop.f32.mrb[170].mxu1  ;;  %6846 = vst [vmem:[%s10228_s3 + $0x40] sm:$0x77] %v7390_v23  ;;  %v6509_v26 = vmax.f32 %v10451_v35, %v6460_v58  ;;  %v10454_v59 = vmax.f32 %v10452_v25, %v10453_v63  ;;  %v5855_v53 = vpop.f32.mrb[171].mxu0  ;;  %v10455_v21 = vld [vmem:[#allocation12_spill] sm:$0xff]  ;;  %v10472_v58 = vld [vmem:[#allocation55_spill] sm:$0xff] }
 0x231   :  { %v7391_v43 = vpack.c.bf16 %v6611_v3, %v6610_v48  ;;  %v5896_v29 = vpop.f32.mrb[171].mxu1  ;;  %v10457_v44 = vmax.f32 %v10455_v21, %v10456_v31  ;;  %v10470_v3 = vmax.f32 %v10468_v14, %v10469_v57  ;;  %v10471_v23 = vld [vmem:[#allocation16_spill] sm:$0xff]  ;;  %v10474_v6 = vld [vmem:[#allocation19_spill] sm:$0xff] }
 0x232   :  { %v6511_v18 = vmax.f32 %v10454_v59, %v6462_v36  ;;  %v6512_v11 = vmax.f32 %v10460_v55, %v6463_v41  ;;  %v6564_v2 = vadd.f32 %v9907_v20, %v6509_v26  ;;  %v10473_v36 = vmax.f32 %v10471_v23, %v10472_v58  ;;  %v10478_v29 = vld [vmem:[#allocation85_spill] sm:$0xff]  ;;  %v10480_v55 = vld [vmem:[#allocation84_spill] sm:$0xff] }
 0x233   :  { %6847 = vst [vmem:[%s10228_s3 + $0x48] sm:$0x77] %v7391_v43  ;;  %v6510_v56 = vmax.f32 %v10457_v44, %v6461_v5  ;;  %v10475_v43 = vld [vmem:[#allocation58_spill] sm:$0xff] }
 0x234   :  { %v6566_v37 = vadd.f32 %v9907_v20, %v6511_v18  ;;  %v6613_v47 = vmax.f32 %v6564_v2, 0.0  ;;  %v6567_v45 = vadd.f32 %v9907_v20, %v6512_v11  ;;  %v10476_v5 = vmax.f32 %v10474_v6, %v10475_v43  ;;  %v10477_v18 = vld [vmem:[#allocation82_spill] sm:$0xff]  ;;  %v10495_v6 = vld [vmem:[#allocation87_spill] sm:$0xff] }
 0x235   :  { %v6565_v52 = vadd.f32 %v9907_v20, %v6510_v56  ;;  %v5932_v38 = vpop.f32.mrb[172].mxu0 }
 0x236   :  { %v6615_v40 = vmax.f32 %v6566_v37, 0.0  ;;  %v5973_v32 = vpop.f32.mrb[172].mxu1  ;;  %v7392_v54 = vpack.c.bf16 %v6613_v47, %v6612_v33  ;;  %v6464_v1 = vmax.f32 %v10461_v9, %v5932_v38  ;;  %v5934_v34 = vpop.f32.mrb[173].mxu0  ;;  %v6616_v8 = vmax.f32 %v6567_v45, 0.0  ;;  %v10481_v33 = vld [vmem:[#allocation21_spill] sm:$0xff]  ;;  %v10484_v38 = vld [vmem:[#allocation22_spill] sm:$0xff] }
 0x237   :  { %v6614_v60 = vmax.f32 %v6565_v52, 0.0  ;;  %v6466_v46 = vmax.f32 %v10462_v49, %v5973_v32  ;;  %v5975_v16 = vpop.f32.mrb[173].mxu1  ;;  %v6465_v19 = vmax.f32 %v10463_v24, %v5934_v34  ;;  %v5936_v61 = vpop.f32.mrb[174].mxu0  ;;  %v10482_v47 = vld [vmem:[#allocation57_spill] sm:$0xff]  ;;  %v10485_v32 = vld [vmem:[#allocation60_spill] sm:$0xff]  ;;  %v10488_v34 = vld [vmem:[#allocation59_spill] sm:$0xff] }
 0x238   :  { %v6467_v13 = vmax.f32 %v10464_v22, %v5975_v16  ;;  %v5977_v4 = vpop.f32.mrb[174].mxu1  ;;  %6848 = vst [vmem:[%s10228_s3 + $0x50] sm:$0x77] %v7392_v54  ;;  %v6513_v50 = vmax.f32 %v10467_v39, %v6464_v1  ;;  %v5937_v30 = vpop.f32.mrb[175].mxu0  ;;  %v10486_v54 = vmax.f32 %v10484_v38, %v10485_v32  ;;  %v10490_v24 = vld [vmem:[#allocation23_spill] sm:$0xff] }
 0x239   :  { %v7393_v27 = vpack.c.bf16 %v6615_v40, %v6614_v60  ;;  %v6515_v48 = vmax.f32 %v10470_v3, %v6466_v46  ;;  %v5978_v10 = vpop.f32.mrb[175].mxu1  ;;  %v6514_v12 = vmax.f32 %v10473_v36, %v6465_v19  ;;  %v10483_v40 = vmax.f32 %v10481_v33, %v10482_v47  ;;  %v10487_v46 = vld [vmem:[#allocation20_spill] sm:$0xff]  ;;  %v10491_v19 = vld [vmem:[#allocation62_spill] sm:$0xff] }
 0x23a   :  { %v6516_v41 = vmax.f32 %v10476_v5, %v6467_v13  ;;  %v6568_v51 = vadd.f32 %v9907_v20, %v6513_v50  ;;  %v10489_v16 = vmax.f32 %v10487_v46, %v10488_v34  ;;  %v10492_v22 = vmax.f32 %v10490_v24, %v10491_v19  ;;  %v10494_v10 = vld [vmem:[#allocation89_spill] sm:$0xff]  ;;  %v10496_v5 = vld [vmem:[#allocation88_spill] sm:$0xff]  ;;  %v10511_v24 = vld [vmem:[#allocation91_spill] sm:$0xff] }
 0x23b   :  { %6849 = vst [vmem:[%s10228_s3 + $0x58] sm:$0x77] %v7393_v27  ;;  %v6570_v0 = vadd.f32 %v9907_v20, %v6515_v48  ;;  %v6569_v62 = vadd.f32 %v9907_v20, %v6514_v12  ;;  %v10493_v48 = vld [vmem:[#allocation86_spill] sm:$0xff] }
 0x23c   :  { %v6617_v42 = vmax.f32 %v6568_v51, 0.0  ;;  %v6571_v52 = vadd.f32 %v9907_v20, %v6516_v41 }
 0x23d   :  { %v6619_v35 = vmax.f32 %v6570_v0, 0.0  ;;  %v6618_v26 = vmax.f32 %v6569_v62, 0.0  ;;  %v6014_v25 = vpop.f32.mrb[176].mxu0 }
 0x23e   :  { %v6055_v63 = vpop.f32.mrb[176].mxu1  ;;  %v7394_v59 = vpack.c.bf16 %v6617_v42, %v6616_v8  ;;  %v6468_v53 = vmax.f32 %v10477_v18, %v6014_v25  ;;  %v6016_v31 = vpop.f32.mrb[177].mxu0  ;;  %v6620_v15 = vmax.f32 %v6571_v52, 0.0  ;;  %v10497_v8 = vld [vmem:[#allocation25_spill] sm:$0xff]  ;;  %v10500_v25 = vld [vmem:[#allocation26_spill] sm:$0xff] }
 0x23f   :  { %v6470_v21 = vmax.f32 %v10478_v29, %v6055_v63  ;;  %v6057_v44 = vpop.f32.mrb[177].mxu1  ;;  %v7395_v56 = vpack.c.bf16 %v6619_v35, %v6618_v26  ;;  %v6469_v17 = vmax.f32 %v10479_v7, %v6016_v31  ;;  %v6018_v2 = vpop.f32.mrb[178].mxu0  ;;  %v10498_v42 = vld [vmem:[#allocation61_spill] sm:$0xff]  ;;  %v10501_v63 = vld [vmem:[#allocation64_spill] sm:$0xff]  ;;  %v10504_v31 = vld [vmem:[#allocation63_spill] sm:$0xff] }
 0x240   :  { %v6471_v11 = vmax.f32 %v10480_v55, %v6057_v44  ;;  %v6059_v37 = vpop.f32.mrb[178].mxu1  ;;  %6850 = vst [vmem:[%s10228_s3 + $0x60] sm:$0x77] %v7394_v59  ;;  %v6517_v60 = vmax.f32 %v10483_v40, %v6468_v53  ;;  %v6019_v1 = vpop.f32.mrb[179].mxu0  ;;  %v10499_v35 = vmax.f32 %v10497_v8, %v10498_v42  ;;  %v10502_v59 = vmax.f32 %v10500_v25, %v10501_v63  ;;  %v10506_v7 = vld [vmem:[#allocation27_spill] sm:$0xff] }
 0x241   :  { %v6519_v9 = vmax.f32 %v10486_v54, %v6470_v21  ;;  %v6060_v49 = vpop.f32.mrb[179].mxu1  ;;  %6851 = vst [vmem:[%s10228_s3 + $0x68] sm:$0x77] %v7395_v56  ;;  %v6518_v27 = vmax.f32 %v10489_v16, %v6469_v17  ;;  %v10503_v21 = vld [vmem:[#allocation24_spill] sm:$0xff]  ;;  %v10507_v17 = vld [vmem:[#allocation66_spill] sm:$0xff] }
 0x242   :  { %v6520_v13 = vmax.f32 %v10492_v22, %v6471_v11  ;;  %v6572_v61 = vadd.f32 %v9907_v20, %v6517_v60  ;;  %v10505_v44 = vmax.f32 %v10503_v21, %v10504_v31  ;;  %v10508_v55 = vmax.f32 %v10506_v7, %v10507_v17  ;;  %v10510_v49 = vld [vmem:[#allocation93_spill] sm:$0xff]  ;;  %v10512_v22 = vld [vmem:[#allocation92_spill] sm:$0xff]  ;;  %v10527_v7 = vld [vmem:[#allocation95_spill] sm:$0xff] }
 0x243   :  { %v6574_v4 = vadd.f32 %v9907_v20, %v6519_v9  ;;  %v6573_v45 = vadd.f32 %v9907_v20, %v6518_v27  ;;  %v10509_v9 = vld [vmem:[#allocation90_spill] sm:$0xff] }
 0x244   :  { %v6621_v28 = vmax.f32 %v6572_v61, 0.0  ;;  %v6575_v62 = vadd.f32 %v9907_v20, %v6520_v13 }
 0x245   :  { %v6623_v39 = vmax.f32 %v6574_v4, 0.0  ;;  %v6622_v50 = vmax.f32 %v6573_v45, 0.0  ;;  %v6096_v14 = vpop.f32.mrb[180].mxu0 }
 0x246   :  { %v6137_v57 = vpop.f32.mrb[180].mxu1  ;;  %v7396_v3 = vpack.c.bf16 %v6621_v28, %v6620_v15  ;;  %v6472_v30 = vmax.f32 %v10493_v48, %v6096_v14  ;;  %v6098_v58 = vpop.f32.mrb[181].mxu0  ;;  %v6624_v33 = vmax.f32 %v6575_v62, 0.0  ;;  %v10513_v15 = vld [vmem:[#allocation29_spill] sm:$0xff]  ;;  %v10516_v14 = vld [vmem:[#allocation30_spill] sm:$0xff] }
 0x247   :  { %v6474_v23 = vmax.f32 %v10494_v10, %v6137_v57  ;;  %v6139_v36 = vpop.f32.mrb[181].mxu1  ;;  %v7397_v12 = vpack.c.bf16 %v6623_v39, %v6622_v50  ;;  %v6473_v43 = vmax.f32 %v10495_v6, %v6098_v58  ;;  %v6100_v51 = vpop.f32.mrb[182].mxu0  ;;  %v10514_v28 = vld [vmem:[#allocation65_spill] sm:$0xff]  ;;  %v10517_v57 = vld [vmem:[#allocation68_spill] sm:$0xff]  ;;  %v10520_v58 = vld [vmem:[#allocation67_spill] sm:$0xff] }
 0x248   :  { %v6475_v41 = vmax.f32 %v10496_v5, %v6139_v36  ;;  %v6141_v0 = vpop.f32.mrb[182].mxu1  ;;  %6852 = vst [vmem:[%s10228_s3 + $0x70] sm:$0x77] %v7396_v3  ;;  %v6521_v26 = vmax.f32 %v10499_v35, %v6472_v30  ;;  %v6101_v53 = vpop.f32.mrb[183].mxu0  ;;  %v10515_v39 = vmax.f32 %v10513_v15, %v10514_v28  ;;  %v10518_v3 = vmax.f32 %v10516_v14, %v10517_v57  ;;  %v10522_v6 = vld [vmem:[#allocation31_spill] sm:$0xff] }
 0x249   :  { %v6523_v18 = vmax.f32 %v10502_v59, %v6474_v23  ;;  %v6142_v29 = vpop.f32.mrb[183].mxu1  ;;  %6853 = vst [vmem:[%s10228_s3 + $0x78] sm:$0x77] %v7397_v12  ;;  %v6522_v56 = vmax.f32 %v10505_v44, %v6473_v43  ;;  %v10519_v23 = vld [vmem:[#allocation28_spill] sm:$0xff]  ;;  %v10523_v43 = vld [vmem:[#allocation70_spill] sm:$0xff] }
 0x24a   :  { %v6524_v11 = vmax.f32 %v10508_v55, %v6475_v41  ;;  %v6576_v2 = vadd.f32 %v9907_v20, %v6521_v26  ;;  %v10521_v36 = vmax.f32 %v10519_v23, %v10520_v58  ;;  %v10524_v5 = vmax.f32 %v10522_v6, %v10523_v43  ;;  %v10526_v29 = vld [vmem:[#allocation97_spill] sm:$0xff]  ;;  %v10528_v55 = vld [vmem:[#allocation96_spill] sm:$0xff]  ;;  %v10543_v6 = vld [vmem:[#allocation99_spill] sm:$0xff] }
 0x24b   :  { %v6578_v37 = vadd.f32 %v9907_v20, %v6523_v18  ;;  %v6577_v52 = vadd.f32 %v9907_v20, %v6522_v56  ;;  %v10525_v18 = vld [vmem:[#allocation94_spill] sm:$0xff] }
 0x24c   :  { %v6625_v47 = vmax.f32 %v6576_v2, 0.0  ;;  %v6579_v45 = vadd.f32 %v9907_v20, %v6524_v11 }
 0x24d   :  { %v6627_v40 = vmax.f32 %v6578_v37, 0.0  ;;  %v6626_v60 = vmax.f32 %v6577_v52, 0.0  ;;  %v6178_v38 = vpop.f32.mrb[184].mxu0 }
 0x24e   :  { %v6219_v32 = vpop.f32.mrb[184].mxu1  ;;  %v7398_v54 = vpack.c.bf16 %v6625_v47, %v6624_v33  ;;  %v6476_v1 = vmax.f32 %v10509_v9, %v6178_v38  ;;  %v6180_v34 = vpop.f32.mrb[185].mxu0  ;;  %v6628_v8 = vmax.f32 %v6579_v45, 0.0  ;;  %v10529_v33 = vld [vmem:[#allocation33_spill] sm:$0xff]  ;;  %v10532_v38 = vld [vmem:[#allocation34_spill] sm:$0xff] }
 0x24f   :  { %v6478_v46 = vmax.f32 %v10510_v49, %v6219_v32  ;;  %v6221_v16 = vpop.f32.mrb[185].mxu1  ;;  %v7399_v27 = vpack.c.bf16 %v6627_v40, %v6626_v60  ;;  %v6477_v19 = vmax.f32 %v10511_v24, %v6180_v34  ;;  %v6182_v61 = vpop.f32.mrb[186].mxu0  ;;  %v10530_v47 = vld [vmem:[#allocation69_spill] sm:$0xff]  ;;  %v10533_v32 = vld [vmem:[#allocation72_spill] sm:$0xff]  ;;  %v10536_v34 = vld [vmem:[#allocation71_spill] sm:$0xff] }
 0x250   :  { %v6479_v13 = vmax.f32 %v10512_v22, %v6221_v16  ;;  %v6223_v4 = vpop.f32.mrb[186].mxu1  ;;  %6854 = vst [vmem:[%s10228_s3 + $0x80] sm:$0x77] %v7398_v54  ;;  %v6525_v50 = vmax.f32 %v10515_v39, %v6476_v1  ;;  %v6183_v30 = vpop.f32.mrb[187].mxu0  ;;  %v10531_v40 = vmax.f32 %v10529_v33, %v10530_v47  ;;  %v10534_v54 = vmax.f32 %v10532_v38, %v10533_v32  ;;  %v10538_v24 = vld [vmem:[#allocation35_spill] sm:$0xff] }
 0x251   :  { %v6527_v48 = vmax.f32 %v10518_v3, %v6478_v46  ;;  %v6224_v10 = vpop.f32.mrb[187].mxu1  ;;  %6855 = vst [vmem:[%s10228_s3 + $0x88] sm:$0x77] %v7399_v27  ;;  %v6526_v12 = vmax.f32 %v10521_v36, %v6477_v19  ;;  %v10535_v46 = vld [vmem:[#allocation32_spill] sm:$0xff]  ;;  %v10539_v19 = vld [vmem:[#allocation74_spill] sm:$0xff] }
 0x252   :  { %v6528_v41 = vmax.f32 %v10524_v5, %v6479_v13  ;;  %v6580_v51 = vadd.f32 %v9907_v20, %v6525_v50  ;;  %v10537_v16 = vmax.f32 %v10535_v46, %v10536_v34  ;;  %v10540_v22 = vmax.f32 %v10538_v24, %v10539_v19  ;;  %v10542_v10 = vld [vmem:[#allocation101_spill] sm:$0xff]  ;;  %v10544_v5 = vld [vmem:[#allocation100_spill] sm:$0xff] }
 0x253   :  { %v6582_v0 = vadd.f32 %v9907_v20, %v6527_v48  ;;  %v6581_v62 = vadd.f32 %v9907_v20, %v6526_v12  ;;  %v10541_v48 = vld [vmem:[#allocation98_spill] sm:$0xff] }
 0x254   :  { %v6629_v42 = vmax.f32 %v6580_v51, 0.0  ;;  %v6583_v52 = vadd.f32 %v9907_v20, %v6528_v41 }
 0x255   :  { %v6631_v35 = vmax.f32 %v6582_v0, 0.0  ;;  %v6630_v26 = vmax.f32 %v6581_v62, 0.0  ;;  %v6260_v25 = vpop.f32.mrb[188].mxu0 }
 0x256   :  { %v6301_v63 = vpop.f32.mrb[188].mxu1  ;;  %v7400_v59 = vpack.c.bf16 %v6629_v42, %v6628_v8  ;;  %v6480_v53 = vmax.f32 %v10525_v18, %v6260_v25  ;;  %v6262_v31 = vpop.f32.mrb[189].mxu0  ;;  %v6632_v15 = vmax.f32 %v6583_v52, 0.0  ;;  %v10545_v8 = vld [vmem:[#allocation37_spill] sm:$0xff]  ;;  %v10548_v25 = vld [vmem:[#allocation38_spill] sm:$0xff] }
 0x257   :  { %v6482_v21 = vmax.f32 %v10526_v29, %v6301_v63  ;;  %v6303_v44 = vpop.f32.mrb[189].mxu1  ;;  %v7401_v56 = vpack.c.bf16 %v6631_v35, %v6630_v26  ;;  %v6481_v17 = vmax.f32 %v10527_v7, %v6262_v31  ;;  %v6264_v2 = vpop.f32.mrb[190].mxu0  ;;  %v10546_v42 = vld [vmem:[#allocation73_spill] sm:$0xff]  ;;  %v10549_v63 = vld [vmem:[#allocation76_spill] sm:$0xff]  ;;  %v10552_v31 = vld [vmem:[#allocation75_spill] sm:$0xff] }
 0x258   :  { %v6483_v11 = vmax.f32 %v10528_v55, %v6303_v44  ;;  %v6305_v37 = vpop.f32.mrb[190].mxu1  ;;  %6856 = vst [vmem:[%s10228_s3 + $0x90] sm:$0x77] %v7400_v59  ;;  %v6529_v60 = vmax.f32 %v10531_v40, %v6480_v53  ;;  %v6265_v1 = vpop.f32.mrb[191].mxu0  ;;  %v10547_v35 = vmax.f32 %v10545_v8, %v10546_v42  ;;  %v10550_v59 = vmax.f32 %v10548_v25, %v10549_v63  ;;  %v10554_v7 = vld [vmem:[#allocation39_spill] sm:$0xff] }
 0x259   :  { %v6531_v9 = vmax.f32 %v10534_v54, %v6482_v21  ;;  %v6306_v49 = vpop.f32.mrb[191].mxu1  ;;  %6857 = vst [vmem:[%s10228_s3 + $0x98] sm:$0x77] %v7401_v56  ;;  %v6530_v27 = vmax.f32 %v10537_v16, %v6481_v17  ;;  %v10551_v21 = vld [vmem:[#allocation36_spill] sm:$0xff]  ;;  %v10555_v17 = vld [vmem:[#allocation77_spill] sm:$0xff] }
 0x25a   :  { %v6532_v13 = vmax.f32 %v10540_v22, %v6483_v11  ;;  %v6584_v61 = vadd.f32 %v9907_v20, %v6529_v60  ;;  %v10553_v44 = vmax.f32 %v10551_v21, %v10552_v31  ;;  %v10556_v55 = vmax.f32 %v10554_v7, %v10555_v17 }
 0x25b   :  { %v6586_v4 = vadd.f32 %v9907_v20, %v6531_v9  ;;  %v6585_v45 = vadd.f32 %v9907_v20, %v6530_v27 }
 0x25c   :  { %v6633_v28 = vmax.f32 %v6584_v61, 0.0  ;;  %v6587_v62 = vadd.f32 %v9907_v20, %v6532_v13 }
 0x25d   :  { %v6635_v39 = vmax.f32 %v6586_v4, 0.0  ;;  %v6634_v50 = vmax.f32 %v6585_v45, 0.0  ;;  %v6342_v14 = vpop.f32.mrb[192].mxu0 }
 0x25e   :  { %v6383_v57 = vpop.f32.mrb[192].mxu1  ;;  %v7402_v3 = vpack.c.bf16 %v6633_v28, %v6632_v15  ;;  %v6484_v30 = vmax.f32 %v10541_v48, %v6342_v14  ;;  %v6344_v58 = vpop.f32.mrb[193].mxu0  ;;  %v6636_v47 = vmax.f32 %v6587_v62, 0.0 }
 0x25f   :  { %v6486_v23 = vmax.f32 %v10542_v10, %v6383_v57  ;;  %v6385_v36 = vpop.f32.mrb[193].mxu1  ;;  %v7403_v12 = vpack.c.bf16 %v6635_v39, %v6634_v50  ;;  %v6485_v43 = vmax.f32 %v10543_v6, %v6344_v58  ;;  %v6346_v51 = vpop.f32.mrb[194].mxu0 }
 0x260   :  { %v6487_v41 = vmax.f32 %v10544_v5, %v6385_v36  ;;  %v6387_v0 = vpop.f32.mrb[194].mxu1  ;;  %6858 = vst [vmem:[%s10228_s3 + $0xa0] sm:$0x77] %v7402_v3  ;;  %v6533_v26 = vmax.f32 %v10547_v35, %v6484_v30  ;;  %v6347_v53 = vpop.f32.mrb[195].mxu0 }
 0x261   :  { %v6535_v18 = vmax.f32 %v10550_v59, %v6486_v23  ;;  %v6388_v29 = vpop.f32.mrb[195].mxu1  ;;  %6859 = vst [vmem:[%s10228_s3 + $0xa8] sm:$0x77] %v7403_v12  ;;  %v6534_v56 = vmax.f32 %v10553_v44, %v6485_v43 }
 0x262   :  { %v6536_v11 = vmax.f32 %v10556_v55, %v6487_v41  ;;  %v6588_v2 = vadd.f32 %v9907_v20, %v6533_v26 }
 0x263   :  { %v6590_v37 = vadd.f32 %v9907_v20, %v6535_v18  ;;  %v6589_v52 = vadd.f32 %v9907_v20, %v6534_v56 }
 0x264   :  { %v6591_v33 = vadd.f32 %v9907_v20, %v6536_v11  ;;  %v6637_v40 = vmax.f32 %v6588_v2, 0.0 }
 0x265   :  { %v6639_v60 = vmax.f32 %v6590_v37, 0.0  ;;  %v6638_v38 = vmax.f32 %v6589_v52, 0.0 }
 0x266   :  { %v6640_v32 = vmax.f32 %v6591_v33, 0.0  ;;  %v7404_v54 = vpack.c.bf16 %v6637_v40, %v6636_v47 }
 0x267   :  { %v7405_v9 = vpack.c.bf16 %v6639_v60, %v6638_v38 }
 0x268   :  { %v7406_v1 = vpack.c.bf16 %v6640_v32, %v6640_v32  ;;  %6860 = vst [vmem:[%s10228_s3 + $0xb0] sm:$0x77] %v7404_v54 }
 0x269   :  { %6861 = vst [vmem:[%s10228_s3 + $0xb8] sm:$0x77] %v7405_v9 }
 0x26a   :  { %6862 = vst [vmem:[%s10228_s3 + $0xc0] sm:$0x7] %v7406_v1 }

// kernel: convnet_forward.5
= control target key start
LH: loop header
LB: loop body
LE: loop exit
PB: predicated region body
PF: predicated region fallthrough
CT: control target
= control target key end

     0   :  { %v3551_v3 = vmov 0   ;;  %vm1558_vm0 = vcmask 523264   ;;  %s4897_s0 = inlined_call_operand.vmem [shape: bf16[1,64,8192], index: 0, kind: input, shape index: {}]   ;;  %s4898_s1 = inlined_call_operand.vmem [shape: bf16[16,64], index: 1, kind: input, shape index: {}]   ;;  %s4899_s2 = inlined_call_operand.vmem [shape: f32[16,1], index: 2, kind: input, shape index: {}]   ;;  %s4900_s3 = inlined_call_operand.vmem [shape: bf16[1,16,2048], index: 3, kind: output, shape index: {}]  }
   0x1   :  { %v17_v0 = vld [vmem:[%s4897_s0] sm:$0xff]  ;;  %v18_v2 = vld [vmem:[%s4897_s0 + $0x8] sm:$0xff]  ;;  %1594 = vmatprep.mubr.bf16.mxu0 %v3551_v3  ;;  %1637 = vmatprep.mubr.bf16.mxu1 %v3551_v3  ;;  %v19_v31 = vld [vmem:[%s4897_s0 + $0x10] sm:$0xff] }
   0x2   :  { %v49_v1 = vld [vmem:[%s4897_s0 + $0x100] sm:$0xff]  ;;  %v50_v5 = vld [vmem:[%s4897_s0 + $0x108] sm:$0xff]  ;;  %3548 = vset.pattern.permute.xlu0 %v3551_v3  ;;  %v51_v32 = vld [vmem:[%s4897_s0 + $0x110] sm:$0xff] }
   0x3   :  { %v3228_v4 = vcombine.high %v17_v0, %v49_v1  ;;  %v3227_v6 = vcombine.low %v17_v0, %v49_v1  ;;  %v81_v7 = vld [vmem:[%s4897_s0 + $0x200] sm:$0xff]  ;;  %v3230_v9 = vcombine.high %v18_v2, %v50_v5  ;;  %v3229_v10 = vcombine.low %v18_v2, %v50_v5  ;;  %v82_v12 = vld [vmem:[%s4897_s0 + $0x208] sm:$0xff]  ;;  %v20_v33 = vld [vmem:[%s4897_s0 + $0x18] sm:$0xff] }
   0x4   :  { %v113_v8 = vld [vmem:[%s4897_s0 + $0x300] sm:$0xff]  ;;  %v114_v13 = vld [vmem:[%s4897_s0 + $0x308] sm:$0xff]  ;;  %v52_v34 = vld [vmem:[%s4897_s0 + $0x118] sm:$0xff]  ;;  %v3232_v37 = vcombine.high %v19_v31, %v51_v32  ;;  %v3231_v44 = vcombine.low %v19_v31, %v51_v32 }
   0x5   :  { %v3292_v11 = vcombine.high %v81_v7, %v113_v8  ;;  %v145_v14 = vld [vmem:[%s4897_s0 + $0x400] sm:$0xff]  ;;  %1562 = vmatprep.subr.bf16.mxu0 %v3228_v4  ;;  %v3294_v15 = vcombine.high %v82_v12, %v114_v13  ;;  %v146_v17 = vld [vmem:[%s4897_s0 + $0x408] sm:$0xff]  ;;  %1605 = vmatprep.subr.bf16.mxu1 %v3230_v9  ;;  %v3291_v19 = vcombine.low %v81_v7, %v113_v8  ;;  %v83_v39 = vld [vmem:[%s4897_s0 + $0x210] sm:$0xff] }
   0x6   :  { %v177_v16 = vld [vmem:[%s4897_s0 + $0x500] sm:$0xff]  ;;  %v178_v18 = vld [vmem:[%s4897_s0 + $0x508] sm:$0xff]  ;;  %1563 = vmatpush1.bf16.msra.mxu0 %v3227_v6  ;;  %1606 = vmatpush1.bf16.msra.mxu1 %v3229_v10  ;;  %v3293_v20 = vcombine.low %v82_v12, %v114_v13  ;;  %v3234_v38 = vcombine.high %v20_v33, %v52_v34  ;;  %v115_v40 = vld [vmem:[%s4897_s0 + $0x310] sm:$0xff]  ;;  %v3233_v45 = vcombine.low %v20_v33, %v52_v34 }
   0x7   :  { %1564 = vmatprep.subr.bf16.mxu0 %v3292_v11  ;;  %v3356_v21 = vcombine.high %v145_v14, %v177_v16  ;;  %1607 = vmatprep.subr.bf16.mxu1 %v3294_v15  ;;  %v3358_v22 = vcombine.high %v146_v17, %v178_v18  ;;  %v209_v23 = vld [vmem:[%s4897_s0 + $0x600] sm:$0xff]  ;;  %v210_v25 = vld [vmem:[%s4897_s0 + $0x608] sm:$0xff]  ;;  %v3355_v27 = vcombine.low %v145_v14, %v177_v16  ;;  %v84_v42 = vld [vmem:[%s4897_s0 + $0x218] sm:$0xff] }
   0x8   :  { %v241_v24 = vld [vmem:[%s4897_s0 + $0x700] sm:$0xff]  ;;  %v242_v26 = vld [vmem:[%s4897_s0 + $0x708] sm:$0xff]  ;;  %v3357_v28 = vcombine.low %v146_v17, %v178_v18  ;;  %v116_v43 = vld [vmem:[%s4897_s0 + $0x318] sm:$0xff]  ;;  %v3296_v46 = vcombine.high %v83_v39, %v115_v40  ;;  %v3295_v52 = vcombine.low %v83_v39, %v115_v40 }
   0x9   :  { %v3420_v29 = vcombine.high %v209_v23, %v241_v24  ;;  %v3422_v30 = vcombine.high %v210_v25, %v242_v26  ;;  %v3419_v35 = vcombine.low %v209_v23, %v241_v24  ;;  %v3421_v36 = vcombine.low %v210_v25, %v242_v26  ;;  %v3644_v41 = vld [vmem:[%s4898_s1] sm:$0xff]   ;;  %v147_v48 = vld [vmem:[%s4897_s0 + $0x410] sm:$0xff]  ;;  %v148_v50 = vld [vmem:[%s4897_s0 + $0x418] sm:$0xff] }
   0xa   :  { %1565 = vmatpush1.bf16.msra.mxu0 %v3291_v19  ;;  %1608 = vmatpush1.bf16.msra.mxu1 %v3293_v20  ;;  %v3298_v47 = vcombine.high %v84_v42, %v116_v43  ;;  %v179_v49 = vld [vmem:[%s4897_s0 + $0x510] sm:$0xff]  ;;  %v180_v51 = vld [vmem:[%s4897_s0 + $0x518] sm:$0xff]  ;;  %v3297_v53 = vcombine.low %v84_v42, %v116_v43  ;;  %v21_v0 = vld [vmem:[%s4897_s0 + $0x20] sm:$0xff] }
   0xb   :  { %1566 = vmatprep.subr.bf16.mxu0 %v3356_v21  ;;  %1609 = vmatprep.subr.bf16.mxu1 %v3358_v22  ;;  %v3360_v54 = vcombine.high %v147_v48, %v179_v49  ;;  %v3362_v55 = vcombine.high %v148_v50, %v180_v51  ;;  %v211_v56 = vld [vmem:[%s4897_s0 + $0x610] sm:$0xff]  ;;  %v212_v58 = vld [vmem:[%s4897_s0 + $0x618] sm:$0xff]  ;;  %v3359_v60 = vcombine.low %v147_v48, %v179_v49  ;;  %v53_v1 = vld [vmem:[%s4897_s0 + $0x120] sm:$0xff] }
   0xc   :  { %v243_v57 = vld [vmem:[%s4897_s0 + $0x710] sm:$0xff]  ;;  %v244_v59 = vld [vmem:[%s4897_s0 + $0x718] sm:$0xff]  ;;  %v3361_v61 = vcombine.low %v148_v50, %v180_v51  ;;  %v22_v2 = vld [vmem:[%s4897_s0 + $0x28] sm:$0xff]  ;;  %v3236_v7 = vcombine.high %v21_v0, %v53_v1  ;;  %v3235_v13 = vcombine.low %v21_v0, %v53_v1 }
   0xd   :  { %v3424_v62 = vcombine.high %v211_v56, %v243_v57  ;;  %v3426_v63 = vcombine.high %v212_v58, %v244_v59  ;;  %v54_v4 = vld [vmem:[%s4897_s0 + $0x128] sm:$0xff]  ;;  %v3423_v5 = vcombine.low %v211_v56, %v243_v57  ;;  %v3425_v6 = vcombine.low %v212_v58, %v244_v59  ;;  %v85_v9 = vld [vmem:[%s4897_s0 + $0x220] sm:$0xff]  ;;  %v23_v33 = vld [vmem:[%s4897_s0 + $0x30] sm:$0xff] }
   0xe   :  { %1567 = vmatpush1.bf16.msra.mxu0 %v3355_v27  ;;  %1610 = vmatpush1.bf16.msra.mxu1 %v3357_v28  ;;  %v3238_v8 = vcombine.high %v22_v2, %v54_v4  ;;  %v117_v10 = vld [vmem:[%s4897_s0 + $0x320] sm:$0xff]  ;;  %v86_v11 = vld [vmem:[%s4897_s0 + $0x228] sm:$0xff]  ;;  %v3237_v14 = vcombine.low %v22_v2, %v54_v4  ;;  %v55_v34 = vld [vmem:[%s4897_s0 + $0x130] sm:$0xff] }
   0xf   :  { %1568 = vmatprep.subr.bf16.mxu0 %v3420_v29  ;;  %1611 = vmatprep.subr.bf16.mxu1 %v3422_v30  ;;  %v118_v12 = vld [vmem:[%s4897_s0 + $0x328] sm:$0xff]  ;;  %v3300_v15 = vcombine.high %v85_v9, %v117_v10  ;;  %v149_v17 = vld [vmem:[%s4897_s0 + $0x420] sm:$0xff]  ;;  %v3299_v21 = vcombine.low %v85_v9, %v117_v10  ;;  %v3240_v39 = vcombine.high %v23_v33, %v55_v34  ;;  %v87_v42 = vld [vmem:[%s4897_s0 + $0x230] sm:$0xff] }
  0x10   :  { %v3302_v16 = vcombine.high %v86_v11, %v118_v12  ;;  %v181_v18 = vld [vmem:[%s4897_s0 + $0x520] sm:$0xff]  ;;  %v150_v19 = vld [vmem:[%s4897_s0 + $0x428] sm:$0xff]  ;;  %v3301_v22 = vcombine.low %v86_v11, %v118_v12  ;;  %v119_v43 = vld [vmem:[%s4897_s0 + $0x330] sm:$0xff] }
  0x11   :  { %v182_v20 = vld [vmem:[%s4897_s0 + $0x528] sm:$0xff]  ;;  %v3364_v23 = vcombine.high %v149_v17, %v181_v18  ;;  %v213_v25 = vld [vmem:[%s4897_s0 + $0x620] sm:$0xff]  ;;  %v3363_v29 = vcombine.low %v149_v17, %v181_v18  ;;  %v3304_v48 = vcombine.high %v87_v42, %v119_v43  ;;  %v151_v50 = vld [vmem:[%s4897_s0 + $0x430] sm:$0xff] }
  0x12   :  { %1569 = vmatpush1.bf16.msra.mxu0 %v3419_v35  ;;  %1612 = vmatpush1.bf16.msra.mxu1 %v3421_v36  ;;  %v3366_v24 = vcombine.high %v150_v19, %v182_v20  ;;  %v245_v26 = vld [vmem:[%s4897_s0 + $0x720] sm:$0xff]  ;;  %v214_v27 = vld [vmem:[%s4897_s0 + $0x628] sm:$0xff]  ;;  %v3365_v30 = vcombine.low %v150_v19, %v182_v20  ;;  %v24_v35 = vld [vmem:[%s4897_s0 + $0x38] sm:$0xff] }
  0x13   :  { %1648 = vmatprep.subr.bf16.mxu0 %v3232_v37  ;;  %1691 = vmatprep.subr.bf16.mxu1 %v3234_v38  ;;  %v246_v28 = vld [vmem:[%s4897_s0 + $0x728] sm:$0xff]  ;;  %v3428_v31 = vcombine.high %v213_v25, %v245_v26  ;;  %v56_v36 = vld [vmem:[%s4897_s0 + $0x138] sm:$0xff]  ;;  %v3427_v37 = vcombine.low %v213_v25, %v245_v26  ;;  %v183_v51 = vld [vmem:[%s4897_s0 + $0x530] sm:$0xff] }
  0x14   :  { %v3430_v32 = vcombine.high %v214_v27, %v246_v28  ;;  %v3429_v38 = vcombine.low %v214_v27, %v246_v28  ;;  %v3242_v40 = vcombine.high %v24_v35, %v56_v36  ;;  %v3368_v56 = vcombine.high %v151_v50, %v183_v51  ;;  %v215_v58 = vld [vmem:[%s4897_s0 + $0x630] sm:$0xff]  ;;  %v25_v2 = vld [vmem:[%s4897_s0 + $0x40] sm:$0xff] }
  0x15   :  { %3483 = vmatmul.mubr.msk.bf16.vlgmr.msra.gmra.mrb[0].mxu0 %vm1558_vm0, %v3644_v41  ;;  %3484 = vmatmul.mubr.msk.bf16.vlgmr.msra.gmra.mrb[0].mxu1 %vm1558_vm0, %v3644_v41  ;;  %v247_v59 = vld [vmem:[%s4897_s0 + $0x730] sm:$0xff]  ;;  %v57_v4 = vld [vmem:[%s4897_s0 + $0x140] sm:$0xff] }
  0x16   :  { %1649 = vmatpush1.bf16.msra.mxu0 %v3231_v44  ;;  %1692 = vmatpush1.bf16.msra.mxu1 %v3233_v45  ;;  %v88_v44 = vld [vmem:[%s4897_s0 + $0x238] sm:$0xff]  ;;  %v3432_v0 = vcombine.high %v215_v58, %v247_v59  ;;  %v3244_v9 = vcombine.high %v25_v2, %v57_v4  ;;  %v89_v11 = vld [vmem:[%s4897_s0 + $0x240] sm:$0xff] }
  0x17   :  { %1650 = vmatprep.subr.bf16.mxu0 %v3296_v46  ;;  %1693 = vmatprep.subr.bf16.mxu1 %v3298_v47  ;;  %v120_v45 = vld [vmem:[%s4897_s0 + $0x338] sm:$0xff]  ;;  %v3239_v46 = vcombine.low %v23_v33, %v55_v34  ;;  %v3241_v47 = vcombine.low %v24_v35, %v56_v36  ;;  %v121_v12 = vld [vmem:[%s4897_s0 + $0x340] sm:$0xff]  ;;  %v27_v35 = vld [vmem:[%s4897_s0 + $0x50] sm:$0xff] }
  0x18   :  { %1680 = vmatprep.mubr.bf16.mxu0 %v3551_v3  ;;  %1723 = vmatprep.mubr.bf16.mxu1 %v3551_v3  ;;  %v3306_v49 = vcombine.high %v88_v44, %v120_v45  ;;  %v3308_v17 = vcombine.high %v89_v11, %v121_v12  ;;  %v153_v19 = vld [vmem:[%s4897_s0 + $0x440] sm:$0xff]  ;;  %v59_v36 = vld [vmem:[%s4897_s0 + $0x150] sm:$0xff] }
  0x19   :  { %v185_v20 = vld [vmem:[%s4897_s0 + $0x540] sm:$0xff] }
  0x1a   :  { %1651 = vmatpush1.bf16.msra.mxu0 %v3295_v52  ;;  %1694 = vmatpush1.bf16.msra.mxu1 %v3297_v53  ;;  %v152_v52 = vld [vmem:[%s4897_s0 + $0x438] sm:$0xff]  ;;  %v3372_v25 = vcombine.high %v153_v19, %v185_v20  ;;  %v217_v27 = vld [vmem:[%s4897_s0 + $0x640] sm:$0xff] }
  0x1b   :  { %1652 = vmatprep.subr.bf16.mxu0 %v3360_v54  ;;  %1695 = vmatprep.subr.bf16.mxu1 %v3362_v55  ;;  %v184_v53 = vld [vmem:[%s4897_s0 + $0x538] sm:$0xff]  ;;  %v3303_v54 = vcombine.low %v87_v42, %v119_v43  ;;  %v3305_v55 = vcombine.low %v88_v44, %v120_v45  ;;  %v249_v28 = vld [vmem:[%s4897_s0 + $0x740] sm:$0xff]  ;;  %v3248_v42 = vcombine.high %v27_v35, %v59_v36  ;;  %v91_v44 = vld [vmem:[%s4897_s0 + $0x250] sm:$0xff] }
  0x1c   :  { %v3370_v57 = vcombine.high %v152_v52, %v184_v53  ;;  %v3436_v33 = vcombine.high %v217_v27, %v249_v28  ;;  %v123_v45 = vld [vmem:[%s4897_s0 + $0x350] sm:$0xff] }
  0x1e   :  { %1653 = vmatpush1.bf16.msra.mxu0 %v3359_v60  ;;  %1696 = vmatpush1.bf16.msra.mxu1 %v3361_v61  ;;  %v216_v60 = vld [vmem:[%s4897_s0 + $0x638] sm:$0xff] }
  0x1f   :  { %1654 = vmatprep.subr.bf16.mxu0 %v3424_v62  ;;  %1697 = vmatprep.subr.bf16.mxu1 %v3426_v63  ;;  %v248_v61 = vld [vmem:[%s4897_s0 + $0x738] sm:$0xff]  ;;  %v3367_v62 = vcombine.low %v151_v50, %v183_v51  ;;  %v3369_v63 = vcombine.low %v152_v52, %v184_v53  ;;  %v3312_v50 = vcombine.high %v91_v44, %v123_v45  ;;  %v155_v52 = vld [vmem:[%s4897_s0 + $0x450] sm:$0xff] }
  0x20   :  { %v3434_v1 = vcombine.high %v216_v60, %v248_v61  ;;  %v187_v53 = vld [vmem:[%s4897_s0 + $0x550] sm:$0xff] }
  0x22   :  { %1655 = vmatpush1.bf16.msra.mxu0 %v3423_v5  ;;  %1698 = vmatpush1.bf16.msra.mxu1 %v3425_v6  ;;  %v26_v5 = vld [vmem:[%s4897_s0 + $0x48] sm:$0xff] }
  0x23   :  { %1734 = vmatprep.subr.bf16.mxu0 %v3236_v7  ;;  %1777 = vmatprep.subr.bf16.mxu1 %v3238_v8  ;;  %v58_v6 = vld [vmem:[%s4897_s0 + $0x148] sm:$0xff]  ;;  %v3431_v7 = vcombine.low %v215_v58, %v247_v59  ;;  %v3433_v8 = vcombine.low %v216_v60, %v248_v61  ;;  %v3376_v58 = vcombine.high %v155_v52, %v187_v53  ;;  %v219_v60 = vld [vmem:[%s4897_s0 + $0x650] sm:$0xff] }
  0x24   :  { %v3246_v10 = vcombine.high %v26_v5, %v58_v6  ;;  %v251_v61 = vld [vmem:[%s4897_s0 + $0x750] sm:$0xff] }
  0x25   :  { %3485 = vmatmul.mubr.msk.bf16.vlgmr.msra.gmra.mrb[4].mxu0 %vm1558_vm0, %v3644_v41  ;;  %3486 = vmatmul.mubr.msk.bf16.vlgmr.msra.gmra.mrb[4].mxu1 %vm1558_vm0, %v3644_v41 }
  0x26   :  { %1735 = vmatpush1.bf16.msra.mxu0 %v3235_v13  ;;  %1778 = vmatpush1.bf16.msra.mxu1 %v3237_v14  ;;  %v90_v13 = vld [vmem:[%s4897_s0 + $0x248] sm:$0xff] }
  0x27   :  { %1736 = vmatprep.subr.bf16.mxu0 %v3300_v15  ;;  %1779 = vmatprep.subr.bf16.mxu1 %v3302_v16  ;;  %v122_v14 = vld [vmem:[%s4897_s0 + $0x348] sm:$0xff]  ;;  %v3243_v15 = vcombine.low %v25_v2, %v57_v4  ;;  %v3245_v16 = vcombine.low %v26_v5, %v58_v6  ;;  %v3440_v2 = vcombine.high %v219_v60, %v251_v61  ;;  %v29_v5 = vld [vmem:[%s4897_s0 + $0x60] sm:$0xff] }
  0x28   :  { %1766 = vmatprep.mubr.bf16.mxu0 %v3551_v3  ;;  %1809 = vmatprep.mubr.bf16.mxu1 %v3551_v3  ;;  %v3310_v18 = vcombine.high %v90_v13, %v122_v14  ;;  %v61_v6 = vld [vmem:[%s4897_s0 + $0x160] sm:$0xff] }
  0x2a   :  { %1737 = vmatpush1.bf16.msra.mxu0 %v3299_v21  ;;  %1780 = vmatpush1.bf16.msra.mxu1 %v3301_v22  ;;  %v154_v21 = vld [vmem:[%s4897_s0 + $0x448] sm:$0xff] }
  0x2b   :  { %1738 = vmatprep.subr.bf16.mxu0 %v3364_v23  ;;  %1781 = vmatprep.subr.bf16.mxu1 %v3366_v24  ;;  %v186_v22 = vld [vmem:[%s4897_s0 + $0x548] sm:$0xff]  ;;  %v3307_v23 = vcombine.low %v89_v11, %v121_v12  ;;  %v3309_v24 = vcombine.low %v90_v13, %v122_v14  ;;  %v3252_v11 = vcombine.high %v29_v5, %v61_v6  ;;  %v93_v13 = vld [vmem:[%s4897_s0 + $0x260] sm:$0xff] }
  0x2c   :  { %v3374_v26 = vcombine.high %v154_v21, %v186_v22  ;;  %v125_v14 = vld [vmem:[%s4897_s0 + $0x360] sm:$0xff] }
  0x2e   :  { %1739 = vmatpush1.bf16.msra.mxu0 %v3363_v29  ;;  %1782 = vmatpush1.bf16.msra.mxu1 %v3365_v30  ;;  %v218_v29 = vld [vmem:[%s4897_s0 + $0x648] sm:$0xff] }
  0x2f   :  { %1740 = vmatprep.subr.bf16.mxu0 %v3428_v31  ;;  %1783 = vmatprep.subr.bf16.mxu1 %v3430_v32  ;;  %v250_v30 = vld [vmem:[%s4897_s0 + $0x748] sm:$0xff]  ;;  %v3371_v31 = vcombine.low %v153_v19, %v185_v20  ;;  %v3373_v32 = vcombine.low %v154_v21, %v186_v22  ;;  %v3316_v19 = vcombine.high %v93_v13, %v125_v14  ;;  %v157_v21 = vld [vmem:[%s4897_s0 + $0x460] sm:$0xff] }
  0x30   :  { %v3438_v34 = vcombine.high %v218_v29, %v250_v30  ;;  %v189_v22 = vld [vmem:[%s4897_s0 + $0x560] sm:$0xff] }
  0x32   :  { %1741 = vmatpush1.bf16.msra.mxu0 %v3427_v37  ;;  %1784 = vmatpush1.bf16.msra.mxu1 %v3429_v38  ;;  %v28_v37 = vld [vmem:[%s4897_s0 + $0x58] sm:$0xff] }
  0x33   :  { %1820 = vmatprep.subr.bf16.mxu0 %v3240_v39  ;;  %1863 = vmatprep.subr.bf16.mxu1 %v3242_v40  ;;  %v60_v38 = vld [vmem:[%s4897_s0 + $0x158] sm:$0xff]  ;;  %v3435_v39 = vcombine.low %v217_v27, %v249_v28  ;;  %v3437_v40 = vcombine.low %v218_v29, %v250_v30  ;;  %v3380_v27 = vcombine.high %v157_v21, %v189_v22  ;;  %v221_v29 = vld [vmem:[%s4897_s0 + $0x660] sm:$0xff] }
  0x34   :  { %v3250_v43 = vcombine.high %v28_v37, %v60_v38  ;;  %v253_v30 = vld [vmem:[%s4897_s0 + $0x760] sm:$0xff] }
  0x35   :  { %3487 = vmatmul.mubr.msk.bf16.vlgmr.msra.gmra.mrb[8].mxu0 %vm1558_vm0, %v3644_v41  ;;  %3488 = vmatmul.mubr.msk.bf16.vlgmr.msra.gmra.mrb[8].mxu1 %vm1558_vm0, %v3644_v41 }
  0x36   :  { %1821 = vmatpush1.bf16.msra.mxu0 %v3239_v46  ;;  %1864 = vmatpush1.bf16.msra.mxu1 %v3241_v47  ;;  %v92_v46 = vld [vmem:[%s4897_s0 + $0x258] sm:$0xff] }
  0x37   :  { %1822 = vmatprep.subr.bf16.mxu0 %v3304_v48  ;;  %1865 = vmatprep.subr.bf16.mxu1 %v3306_v49  ;;  %v124_v47 = vld [vmem:[%s4897_s0 + $0x358] sm:$0xff]  ;;  %v3247_v48 = vcombine.low %v27_v35, %v59_v36  ;;  %v3249_v49 = vcombine.low %v28_v37, %v60_v38  ;;  %v3444_v35 = vcombine.high %v221_v29, %v253_v30  ;;  %v31_v37 = vld [vmem:[%s4897_s0 + $0x70] sm:$0xff] }
  0x38   :  { %1852 = vmatprep.mubr.bf16.mxu0 %v3551_v3  ;;  %1895 = vmatprep.mubr.bf16.mxu1 %v3551_v3  ;;  %v3314_v51 = vcombine.high %v92_v46, %v124_v47  ;;  %v63_v38 = vld [vmem:[%s4897_s0 + $0x170] sm:$0xff] }
  0x3a   :  { %1823 = vmatpush1.bf16.msra.mxu0 %v3303_v54  ;;  %1866 = vmatpush1.bf16.msra.mxu1 %v3305_v55  ;;  %v156_v54 = vld [vmem:[%s4897_s0 + $0x458] sm:$0xff] }
  0x3b   :  { %1824 = vmatprep.subr.bf16.mxu0 %v3368_v56  ;;  %1867 = vmatprep.subr.bf16.mxu1 %v3370_v57  ;;  %v188_v55 = vld [vmem:[%s4897_s0 + $0x558] sm:$0xff]  ;;  %v3311_v56 = vcombine.low %v91_v44, %v123_v45  ;;  %v3313_v57 = vcombine.low %v92_v46, %v124_v47  ;;  %v3256_v44 = vcombine.high %v31_v37, %v63_v38  ;;  %v95_v46 = vld [vmem:[%s4897_s0 + $0x270] sm:$0xff] }
  0x3c   :  { %v3378_v59 = vcombine.high %v156_v54, %v188_v55  ;;  %v127_v47 = vld [vmem:[%s4897_s0 + $0x370] sm:$0xff] }
  0x3e   :  { %1825 = vmatpush1.bf16.msra.mxu0 %v3367_v62  ;;  %1868 = vmatpush1.bf16.msra.mxu1 %v3369_v63  ;;  %v220_v62 = vld [vmem:[%s4897_s0 + $0x658] sm:$0xff] }
  0x3f   :  { %1826 = vmatprep.subr.bf16.mxu0 %v3432_v0  ;;  %1869 = vmatprep.subr.bf16.mxu1 %v3434_v1  ;;  %v252_v63 = vld [vmem:[%s4897_s0 + $0x758] sm:$0xff]  ;;  %v3375_v0 = vcombine.low %v155_v52, %v187_v53  ;;  %v3377_v1 = vcombine.low %v156_v54, %v188_v55  ;;  %v3320_v52 = vcombine.high %v95_v46, %v127_v47  ;;  %v159_v54 = vld [vmem:[%s4897_s0 + $0x470] sm:$0xff] }
  0x40   :  { %v3442_v4 = vcombine.high %v220_v62, %v252_v63  ;;  %v191_v55 = vld [vmem:[%s4897_s0 + $0x570] sm:$0xff] }
  0x42   :  { %1827 = vmatpush1.bf16.msra.mxu0 %v3431_v7  ;;  %1870 = vmatpush1.bf16.msra.mxu1 %v3433_v8  ;;  %v30_v7 = vld [vmem:[%s4897_s0 + $0x68] sm:$0xff] }
  0x43   :  { %1906 = vmatprep.subr.bf16.mxu0 %v3244_v9  ;;  %1949 = vmatprep.subr.bf16.mxu1 %v3246_v10  ;;  %v62_v8 = vld [vmem:[%s4897_s0 + $0x168] sm:$0xff]  ;;  %v3439_v9 = vcombine.low %v219_v60, %v251_v61  ;;  %v3441_v10 = vcombine.low %v220_v62, %v252_v63  ;;  %v3384_v60 = vcombine.high %v159_v54, %v191_v55  ;;  %v223_v62 = vld [vmem:[%s4897_s0 + $0x670] sm:$0xff] }
  0x44   :  { %v3254_v12 = vcombine.high %v30_v7, %v62_v8  ;;  %v255_v63 = vld [vmem:[%s4897_s0 + $0x770] sm:$0xff] }
  0x45   :  { %3489 = vmatmul.mubr.msk.bf16.vlgmr.msra.gmra.mrb[12].mxu0 %vm1558_vm0, %v3644_v41  ;;  %3490 = vmatmul.mubr.msk.bf16.vlgmr.msra.gmra.mrb[12].mxu1 %vm1558_vm0, %v3644_v41 }
  0x46   :  { %1907 = vmatpush1.bf16.msra.mxu0 %v3243_v15  ;;  %1950 = vmatpush1.bf16.msra.mxu1 %v3245_v16  ;;  %v94_v15 = vld [vmem:[%s4897_s0 + $0x268] sm:$0xff] }
  0x47   :  { %1908 = vmatprep.subr.bf16.mxu0 %v3308_v17  ;;  %1951 = vmatprep.subr.bf16.mxu1 %v3310_v18  ;;  %v126_v16 = vld [vmem:[%s4897_s0 + $0x368] sm:$0xff]  ;;  %v3251_v17 = vcombine.low %v29_v5, %v61_v6  ;;  %v3253_v18 = vcombine.low %v30_v7, %v62_v8  ;;  %v3448_v5 = vcombine.high %v223_v62, %v255_v63  ;;  %v33_v7 = vld [vmem:[%s4897_s0 + $0x80] sm:$0xff] }
  0x48   :  { %1938 = vmatprep.mubr.bf16.mxu0 %v3551_v3  ;;  %1981 = vmatprep.mubr.bf16.mxu1 %v3551_v3  ;;  %v3318_v20 = vcombine.high %v94_v15, %v126_v16  ;;  %v65_v8 = vld [vmem:[%s4897_s0 + $0x180] sm:$0xff] }
  0x4a   :  { %1909 = vmatpush1.bf16.msra.mxu0 %v3307_v23  ;;  %1952 = vmatpush1.bf16.msra.mxu1 %v3309_v24  ;;  %v158_v23 = vld [vmem:[%s4897_s0 + $0x468] sm:$0xff] }
  0x4b   :  { %1910 = vmatprep.subr.bf16.mxu0 %v3372_v25  ;;  %1953 = vmatprep.subr.bf16.mxu1 %v3374_v26  ;;  %v190_v24 = vld [vmem:[%s4897_s0 + $0x568] sm:$0xff]  ;;  %v3315_v25 = vcombine.low %v93_v13, %v125_v14  ;;  %v3317_v26 = vcombine.low %v94_v15, %v126_v16  ;;  %v3260_v13 = vcombine.high %v33_v7, %v65_v8  ;;  %v97_v15 = vld [vmem:[%s4897_s0 + $0x280] sm:$0xff] }
  0x4c   :  { %v3382_v28 = vcombine.high %v158_v23, %v190_v24  ;;  %v129_v16 = vld [vmem:[%s4897_s0 + $0x380] sm:$0xff] }
  0x4e   :  { %1911 = vmatpush1.bf16.msra.mxu0 %v3371_v31  ;;  %1954 = vmatpush1.bf16.msra.mxu1 %v3373_v32  ;;  %v222_v31 = vld [vmem:[%s4897_s0 + $0x668] sm:$0xff] }
  0x4f   :  { %1912 = vmatprep.subr.bf16.mxu0 %v3436_v33  ;;  %1955 = vmatprep.subr.bf16.mxu1 %v3438_v34  ;;  %v254_v32 = vld [vmem:[%s4897_s0 + $0x768] sm:$0xff]  ;;  %v3379_v33 = vcombine.low %v157_v21, %v189_v22  ;;  %v3381_v34 = vcombine.low %v158_v23, %v190_v24  ;;  %v3324_v21 = vcombine.high %v97_v15, %v129_v16  ;;  %v161_v23 = vld [vmem:[%s4897_s0 + $0x480] sm:$0xff] }
  0x50   :  { %v3446_v36 = vcombine.high %v222_v31, %v254_v32  ;;  %v193_v24 = vld [vmem:[%s4897_s0 + $0x580] sm:$0xff] }
  0x52   :  { %1913 = vmatpush1.bf16.msra.mxu0 %v3435_v39  ;;  %1956 = vmatpush1.bf16.msra.mxu1 %v3437_v40  ;;  %v32_v39 = vld [vmem:[%s4897_s0 + $0x78] sm:$0xff] }
  0x53   :  { %1992 = vmatprep.subr.bf16.mxu0 %v3248_v42  ;;  %2035 = vmatprep.subr.bf16.mxu1 %v3250_v43  ;;  %v64_v40 = vld [vmem:[%s4897_s0 + $0x178] sm:$0xff]  ;;  %v3443_v42 = vcombine.low %v221_v29, %v253_v30  ;;  %v3445_v43 = vcombine.low %v222_v31, %v254_v32  ;;  %v3388_v29 = vcombine.high %v161_v23, %v193_v24  ;;  %v225_v31 = vld [vmem:[%s4897_s0 + $0x680] sm:$0xff] }
  0x54   :  { %v3258_v45 = vcombine.high %v32_v39, %v64_v40  ;;  %v257_v32 = vld [vmem:[%s4897_s0 + $0x780] sm:$0xff] }
  0x55   :  { %3491 = vmatmul.mubr.msk.bf16.vlgmr.msra.gmra.mrb[16].mxu0 %vm1558_vm0, %v3644_v41  ;;  %3492 = vmatmul.mubr.msk.bf16.vlgmr.msra.gmra.mrb[16].mxu1 %vm1558_vm0, %v3644_v41 }
  0x56   :  { %1993 = vmatpush1.bf16.msra.mxu0 %v3247_v48  ;;  %2036 = vmatpush1.bf16.msra.mxu1 %v3249_v49  ;;  %v96_v48 = vld [vmem:[%s4897_s0 + $0x278] sm:$0xff] }
  0x57   :  { %1994 = vmatprep.subr.bf16.mxu0 %v3312_v50  ;;  %2037 = vmatprep.subr.bf16.mxu1 %v3314_v51  ;;  %v128_v49 = vld [vmem:[%s4897_s0 + $0x378] sm:$0xff]  ;;  %v3255_v50 = vcombine.low %v31_v37, %v63_v38  ;;  %v3257_v51 = vcombine.low %v32_v39, %v64_v40  ;;  %v3452_v37 = vcombine.high %v225_v31, %v257_v32  ;;  %v35_v39 = vld [vmem:[%s4897_s0 + $0x90] sm:$0xff] }
  0x58   :  { %2024 = vmatprep.mubr.bf16.mxu0 %v3551_v3  ;;  %2067 = vmatprep.mubr.bf16.mxu1 %v3551_v3  ;;  %v3322_v53 = vcombine.high %v96_v48, %v128_v49  ;;  %v67_v40 = vld [vmem:[%s4897_s0 + $0x190] sm:$0xff] }
  0x5a   :  { %1995 = vmatpush1.bf16.msra.mxu0 %v3311_v56  ;;  %2038 = vmatpush1.bf16.msra.mxu1 %v3313_v57  ;;  %v160_v56 = vld [vmem:[%s4897_s0 + $0x478] sm:$0xff] }
  0x5b   :  { %1996 = vmatprep.subr.bf16.mxu0 %v3376_v58  ;;  %2039 = vmatprep.subr.bf16.mxu1 %v3378_v59  ;;  %v192_v57 = vld [vmem:[%s4897_s0 + $0x578] sm:$0xff]  ;;  %v3319_v58 = vcombine.low %v95_v46, %v127_v47  ;;  %v3321_v59 = vcombine.low %v96_v48, %v128_v49  ;;  %v3264_v46 = vcombine.high %v35_v39, %v67_v40  ;;  %v99_v48 = vld [vmem:[%s4897_s0 + $0x290] sm:$0xff] }
  0x5c   :  { %v3386_v61 = vcombine.high %v160_v56, %v192_v57  ;;  %v131_v49 = vld [vmem:[%s4897_s0 + $0x390] sm:$0xff] }
  0x5e   :  { %1997 = vmatpush1.bf16.msra.mxu0 %v3375_v0  ;;  %2040 = vmatpush1.bf16.msra.mxu1 %v3377_v1  ;;  %v224_v0 = vld [vmem:[%s4897_s0 + $0x678] sm:$0xff] }
  0x5f   :  { %1998 = vmatprep.subr.bf16.mxu0 %v3440_v2  ;;  %2041 = vmatprep.subr.bf16.mxu1 %v3442_v4  ;;  %v256_v1 = vld [vmem:[%s4897_s0 + $0x778] sm:$0xff]  ;;  %v3383_v2 = vcombine.low %v159_v54, %v191_v55  ;;  %v3385_v4 = vcombine.low %v160_v56, %v192_v57  ;;  %v3328_v54 = vcombine.high %v99_v48, %v131_v49  ;;  %v163_v56 = vld [vmem:[%s4897_s0 + $0x490] sm:$0xff] }
  0x60   :  { %v3450_v6 = vcombine.high %v224_v0, %v256_v1  ;;  %v195_v57 = vld [vmem:[%s4897_s0 + $0x590] sm:$0xff] }
  0x62   :  { %1999 = vmatpush1.bf16.msra.mxu0 %v3439_v9  ;;  %2042 = vmatpush1.bf16.msra.mxu1 %v3441_v10  ;;  %v34_v9 = vld [vmem:[%s4897_s0 + $0x88] sm:$0xff] }
  0x63   :  { %2078 = vmatprep.subr.bf16.mxu0 %v3252_v11  ;;  %2121 = vmatprep.subr.bf16.mxu1 %v3254_v12  ;;  %v66_v10 = vld [vmem:[%s4897_s0 + $0x188] sm:$0xff]  ;;  %v3447_v11 = vcombine.low %v223_v62, %v255_v63  ;;  %v3449_v12 = vcombine.low %v224_v0, %v256_v1  ;;  %v3392_v62 = vcombine.high %v163_v56, %v195_v57  ;;  %v227_v0 = vld [vmem:[%s4897_s0 + $0x690] sm:$0xff] }
  0x64   :  { %v3262_v14 = vcombine.high %v34_v9, %v66_v10  ;;  %v259_v1 = vld [vmem:[%s4897_s0 + $0x790] sm:$0xff] }
  0x65   :  { %3493 = vmatmul.mubr.msk.bf16.vlgmr.msra.gmra.mrb[20].mxu0 %vm1558_vm0, %v3644_v41  ;;  %3494 = vmatmul.mubr.msk.bf16.vlgmr.msra.gmra.mrb[20].mxu1 %vm1558_vm0, %v3644_v41 }
  0x66   :  { %2079 = vmatpush1.bf16.msra.mxu0 %v3251_v17  ;;  %2122 = vmatpush1.bf16.msra.mxu1 %v3253_v18  ;;  %v98_v17 = vld [vmem:[%s4897_s0 + $0x288] sm:$0xff] }
  0x67   :  { %2080 = vmatprep.subr.bf16.mxu0 %v3316_v19  ;;  %2123 = vmatprep.subr.bf16.mxu1 %v3318_v20  ;;  %v130_v18 = vld [vmem:[%s4897_s0 + $0x388] sm:$0xff]  ;;  %v3259_v19 = vcombine.low %v33_v7, %v65_v8  ;;  %v3261_v20 = vcombine.low %v34_v9, %v66_v10  ;;  %v3456_v7 = vcombine.high %v227_v0, %v259_v1  ;;  %v37_v9 = vld [vmem:[%s4897_s0 + $0xa0] sm:$0xff] }
  0x68   :  { %2110 = vmatprep.mubr.bf16.mxu0 %v3551_v3  ;;  %2153 = vmatprep.mubr.bf16.mxu1 %v3551_v3  ;;  %v3326_v22 = vcombine.high %v98_v17, %v130_v18  ;;  %v69_v10 = vld [vmem:[%s4897_s0 + $0x1a0] sm:$0xff] }
  0x6a   :  { %2081 = vmatpush1.bf16.msra.mxu0 %v3315_v25  ;;  %2124 = vmatpush1.bf16.msra.mxu1 %v3317_v26  ;;  %v162_v25 = vld [vmem:[%s4897_s0 + $0x488] sm:$0xff] }
  0x6b   :  { %2082 = vmatprep.subr.bf16.mxu0 %v3380_v27  ;;  %2125 = vmatprep.subr.bf16.mxu1 %v3382_v28  ;;  %v194_v26 = vld [vmem:[%s4897_s0 + $0x588] sm:$0xff]  ;;  %v3323_v27 = vcombine.low %v97_v15, %v129_v16  ;;  %v3325_v28 = vcombine.low %v98_v17, %v130_v18  ;;  %v3268_v15 = vcombine.high %v37_v9, %v69_v10  ;;  %v101_v17 = vld [vmem:[%s4897_s0 + $0x2a0] sm:$0xff] }
  0x6c   :  { %v3390_v30 = vcombine.high %v162_v25, %v194_v26  ;;  %v133_v18 = vld [vmem:[%s4897_s0 + $0x3a0] sm:$0xff] }
  0x6e   :  { %2083 = vmatpush1.bf16.msra.mxu0 %v3379_v33  ;;  %2126 = vmatpush1.bf16.msra.mxu1 %v3381_v34  ;;  %v226_v33 = vld [vmem:[%s4897_s0 + $0x688] sm:$0xff] }
  0x6f   :  { %2084 = vmatprep.subr.bf16.mxu0 %v3444_v35  ;;  %2127 = vmatprep.subr.bf16.mxu1 %v3446_v36  ;;  %v258_v34 = vld [vmem:[%s4897_s0 + $0x788] sm:$0xff]  ;;  %v3387_v35 = vcombine.low %v161_v23, %v193_v24  ;;  %v3389_v36 = vcombine.low %v162_v25, %v194_v26  ;;  %v3332_v23 = vcombine.high %v101_v17, %v133_v18  ;;  %v165_v25 = vld [vmem:[%s4897_s0 + $0x4a0] sm:$0xff] }
  0x70   :  { %v3454_v38 = vcombine.high %v226_v33, %v258_v34  ;;  %v197_v26 = vld [vmem:[%s4897_s0 + $0x5a0] sm:$0xff] }
  0x72   :  { %2085 = vmatpush1.bf16.msra.mxu0 %v3443_v42  ;;  %2128 = vmatpush1.bf16.msra.mxu1 %v3445_v43  ;;  %v36_v42 = vld [vmem:[%s4897_s0 + $0x98] sm:$0xff] }
  0x73   :  { %2164 = vmatprep.subr.bf16.mxu0 %v3256_v44  ;;  %2207 = vmatprep.subr.bf16.mxu1 %v3258_v45  ;;  %v68_v43 = vld [vmem:[%s4897_s0 + $0x198] sm:$0xff]  ;;  %v3451_v44 = vcombine.low %v225_v31, %v257_v32  ;;  %v3453_v45 = vcombine.low %v226_v33, %v258_v34  ;;  %v3396_v31 = vcombine.high %v165_v25, %v197_v26  ;;  %v229_v33 = vld [vmem:[%s4897_s0 + $0x6a0] sm:$0xff] }
  0x74   :  { %v3266_v47 = vcombine.high %v36_v42, %v68_v43  ;;  %v261_v34 = vld [vmem:[%s4897_s0 + $0x7a0] sm:$0xff] }
  0x75   :  { %3495 = vmatmul.mubr.msk.bf16.vlgmr.msra.gmra.mrb[24].mxu0 %vm1558_vm0, %v3644_v41  ;;  %3496 = vmatmul.mubr.msk.bf16.vlgmr.msra.gmra.mrb[24].mxu1 %vm1558_vm0, %v3644_v41 }
  0x76   :  { %2165 = vmatpush1.bf16.msra.mxu0 %v3255_v50  ;;  %2208 = vmatpush1.bf16.msra.mxu1 %v3257_v51  ;;  %v100_v50 = vld [vmem:[%s4897_s0 + $0x298] sm:$0xff] }
  0x77   :  { %2166 = vmatprep.subr.bf16.mxu0 %v3320_v52  ;;  %2209 = vmatprep.subr.bf16.mxu1 %v3322_v53  ;;  %v132_v51 = vld [vmem:[%s4897_s0 + $0x398] sm:$0xff]  ;;  %v3263_v52 = vcombine.low %v35_v39, %v67_v40  ;;  %v3265_v53 = vcombine.low %v36_v42, %v68_v43  ;;  %v3034_v39 = vld [vmem:[%s4899_s2] sm:$0xff]  ;;  %v39_v42 = vld [vmem:[%s4897_s0 + $0xb0] sm:$0xff] }
  0x78   :  { %2196 = vmatprep.mubr.bf16.mxu0 %v3551_v3  ;;  %2239 = vmatprep.mubr.bf16.mxu1 %v3551_v3  ;;  %v3330_v55 = vcombine.high %v100_v50, %v132_v51  ;;  %v71_v43 = vld [vmem:[%s4897_s0 + $0x1b0] sm:$0xff] }
  0x79   :  { %3038 = vperm.xlu0 %3548, %v3034_v39   ;;  %v266_v39 = vld [vmem:[%s4897_s0 + $0x7c8] sm:$0xff] }
  0x7a   :  { %2167 = vmatpush1.bf16.msra.mxu0 %v3319_v58  ;;  %2210 = vmatpush1.bf16.msra.mxu1 %v3321_v59  ;;  %v164_v58 = vld [vmem:[%s4897_s0 + $0x498] sm:$0xff] }
  0x7b   :  { %2168 = vmatprep.subr.bf16.mxu0 %v3384_v60  ;;  %2211 = vmatprep.subr.bf16.mxu1 %v3386_v61  ;;  %v196_v59 = vld [vmem:[%s4897_s0 + $0x598] sm:$0xff]  ;;  %v3327_v60 = vcombine.low %v99_v48, %v131_v49  ;;  %v3329_v61 = vcombine.low %v100_v50, %v132_v51  ;;  %v3272_v49 = vcombine.high %v39_v42, %v71_v43  ;;  %v103_v51 = vld [vmem:[%s4897_s0 + $0x2b0] sm:$0xff] }
  0x7c   :  { %v3394_v63 = vcombine.high %v164_v58, %v196_v59 }
  0x7e   :  { %2169 = vmatpush1.bf16.msra.mxu0 %v3383_v2  ;;  %2212 = vmatpush1.bf16.msra.mxu1 %v3385_v4  ;;  %v228_v2 = vld [vmem:[%s4897_s0 + $0x698] sm:$0xff] }
  0x7f   :  { %2170 = vmatprep.subr.bf16.mxu0 %v3448_v5  ;;  %2213 = vmatprep.subr.bf16.mxu1 %v3450_v6  ;;  %v260_v4 = vld [vmem:[%s4897_s0 + $0x798] sm:$0xff]  ;;  %v3391_v5 = vcombine.low %v163_v56, %v195_v57  ;;  %v3393_v6 = vcombine.low %v164_v58, %v196_v59  ;;  %v167_v59 = vld [vmem:[%s4897_s0 + $0x4b0] sm:$0xff] }
  0x80   :  { %v3458_v8 = vcombine.high %v228_v2, %v260_v4 }
  0x82   :  { %2171 = vmatpush1.bf16.msra.mxu0 %v3447_v11  ;;  %2214 = vmatpush1.bf16.msra.mxu1 %v3449_v12  ;;  %v38_v11 = vld [vmem:[%s4897_s0 + $0xa8] sm:$0xff] }
  0x83   :  { %2250 = vmatprep.subr.bf16.mxu0 %v3260_v13  ;;  %2293 = vmatprep.subr.bf16.mxu1 %v3262_v14  ;;  %v70_v12 = vld [vmem:[%s4897_s0 + $0x1a8] sm:$0xff]  ;;  %v3455_v13 = vcombine.low %v227_v0, %v259_v1  ;;  %v3457_v14 = vcombine.low %v228_v2, %v260_v4 }
  0x84   :  { %v3270_v16 = vcombine.high %v38_v11, %v70_v12 }
  0x85   :  { %3497 = vmatmul.mubr.msk.bf16.vlgmr.msra.gmra.mrb[28].mxu0 %vm1558_vm0, %v3644_v41  ;;  %3498 = vmatmul.mubr.msk.bf16.vlgmr.msra.gmra.mrb[28].mxu1 %vm1558_vm0, %v3644_v41 }
  0x86   :  { %2251 = vmatpush1.bf16.msra.mxu0 %v3259_v19  ;;  %2294 = vmatpush1.bf16.msra.mxu1 %v3261_v20  ;;  %v102_v19 = vld [vmem:[%s4897_s0 + $0x2a8] sm:$0xff] }
  0x87   :  { %2252 = vmatprep.subr.bf16.mxu0 %v3324_v21  ;;  %2295 = vmatprep.subr.bf16.mxu1 %v3326_v22  ;;  %v134_v20 = vld [vmem:[%s4897_s0 + $0x3a8] sm:$0xff]  ;;  %v3267_v21 = vcombine.low %v37_v9, %v69_v10  ;;  %v3269_v22 = vcombine.low %v38_v11, %v70_v12 }
  0x88   :  { %2282 = vmatprep.mubr.bf16.mxu0 %v3551_v3  ;;  %2325 = vmatprep.mubr.bf16.mxu1 %v3551_v3  ;;  %v3334_v24 = vcombine.high %v102_v19, %v134_v20 }
  0x8a   :  { %2253 = vmatpush1.bf16.msra.mxu0 %v3323_v27  ;;  %2296 = vmatpush1.bf16.msra.mxu1 %v3325_v28  ;;  %v166_v27 = vld [vmem:[%s4897_s0 + $0x4a8] sm:$0xff] }
  0x8b   :  { %2254 = vmatprep.subr.bf16.mxu0 %v3388_v29  ;;  %2297 = vmatprep.subr.bf16.mxu1 %v3390_v30  ;;  %v198_v28 = vld [vmem:[%s4897_s0 + $0x5a8] sm:$0xff]  ;;  %v3331_v29 = vcombine.low %v101_v17, %v133_v18  ;;  %v3333_v30 = vcombine.low %v102_v19, %v134_v20 }
  0x8c   :  { %v3398_v32 = vcombine.high %v166_v27, %v198_v28 }
  0x8e   :  { %2255 = vmatpush1.bf16.msra.mxu0 %v3387_v35  ;;  %2298 = vmatpush1.bf16.msra.mxu1 %v3389_v36  ;;  %v262_v35 = vld [vmem:[%s4897_s0 + $0x7a8] sm:$0xff]  ;;  %v3395_v36 = vcombine.low %v165_v25, %v197_v26 }
  0x8f   :  { %2256 = vmatprep.subr.bf16.mxu0 %v3452_v37  ;;  %2299 = vmatprep.subr.bf16.mxu1 %v3454_v38  ;;  %v3397_v37 = vcombine.low %v166_v27, %v198_v28  ;;  %v3460_v38 = vcombine.high %v229_v33, %v261_v34 }
  0x92   :  { %2257 = vmatpush1.bf16.msra.mxu0 %v3451_v44  ;;  %2300 = vmatpush1.bf16.msra.mxu1 %v3453_v45  ;;  %v40_v44 = vld [vmem:[%s4897_s0 + $0xb8] sm:$0xff] }
  0x93   :  { %2336 = vmatprep.subr.bf16.mxu0 %v3264_v46  ;;  %2379 = vmatprep.subr.bf16.mxu1 %v3266_v47  ;;  %v72_v45 = vld [vmem:[%s4897_s0 + $0x1b8] sm:$0xff]  ;;  %v3035_v46 = vld [vmem:[%s4899_s2 + $0x8] sm:$0xff]  ;;  %v3459_v47 = vcombine.low %v229_v33, %v261_v34 }
  0x94   :  { %v3274_v50 = vcombine.high %v40_v44, %v72_v45  ;;  %3043 = vperm.xlu0 %3548, %v3035_v46   ;;  %v3273_v56 = vcombine.low %v40_v44, %v72_v45  ;;  %v43_v45 = vld [vmem:[%s4897_s0 + $0xd0] sm:$0xff] }
  0x95   :  { %3499 = vmatmul.mubr.msk.bf16.vlgmr.msra.gmra.mrb[32].mxu0 %vm1558_vm0, %v3644_v41  ;;  %3500 = vmatmul.mubr.msk.bf16.vlgmr.msra.gmra.mrb[32].mxu1 %vm1558_vm0, %v3644_v41  ;;  %v75_v46 = vld [vmem:[%s4897_s0 + $0x1d0] sm:$0xff] }
  0x96   :  { %2337 = vmatpush1.bf16.msra.mxu0 %v3263_v52  ;;  %2380 = vmatpush1.bf16.msra.mxu1 %v3265_v53  ;;  %v135_v52 = vld [vmem:[%s4897_s0 + $0x3b0] sm:$0xff]  ;;  %v104_v53 = vld [vmem:[%s4897_s0 + $0x2b8] sm:$0xff] }
  0x97   :  { %2338 = vmatprep.subr.bf16.mxu0 %v3328_v54  ;;  %2381 = vmatprep.subr.bf16.mxu1 %v3330_v55  ;;  %v136_v54 = vld [vmem:[%s4897_s0 + $0x3b8] sm:$0xff]  ;;  %v3271_v55 = vcombine.low %v39_v42, %v71_v43  ;;  %v3336_v57 = vcombine.high %v103_v51, %v135_v52  ;;  %v3335_v0 = vcombine.low %v103_v51, %v135_v52 }
  0x98   :  { %2368 = vmatprep.mubr.bf16.mxu0 %v3551_v3  ;;  %2411 = vmatprep.mubr.bf16.mxu1 %v3551_v3  ;;  %v3338_v58 = vcombine.high %v104_v53, %v136_v54  ;;  %v3337_v1 = vcombine.low %v104_v53, %v136_v54  ;;  %v3280_v51 = vcombine.high %v43_v45, %v75_v46  ;;  %v107_v53 = vld [vmem:[%s4897_s0 + $0x2d0] sm:$0xff] }
  0x99   :  { %v139_v54 = vld [vmem:[%s4897_s0 + $0x3d0] sm:$0xff] }
  0x9a   :  { %2339 = vmatpush1.bf16.msra.mxu0 %v3327_v60  ;;  %2382 = vmatpush1.bf16.msra.mxu1 %v3329_v61  ;;  %v199_v60 = vld [vmem:[%s4897_s0 + $0x5b0] sm:$0xff]  ;;  %v4207_v61 = vld [vmem:[%s4898_s1] sm:$0xff]  }
  0x9b   :  { %2340 = vmatprep.subr.bf16.mxu0 %v3392_v62  ;;  %2383 = vmatprep.subr.bf16.mxu1 %v3394_v63  ;;  %v168_v62 = vld [vmem:[%s4897_s0 + $0x4b8] sm:$0xff]  ;;  %v3400_v2 = vcombine.high %v167_v59, %v199_v60  ;;  %v3399_v9 = vcombine.low %v167_v59, %v199_v60  ;;  %v3344_v59 = vcombine.high %v107_v53, %v139_v54 }
  0x9c   :  { %v200_v63 = vld [vmem:[%s4897_s0 + $0x5b8] sm:$0xff] }
  0x9d   :  { %v3402_v4 = vcombine.high %v168_v62, %v200_v63  ;;  %v3401_v10 = vcombine.low %v168_v62, %v200_v63  ;;  %v171_v62 = vld [vmem:[%s4897_s0 + $0x4d0] sm:$0xff] }
  0x9e   :  { %2341 = vmatpush1.bf16.msra.mxu0 %v3391_v5  ;;  %2384 = vmatpush1.bf16.msra.mxu1 %v3393_v6  ;;  %v231_v5 = vld [vmem:[%s4897_s0 + $0x6b0] sm:$0xff] }
  0x9f   :  { %2342 = vmatprep.subr.bf16.mxu0 %v3456_v7  ;;  %2385 = vmatprep.subr.bf16.mxu1 %v3458_v8  ;;  %v263_v6 = vld [vmem:[%s4897_s0 + $0x7b0] sm:$0xff]  ;;  %v232_v7 = vld [vmem:[%s4897_s0 + $0x6b8] sm:$0xff] }
  0xa0   :  { %v264_v8 = vld [vmem:[%s4897_s0 + $0x7b8] sm:$0xff]  ;;  %v3464_v11 = vcombine.high %v231_v5, %v263_v6  ;;  %v3463_v17 = vcombine.low %v231_v5, %v263_v6  ;;  %v203_v63 = vld [vmem:[%s4897_s0 + $0x5d0] sm:$0xff] }
  0xa1   :  { %v3466_v12 = vcombine.high %v232_v7, %v264_v8  ;;  %v3465_v18 = vcombine.low %v232_v7, %v264_v8  ;;  %v3408_v5 = vcombine.high %v171_v62, %v203_v63  ;;  %v235_v7 = vld [vmem:[%s4897_s0 + $0x6d0] sm:$0xff] }
  0xa2   :  { %2343 = vmatpush1.bf16.msra.mxu0 %v3455_v13  ;;  %2386 = vmatpush1.bf16.msra.mxu1 %v3457_v14  ;;  %v41_v13 = vld [vmem:[%s4897_s0 + $0xc0] sm:$0xff]  ;;  %v267_v8 = vld [vmem:[%s4897_s0 + $0x7d0] sm:$0xff] }
  0xa3   :  { %2422 = vmatprep.subr.bf16.mxu0 %v3268_v15  ;;  %2465 = vmatprep.subr.bf16.mxu1 %v3270_v16  ;;  %v73_v14 = vld [vmem:[%s4897_s0 + $0x1c0] sm:$0xff]  ;;  %v42_v15 = vld [vmem:[%s4897_s0 + $0xc8] sm:$0xff] }
  0xa4   :  { %v74_v16 = vld [vmem:[%s4897_s0 + $0x1c8] sm:$0xff]  ;;  %v3276_v19 = vcombine.high %v41_v13, %v73_v14  ;;  %v3275_v25 = vcombine.low %v41_v13, %v73_v14  ;;  %v3472_v13 = vcombine.high %v235_v7, %v267_v8 }
  0xa5   :  { %3501 = vmatmul.mubr.msk.bf16.vlgmr.msra.gmra.mrb[36].mxu0 %vm1558_vm0, %v3644_v41  ;;  %3502 = vmatmul.mubr.msk.bf16.vlgmr.msra.gmra.mrb[36].mxu1 %vm1558_vm0, %v3644_v41  ;;  %v230_v41 = vld [vmem:[%s4897_s0 + $0x6a8] sm:$0xff]  ;;  %v3278_v20 = vcombine.high %v42_v15, %v74_v16  ;;  %v3277_v26 = vcombine.low %v42_v15, %v74_v16  ;;  %v45_v15 = vld [vmem:[%s4897_s0 + $0xe0] sm:$0xff] }
  0xa6   :  { %2423 = vmatpush1.bf16.msra.mxu0 %v3267_v21  ;;  %2466 = vmatpush1.bf16.msra.mxu1 %v3269_v22  ;;  %v3462_v40 = vcombine.high %v230_v41, %v262_v35  ;;  %v3461_v48 = vcombine.low %v230_v41, %v262_v35  ;;  %v105_v21 = vld [vmem:[%s4897_s0 + $0x2c0] sm:$0xff] }
  0xa7   :  { %2424 = vmatprep.subr.bf16.mxu0 %v3332_v23  ;;  %2467 = vmatprep.subr.bf16.mxu1 %v3334_v24  ;;  %v137_v22 = vld [vmem:[%s4897_s0 + $0x3c0] sm:$0xff]  ;;  %v106_v23 = vld [vmem:[%s4897_s0 + $0x2c8] sm:$0xff] }
  0xa8   :  { %2454 = vmatprep.mubr.bf16.mxu0 %v3551_v3  ;;  %2497 = vmatprep.mubr.bf16.mxu1 %v3551_v3  ;;  %v138_v24 = vld [vmem:[%s4897_s0 + $0x3c8] sm:$0xff]  ;;  %v3340_v27 = vcombine.high %v105_v21, %v137_v22  ;;  %v3339_v33 = vcombine.low %v105_v21, %v137_v22  ;;  %v77_v16 = vld [vmem:[%s4897_s0 + $0x1e0] sm:$0xff] }
  0xa9   :  { %v3342_v28 = vcombine.high %v106_v23, %v138_v24  ;;  %v3341_v34 = vcombine.low %v106_v23, %v138_v24  ;;  %v3284_v21 = vcombine.high %v45_v15, %v77_v16  ;;  %v109_v23 = vld [vmem:[%s4897_s0 + $0x2e0] sm:$0xff] }
  0xaa   :  { %2425 = vmatpush1.bf16.msra.mxu0 %v3331_v29  ;;  %2468 = vmatpush1.bf16.msra.mxu1 %v3333_v30  ;;  %v169_v29 = vld [vmem:[%s4897_s0 + $0x4c0] sm:$0xff] }
  0xab   :  { %2426 = vmatprep.subr.bf16.mxu0 %v3396_v31  ;;  %2469 = vmatprep.subr.bf16.mxu1 %v3398_v32  ;;  %v201_v30 = vld [vmem:[%s4897_s0 + $0x5c0] sm:$0xff]  ;;  %v170_v31 = vld [vmem:[%s4897_s0 + $0x4c8] sm:$0xff] }
  0xac   :  { %v202_v32 = vld [vmem:[%s4897_s0 + $0x5c8] sm:$0xff]  ;;  %v3404_v41 = vcombine.high %v169_v29, %v201_v30  ;;  %v141_v24 = vld [vmem:[%s4897_s0 + $0x3e0] sm:$0xff] }
  0xad   :  { %v3406_v35 = vcombine.high %v170_v31, %v202_v32  ;;  %v3405_v42 = vcombine.low %v170_v31, %v202_v32  ;;  %v173_v31 = vld [vmem:[%s4897_s0 + $0x4e0] sm:$0xff] }
  0xae   :  { %2427 = vmatpush1.bf16.msra.mxu0 %v3395_v36  ;;  %2470 = vmatpush1.bf16.msra.mxu1 %v3397_v37  ;;  %v233_v36 = vld [vmem:[%s4897_s0 + $0x6c0] sm:$0xff] }
  0xaf   :  { %2428 = vmatprep.subr.bf16.mxu0 %v3460_v38  ;;  %2471 = vmatprep.subr.bf16.mxu1 %v3462_v40  ;;  %v265_v37 = vld [vmem:[%s4897_s0 + $0x7c0] sm:$0xff]  ;;  %v234_v38 = vld [vmem:[%s4897_s0 + $0x6c8] sm:$0xff]  ;;  %v3403_v40 = vcombine.low %v169_v29, %v201_v30  ;;  %v3348_v29 = vcombine.high %v109_v23, %v141_v24 }
  0xb0   :  { %v3468_v43 = vcombine.high %v233_v36, %v265_v37  ;;  %v3470_v44 = vcombine.high %v234_v38, %v266_v39  ;;  %v205_v32 = vld [vmem:[%s4897_s0 + $0x5e0] sm:$0xff] }
  0xb2   :  { %2429 = vmatpush1.bf16.msra.mxu0 %v3459_v47  ;;  %2472 = vmatpush1.bf16.msra.mxu1 %v3461_v48  ;;  %v44_v47 = vld [vmem:[%s4897_s0 + $0xd8] sm:$0xff] }
  0xb3   :  { %2508 = vmatprep.subr.bf16.mxu0 %v3272_v49  ;;  %2551 = vmatprep.subr.bf16.mxu1 %v3274_v50  ;;  %v76_v48 = vld [vmem:[%s4897_s0 + $0x1d8] sm:$0xff]  ;;  %v3467_v49 = vcombine.low %v233_v36, %v265_v37  ;;  %v3469_v50 = vcombine.low %v234_v38, %v266_v39  ;;  %v3412_v36 = vcombine.high %v173_v31, %v205_v32  ;;  %v237_v39 = vld [vmem:[%s4897_s0 + $0x6e0] sm:$0xff] }
  0xb4   :  { %v3282_v52 = vcombine.high %v44_v47, %v76_v48 }
  0xb5   :  { %3503 = vmatmul.mubr.msk.bf16.vlgmr.msra.gmra.mrb[40].mxu0 %vm1558_vm0, %v4207_v61  ;;  %3504 = vmatmul.mubr.msk.bf16.vlgmr.msra.gmra.mrb[40].mxu1 %vm1558_vm0, %v4207_v61 }
  0xb6   :  { %2509 = vmatpush1.bf16.msra.mxu0 %v3271_v55  ;;  %2552 = vmatpush1.bf16.msra.mxu1 %v3273_v56  ;;  %v108_v55 = vld [vmem:[%s4897_s0 + $0x2d8] sm:$0xff] }
  0xb7   :  { %2510 = vmatprep.subr.bf16.mxu0 %v3336_v57  ;;  %2553 = vmatprep.subr.bf16.mxu1 %v3338_v58  ;;  %v140_v56 = vld [vmem:[%s4897_s0 + $0x3d8] sm:$0xff]  ;;  %v3279_v57 = vcombine.low %v43_v45, %v75_v46  ;;  %v3281_v58 = vcombine.low %v44_v47, %v76_v48  ;;  %v270_v45 = vld [vmem:[%s4897_s0 + $0x7e8] sm:$0xff]  ;;  %v3411_v48 = vcombine.low %v173_v31, %v205_v32 }
  0xb8   :  { %2540 = vmatprep.mubr.bf16.mxu0 %v3551_v3  ;;  %2583 = vmatprep.mubr.bf16.mxu1 %v3551_v3  ;;  %v3346_v60 = vcombine.high %v108_v55, %v140_v56 }
  0xba   :  { %2511 = vmatpush1.bf16.msra.mxu0 %v3335_v0  ;;  %2554 = vmatpush1.bf16.msra.mxu1 %v3337_v1  ;;  %v172_v0 = vld [vmem:[%s4897_s0 + $0x4d8] sm:$0xff] }
  0xbb   :  { %2512 = vmatprep.subr.bf16.mxu0 %v3400_v2  ;;  %2555 = vmatprep.subr.bf16.mxu1 %v3402_v4  ;;  %v204_v1 = vld [vmem:[%s4897_s0 + $0x5d8] sm:$0xff]  ;;  %v3343_v2 = vcombine.low %v107_v53, %v139_v54  ;;  %v3345_v4 = vcombine.low %v108_v55, %v140_v56  ;;  %v47_v55 = vld [vmem:[%s4897_s0 + $0xf0] sm:$0xff] }
  0xbc   :  { %v3410_v6 = vcombine.high %v172_v0, %v204_v1  ;;  %v79_v56 = vld [vmem:[%s4897_s0 + $0x1f0] sm:$0xff] }
  0xbe   :  { %2513 = vmatpush1.bf16.msra.mxu0 %v3399_v9  ;;  %2556 = vmatpush1.bf16.msra.mxu1 %v3401_v10  ;;  %v236_v9 = vld [vmem:[%s4897_s0 + $0x6d8] sm:$0xff] }
  0xbf   :  { %2514 = vmatprep.subr.bf16.mxu0 %v3464_v11  ;;  %2557 = vmatprep.subr.bf16.mxu1 %v3466_v12  ;;  %v268_v10 = vld [vmem:[%s4897_s0 + $0x7d8] sm:$0xff]  ;;  %v3407_v11 = vcombine.low %v171_v62, %v203_v63  ;;  %v3409_v12 = vcombine.low %v172_v0, %v204_v1  ;;  %v3288_v62 = vcombine.high %v47_v55, %v79_v56  ;;  %v111_v0 = vld [vmem:[%s4897_s0 + $0x2f0] sm:$0xff] }
  0xc0   :  { %v3474_v14 = vcombine.high %v236_v9, %v268_v10  ;;  %v143_v1 = vld [vmem:[%s4897_s0 + $0x3f0] sm:$0xff] }
  0xc2   :  { %2515 = vmatpush1.bf16.msra.mxu0 %v3463_v17  ;;  %2558 = vmatpush1.bf16.msra.mxu1 %v3465_v18  ;;  %v46_v17 = vld [vmem:[%s4897_s0 + $0xe8] sm:$0xff] }
  0xc3   :  { %2594 = vmatprep.subr.bf16.mxu0 %v3276_v19  ;;  %2637 = vmatprep.subr.bf16.mxu1 %v3278_v20  ;;  %v78_v18 = vld [vmem:[%s4897_s0 + $0x1e8] sm:$0xff]  ;;  %v3471_v19 = vcombine.low %v235_v7, %v267_v8  ;;  %v3473_v20 = vcombine.low %v236_v9, %v268_v10  ;;  %v3352_v7 = vcombine.high %v111_v0, %v143_v1  ;;  %v175_v9 = vld [vmem:[%s4897_s0 + $0x4f0] sm:$0xff] }
  0xc4   :  { %v3286_v22 = vcombine.high %v46_v17, %v78_v18  ;;  %v207_v10 = vld [vmem:[%s4897_s0 + $0x5f0] sm:$0xff] }
  0xc5   :  { %3505 = vmatmul.mubr.msk.bf16.vlgmr.msra.gmra.mrb[44].mxu0 %vm1558_vm0, %v4207_v61  ;;  %3506 = vmatmul.mubr.msk.bf16.vlgmr.msra.gmra.mrb[44].mxu1 %vm1558_vm0, %v4207_v61 }
  0xc6   :  { %2595 = vmatpush1.bf16.msra.mxu0 %v3275_v25  ;;  %2638 = vmatpush1.bf16.msra.mxu1 %v3277_v26  ;;  %v110_v25 = vld [vmem:[%s4897_s0 + $0x2e8] sm:$0xff] }
  0xc7   :  { %2596 = vmatprep.subr.bf16.mxu0 %v3340_v27  ;;  %2639 = vmatprep.subr.bf16.mxu1 %v3342_v28  ;;  %v142_v26 = vld [vmem:[%s4897_s0 + $0x3e8] sm:$0xff]  ;;  %v3283_v27 = vcombine.low %v45_v15, %v77_v16  ;;  %v3285_v28 = vcombine.low %v46_v17, %v78_v18  ;;  %v3416_v15 = vcombine.high %v175_v9, %v207_v10  ;;  %v239_v18 = vld [vmem:[%s4897_s0 + $0x6f0] sm:$0xff] }
  0xc8   :  { %2626 = vmatprep.mubr.bf16.mxu0 %v3551_v3  ;;  %2669 = vmatprep.mubr.bf16.mxu1 %v3551_v3  ;;  %v3350_v30 = vcombine.high %v110_v25, %v142_v26 }
  0xca   :  { %2597 = vmatpush1.bf16.msra.mxu0 %v3339_v33  ;;  %2640 = vmatpush1.bf16.msra.mxu1 %v3341_v34  ;;  %v174_v33 = vld [vmem:[%s4897_s0 + $0x4e8] sm:$0xff] }
  0xcb   :  { %2598 = vmatprep.subr.bf16.mxu0 %v3404_v41  ;;  %2641 = vmatprep.subr.bf16.mxu1 %v3406_v35  ;;  %v206_v34 = vld [vmem:[%s4897_s0 + $0x5e8] sm:$0xff]  ;;  %v3347_v41 = vcombine.low %v109_v23, %v141_v24  ;;  %v3349_v35 = vcombine.low %v110_v25, %v142_v26  ;;  %v272_v23 = vld [vmem:[%s4897_s0 + $0x7f8] sm:$0xff]  ;;  %v3415_v26 = vcombine.low %v175_v9, %v207_v10 }
  0xcc   :  { %v3414_v38 = vcombine.high %v174_v33, %v206_v34 }
  0xce   :  { %2599 = vmatpush1.bf16.msra.mxu0 %v3403_v40  ;;  %2642 = vmatpush1.bf16.msra.mxu1 %v3405_v42  ;;  %v269_v40 = vld [vmem:[%s4897_s0 + $0x7e0] sm:$0xff] }
  0xcf   :  { %2600 = vmatprep.subr.bf16.mxu0 %v3468_v43  ;;  %2643 = vmatprep.subr.bf16.mxu1 %v3470_v44  ;;  %v238_v44 = vld [vmem:[%s4897_s0 + $0x6e8] sm:$0xff] }
  0xd0   :  { %v3478_v54 = vcombine.high %v238_v44, %v270_v45 }
  0xd2   :  { %2601 = vmatpush1.bf16.msra.mxu0 %v3467_v49  ;;  %2644 = vmatpush1.bf16.msra.mxu1 %v3469_v50 }
  0xd3   :  { %2680 = vmatprep.subr.bf16.mxu0 %v3280_v51  ;;  %2723 = vmatprep.subr.bf16.mxu1 %v3282_v52  ;;  %v3413_v51 = vcombine.low %v174_v33, %v206_v34  ;;  %v3476_v52 = vcombine.high %v237_v39, %v269_v40 }
  0xd5   :  { %3507 = vmatmul.mubr.msk.bf16.vlgmr.msra.gmra.mrb[48].mxu0 %vm1558_vm0, %v4207_v61  ;;  %3508 = vmatmul.mubr.msk.bf16.vlgmr.msra.gmra.mrb[48].mxu1 %vm1558_vm0, %v4207_v61 }
  0xd6   :  { %2681 = vmatpush1.bf16.msra.mxu0 %v3279_v57  ;;  %2724 = vmatpush1.bf16.msra.mxu1 %v3281_v58  ;;  %v48_v57 = vld [vmem:[%s4897_s0 + $0xf8] sm:$0xff] }
  0xd7   :  { %2682 = vmatprep.subr.bf16.mxu0 %v3344_v59  ;;  %2725 = vmatprep.subr.bf16.mxu1 %v3346_v60  ;;  %v80_v58 = vld [vmem:[%s4897_s0 + $0x1f8] sm:$0xff]  ;;  %v3475_v59 = vcombine.low %v237_v39, %v269_v40  ;;  %v3477_v60 = vcombine.low %v238_v44, %v270_v45 }
  0xd8   :  { %2712 = vmatprep.mubr.bf16.mxu0 %v3551_v3  ;;  %2755 = vmatprep.mubr.bf16.mxu1 %v3551_v3  ;;  %v3290_v63 = vcombine.high %v48_v57, %v80_v58 }
  0xda   :  { %2683 = vmatpush1.bf16.msra.mxu0 %v3343_v2  ;;  %2726 = vmatpush1.bf16.msra.mxu1 %v3345_v4  ;;  %v112_v2 = vld [vmem:[%s4897_s0 + $0x2f8] sm:$0xff] }
  0xdb   :  { %2684 = vmatprep.subr.bf16.mxu0 %v3408_v5  ;;  %2727 = vmatprep.subr.bf16.mxu1 %v3410_v6  ;;  %v144_v4 = vld [vmem:[%s4897_s0 + $0x3f8] sm:$0xff]  ;;  %v3287_v5 = vcombine.low %v47_v55, %v79_v56  ;;  %v3289_v6 = vcombine.low %v48_v57, %v80_v58 }
  0xdc   :  { %v3354_v8 = vcombine.high %v112_v2, %v144_v4 }
  0xde   :  { %2685 = vmatpush1.bf16.msra.mxu0 %v3407_v11  ;;  %2728 = vmatpush1.bf16.msra.mxu1 %v3409_v12  ;;  %v176_v11 = vld [vmem:[%s4897_s0 + $0x4f8] sm:$0xff] }
  0xdf   :  { %2686 = vmatprep.subr.bf16.mxu0 %v3472_v13  ;;  %2729 = vmatprep.subr.bf16.mxu1 %v3474_v14  ;;  %v208_v12 = vld [vmem:[%s4897_s0 + $0x5f8] sm:$0xff]  ;;  %v3351_v13 = vcombine.low %v111_v0, %v143_v1  ;;  %v3353_v14 = vcombine.low %v112_v2, %v144_v4 }
  0xe0   :  { %v3418_v17 = vcombine.high %v176_v11, %v208_v12 }
  0xe2   :  { %2687 = vmatpush1.bf16.msra.mxu0 %v3471_v19  ;;  %2730 = vmatpush1.bf16.msra.mxu1 %v3473_v20  ;;  %v271_v19 = vld [vmem:[%s4897_s0 + $0x7f0] sm:$0xff] }
  0xe3   :  { %2766 = vmatprep.subr.bf16.mxu0 %v3284_v21  ;;  %2809 = vmatprep.subr.bf16.mxu1 %v3286_v22  ;;  %v240_v22 = vld [vmem:[%s4897_s0 + $0x6f8] sm:$0xff] }
  0xe4   :  { %v3482_v32 = vcombine.high %v240_v22, %v272_v23  ;;  %v3481_v33 = vcombine.low %v240_v22, %v272_v23 }
  0xe5   :  { %3509 = vmatmul.mubr.msk.bf16.vlgmr.msra.gmra.mrb[52].mxu0 %vm1558_vm0, %v4207_v61  ;;  %3510 = vmatmul.mubr.msk.bf16.vlgmr.msra.gmra.mrb[52].mxu1 %vm1558_vm0, %v4207_v61 }
  0xe6   :  { %2767 = vmatpush1.bf16.msra.mxu0 %v3283_v27  ;;  %2810 = vmatpush1.bf16.msra.mxu1 %v3285_v28 }
  0xe7   :  { %2768 = vmatprep.subr.bf16.mxu0 %v3348_v29  ;;  %2811 = vmatprep.subr.bf16.mxu1 %v3350_v30  ;;  %v3417_v29 = vcombine.low %v176_v11, %v208_v12  ;;  %v3480_v30 = vcombine.high %v239_v18, %v271_v19 }
  0xe8   :  { %v4381_v37 = vpop.f32.mrb[0].mxu0  ;;  %2798 = vmatprep.mubr.bf16.mxu0 %v3551_v3  ;;  %v4390_v42 = vpop.f32.mrb[0].mxu1  ;;  %2841 = vmatprep.mubr.bf16.mxu1 %v3551_v3 }
  0xe9   :  { %v4392_v43 = vpop.f32.mrb[1].mxu0  ;;  %v4401_v46 = vpop.f32.mrb[1].mxu1 }
  0xea   :  { %v4403_v47 = vpop.f32.mrb[2].mxu0  ;;  %2769 = vmatpush1.bf16.msra.mxu0 %v3347_v41  ;;  %v4405_v49 = vpop.f32.mrb[2].mxu1  ;;  %2812 = vmatpush1.bf16.msra.mxu1 %v3349_v35 }
  0xeb   :  { %v4407_v50 = vpop.f32.mrb[3].mxu0  ;;  %2770 = vmatprep.subr.bf16.mxu0 %v3412_v36  ;;  %v4409_v53 = vpop.f32.mrb[3].mxu1  ;;  %2813 = vmatprep.subr.bf16.mxu1 %v3414_v38 }
  0xee   :  { %2771 = vmatpush1.bf16.msra.mxu0 %v3411_v48  ;;  %2814 = vmatpush1.bf16.msra.mxu1 %v3413_v51 }
  0xef   :  { %2772 = vmatprep.subr.bf16.mxu0 %v3476_v52  ;;  %2815 = vmatprep.subr.bf16.mxu1 %v3478_v54 }
  0xf2   :  { %2773 = vmatpush1.bf16.msra.mxu0 %v3475_v59  ;;  %2816 = vmatpush1.bf16.msra.mxu1 %v3477_v60 }
  0xf3   :  { %2852 = vmatprep.subr.bf16.mxu0 %v3288_v62  ;;  %2895 = vmatprep.subr.bf16.mxu1 %v3290_v63 }
  0xf5   :  { %3511 = vmatmul.mubr.msk.bf16.vlgmr.msra.gmra.mrb[56].mxu0 %vm1558_vm0, %v4207_v61  ;;  %3512 = vmatmul.mubr.msk.bf16.vlgmr.msra.gmra.mrb[56].mxu1 %vm1558_vm0, %v4207_v61 }
  0xf6   :  { %2853 = vmatpush1.bf16.msra.mxu0 %v3287_v5  ;;  %2896 = vmatpush1.bf16.msra.mxu1 %v3289_v6 }
  0xf7   :  { %2854 = vmatprep.subr.bf16.mxu0 %v3352_v7  ;;  %2897 = vmatprep.subr.bf16.mxu1 %v3354_v8 }
  0xf8   :  { %v4451_v16 = vpop.f32.mrb[4].mxu0  ;;  %2884 = vmatprep.mubr.bf16.mxu0 %v3551_v3  ;;  %v4460_v20 = vpop.f32.mrb[4].mxu1  ;;  %2927 = vmatprep.mubr.bf16.mxu1 %v3551_v3  ;;  %v3479_v3 = vcombine.low %v239_v18, %v271_v19 }
  0xf9   :  { %v4462_v21 = vpop.f32.mrb[5].mxu0  ;;  %v4471_v24 = vpop.f32.mrb[5].mxu1 }
  0xfa   :  { %v4473_v25 = vpop.f32.mrb[6].mxu0  ;;  %2855 = vmatpush1.bf16.msra.mxu0 %v3351_v13  ;;  %v4475_v27 = vpop.f32.mrb[6].mxu1  ;;  %2898 = vmatpush1.bf16.msra.mxu1 %v3353_v14 }
  0xfb   :  { %v4477_v28 = vpop.f32.mrb[7].mxu0  ;;  %2856 = vmatprep.subr.bf16.mxu0 %v3416_v15  ;;  %v4479_v31 = vpop.f32.mrb[7].mxu1  ;;  %2899 = vmatprep.subr.bf16.mxu1 %v3418_v17 }
  0xfe   :  { %2857 = vmatpush1.bf16.msra.mxu0 %v3415_v26  ;;  %2900 = vmatpush1.bf16.msra.mxu1 %v3417_v29 }
  0xff   :  { %2858 = vmatprep.subr.bf16.mxu0 %v3480_v30  ;;  %2901 = vmatprep.subr.bf16.mxu1 %v3482_v32 }
 0x102   :  { %2859 = vmatpush1.bf16.msra.mxu0 %v3479_v3  ;;  %2902 = vmatpush1.bf16.msra.mxu1 %v3481_v33 }
 0x105   :  { %3513 = vmatmul.mubr.msk.bf16.vlgmr.msra.gmra.mrb[60].mxu0 %vm1558_vm0, %v4207_v61  ;;  %3514 = vmatmul.mubr.msk.bf16.vlgmr.msra.gmra.mrb[60].mxu1 %vm1558_vm0, %v4207_v61 }
 0x108   :  { %v4485_v34 = vpop.f32.mrb[8].mxu0  ;;  %v4487_v41 = vpop.f32.mrb[8].mxu1 }
 0x109   :  { %4934 = vst [vmem:[#allocation2_spill] sm:$0xff] %v4485_v34  ;;  %4935 = vst [vmem:[#allocation3_spill] sm:$0xff] %v4487_v41  ;;  %v4489_v35 = vpop.f32.mrb[9].mxu0  ;;  %v4491_v36 = vpop.f32.mrb[9].mxu1 }
 0x10a   :  { %4936 = vst [vmem:[#allocation4_spill] sm:$0xff] %v4489_v35  ;;  %4937 = vst [vmem:[#allocation5_spill] sm:$0xff] %v4491_v36  ;;  %v4493_v38 = vpop.f32.mrb[10].mxu0  ;;  %v4495_v39 = vpop.f32.mrb[10].mxu1 }
 0x10b   :  { %4938 = vst [vmem:[#allocation6_spill] sm:$0xff] %v4493_v38  ;;  %4939 = vst [vmem:[#allocation7_spill] sm:$0xff] %v4495_v39  ;;  %v4497_v40 = vpop.f32.mrb[11].mxu0  ;;  %v4499_v44 = vpop.f32.mrb[11].mxu1 }
 0x10c   :  { %4940 = vst [vmem:[#allocation8_spill] sm:$0xff] %v4497_v40  ;;  %4941 = vst [vmem:[#allocation9_spill] sm:$0xff] %v4499_v44 }
 0x118   :  { %v4501_v45 = vpop.f32.mrb[12].mxu0  ;;  %v4503_v48 = vpop.f32.mrb[12].mxu1 }
 0x119   :  { %4942 = vst [vmem:[#allocation10_spill] sm:$0xff] %v4501_v45  ;;  %4943 = vst [vmem:[#allocation11_spill] sm:$0xff] %v4503_v48  ;;  %v4505_v61 = vpop.f32.mrb[13].mxu0  ;;  %v4507_v51 = vpop.f32.mrb[13].mxu1 }
 0x11a   :  { %4944 = vst [vmem:[#allocation12_spill] sm:$0xff] %v4505_v61  ;;  %4945 = vst [vmem:[#allocation13_spill] sm:$0xff] %v4507_v51  ;;  %v4509_v52 = vpop.f32.mrb[14].mxu0  ;;  %v4511_v54 = vpop.f32.mrb[14].mxu1 }
 0x11b   :  { %4946 = vst [vmem:[#allocation14_spill] sm:$0xff] %v4509_v52  ;;  %4947 = vst [vmem:[#allocation15_spill] sm:$0xff] %v4511_v54  ;;  %v4513_v55 = vpop.f32.mrb[15].mxu0  ;;  %v4515_v56 = vpop.f32.mrb[15].mxu1 }
 0x11c   :  { %4948 = vst [vmem:[#allocation16_spill] sm:$0xff] %v4513_v55  ;;  %4949 = vst [vmem:[#allocation17_spill] sm:$0xff] %v4515_v56 }
 0x128   :  { %v4517_v57 = vpop.f32.mrb[16].mxu0  ;;  %v4521_v59 = vpop.f32.mrb[16].mxu1 }
 0x129   :  { %v4523_v60 = vpop.f32.mrb[17].mxu0  ;;  %v4529_v0 = vpop.f32.mrb[17].mxu1 }
 0x12a   :  { %v4531_v1 = vpop.f32.mrb[18].mxu0  ;;  %v4537_v5 = vpop.f32.mrb[18].mxu1 }
 0x12b   :  { %v4539_v6 = vpop.f32.mrb[19].mxu0  ;;  %v4545_v9 = vpop.f32.mrb[19].mxu1 }
 0x138   :  { %v4549_v11 = vpop.f32.mrb[20].mxu0  ;;  %v4553_v13 = vpop.f32.mrb[20].mxu1 }
 0x139   :  { %v4555_v14 = vpop.f32.mrb[21].mxu0  ;;  %v4561_v18 = vpop.f32.mrb[21].mxu1 }
 0x13a   :  { %v4563_v19 = vpop.f32.mrb[22].mxu0  ;;  %v4569_v26 = vpop.f32.mrb[22].mxu1 }
 0x13b   :  { %v4571_v29 = vpop.f32.mrb[23].mxu0  ;;  %v4577_v3 = vpop.f32.mrb[23].mxu1 }
 0x13c   :  { %4950 = vst [vmem:[#allocation18_spill] sm:$0xff] %v4577_v3 }
 0x148   :  { %v4581_v17 = vpop.f32.mrb[24].mxu0  ;;  %v4585_v22 = vpop.f32.mrb[24].mxu1 }
 0x149   :  { %4951 = vst [vmem:[#allocation19_spill] sm:$0xff] %v4581_v17  ;;  %4952 = vst [vmem:[#allocation20_spill] sm:$0xff] %v4585_v22  ;;  %v4587_v15 = vpop.f32.mrb[25].mxu0  ;;  %v4593_v12 = vpop.f32.mrb[25].mxu1 }
 0x14a   :  { %4953 = vst [vmem:[#allocation21_spill] sm:$0xff] %v4587_v15  ;;  %4954 = vst [vmem:[#allocation22_spill] sm:$0xff] %v4593_v12  ;;  %v4595_v10 = vpop.f32.mrb[26].mxu0  ;;  %v4601_v8 = vpop.f32.mrb[26].mxu1 }
 0x14b   :  { %4955 = vst [vmem:[#allocation23_spill] sm:$0xff] %v4595_v10  ;;  %4956 = vst [vmem:[#allocation24_spill] sm:$0xff] %v4601_v8  ;;  %v4603_v7 = vpop.f32.mrb[27].mxu0  ;;  %v4609_v4 = vpop.f32.mrb[27].mxu1 }
 0x14c   :  { %4957 = vst [vmem:[#allocation25_spill] sm:$0xff] %v4603_v7  ;;  %4958 = vst [vmem:[#allocation26_spill] sm:$0xff] %v4609_v4 }
 0x158   :  { %v4613_v63 = vpop.f32.mrb[28].mxu0  ;;  %v4617_v33 = vpop.f32.mrb[28].mxu1 }
 0x159   :  { %4959 = vst [vmem:[#allocation27_spill] sm:$0xff] %v4613_v63  ;;  %4960 = vst [vmem:[#allocation28_spill] sm:$0xff] %v4617_v33  ;;  %v4619_v62 = vpop.f32.mrb[29].mxu0  ;;  %v4625_v58 = vpop.f32.mrb[29].mxu1 }
 0x15a   :  { %4961 = vst [vmem:[#allocation29_spill] sm:$0xff] %v4619_v62  ;;  %4962 = vst [vmem:[#allocation30_spill] sm:$0xff] %v4625_v58  ;;  %v4627_v7 = vpop.f32.mrb[30].mxu0  ;;  %v4633_v63 = vpop.f32.mrb[30].mxu1 }
 0x15b   :  { %4963 = vst [vmem:[#allocation31_spill] sm:$0xff] %v4627_v7  ;;  %4964 = vst [vmem:[#allocation32_spill] sm:$0xff] %v4633_v63  ;;  %v4635_v45 = vpop.f32.mrb[31].mxu0  ;;  %v4641_v62 = vpop.f32.mrb[31].mxu1 }
 0x15c   :  { %4965 = vst [vmem:[#allocation33_spill] sm:$0xff] %v4635_v45  ;;  %4966 = vst [vmem:[#allocation34_spill] sm:$0xff] %v4641_v62 }
 0x168   :  { %v2284_v33 = vpop.f32.mrb[32].mxu0  ;;  %v2327_v2 = vpop.f32.mrb[32].mxu1 }
 0x169   :  { %v2286_v58 = vpop.f32.mrb[33].mxu0  ;;  %v2329_v51 = vpop.f32.mrb[33].mxu1 }
 0x16a   :  { %v2288_v23 = vpop.f32.mrb[34].mxu0  ;;  %v2331_v7 = vpop.f32.mrb[34].mxu1 }
 0x16b   :  { %v2290_v52 = vpop.f32.mrb[35].mxu0  ;;  %v2333_v48 = vpop.f32.mrb[35].mxu1 }
 0x178   :  { %v4645_v4 = vpop.f32.mrb[36].mxu0  ;;  %v4647_v44 = vpop.f32.mrb[36].mxu1 }
 0x179   :  { %v4649_v30 = vpop.f32.mrb[37].mxu0  ;;  %v4651_v32 = vpop.f32.mrb[37].mxu1 }
 0x17a   :  { %v4653_v45 = vpop.f32.mrb[38].mxu0  ;;  %v4655_v55 = vpop.f32.mrb[38].mxu1 }
 0x17b   :  { %v4657_v61 = vpop.f32.mrb[39].mxu0  ;;  %v4659_v62 = vpop.f32.mrb[39].mxu1 }
 0x188   :  { %v4661_v56 = vpop.f32.mrb[40].mxu0  ;;  %v4663_v63 = vpop.f32.mrb[40].mxu1 }
 0x189   :  { %4967 = vst [vmem:[#allocation35_spill] sm:$0xff] %v4661_v56  ;;  %4968 = vst [vmem:[#allocation36_spill] sm:$0xff] %v4663_v63  ;;  %v4665_v54 = vpop.f32.mrb[41].mxu0  ;;  %v4667_v40 = vpop.f32.mrb[41].mxu1 }
 0x18a   :  { %4969 = vst [vmem:[#allocation37_spill] sm:$0xff] %v4665_v54  ;;  %4970 = vst [vmem:[#allocation38_spill] sm:$0xff] %v4667_v40  ;;  %v4669_v8 = vpop.f32.mrb[42].mxu0  ;;  %v4671_v39 = vpop.f32.mrb[42].mxu1 }
 0x18b   :  { %4971 = vst [vmem:[#allocation39_spill] sm:$0xff] %v4669_v8  ;;  %4972 = vst [vmem:[#allocation40_spill] sm:$0xff] %v4671_v39  ;;  %v4673_v10 = vpop.f32.mrb[43].mxu0  ;;  %v4675_v38 = vpop.f32.mrb[43].mxu1 }
 0x18c   :  { %4973 = vst [vmem:[#allocation41_spill] sm:$0xff] %v4673_v10  ;;  %4974 = vst [vmem:[#allocation42_spill] sm:$0xff] %v4675_v38  ;;  %v4693_v39 = vpop.permute.xlu0 %3038 }
 0x198   :  { %v4677_v12 = vpop.f32.mrb[44].mxu0  ;;  %v4679_v36 = vpop.f32.mrb[44].mxu1 }
 0x199   :  { %4975 = vst [vmem:[#allocation43_spill] sm:$0xff] %v4677_v12  ;;  %4976 = vst [vmem:[#allocation44_spill] sm:$0xff] %v4679_v36  ;;  %v4681_v15 = vpop.f32.mrb[45].mxu0  ;;  %v4683_v35 = vpop.f32.mrb[45].mxu1 }
 0x19a   :  { %4977 = vst [vmem:[#allocation45_spill] sm:$0xff] %v4681_v15  ;;  %4978 = vst [vmem:[#allocation46_spill] sm:$0xff] %v4683_v35  ;;  %v4685_v22 = vpop.f32.mrb[46].mxu0  ;;  %v4687_v41 = vpop.f32.mrb[46].mxu1  ;;  %v4983_v35 = vmax.f32 %v4381_v37, %v4517_v57  ;;  %v4986_v37 = vmax.f32 %v4401_v46, %v4529_v0 }
 0x19b   :  { %4979 = vst [vmem:[#allocation47_spill] sm:$0xff] %v4685_v22  ;;  %4980 = vst [vmem:[#allocation48_spill] sm:$0xff] %v4687_v41  ;;  %v4689_v40 = vpop.f32.mrb[47].mxu0  ;;  %v4691_v8 = vpop.f32.mrb[47].mxu1 }
 0x19c   :  { %4981 = vst [vmem:[#allocation49_spill] sm:$0xff] %v4689_v40  ;;  %4982 = vst [vmem:[#allocation50_spill] sm:$0xff] %v4691_v8  ;;  %v4984_v8 = vmax.f32 %v4390_v42, %v4521_v59 }
 0x1a8   :  { %v2628_v10 = vpop.f32.mrb[48].mxu0  ;;  %v2671_v17 = vpop.f32.mrb[48].mxu1 }
 0x1a9   :  { %v2970_v38 = vmax.f32 %v2284_v33, %v2628_v10  ;;  %v2630_v12 = vpop.f32.mrb[49].mxu0  ;;  %v2972_v34 = vmax.f32 %v2327_v2, %v2671_v17  ;;  %v2673_v54 = vpop.f32.mrb[49].mxu1  ;;  %v4985_v10 = vmax.f32 %v4392_v43, %v4523_v60 }
 0x1aa   :  { %v2971_v36 = vmax.f32 %v2286_v58, %v2630_v12  ;;  %v2632_v15 = vpop.f32.mrb[50].mxu0  ;;  %v2973_v63 = vmax.f32 %v2329_v51, %v2673_v54  ;;  %v2675_v56 = vpop.f32.mrb[50].mxu1  ;;  %v4987_v51 = vmax.f32 %v4403_v47, %v4531_v1  ;;  %v4990_v47 = vmax.f32 %v4409_v53, %v4545_v9 }
 0x1ab   :  { %v3002_v22 = vmax.f32 %v4983_v35, %v2970_v38  ;;  %v2986_v41 = vmax.f32 %v2288_v23, %v2632_v15  ;;  %v2634_v40 = vpop.f32.mrb[51].mxu0  ;;  %v3004_v3 = vmax.f32 %v4984_v8, %v2972_v34  ;;  %v2988_v2 = vmax.f32 %v2331_v7, %v2675_v56  ;;  %v2677_v12 = vpop.f32.mrb[51].mxu1 }
 0x1ac   :  { %v3003_v33 = vmax.f32 %v4985_v10, %v2971_v36  ;;  %v2987_v58 = vmax.f32 %v2290_v52, %v2634_v40  ;;  %v4704_v17 = vpop.permute.xlu0 %3043  ;;  %v3005_v35 = vmax.f32 %v4986_v37, %v2973_v63  ;;  %v2989_v34 = vmax.f32 %v2333_v48, %v2677_v12 }
 0x1ad   :  { %v3046_v38 = vadd.f32 %v4693_v39, %v3002_v22  ;;  %v3018_v42 = vmax.f32 %v4987_v51, %v2986_v41  ;;  %v3048_v43 = vadd.f32 %v4693_v39, %v3004_v3  ;;  %v4988_v36 = vmax.f32 %v4405_v49, %v4537_v5 }
 0x1ae   :  { %v3047_v54 = vadd.f32 %v4693_v39, %v3003_v33  ;;  %v4989_v52 = vmax.f32 %v4407_v50, %v4539_v6  ;;  %v3049_v56 = vadd.f32 %v4693_v39, %v3005_v35  ;;  %v3021_v41 = vmax.f32 %v4990_v47, %v2989_v34 }
 0x1af   :  { %v3020_v40 = vmax.f32 %v4988_v36, %v2988_v2  ;;  %v3078_v57 = vmax.f32 %v3046_v38, 0.0  ;;  %v3062_v48 = vadd.f32 %v4704_v17, %v3018_v42  ;;  %v3080_v60 = vmax.f32 %v3048_v43, 0.0 }
 0x1b0   :  { %v3019_v46 = vmax.f32 %v4989_v52, %v2987_v58  ;;  %v3079_v59 = vmax.f32 %v3047_v54, 0.0  ;;  %v3081_v0 = vmax.f32 %v3049_v56, 0.0  ;;  %v3065_v1 = vadd.f32 %v4704_v17, %v3021_v41 }
 0x1b1   :  { %v3064_v49 = vadd.f32 %v4704_v17, %v3020_v40  ;;  %v3094_v50 = vmax.f32 %v3062_v48, 0.0  ;;  %v4991_v37 = vmax.f32 %v4451_v16, %v4549_v11  ;;  %v4995_v40 = vmax.f32 %v4473_v25, %v4563_v19  ;;  %v4998_v19 = vld [vmem:[#allocation18_spill] sm:$0xff] }
 0x1b2   :  { %v3063_v63 = vadd.f32 %v4704_v17, %v3019_v46  ;;  %v3531_v5 = vpack.c.bf16 %v3079_v59, %v3078_v57  ;;  %v3532_v8 = vpack.c.bf16 %v3081_v0, %v3080_v60  ;;  %v3097_v15 = vmax.f32 %v3065_v1, 0.0 }
 0x1b3   :  { %v3096_v7 = vmax.f32 %v3064_v49, 0.0  ;;  %v4997_v52 = vmax.f32 %v4477_v28, %v4571_v29 }
 0x1b4   :  { %v3095_v6 = vmax.f32 %v3063_v63, 0.0  ;;  %3206 = vst [vmem:[%s4900_s3] sm:$0xff] %v3531_v5  ;;  %3207 = vst [vmem:[%s4900_s3 + $0x8] sm:$0xff] %v3532_v8  ;;  %v5001_v8 = vld [vmem:[#allocation36_spill] sm:$0xff] }
 0x1b5   :  { %v3540_v53 = vpack.c.bf16 %v3097_v15, %v3096_v7 }
 0x1b6   :  { %v3539_v22 = vpack.c.bf16 %v3095_v6, %v3094_v50  ;;  %v5000_v50 = vld [vmem:[#allocation35_spill] sm:$0xff] }
 0x1b7   :  { %3215 = vst [vmem:[%s4900_s3 + $0x48] sm:$0xff] %v3540_v53 }
 0x1b8   :  { %3214 = vst [vmem:[%s4900_s3 + $0x40] sm:$0xff] %v3539_v22  ;;  %v2714_v9 = vpop.f32.mrb[52].mxu0  ;;  %v2757_v3 = vpop.f32.mrb[52].mxu1  ;;  %v5002_v22 = vld [vmem:[#allocation37_spill] sm:$0xff] }
 0x1b9   :  { %v2974_v23 = vmax.f32 %v4645_v4, %v2714_v9  ;;  %v2716_v10 = vpop.f32.mrb[53].mxu0  ;;  %v2976_v33 = vmax.f32 %v4647_v44, %v2757_v3  ;;  %v2759_v58 = vpop.f32.mrb[53].mxu1  ;;  %v4992_v4 = vmax.f32 %v4460_v20, %v4553_v13  ;;  %v4993_v44 = vmax.f32 %v4462_v21, %v4555_v14  ;;  %v5003_v3 = vld [vmem:[#allocation2_spill] sm:$0xff] }
 0x1ba   :  { %v2975_v2 = vmax.f32 %v4649_v30, %v2716_v10  ;;  %v2718_v12 = vpop.f32.mrb[54].mxu0  ;;  %v2977_v38 = vmax.f32 %v4651_v32, %v2759_v58  ;;  %v2761_v42 = vpop.f32.mrb[54].mxu1  ;;  %v5004_v10 = vld [vmem:[#allocation19_spill] sm:$0xff]  ;;  %v5006_v58 = vld [vmem:[#allocation38_spill] sm:$0xff] }
 0x1bb   :  { %v3006_v35 = vmax.f32 %v4991_v37, %v2974_v23  ;;  %v2990_v51 = vmax.f32 %v4653_v45, %v2718_v12  ;;  %v2720_v34 = vpop.f32.mrb[55].mxu0  ;;  %v3008_v54 = vmax.f32 %v4992_v4, %v2976_v33  ;;  %v2992_v43 = vmax.f32 %v4655_v55, %v2761_v42  ;;  %v2763_v16 = vpop.f32.mrb[55].mxu1  ;;  %v5007_v37 = vld [vmem:[#allocation39_spill] sm:$0xff] }
 0x1bc   :  { %v3007_v30 = vmax.f32 %v4993_v44, %v2975_v2  ;;  %v2991_v36 = vmax.f32 %v4657_v61, %v2720_v34  ;;  %v4994_v45 = vmax.f32 %v4471_v24, %v4561_v18  ;;  %v2993_v13 = vmax.f32 %v4659_v62, %v2763_v16  ;;  %v5008_v42 = vld [vmem:[#allocation3_spill] sm:$0xff]  ;;  %v5009_v34 = vld [vmem:[#allocation20_spill] sm:$0xff] }
 0x1bd   :  { %v3050_v11 = vadd.f32 %v4693_v39, %v3006_v35  ;;  %v3022_v20 = vmax.f32 %v4995_v40, %v2990_v51  ;;  %v3052_v21 = vadd.f32 %v4693_v39, %v3008_v54  ;;  %v4996_v61 = vmax.f32 %v4475_v27, %v4569_v26  ;;  %v5011_v44 = vld [vmem:[#allocation4_spill] sm:$0xff] }
 0x1be   :  { %v3009_v32 = vmax.f32 %v4994_v45, %v2977_v38  ;;  %v3051_v14 = vadd.f32 %v4693_v39, %v3007_v30  ;;  %v3023_v46 = vmax.f32 %v4997_v52, %v2991_v36  ;;  %v4999_v62 = vmax.f32 %v4479_v31, %v4998_v19  ;;  %v5012_v30 = vld [vmem:[#allocation21_spill] sm:$0xff]  ;;  %v5014_v16 = vld [vmem:[#allocation40_spill] sm:$0xff]  ;;  %v5020_v52 = vld [vmem:[#allocation23_spill] sm:$0xff] }
 0x1bf   :  { %v3024_v55 = vmax.f32 %v4996_v61, %v2992_v43  ;;  %v3082_v24 = vmax.f32 %v3050_v11, 0.0  ;;  %v3066_v25 = vadd.f32 %v4704_v17, %v3022_v20  ;;  %v3084_v57 = vmax.f32 %v3052_v21, 0.0  ;;  %v5015_v45 = vld [vmem:[#allocation41_spill] sm:$0xff]  ;;  %v5017_v21 = vld [vmem:[#allocation22_spill] sm:$0xff] }
 0x1c0   :  { %v3053_v18 = vadd.f32 %v4693_v39, %v3009_v32  ;;  %v3025_v56 = vmax.f32 %v4999_v62, %v2993_v13  ;;  %v3083_v47 = vmax.f32 %v3051_v14, 0.0  ;;  %v3067_v27 = vadd.f32 %v4704_v17, %v3023_v46  ;;  %v5016_v13 = vld [vmem:[#allocation5_spill] sm:$0xff] }
 0x1c1   :  { %v3068_v41 = vadd.f32 %v4704_v17, %v3024_v55  ;;  %v3098_v48 = vmax.f32 %v3066_v25, 0.0  ;;  %v5005_v33 = vmax.f32 %v5003_v3, %v5004_v10  ;;  %v5010_v4 = vmax.f32 %v5008_v42, %v5009_v34  ;;  %v5019_v55 = vld [vmem:[#allocation6_spill] sm:$0xff]  ;;  %v5034_v42 = vld [vmem:[#allocation45_spill] sm:$0xff] }
 0x1c2   :  { %v3085_v26 = vmax.f32 %v3053_v18, 0.0  ;;  %v3069_v28 = vadd.f32 %v4704_v17, %v3025_v56  ;;  %v3533_v29 = vpack.c.bf16 %v3083_v47, %v3082_v24  ;;  %v3099_v60 = vmax.f32 %v3067_v27, 0.0  ;;  %v5022_v18 = vld [vmem:[#allocation42_spill] sm:$0xff]  ;;  %v5023_v56 = vld [vmem:[#allocation7_spill] sm:$0xff]  ;;  %v5026_v27 = vld [vmem:[#allocation8_spill] sm:$0xff] }
 0x1c3   :  { %v3100_v59 = vmax.f32 %v3068_v41, 0.0  ;;  %v5013_v43 = vmax.f32 %v5011_v44, %v5012_v30  ;;  %v5018_v14 = vmax.f32 %v5016_v13, %v5017_v21  ;;  %v5021_v46 = vmax.f32 %v5019_v55, %v5020_v52  ;;  %v5035_v44 = vld [vmem:[#allocation10_spill] sm:$0xff]  ;;  %v5036_v30 = vld [vmem:[#allocation27_spill] sm:$0xff]  ;;  %v5041_v21 = vld [vmem:[#allocation28_spill] sm:$0xff] }
 0x1c4   :  { %v3534_v63 = vpack.c.bf16 %v3085_v26, %v3084_v57  ;;  %v3101_v49 = vmax.f32 %v3069_v28, 0.0  ;;  %3208 = vst [vmem:[%s4900_s3 + $0x10] sm:$0xff] %v3533_v29  ;;  %v3541_v31 = vpack.c.bf16 %v3099_v60, %v3098_v48  ;;  %v5024_v57 = vld [vmem:[#allocation24_spill] sm:$0xff]  ;;  %v5027_v26 = vld [vmem:[#allocation25_spill] sm:$0xff]  ;;  %v5040_v13 = vld [vmem:[#allocation11_spill] sm:$0xff] }
 0x1c5   :  { %v5025_v47 = vmax.f32 %v5023_v56, %v5024_v57  ;;  %v5028_v48 = vmax.f32 %v5026_v27, %v5027_v26  ;;  %v5043_v55 = vld [vmem:[#allocation12_spill] sm:$0xff]  ;;  %v5044_v52 = vld [vmem:[#allocation29_spill] sm:$0xff] }
 0x1c6   :  { %3209 = vst [vmem:[%s4900_s3 + $0x18] sm:$0xff] %v3534_v63  ;;  %v3542_v0 = vpack.c.bf16 %v3101_v49, %v3100_v59  ;;  %3216 = vst [vmem:[%s4900_s3 + $0x50] sm:$0xff] %v3541_v31  ;;  %v5029_v63 = vld [vmem:[#allocation9_spill] sm:$0xff]  ;;  %v5030_v49 = vld [vmem:[#allocation26_spill] sm:$0xff] }
 0x1c7   :  { %v5031_v31 = vmax.f32 %v5029_v63, %v5030_v49 }
 0x1c8   :  { %3217 = vst [vmem:[%s4900_s3 + $0x58] sm:$0xff] %v3542_v0  ;;  %v2800_v1 = vpop.f32.mrb[56].mxu0  ;;  %v2843_v6 = vpop.f32.mrb[56].mxu1 }
 0x1c9   :  { %v2978_v5 = vmax.f32 %v5000_v50, %v2800_v1  ;;  %v2802_v7 = vpop.f32.mrb[57].mxu0  ;;  %v2980_v15 = vmax.f32 %v5001_v8, %v2843_v6  ;;  %v2845_v9 = vpop.f32.mrb[57].mxu1 }
 0x1ca   :  { %v2979_v53 = vmax.f32 %v5002_v22, %v2802_v7  ;;  %v2804_v23 = vpop.f32.mrb[58].mxu0  ;;  %v2981_v12 = vmax.f32 %v5006_v58, %v2845_v9  ;;  %v2847_v38 = vpop.f32.mrb[58].mxu1  ;;  %v5032_v58 = vld [vmem:[#allocation43_spill] sm:$0xff] }
 0x1cb   :  { %v3010_v2 = vmax.f32 %v5005_v33, %v2978_v5  ;;  %v2994_v35 = vmax.f32 %v5007_v37, %v2804_v23  ;;  %v2806_v51 = vpop.f32.mrb[59].mxu0  ;;  %v3012_v54 = vmax.f32 %v5010_v4, %v2980_v15  ;;  %v2996_v11 = vmax.f32 %v5014_v16, %v2847_v38  ;;  %v2849_v40 = vpop.f32.mrb[59].mxu1  ;;  %v5033_v38 = vld [vmem:[#allocation44_spill] sm:$0xff]  ;;  %v5038_v16 = vld [vmem:[#allocation46_spill] sm:$0xff] }
 0x1cc   :  { %v3011_v36 = vmax.f32 %v5013_v43, %v2979_v53  ;;  %v2995_v32 = vmax.f32 %v5015_v45, %v2806_v51  ;;  %v3013_v61 = vmax.f32 %v5018_v14, %v2981_v12  ;;  %v2997_v25 = vmax.f32 %v5022_v18, %v2849_v40  ;;  %v5039_v45 = vld [vmem:[#allocation47_spill] sm:$0xff]  ;;  %v5046_v18 = vld [vmem:[#allocation48_spill] sm:$0xff] }
 0x1cd   :  { %v3054_v20 = vadd.f32 %v4693_v39, %v3010_v2  ;;  %v3026_v24 = vmax.f32 %v5021_v46, %v2994_v35  ;;  %v3056_v19 = vadd.f32 %v4693_v39, %v3012_v54  ;;  %v3028_v41 = vmax.f32 %v5025_v47, %v2996_v11  ;;  %v5048_v47 = vld [vmem:[#allocation13_spill] sm:$0xff] }
 0x1ce   :  { %v3055_v62 = vadd.f32 %v4693_v39, %v3011_v36  ;;  %v3027_v28 = vmax.f32 %v5028_v48, %v2995_v32  ;;  %v3057_v59 = vadd.f32 %v4693_v39, %v3013_v61  ;;  %v3029_v0 = vmax.f32 %v5031_v31, %v2997_v25  ;;  %v5051_v48 = vld [vmem:[#allocation14_spill] sm:$0xff] }
 0x1cf   :  { %v3086_v29 = vmax.f32 %v3054_v20, 0.0  ;;  %v3070_v60 = vadd.f32 %v4704_v17, %v3026_v24  ;;  %v3088_v1 = vmax.f32 %v3056_v19, 0.0  ;;  %v3072_v5 = vadd.f32 %v4704_v17, %v3028_v41  ;;  %v5047_v19 = vld [vmem:[#allocation49_spill] sm:$0xff]  ;;  %v5049_v41 = vld [vmem:[#allocation30_spill] sm:$0xff] }
 0x1d0   :  { %v3087_v50 = vmax.f32 %v3055_v62, 0.0  ;;  %v3071_v6 = vadd.f32 %v4704_v17, %v3027_v28  ;;  %v3089_v7 = vmax.f32 %v3057_v59, 0.0  ;;  %v3073_v15 = vadd.f32 %v4704_v17, %v3029_v0  ;;  %v5052_v28 = vld [vmem:[#allocation31_spill] sm:$0xff] }
 0x1d1   :  { %v3102_v8 = vmax.f32 %v3070_v60, 0.0  ;;  %v3104_v53 = vmax.f32 %v3072_v5, 0.0  ;;  %v5037_v43 = vmax.f32 %v5035_v44, %v5036_v30  ;;  %v5042_v14 = vmax.f32 %v5040_v13, %v5041_v21  ;;  %v5054_v60 = vld [vmem:[#allocation50_spill] sm:$0xff]  ;;  %v5055_v0 = vld [vmem:[#allocation15_spill] sm:$0xff] }
 0x1d2   :  { %v3535_v22 = vpack.c.bf16 %v3087_v50, %v3086_v29  ;;  %v3103_v9 = vmax.f32 %v3071_v6, 0.0  ;;  %v3536_v23 = vpack.c.bf16 %v3089_v7, %v3088_v1  ;;  %v3105_v3 = vmax.f32 %v3073_v15, 0.0  ;;  %v5056_v1 = vld [vmem:[#allocation32_spill] sm:$0xff]  ;;  %v5059_v7 = vld [vmem:[#allocation33_spill] sm:$0xff] }
 0x1d3   :  { %v5045_v46 = vmax.f32 %v5043_v55, %v5044_v52  ;;  %v5050_v27 = vmax.f32 %v5048_v47, %v5049_v41  ;;  %v5053_v29 = vmax.f32 %v5051_v48, %v5052_v28  ;;  %v5057_v50 = vmax.f32 %v5055_v0, %v5056_v1  ;;  %v5058_v6 = vld [vmem:[#allocation16_spill] sm:$0xff] }
 0x1d4   :  { %3210 = vst [vmem:[%s4900_s3 + $0x20] sm:$0xff] %v3535_v22  ;;  %v3543_v10 = vpack.c.bf16 %v3103_v9, %v3102_v8  ;;  %3211 = vst [vmem:[%s4900_s3 + $0x28] sm:$0xff] %v3536_v23  ;;  %v3544_v33 = vpack.c.bf16 %v3105_v3, %v3104_v53  ;;  %v5060_v8 = vmax.f32 %v5058_v6, %v5059_v7  ;;  %v5061_v23 = vld [vmem:[#allocation17_spill] sm:$0xff]  ;;  %v5062_v3 = vld [vmem:[#allocation34_spill] sm:$0xff] }
 0x1d6   :  { %3218 = vst [vmem:[%s4900_s3 + $0x60] sm:$0xff] %v3543_v10  ;;  %3219 = vst [vmem:[%s4900_s3 + $0x68] sm:$0xff] %v3544_v33  ;;  %v5063_v10 = vmax.f32 %v5061_v23, %v5062_v3 }
 0x1d8   :  { %v2886_v2 = vpop.f32.mrb[60].mxu0  ;;  %v2929_v37 = vpop.f32.mrb[60].mxu1 }
 0x1d9   :  { %v2982_v12 = vmax.f32 %v5032_v58, %v2886_v2  ;;  %v2888_v35 = vpop.f32.mrb[61].mxu0  ;;  %v2984_v51 = vmax.f32 %v5033_v38, %v2929_v37  ;;  %v2931_v4 = vpop.f32.mrb[61].mxu1 }
 0x1da   :  { %v2983_v34 = vmax.f32 %v5034_v42, %v2888_v35  ;;  %v2890_v54 = vpop.f32.mrb[62].mxu0  ;;  %v2985_v11 = vmax.f32 %v5038_v16, %v2931_v4  ;;  %v2933_v40 = vpop.f32.mrb[62].mxu1 }
 0x1db   :  { %v3014_v36 = vmax.f32 %v5037_v43, %v2982_v12  ;;  %v2998_v32 = vmax.f32 %v5039_v45, %v2890_v54  ;;  %v2892_v20 = vpop.f32.mrb[63].mxu0  ;;  %v3016_v61 = vmax.f32 %v5042_v14, %v2984_v51  ;;  %v3000_v25 = vmax.f32 %v5046_v18, %v2933_v40  ;;  %v2935_v56 = vpop.f32.mrb[63].mxu1 }
 0x1dc   :  { %v3015_v24 = vmax.f32 %v5045_v46, %v2983_v34  ;;  %v2999_v62 = vmax.f32 %v5047_v19, %v2892_v20  ;;  %v3017_v26 = vmax.f32 %v5050_v27, %v2985_v11  ;;  %v3001_v63 = vmax.f32 %v5054_v60, %v2935_v56 }
 0x1dd   :  { %v3058_v57 = vadd.f32 %v4693_v39, %v3014_v36  ;;  %v3030_v59 = vmax.f32 %v5053_v29, %v2998_v32  ;;  %v3060_v49 = vadd.f32 %v4693_v39, %v3016_v61  ;;  %v3032_v5 = vmax.f32 %v5057_v50, %v3000_v25 }
 0x1de   :  { %v3059_v31 = vadd.f32 %v4693_v39, %v3015_v24  ;;  %v3031_v15 = vmax.f32 %v5060_v8, %v2999_v62  ;;  %v3061_v53 = vadd.f32 %v4693_v39, %v3017_v26  ;;  %v3033_v33 = vmax.f32 %v5063_v10, %v3001_v63 }
 0x1df   :  { %v3090_v22 = vmax.f32 %v3058_v57, 0.0  ;;  %v3074_v9 = vadd.f32 %v4704_v17, %v3030_v59  ;;  %v3092_v2 = vmax.f32 %v3060_v49, 0.0  ;;  %v3076_v12 = vadd.f32 %v4704_v17, %v3032_v5 }
 0x1e0   :  { %v3091_v58 = vmax.f32 %v3059_v31, 0.0  ;;  %v3075_v37 = vadd.f32 %v4704_v17, %v3031_v15  ;;  %v3093_v35 = vmax.f32 %v3061_v53, 0.0  ;;  %v3077_v51 = vadd.f32 %v4704_v17, %v3033_v33 }
 0x1e1   :  { %v3106_v38 = vmax.f32 %v3074_v9, 0.0  ;;  %v3108_v34 = vmax.f32 %v3076_v12, 0.0 }
 0x1e2   :  { %v3537_v42 = vpack.c.bf16 %v3091_v58, %v3090_v22  ;;  %v3107_v4 = vmax.f32 %v3075_v37, 0.0  ;;  %v3538_v39 = vpack.c.bf16 %v3093_v35, %v3092_v2  ;;  %v3109_v54 = vmax.f32 %v3077_v51, 0.0 }
 0x1e4   :  { %3212 = vst [vmem:[%s4900_s3 + $0x30] sm:$0xff] %v3537_v42  ;;  %v3545_v44 = vpack.c.bf16 %v3107_v4, %v3106_v38  ;;  %3213 = vst [vmem:[%s4900_s3 + $0x38] sm:$0xff] %v3538_v39  ;;  %v3546_v30 = vpack.c.bf16 %v3109_v54, %v3108_v34 }
 0x1e6   :  { %3220 = vst [vmem:[%s4900_s3 + $0x70] sm:$0xff] %v3545_v44  ;;  %3221 = vst [vmem:[%s4900_s3 + $0x78] sm:$0xff] %v3546_v30 }

// kernel: convnet_forward.6
= control target key start
LH: loop header
LB: loop body
LE: loop exit
PB: predicated region body
PF: predicated region fallthrough
CT: control target
= control target key end

     0   :  { %vm901_vm0 = vcmask 130048   ;;  %s2377_s0 = inlined_call_operand.vmem [shape: bf16[1,144,2048], index: 0, kind: input, shape index: {}]   ;;  %s2378_s1 = inlined_call_operand.vmem [shape: bf16[32,144], index: 1, kind: input, shape index: {}]   ;;  %s2379_s2 = inlined_call_operand.vmem [shape: f32[32,1], index: 2, kind: input, shape index: {}]   ;;  %s2380_s3 = inlined_call_operand.vmem [shape: bf16[1,32,512], index: 3, kind: output, shape index: {}]  }
   0x1   :  { %v19_v0 = vld [vmem:[%s2377_s0] sm:$0xff]  ;;  %v20_v2 = vld [vmem:[%s2377_s0 + $0x8] sm:$0xff] }
   0x2   :  { %v27_v1 = vld [vmem:[%s2377_s0 + $0x40] sm:$0xff]  ;;  %v28_v4 = vld [vmem:[%s2377_s0 + $0x48] sm:$0xff] }
   0x3   :  { %v1501_v3 = vcombine.high %v19_v0, %v27_v1  ;;  %v1500_v5 = vcombine.low %v19_v0, %v27_v1  ;;  %v35_v6 = vld [vmem:[%s2377_s0 + $0x80] sm:$0xff]  ;;  %v1503_v8 = vcombine.high %v20_v2, %v28_v4  ;;  %v1502_v9 = vcombine.low %v20_v2, %v28_v4  ;;  %v36_v11 = vld [vmem:[%s2377_s0 + $0x88] sm:$0xff] }
   0x4   :  { %v43_v7 = vld [vmem:[%s2377_s0 + $0xc0] sm:$0xff]  ;;  %v44_v12 = vld [vmem:[%s2377_s0 + $0xc8] sm:$0xff] }
   0x5   :  { %v1517_v10 = vcombine.high %v35_v6, %v43_v7  ;;  %v51_v13 = vld [vmem:[%s2377_s0 + $0x100] sm:$0xff]  ;;  %908 = vmatprep.subr.bf16.mxu0 %v1501_v3  ;;  %v1519_v14 = vcombine.high %v36_v11, %v44_v12  ;;  %v52_v16 = vld [vmem:[%s2377_s0 + $0x108] sm:$0xff]  ;;  %961 = vmatprep.subr.bf16.mxu1 %v1503_v8  ;;  %v1516_v18 = vcombine.low %v35_v6, %v43_v7  ;;  %v21_v7 = vld [vmem:[%s2377_s0 + $0x10] sm:$0xff] }
   0x6   :  { %v59_v15 = vld [vmem:[%s2377_s0 + $0x140] sm:$0xff]  ;;  %v60_v17 = vld [vmem:[%s2377_s0 + $0x148] sm:$0xff]  ;;  %909 = vmatpush1.bf16.msra.mxu0 %v1500_v5  ;;  %962 = vmatpush1.bf16.msra.mxu1 %v1502_v9  ;;  %v1518_v19 = vcombine.low %v36_v11, %v44_v12  ;;  %v29_v8 = vld [vmem:[%s2377_s0 + $0x50] sm:$0xff]  ;;  %v1685_v11 = vmov 0  }
   0x7   :  { %910 = vmatprep.subr.bf16.mxu0 %v1517_v10  ;;  %v1533_v20 = vcombine.high %v51_v13, %v59_v15  ;;  %963 = vmatprep.subr.bf16.mxu1 %v1519_v14  ;;  %v1535_v21 = vcombine.high %v52_v16, %v60_v17  ;;  %v67_v22 = vld [vmem:[%s2377_s0 + $0x180] sm:$0xff]  ;;  %v68_v24 = vld [vmem:[%s2377_s0 + $0x188] sm:$0xff]  ;;  %v1532_v26 = vcombine.low %v51_v13, %v59_v15  ;;  %v22_v9 = vld [vmem:[%s2377_s0 + $0x18] sm:$0xff] }
   0x8   :  { %v75_v23 = vld [vmem:[%s2377_s0 + $0x1c0] sm:$0xff]  ;;  %v76_v25 = vld [vmem:[%s2377_s0 + $0x1c8] sm:$0xff]  ;;  %v1534_v27 = vcombine.low %v52_v16, %v60_v17  ;;  %v30_v10 = vld [vmem:[%s2377_s0 + $0x58] sm:$0xff]  ;;  %1677 = vset.pattern.permute.xlu0 %v1685_v11  ;;  %1678 = vset.pattern.permute.xlu1 %v1685_v11  ;;  %v1505_v14 = vcombine.high %v21_v7, %v29_v8 }
   0x9   :  { %v1549_v28 = vcombine.high %v67_v22, %v75_v23  ;;  %v1551_v29 = vcombine.high %v68_v24, %v76_v25  ;;  %v83_v30 = vld [vmem:[%s2377_s0 + $0x200] sm:$0xff]  ;;  %v84_v32 = vld [vmem:[%s2377_s0 + $0x208] sm:$0xff]  ;;  %v1548_v34 = vcombine.low %v67_v22, %v75_v23  ;;  %v1550_v36 = vcombine.low %v68_v24, %v76_v25  ;;  %v37_v16 = vld [vmem:[%s2377_s0 + $0x90] sm:$0xff] }
   0xa   :  { %911 = vmatpush1.bf16.msra.mxu0 %v1516_v18  ;;  %964 = vmatpush1.bf16.msra.mxu1 %v1518_v19  ;;  %v91_v31 = vld [vmem:[%s2377_s0 + $0x240] sm:$0xff]  ;;  %v92_v33 = vld [vmem:[%s2377_s0 + $0x248] sm:$0xff]  ;;  %v1507_v15 = vcombine.high %v22_v9, %v30_v10  ;;  %v45_v17 = vld [vmem:[%s2377_s0 + $0xd0] sm:$0xff]  ;;  %v1506_v22 = vcombine.low %v22_v9, %v30_v10 }
   0xb   :  { %912 = vmatprep.subr.bf16.mxu0 %v1533_v20  ;;  %965 = vmatprep.subr.bf16.mxu1 %v1535_v21  ;;  %v1769_v35 = vld [vmem:[%s2378_s1 + $0x4] ss:$8 sps:$4 sm:$0xff]   ;;  %v1565_v37 = vcombine.high %v83_v30, %v91_v31  ;;  %v1567_v38 = vcombine.high %v84_v32, %v92_v33  ;;  %v1564_v43 = vcombine.low %v83_v30, %v91_v31  ;;  %v1844_v18 = vld [vmem:[%s2378_s1] ss:$8 sps:$4 sm:$0xff]   ;;  %v38_v19 = vld [vmem:[%s2377_s0 + $0x98] sm:$0xff] }
   0xc   :  { %v99_v39 = vld [vmem:[%s2377_s0 + $0x280] sm:$0xff]  ;;  %1644 = vmatprep.mubr.msk.bf16.mxu0 %vm901_vm0, %v1769_v35  ;;  %v100_v41 = vld [vmem:[%s2377_s0 + $0x288] sm:$0xff]  ;;  %1646 = vmatprep.mubr.msk.bf16.mxu1 %vm901_vm0, %v1769_v35  ;;  %v1566_v44 = vcombine.low %v84_v32, %v92_v33  ;;  %v46_v20 = vld [vmem:[%s2377_s0 + $0xd8] sm:$0xff]  ;;  %v1504_v21 = vcombine.low %v21_v7, %v29_v8  ;;  %v1521_v23 = vcombine.high %v37_v16, %v45_v17 }
   0xd   :  { %v107_v40 = vld [vmem:[%s2377_s0 + $0x2c0] sm:$0xff]  ;;  %v108_v42 = vld [vmem:[%s2377_s0 + $0x2c8] sm:$0xff]  ;;  %v1523_v24 = vcombine.high %v38_v19, %v46_v20  ;;  %v53_v25 = vld [vmem:[%s2377_s0 + $0x110] sm:$0xff]  ;;  %v1520_v30 = vcombine.low %v37_v16, %v45_v17  ;;  %v1522_v31 = vcombine.low %v38_v19, %v46_v20 }
   0xe   :  { %913 = vmatpush1.bf16.msra.mxu0 %v1532_v26  ;;  %966 = vmatpush1.bf16.msra.mxu1 %v1534_v27  ;;  %v1581_v45 = vcombine.high %v99_v39, %v107_v40  ;;  %v1583_v46 = vcombine.high %v100_v41, %v108_v42  ;;  %v115_v47 = vld [vmem:[%s2377_s0 + $0x300] sm:$0xff]  ;;  %v116_v49 = vld [vmem:[%s2377_s0 + $0x308] sm:$0xff]  ;;  %v1580_v51 = vcombine.low %v99_v39, %v107_v40  ;;  %v61_v26 = vld [vmem:[%s2377_s0 + $0x150] sm:$0xff] }
   0xf   :  { %914 = vmatprep.subr.bf16.mxu0 %v1549_v28  ;;  %967 = vmatprep.subr.bf16.mxu1 %v1551_v29  ;;  %v123_v48 = vld [vmem:[%s2377_s0 + $0x340] sm:$0xff]  ;;  %v124_v50 = vld [vmem:[%s2377_s0 + $0x348] sm:$0xff]  ;;  %v1582_v52 = vcombine.low %v100_v41, %v108_v42  ;;  %v1861_v27 = vld [vmem:[%s2378_s1 + $0x14] ss:$8 sps:$4 sm:$0xff]   ;;  %v1537_v32 = vcombine.high %v53_v25, %v61_v26  ;;  %v1536_v40 = vcombine.low %v53_v25, %v61_v26 }
  0x10   :  { %v1597_v53 = vcombine.high %v115_v47, %v123_v48  ;;  %v1599_v54 = vcombine.high %v116_v49, %v124_v50  ;;  %v131_v55 = vld [vmem:[%s2377_s0 + $0x380] sm:$0xff]  ;;  %v132_v57 = vld [vmem:[%s2377_s0 + $0x388] sm:$0xff]  ;;  %v1596_v59 = vcombine.low %v115_v47, %v123_v48  ;;  %v1598_v60 = vcombine.low %v116_v49, %v124_v50  ;;  %v54_v28 = vld [vmem:[%s2377_s0 + $0x118] sm:$0xff] }
  0x11   :  { %v139_v56 = vld [vmem:[%s2377_s0 + $0x3c0] sm:$0xff]  ;;  %v140_v58 = vld [vmem:[%s2377_s0 + $0x3c8] sm:$0xff]  ;;  %v62_v29 = vld [vmem:[%s2377_s0 + $0x158] sm:$0xff] }
  0x12   :  { %915 = vmatpush1.bf16.msra.mxu0 %v1548_v34  ;;  %968 = vmatpush1.bf16.msra.mxu1 %v1550_v36  ;;  %v1613_v61 = vcombine.high %v131_v55, %v139_v56  ;;  %v1615_v62 = vcombine.high %v132_v57, %v140_v58  ;;  %v147_v63 = vld [vmem:[%s2377_s0 + $0x400] sm:$0xff]  ;;  %v148_v1 = vld [vmem:[%s2377_s0 + $0x408] sm:$0xff]  ;;  %v1612_v3 = vcombine.low %v131_v55, %v139_v56  ;;  %v69_v34 = vld [vmem:[%s2377_s0 + $0x190] sm:$0xff] }
  0x13   :  { %916 = vmatprep.subr.bf16.mxu0 %v1565_v37  ;;  %969 = vmatprep.subr.bf16.mxu1 %v1567_v38  ;;  %v155_v0 = vld [vmem:[%s2377_s0 + $0x440] sm:$0xff]  ;;  %v156_v2 = vld [vmem:[%s2377_s0 + $0x448] sm:$0xff]  ;;  %v1614_v4 = vcombine.low %v132_v57, %v140_v58  ;;  %v1539_v33 = vcombine.high %v54_v28, %v62_v29  ;;  %v77_v36 = vld [vmem:[%s2377_s0 + $0x1d0] sm:$0xff]  ;;  %v1538_v41 = vcombine.low %v54_v28, %v62_v29 }
  0x14   :  { %v1629_v5 = vcombine.high %v147_v63, %v155_v0  ;;  %v1631_v6 = vcombine.high %v148_v1, %v156_v2  ;;  %v1628_v12 = vcombine.low %v147_v63, %v155_v0  ;;  %v1630_v13 = vcombine.low %v148_v1, %v156_v2  ;;  %v70_v37 = vld [vmem:[%s2377_s0 + $0x198] sm:$0xff]  ;;  %v1382_v57 = vld [vmem:[%s2379_s2 + $0x10] sm:$0xff]  ;;  %v23_v25 = vld [vmem:[%s2377_s0 + $0x20] sm:$0xff] }
  0x15   :  { %v78_v38 = vld [vmem:[%s2377_s0 + $0x1d8] sm:$0xff]  ;;  %v1553_v42 = vcombine.high %v69_v34, %v77_v36  ;;  %v1552_v48 = vcombine.low %v69_v34, %v77_v36  ;;  %1396 = vperm.xlu1 %1678, %v1382_v57   ;;  %v117_v0 = vld [vmem:[%s2377_s0 + $0x310] sm:$0xff]  ;;  %v31_v26 = vld [vmem:[%s2377_s0 + $0x60] sm:$0xff] }
  0x16   :  { %917 = vmatpush1.bf16.msra.mxu0 %v1564_v43  ;;  %970 = vmatpush1.bf16.msra.mxu1 %v1566_v44  ;;  %v1890_v39 = vld [vmem:[%s2378_s1 + $0x10] ss:$8 sps:$4 sm:$0xff]   ;;  %v1555_v43 = vcombine.high %v70_v37, %v78_v38  ;;  %v1554_v49 = vcombine.low %v70_v37, %v78_v38  ;;  %v24_v28 = vld [vmem:[%s2377_s0 + $0x28] sm:$0xff]  ;;  %v39_v34 = vld [vmem:[%s2377_s0 + $0xa0] sm:$0xff] }
  0x17   :  { %918 = vmatprep.subr.bf16.mxu0 %v1581_v45  ;;  %971 = vmatprep.subr.bf16.mxu1 %v1583_v46  ;;  %v85_v44 = vld [vmem:[%s2377_s0 + $0x210] sm:$0xff]  ;;  %v86_v46 = vld [vmem:[%s2377_s0 + $0x218] sm:$0xff]  ;;  %v32_v29 = vld [vmem:[%s2377_s0 + $0x68] sm:$0xff] }
  0x18   :  { %v93_v45 = vld [vmem:[%s2377_s0 + $0x250] sm:$0xff]  ;;  %v94_v47 = vld [vmem:[%s2377_s0 + $0x258] sm:$0xff]  ;;  %v47_v36 = vld [vmem:[%s2377_s0 + $0xe0] sm:$0xff] }
  0x19   :  { %v1569_v50 = vcombine.high %v85_v44, %v93_v45  ;;  %v102_v55 = vld [vmem:[%s2377_s0 + $0x298] sm:$0xff]  ;;  %v1568_v58 = vcombine.low %v85_v44, %v93_v45  ;;  %v125_v1 = vld [vmem:[%s2377_s0 + $0x350] sm:$0xff]  ;;  %v40_v37 = vld [vmem:[%s2377_s0 + $0xa8] sm:$0xff] }
  0x1a   :  { %919 = vmatpush1.bf16.msra.mxu0 %v1580_v51  ;;  %972 = vmatpush1.bf16.msra.mxu1 %v1582_v52  ;;  %v1571_v51 = vcombine.high %v86_v46, %v94_v47  ;;  %v101_v52 = vld [vmem:[%s2377_s0 + $0x290] sm:$0xff]  ;;  %v110_v56 = vld [vmem:[%s2377_s0 + $0x2d8] sm:$0xff]  ;;  %v48_v38 = vld [vmem:[%s2377_s0 + $0xe8] sm:$0xff] }
  0x1b   :  { %920 = vmatprep.subr.bf16.mxu0 %v1597_v53  ;;  %973 = vmatprep.subr.bf16.mxu1 %v1599_v54  ;;  %v109_v53 = vld [vmem:[%s2377_s0 + $0x2d0] sm:$0xff]  ;;  %v1380_v54 = vld [vmem:[%s2379_s2] sm:$0xff]  ;;  %v1587_v63 = vcombine.high %v102_v55, %v110_v56  ;;  %v118_v2 = vld [vmem:[%s2377_s0 + $0x318] sm:$0xff] }
  0x1c   :  { %1386 = vperm.xlu0 %1677, %v1380_v54   ;;  %v133_v8 = vld [vmem:[%s2377_s0 + $0x390] sm:$0xff]  ;;  %v134_v10 = vld [vmem:[%s2377_s0 + $0x398] sm:$0xff]  ;;  %v55_v44 = vld [vmem:[%s2377_s0 + $0x120] sm:$0xff] }
  0x1d   :  { %v141_v9 = vld [vmem:[%s2377_s0 + $0x3d0] sm:$0xff]  ;;  %v142_v11 = vld [vmem:[%s2377_s0 + $0x3d8] sm:$0xff]  ;;  %v63_v45 = vld [vmem:[%s2377_s0 + $0x160] sm:$0xff] }
  0x1e   :  { %921 = vmatpush1.bf16.msra.mxu0 %v1596_v59  ;;  %974 = vmatpush1.bf16.msra.mxu1 %v1598_v60  ;;  %v1381_v59 = vld [vmem:[%s2379_s2 + $0x8] sm:$0xff]  ;;  %v1570_v60 = vcombine.low %v86_v46, %v94_v47  ;;  %v149_v16 = vld [vmem:[%s2377_s0 + $0x410] sm:$0xff]  ;;  %v150_v19 = vld [vmem:[%s2377_s0 + $0x418] sm:$0xff] }
  0x1f   :  { %922 = vmatprep.subr.bf16.mxu0 %v1613_v61  ;;  %975 = vmatprep.subr.bf16.mxu1 %v1615_v62  ;;  %v1585_v61 = vcombine.high %v101_v52, %v109_v53  ;;  %v1383_v62 = vld [vmem:[%s2379_s2 + $0x18] sm:$0xff]  ;;  %v157_v17 = vld [vmem:[%s2377_s0 + $0x450] sm:$0xff]  ;;  %v56_v46 = vld [vmem:[%s2377_s0 + $0x128] sm:$0xff] }
  0x20   :  { %1391 = vperm.xlu0 %1677, %v1381_v59   ;;  %1401 = vperm.xlu1 %1678, %v1383_v62   ;;  %v158_v20 = vld [vmem:[%s2377_s0 + $0x458] sm:$0xff]  ;;  %v64_v47 = vld [vmem:[%s2377_s0 + $0x168] sm:$0xff] }
  0x21   :  { %v72_v54 = vld [vmem:[%s2377_s0 + $0x1a8] sm:$0xff]  ;;  %v1542_v57 = vcombine.low %v56_v46, %v64_v47 }
  0x22   :  { %923 = vmatpush1.bf16.msra.mxu0 %v1612_v3  ;;  %976 = vmatpush1.bf16.msra.mxu1 %v1614_v4  ;;  %v126_v3 = vld [vmem:[%s2377_s0 + $0x358] sm:$0xff]  ;;  %v1584_v4 = vcombine.low %v101_v52, %v109_v53  ;;  %v71_v52 = vld [vmem:[%s2377_s0 + $0x1a0] sm:$0xff]  ;;  %v88_v62 = vld [vmem:[%s2377_s0 + $0x228] sm:$0xff] }
  0x23   :  { %924 = vmatprep.subr.bf16.mxu0 %v1629_v5  ;;  %977 = vmatprep.subr.bf16.mxu1 %v1631_v6  ;;  %v1586_v5 = vcombine.low %v102_v55, %v110_v56  ;;  %v1601_v6 = vcombine.high %v117_v0, %v125_v1  ;;  %v1603_v7 = vcombine.high %v118_v2, %v126_v3  ;;  %v79_v53 = vld [vmem:[%s2377_s0 + $0x1e0] sm:$0xff]  ;;  %v80_v55 = vld [vmem:[%s2377_s0 + $0x1e8] sm:$0xff] }
  0x24   :  { %v1540_v56 = vcombine.low %v55_v44, %v63_v45  ;;  %v1559_v59 = vcombine.high %v72_v54, %v80_v55 }
  0x26   :  { %925 = vmatpush1.bf16.msra.mxu0 %v1628_v12  ;;  %978 = vmatpush1.bf16.msra.mxu1 %v1630_v13  ;;  %v1600_v12 = vcombine.low %v117_v0, %v125_v1  ;;  %v1602_v13 = vcombine.low %v118_v2, %v126_v3  ;;  %v1556_v0 = vcombine.low %v71_v52, %v79_v53 }
  0x27   :  { %1014 = vmatprep.subr.bf16.mxu0 %v1505_v14  ;;  %1067 = vmatprep.subr.bf16.mxu1 %v1507_v15  ;;  %v1617_v14 = vcombine.high %v133_v8, %v141_v9  ;;  %v1619_v15 = vcombine.high %v134_v10, %v142_v11  ;;  %v1558_v1 = vcombine.low %v72_v54, %v80_v55 }
  0x29   :  { %941 = vmatmul.mubr.bf16.vlgmr.msra.gmra.mrb[0].mxu0 %v1844_v18  ;;  %994 = vmatmul.mubr.bf16.vlgmr.msra.gmra.mrb[0].mxu1 %v1844_v18 }
  0x2a   :  { %1015 = vmatpush1.bf16.msra.mxu0 %v1504_v21  ;;  %1068 = vmatpush1.bf16.msra.mxu1 %v1506_v22  ;;  %v1616_v21 = vcombine.low %v133_v8, %v141_v9  ;;  %v1618_v22 = vcombine.low %v134_v10, %v142_v11 }
  0x2b   :  { %1016 = vmatprep.subr.bf16.mxu0 %v1521_v23  ;;  %1069 = vmatprep.subr.bf16.mxu1 %v1523_v24  ;;  %v1633_v23 = vcombine.high %v149_v16, %v157_v17  ;;  %v1635_v24 = vcombine.high %v150_v19, %v158_v20 }
  0x2c   :  { %1645 = vmatprep.mubr.msk.bf16.mxu0 %vm901_vm0, %v1861_v27  ;;  %1647 = vmatprep.mubr.msk.bf16.mxu1 %vm901_vm0, %v1861_v27 }
  0x2e   :  { %1017 = vmatpush1.bf16.msra.mxu0 %v1520_v30  ;;  %1070 = vmatpush1.bf16.msra.mxu1 %v1522_v31  ;;  %v1632_v30 = vcombine.low %v149_v16, %v157_v17  ;;  %v1634_v31 = vcombine.low %v150_v19, %v158_v20 }
  0x2f   :  { %1018 = vmatprep.subr.bf16.mxu0 %v1537_v32  ;;  %1071 = vmatprep.subr.bf16.mxu1 %v1539_v33  ;;  %v1509_v32 = vcombine.high %v23_v25, %v31_v26  ;;  %v1511_v33 = vcombine.high %v24_v28, %v32_v29 }
  0x31   :  { %951 = vmatmul.mubr.bf16.gmra.mrb[4].mxu0 %v1890_v39  ;;  %1004 = vmatmul.mubr.bf16.gmra.mrb[4].mxu1 %v1890_v39 }
  0x32   :  { %1019 = vmatpush1.bf16.msra.mxu0 %v1536_v40  ;;  %1072 = vmatpush1.bf16.msra.mxu1 %v1538_v41  ;;  %v1508_v40 = vcombine.low %v23_v25, %v31_v26  ;;  %v1510_v41 = vcombine.low %v24_v28, %v32_v29 }
  0x33   :  { %1020 = vmatprep.subr.bf16.mxu0 %v1553_v42  ;;  %1073 = vmatprep.subr.bf16.mxu1 %v1555_v43  ;;  %v1525_v42 = vcombine.high %v39_v34, %v47_v36  ;;  %v1527_v43 = vcombine.high %v40_v37, %v48_v38 }
  0x34   :  { %1648 = vmatprep.mubr.msk.bf16.mxu0 %vm901_vm0, %v1769_v35  ;;  %1650 = vmatprep.mubr.msk.bf16.mxu1 %vm901_vm0, %v1769_v35 }
  0x36   :  { %1021 = vmatpush1.bf16.msra.mxu0 %v1552_v48  ;;  %1074 = vmatpush1.bf16.msra.mxu1 %v1554_v49  ;;  %v1524_v48 = vcombine.low %v39_v34, %v47_v36  ;;  %v1526_v49 = vcombine.low %v40_v37, %v48_v38 }
  0x37   :  { %1022 = vmatprep.subr.bf16.mxu0 %v1569_v50  ;;  %1075 = vmatprep.subr.bf16.mxu1 %v1571_v51  ;;  %v1541_v50 = vcombine.high %v55_v44, %v63_v45  ;;  %v1543_v51 = vcombine.high %v56_v46, %v64_v47 }
  0x3a   :  { %1023 = vmatpush1.bf16.msra.mxu0 %v1568_v58  ;;  %1076 = vmatpush1.bf16.msra.mxu1 %v1570_v60  ;;  %v1557_v58 = vcombine.high %v71_v52, %v79_v53  ;;  %v87_v60 = vld [vmem:[%s2377_s0 + $0x220] sm:$0xff] }
  0x3b   :  { %1024 = vmatprep.subr.bf16.mxu0 %v1585_v61  ;;  %1077 = vmatprep.subr.bf16.mxu1 %v1587_v63  ;;  %v95_v61 = vld [vmem:[%s2377_s0 + $0x260] sm:$0xff]  ;;  %v96_v63 = vld [vmem:[%s2377_s0 + $0x268] sm:$0xff] }
  0x3c   :  { %v1573_v2 = vcombine.high %v87_v60, %v95_v61  ;;  %v1575_v3 = vcombine.high %v88_v62, %v96_v63  ;;  %v1572_v8 = vcombine.low %v87_v60, %v95_v61  ;;  %v1574_v9 = vcombine.low %v88_v62, %v96_v63 }
  0x3e   :  { %1025 = vmatpush1.bf16.msra.mxu0 %v1584_v4  ;;  %1078 = vmatpush1.bf16.msra.mxu1 %v1586_v5  ;;  %v103_v4 = vld [vmem:[%s2377_s0 + $0x2a0] sm:$0xff] }
  0x3f   :  { %1026 = vmatprep.subr.bf16.mxu0 %v1601_v6  ;;  %1079 = vmatprep.subr.bf16.mxu1 %v1603_v7  ;;  %v111_v5 = vld [vmem:[%s2377_s0 + $0x2e0] sm:$0xff]  ;;  %v104_v6 = vld [vmem:[%s2377_s0 + $0x2a8] sm:$0xff] }
  0x40   :  { %v112_v7 = vld [vmem:[%s2377_s0 + $0x2e8] sm:$0xff]  ;;  %v1589_v10 = vcombine.high %v103_v4, %v111_v5  ;;  %v1588_v16 = vcombine.low %v103_v4, %v111_v5 }
  0x41   :  { %v1591_v11 = vcombine.high %v104_v6, %v112_v7  ;;  %v1590_v17 = vcombine.low %v104_v6, %v112_v7 }
  0x42   :  { %1027 = vmatpush1.bf16.msra.mxu0 %v1600_v12  ;;  %1080 = vmatpush1.bf16.msra.mxu1 %v1602_v13  ;;  %v119_v12 = vld [vmem:[%s2377_s0 + $0x320] sm:$0xff] }
  0x43   :  { %1028 = vmatprep.subr.bf16.mxu0 %v1617_v14  ;;  %1081 = vmatprep.subr.bf16.mxu1 %v1619_v15  ;;  %v127_v13 = vld [vmem:[%s2377_s0 + $0x360] sm:$0xff]  ;;  %v120_v14 = vld [vmem:[%s2377_s0 + $0x328] sm:$0xff] }
  0x44   :  { %v128_v15 = vld [vmem:[%s2377_s0 + $0x368] sm:$0xff]  ;;  %v1605_v19 = vcombine.high %v119_v12, %v127_v13  ;;  %v1604_v25 = vcombine.low %v119_v12, %v127_v13 }
  0x45   :  { %v1607_v20 = vcombine.high %v120_v14, %v128_v15  ;;  %v1606_v26 = vcombine.low %v120_v14, %v128_v15 }
  0x46   :  { %1029 = vmatpush1.bf16.msra.mxu0 %v1616_v21  ;;  %1082 = vmatpush1.bf16.msra.mxu1 %v1618_v22  ;;  %v135_v21 = vld [vmem:[%s2377_s0 + $0x3a0] sm:$0xff] }
  0x47   :  { %1030 = vmatprep.subr.bf16.mxu0 %v1633_v23  ;;  %1083 = vmatprep.subr.bf16.mxu1 %v1635_v24  ;;  %v143_v22 = vld [vmem:[%s2377_s0 + $0x3e0] sm:$0xff]  ;;  %v136_v23 = vld [vmem:[%s2377_s0 + $0x3a8] sm:$0xff] }
  0x48   :  { %v144_v24 = vld [vmem:[%s2377_s0 + $0x3e8] sm:$0xff]  ;;  %v1621_v28 = vcombine.high %v135_v21, %v143_v22  ;;  %v1620_v34 = vcombine.low %v135_v21, %v143_v22 }
  0x49   :  { %v1623_v29 = vcombine.high %v136_v23, %v144_v24  ;;  %v1622_v36 = vcombine.low %v136_v23, %v144_v24 }
  0x4a   :  { %1031 = vmatpush1.bf16.msra.mxu0 %v1632_v30  ;;  %1084 = vmatpush1.bf16.msra.mxu1 %v1634_v31  ;;  %v151_v30 = vld [vmem:[%s2377_s0 + $0x420] sm:$0xff] }
  0x4b   :  { %1120 = vmatprep.subr.bf16.mxu0 %v1509_v32  ;;  %1173 = vmatprep.subr.bf16.mxu1 %v1511_v33  ;;  %v159_v31 = vld [vmem:[%s2377_s0 + $0x460] sm:$0xff]  ;;  %v152_v32 = vld [vmem:[%s2377_s0 + $0x428] sm:$0xff] }
  0x4c   :  { %v160_v33 = vld [vmem:[%s2377_s0 + $0x468] sm:$0xff]  ;;  %v1637_v37 = vcombine.high %v151_v30, %v159_v31  ;;  %v1636_v44 = vcombine.low %v151_v30, %v159_v31 }
  0x4d   :  { %1047 = vmatmul.mubr.bf16.vlgmr.msra.gmra.mrb[8].mxu0 %v1844_v18  ;;  %1100 = vmatmul.mubr.bf16.vlgmr.msra.gmra.mrb[8].mxu1 %v1844_v18  ;;  %v1639_v38 = vcombine.high %v152_v32, %v160_v33  ;;  %v1638_v45 = vcombine.low %v152_v32, %v160_v33  ;;  %v137_v33 = vld [vmem:[%s2377_s0 + $0x3b0] sm:$0xff] }
  0x4e   :  { %1121 = vmatpush1.bf16.msra.mxu0 %v1508_v40  ;;  %1174 = vmatpush1.bf16.msra.mxu1 %v1510_v41  ;;  %v25_v40 = vld [vmem:[%s2377_s0 + $0x30] sm:$0xff] }
  0x4f   :  { %1122 = vmatprep.subr.bf16.mxu0 %v1525_v42  ;;  %1175 = vmatprep.subr.bf16.mxu1 %v1527_v43  ;;  %v33_v41 = vld [vmem:[%s2377_s0 + $0x70] sm:$0xff]  ;;  %v26_v42 = vld [vmem:[%s2377_s0 + $0x38] sm:$0xff] }
  0x50   :  { %1649 = vmatprep.mubr.msk.bf16.mxu0 %vm901_vm0, %v1861_v27  ;;  %1651 = vmatprep.mubr.msk.bf16.mxu1 %vm901_vm0, %v1861_v27  ;;  %v34_v43 = vld [vmem:[%s2377_s0 + $0x78] sm:$0xff]  ;;  %v1513_v46 = vcombine.high %v25_v40, %v33_v41  ;;  %v1512_v52 = vcombine.low %v25_v40, %v33_v41 }
  0x51   :  { %v1515_v47 = vcombine.high %v26_v42, %v34_v43  ;;  %v1514_v53 = vcombine.low %v26_v42, %v34_v43  ;;  %v153_v43 = vld [vmem:[%s2377_s0 + $0x430] sm:$0xff] }
  0x52   :  { %1123 = vmatpush1.bf16.msra.mxu0 %v1524_v48  ;;  %1176 = vmatpush1.bf16.msra.mxu1 %v1526_v49  ;;  %v41_v48 = vld [vmem:[%s2377_s0 + $0xb0] sm:$0xff] }
  0x53   :  { %1124 = vmatprep.subr.bf16.mxu0 %v1541_v50  ;;  %1177 = vmatprep.subr.bf16.mxu1 %v1543_v51  ;;  %v49_v49 = vld [vmem:[%s2377_s0 + $0xf0] sm:$0xff]  ;;  %v42_v50 = vld [vmem:[%s2377_s0 + $0xb8] sm:$0xff] }
  0x54   :  { %v50_v51 = vld [vmem:[%s2377_s0 + $0xf8] sm:$0xff]  ;;  %v1529_v54 = vcombine.high %v41_v48, %v49_v49  ;;  %v1528_v60 = vcombine.low %v41_v48, %v49_v49 }
  0x55   :  { %1057 = vmatmul.mubr.bf16.gmra.mrb[12].mxu0 %v1890_v39  ;;  %1110 = vmatmul.mubr.bf16.gmra.mrb[12].mxu1 %v1890_v39  ;;  %v1531_v55 = vcombine.high %v42_v50, %v50_v51  ;;  %v1530_v61 = vcombine.low %v42_v50, %v50_v51 }
  0x56   :  { %1125 = vmatpush1.bf16.msra.mxu0 %v1540_v56  ;;  %1178 = vmatpush1.bf16.msra.mxu1 %v1542_v57  ;;  %v57_v56 = vld [vmem:[%s2377_s0 + $0x130] sm:$0xff] }
  0x57   :  { %1126 = vmatprep.subr.bf16.mxu0 %v1557_v58  ;;  %1179 = vmatprep.subr.bf16.mxu1 %v1559_v59  ;;  %v65_v57 = vld [vmem:[%s2377_s0 + $0x170] sm:$0xff]  ;;  %v58_v58 = vld [vmem:[%s2377_s0 + $0x138] sm:$0xff] }
  0x58   :  { %1652 = vmatprep.mubr.msk.bf16.mxu0 %vm901_vm0, %v1769_v35  ;;  %1654 = vmatprep.mubr.msk.bf16.mxu1 %vm901_vm0, %v1769_v35  ;;  %v66_v59 = vld [vmem:[%s2377_s0 + $0x178] sm:$0xff]  ;;  %v1545_v62 = vcombine.high %v57_v56, %v65_v57  ;;  %v1544_v4 = vcombine.low %v57_v56, %v65_v57 }
  0x59   :  { %v1547_v63 = vcombine.high %v58_v58, %v66_v59  ;;  %v1546_v5 = vcombine.low %v58_v58, %v66_v59 }
  0x5a   :  { %1127 = vmatpush1.bf16.msra.mxu0 %v1556_v0  ;;  %1180 = vmatpush1.bf16.msra.mxu1 %v1558_v1  ;;  %v73_v0 = vld [vmem:[%s2377_s0 + $0x1b0] sm:$0xff] }
  0x5b   :  { %1128 = vmatprep.subr.bf16.mxu0 %v1573_v2  ;;  %1181 = vmatprep.subr.bf16.mxu1 %v1575_v3  ;;  %v81_v1 = vld [vmem:[%s2377_s0 + $0x1f0] sm:$0xff]  ;;  %v74_v2 = vld [vmem:[%s2377_s0 + $0x1b8] sm:$0xff] }
  0x5c   :  { %v82_v3 = vld [vmem:[%s2377_s0 + $0x1f8] sm:$0xff]  ;;  %v1561_v6 = vcombine.high %v73_v0, %v81_v1  ;;  %v1560_v12 = vcombine.low %v73_v0, %v81_v1 }
  0x5d   :  { %v1563_v7 = vcombine.high %v74_v2, %v82_v3  ;;  %v1562_v13 = vcombine.low %v74_v2, %v82_v3 }
  0x5e   :  { %1129 = vmatpush1.bf16.msra.mxu0 %v1572_v8  ;;  %1182 = vmatpush1.bf16.msra.mxu1 %v1574_v9  ;;  %v89_v8 = vld [vmem:[%s2377_s0 + $0x230] sm:$0xff] }
  0x5f   :  { %1130 = vmatprep.subr.bf16.mxu0 %v1589_v10  ;;  %1183 = vmatprep.subr.bf16.mxu1 %v1591_v11  ;;  %v97_v9 = vld [vmem:[%s2377_s0 + $0x270] sm:$0xff]  ;;  %v90_v10 = vld [vmem:[%s2377_s0 + $0x238] sm:$0xff] }
  0x60   :  { %v98_v11 = vld [vmem:[%s2377_s0 + $0x278] sm:$0xff]  ;;  %v1577_v14 = vcombine.high %v89_v8, %v97_v9  ;;  %v1576_v21 = vcombine.low %v89_v8, %v97_v9 }
  0x61   :  { %v1579_v15 = vcombine.high %v90_v10, %v98_v11  ;;  %v1578_v22 = vcombine.low %v90_v10, %v98_v11 }
  0x62   :  { %1131 = vmatpush1.bf16.msra.mxu0 %v1588_v16  ;;  %1184 = vmatpush1.bf16.msra.mxu1 %v1590_v17  ;;  %v105_v16 = vld [vmem:[%s2377_s0 + $0x2b0] sm:$0xff] }
  0x63   :  { %1132 = vmatprep.subr.bf16.mxu0 %v1605_v19  ;;  %1185 = vmatprep.subr.bf16.mxu1 %v1607_v20  ;;  %v113_v17 = vld [vmem:[%s2377_s0 + $0x2f0] sm:$0xff]  ;;  %v106_v19 = vld [vmem:[%s2377_s0 + $0x2b8] sm:$0xff] }
  0x64   :  { %v114_v20 = vld [vmem:[%s2377_s0 + $0x2f8] sm:$0xff]  ;;  %v1593_v23 = vcombine.high %v105_v16, %v113_v17 }
  0x65   :  { %v1595_v24 = vcombine.high %v106_v19, %v114_v20  ;;  %v1594_v30 = vcombine.low %v106_v19, %v114_v20 }
  0x66   :  { %1133 = vmatpush1.bf16.msra.mxu0 %v1604_v25  ;;  %1186 = vmatpush1.bf16.msra.mxu1 %v1606_v26  ;;  %v121_v25 = vld [vmem:[%s2377_s0 + $0x330] sm:$0xff] }
  0x67   :  { %1134 = vmatprep.subr.bf16.mxu0 %v1621_v28  ;;  %1187 = vmatprep.subr.bf16.mxu1 %v1623_v29  ;;  %v129_v26 = vld [vmem:[%s2377_s0 + $0x370] sm:$0xff]  ;;  %v130_v28 = vld [vmem:[%s2377_s0 + $0x378] sm:$0xff]  ;;  %v1592_v29 = vcombine.low %v105_v16, %v113_v17 }
  0x68   :  { %v1609_v31 = vcombine.high %v121_v25, %v129_v26 }
  0x6a   :  { %1135 = vmatpush1.bf16.msra.mxu0 %v1620_v34  ;;  %1188 = vmatpush1.bf16.msra.mxu1 %v1622_v36  ;;  %v145_v34 = vld [vmem:[%s2377_s0 + $0x3f0] sm:$0xff]  ;;  %v138_v36 = vld [vmem:[%s2377_s0 + $0x3b8] sm:$0xff] }
  0x6b   :  { %1136 = vmatprep.subr.bf16.mxu0 %v1637_v37  ;;  %1189 = vmatprep.subr.bf16.mxu1 %v1639_v38  ;;  %v146_v37 = vld [vmem:[%s2377_s0 + $0x3f8] sm:$0xff]  ;;  %v1608_v38 = vcombine.low %v121_v25, %v129_v26  ;;  %v1625_v41 = vcombine.high %v137_v33, %v145_v34 }
  0x6c   :  { %v1627_v42 = vcombine.high %v138_v36, %v146_v37  ;;  %v1626_v48 = vcombine.low %v138_v36, %v146_v37 }
  0x6e   :  { %1137 = vmatpush1.bf16.msra.mxu0 %v1636_v44  ;;  %1190 = vmatpush1.bf16.msra.mxu1 %v1638_v45  ;;  %v161_v44 = vld [vmem:[%s2377_s0 + $0x470] sm:$0xff]  ;;  %v154_v45 = vld [vmem:[%s2377_s0 + $0x438] sm:$0xff] }
  0x6f   :  { %1226 = vmatprep.subr.bf16.mxu0 %v1513_v46  ;;  %1279 = vmatprep.subr.bf16.mxu1 %v1515_v47  ;;  %v162_v46 = vld [vmem:[%s2377_s0 + $0x478] sm:$0xff]  ;;  %v1624_v47 = vcombine.low %v137_v33, %v145_v34  ;;  %v1641_v49 = vcombine.high %v153_v43, %v161_v44  ;;  %v1640_v51 = vcombine.low %v153_v43, %v161_v44 }
  0x70   :  { %v1643_v50 = vcombine.high %v154_v45, %v162_v46 }
  0x71   :  { %1153 = vmatmul.mubr.bf16.vlgmr.msra.gmra.mrb[16].mxu0 %v1844_v18  ;;  %1206 = vmatmul.mubr.bf16.vlgmr.msra.gmra.mrb[16].mxu1 %v1844_v18 }
  0x72   :  { %1227 = vmatpush1.bf16.msra.mxu0 %v1512_v52  ;;  %1280 = vmatpush1.bf16.msra.mxu1 %v1514_v53  ;;  %v1642_v52 = vcombine.low %v154_v45, %v162_v46 }
  0x73   :  { %1228 = vmatprep.subr.bf16.mxu0 %v1529_v54  ;;  %1281 = vmatprep.subr.bf16.mxu1 %v1531_v55 }
  0x74   :  { %1653 = vmatprep.mubr.msk.bf16.mxu0 %vm901_vm0, %v1861_v27  ;;  %1655 = vmatprep.mubr.msk.bf16.mxu1 %vm901_vm0, %v1861_v27 }
  0x76   :  { %1229 = vmatpush1.bf16.msra.mxu0 %v1528_v60  ;;  %1282 = vmatpush1.bf16.msra.mxu1 %v1530_v61 }
  0x77   :  { %1230 = vmatprep.subr.bf16.mxu0 %v1545_v62  ;;  %1283 = vmatprep.subr.bf16.mxu1 %v1547_v63 }
  0x79   :  { %1163 = vmatmul.mubr.bf16.gmra.mrb[20].mxu0 %v1890_v39  ;;  %1216 = vmatmul.mubr.bf16.gmra.mrb[20].mxu1 %v1890_v39 }
  0x7a   :  { %1231 = vmatpush1.bf16.msra.mxu0 %v1544_v4  ;;  %1284 = vmatpush1.bf16.msra.mxu1 %v1546_v5 }
  0x7b   :  { %1232 = vmatprep.subr.bf16.mxu0 %v1561_v6  ;;  %1285 = vmatprep.subr.bf16.mxu1 %v1563_v7 }
  0x7c   :  { %1656 = vmatprep.mubr.msk.bf16.mxu0 %vm901_vm0, %v1769_v35  ;;  %1658 = vmatprep.mubr.msk.bf16.mxu1 %vm901_vm0, %v1769_v35  ;;  %v122_v35 = vld [vmem:[%s2377_s0 + $0x338] sm:$0xff] }
  0x7d   :  { %v1611_v32 = vcombine.high %v122_v35, %v130_v28  ;;  %v1610_v40 = vcombine.low %v122_v35, %v130_v28 }
  0x7e   :  { %1233 = vmatpush1.bf16.msra.mxu0 %v1560_v12  ;;  %1286 = vmatpush1.bf16.msra.mxu1 %v1562_v13 }
  0x7f   :  { %1234 = vmatprep.subr.bf16.mxu0 %v1577_v14  ;;  %1287 = vmatprep.subr.bf16.mxu1 %v1579_v15 }
  0x82   :  { %1235 = vmatpush1.bf16.msra.mxu0 %v1576_v21  ;;  %1288 = vmatpush1.bf16.msra.mxu1 %v1578_v22 }
  0x83   :  { %1236 = vmatprep.subr.bf16.mxu0 %v1593_v23  ;;  %1289 = vmatprep.subr.bf16.mxu1 %v1595_v24 }
  0x86   :  { %1237 = vmatpush1.bf16.msra.mxu0 %v1592_v29  ;;  %1290 = vmatpush1.bf16.msra.mxu1 %v1594_v30 }
  0x87   :  { %1238 = vmatprep.subr.bf16.mxu0 %v1609_v31  ;;  %1291 = vmatprep.subr.bf16.mxu1 %v1611_v32 }
  0x8a   :  { %1239 = vmatpush1.bf16.msra.mxu0 %v1608_v38  ;;  %1292 = vmatpush1.bf16.msra.mxu1 %v1610_v40 }
  0x8b   :  { %1240 = vmatprep.subr.bf16.mxu0 %v1625_v41  ;;  %1293 = vmatprep.subr.bf16.mxu1 %v1627_v42 }
  0x8e   :  { %1241 = vmatpush1.bf16.msra.mxu0 %v1624_v47  ;;  %1294 = vmatpush1.bf16.msra.mxu1 %v1626_v48 }
  0x8f   :  { %1242 = vmatprep.subr.bf16.mxu0 %v1641_v49  ;;  %1295 = vmatprep.subr.bf16.mxu1 %v1643_v50 }
  0x92   :  { %1243 = vmatpush1.bf16.msra.mxu0 %v1640_v51  ;;  %1296 = vmatpush1.bf16.msra.mxu1 %v1642_v52 }
  0x95   :  { %1259 = vmatmul.mubr.bf16.vlgmr.msra.gmra.mrb[24].mxu0 %v1844_v18  ;;  %1312 = vmatmul.mubr.bf16.vlgmr.msra.gmra.mrb[24].mxu1 %v1844_v18 }
  0x96   :  { %1657 = vmatprep.mubr.msk.bf16.mxu0 %vm901_vm0, %v1861_v27  ;;  %1659 = vmatprep.mubr.msk.bf16.mxu1 %vm901_vm0, %v1861_v27 }
  0x9d   :  { %1269 = vmatmul.mubr.bf16.gmra.mrb[28].mxu0 %v1890_v39  ;;  %1322 = vmatmul.mubr.bf16.gmra.mrb[28].mxu1 %v1890_v39 }
  0xfc   :  { %v2218_v53 = vpop.f32.mrb[0].mxu0  ;;  %v2220_v54 = vpop.f32.mrb[0].mxu1 }
  0xfd   :  { %v2222_v55 = vpop.f32.mrb[1].mxu0  ;;  %v2224_v56 = vpop.f32.mrb[1].mxu1 }
  0xfe   :  { %v2226_v57 = vpop.f32.mrb[2].mxu0  ;;  %v2228_v18 = vpop.f32.mrb[2].mxu1 }
  0xff   :  { %v2230_v58 = vpop.f32.mrb[3].mxu0  ;;  %v2232_v59 = vpop.f32.mrb[3].mxu1 }
 0x104   :  { %v2234_v27 = vpop.f32.mrb[4].mxu0  ;;  %v2236_v60 = vpop.f32.mrb[4].mxu1 }
 0x105   :  { %v2238_v39 = vpop.f32.mrb[5].mxu0  ;;  %v2240_v61 = vpop.f32.mrb[5].mxu1 }
 0x106   :  { %v2242_v62 = vpop.f32.mrb[6].mxu0  ;;  %v2244_v63 = vpop.f32.mrb[6].mxu1 }
 0x107   :  { %v2246_v0 = vpop.f32.mrb[7].mxu0  ;;  %v2248_v1 = vpop.f32.mrb[7].mxu1 }
 0x120   :  { %v1048_v2 = vpop.f32.mrb[8].mxu0  ;;  %v1101_v4 = vpop.f32.mrb[8].mxu1 }
 0x121   :  { %v1332_v3 = vmax.f32 %v2218_v53, %v1048_v2  ;;  %v1050_v5 = vpop.f32.mrb[9].mxu0  ;;  %v1334_v6 = vmax.f32 %v2220_v54, %v1101_v4  ;;  %v2253_v8 = vpop.f32.mrb[9].mxu1 }
 0x122   :  { %v1333_v7 = vmax.f32 %v2222_v55, %v1050_v5  ;;  %v2255_v9 = vpop.f32.mrb[10].mxu0  ;;  %v1335_v10 = vmax.f32 %v2224_v56, %v2253_v8  ;;  %v2261_v12 = vpop.f32.mrb[10].mxu1 }
 0x123   :  { %v1336_v11 = vmax.f32 %v2226_v57, %v2255_v9  ;;  %v2263_v13 = vpop.f32.mrb[11].mxu0  ;;  %v1338_v14 = vmax.f32 %v2228_v18, %v2261_v12  ;;  %v2269_v16 = vpop.f32.mrb[11].mxu1 }
 0x124   :  { %v1337_v15 = vmax.f32 %v2230_v58, %v2263_v13  ;;  %v1387_v53 = vpop.permute.xlu0 %1386 }
 0x128   :  { %v2273_v19 = vpop.f32.mrb[12].mxu0  ;;  %v2277_v21 = vpop.f32.mrb[12].mxu1 }
 0x129   :  { %v2279_v22 = vpop.f32.mrb[13].mxu0  ;;  %v2285_v25 = vpop.f32.mrb[13].mxu1 }
 0x12a   :  { %v2287_v26 = vpop.f32.mrb[14].mxu0  ;;  %v2293_v29 = vpop.f32.mrb[14].mxu1 }
 0x12b   :  { %v2295_v30 = vpop.f32.mrb[15].mxu0  ;;  %v2301_v33 = vpop.f32.mrb[15].mxu1 }
 0x12c   :  { %v1392_v24 = vpop.permute.xlu0 %1391 }
 0x144   :  { %v1154_v36 = vpop.f32.mrb[16].mxu0  ;;  %v1207_v37 = vpop.f32.mrb[16].mxu1 }
 0x145   :  { %v1156_v38 = vpop.f32.mrb[17].mxu0  ;;  %v1209_v40 = vpop.f32.mrb[17].mxu1 }
 0x146   :  { %v1158_v41 = vpop.f32.mrb[18].mxu0  ;;  %v1211_v42 = vpop.f32.mrb[18].mxu1 }
 0x147   :  { %v1160_v43 = vpop.f32.mrb[19].mxu0  ;;  %v1213_v44 = vpop.f32.mrb[19].mxu1 }
 0x14c   :  { %v1164_v45 = vpop.f32.mrb[20].mxu0  ;;  %v2305_v46 = vpop.f32.mrb[20].mxu1 }
 0x14d   :  { %v2307_v47 = vpop.f32.mrb[21].mxu0  ;;  %v2309_v48 = vpop.f32.mrb[21].mxu1 }
 0x14e   :  { %v2311_v49 = vpop.f32.mrb[22].mxu0  ;;  %v2313_v50 = vpop.f32.mrb[22].mxu1 }
 0x14f   :  { %v2315_v51 = vpop.f32.mrb[23].mxu0  ;;  %v2317_v52 = vpop.f32.mrb[23].mxu1 }
 0x168   :  { %v1260_v54 = vpop.f32.mrb[24].mxu0  ;;  %v1313_v56 = vpop.f32.mrb[24].mxu1 }
 0x169   :  { %v1348_v55 = vmax.f32 %v1154_v36, %v1260_v54  ;;  %v1262_v57 = vpop.f32.mrb[25].mxu0  ;;  %v1350_v18 = vmax.f32 %v1207_v37, %v1313_v56  ;;  %v1315_v2 = vpop.f32.mrb[25].mxu1 }
 0x16a   :  { %v1349_v58 = vmax.f32 %v1156_v38, %v1262_v57  ;;  %v1264_v4 = vpop.f32.mrb[26].mxu0  ;;  %v1351_v8 = vmax.f32 %v1209_v40, %v1315_v2  ;;  %v1317_v12 = vpop.f32.mrb[26].mxu1  ;;  %v2381_v40 = vmax.f32 %v2232_v59, %v2269_v16 }
 0x16b   :  { %v1364_v5 = vmax.f32 %v1332_v3, %v1348_v55  ;;  %v1352_v9 = vmax.f32 %v1158_v41, %v1264_v4  ;;  %v1266_v13 = vpop.f32.mrb[27].mxu0  ;;  %v1366_v34 = vmax.f32 %v1334_v6, %v1350_v18  ;;  %v1354_v31 = vmax.f32 %v1211_v42, %v1317_v12  ;;  %v1319_v35 = vpop.f32.mrb[27].mxu1 }
 0x16c   :  { %v1365_v32 = vmax.f32 %v1333_v7, %v1349_v58  ;;  %v1353_v28 = vmax.f32 %v1160_v43, %v1266_v13  ;;  %v1367_v23 = vmax.f32 %v1335_v10, %v1351_v8  ;;  %v1355_v54 = vmax.f32 %v1213_v44, %v1319_v35  ;;  %v1397_v18 = vpop.permute.xlu1 %1396 }
 0x16d   :  { %v1404_v20 = vadd.f32 %v1387_v53, %v1364_v5  ;;  %v1368_v36 = vmax.f32 %v1336_v11, %v1352_v9  ;;  %v1406_v37 = vadd.f32 %v1387_v53, %v1366_v34  ;;  %v1370_v38 = vmax.f32 %v1338_v14, %v1354_v31 }
 0x16e   :  { %v1405_v17 = vadd.f32 %v1387_v53, %v1365_v32  ;;  %v1369_v56 = vmax.f32 %v1337_v15, %v1353_v28  ;;  %v1407_v57 = vadd.f32 %v1387_v53, %v1367_v23  ;;  %v1371_v41 = vmax.f32 %v2381_v40, %v1355_v54 }
 0x16f   :  { %v1420_v3 = vmax.f32 %v1404_v20, 0.0  ;;  %v1408_v6 = vadd.f32 %v1392_v24, %v1368_v36  ;;  %v1422_v42 = vmax.f32 %v1406_v37, 0.0  ;;  %v1410_v55 = vadd.f32 %v1392_v24, %v1370_v38 }
 0x170   :  { %v1421_v7 = vmax.f32 %v1405_v17, 0.0  ;;  %v1409_v43 = vadd.f32 %v1392_v24, %v1369_v56  ;;  %v1270_v10 = vpop.f32.mrb[28].mxu0  ;;  %v1423_v58 = vmax.f32 %v1407_v57, 0.0  ;;  %v1411_v11 = vadd.f32 %v1392_v24, %v1371_v41  ;;  %v1323_v34 = vpop.f32.mrb[28].mxu1 }
 0x171   :  { %v1424_v35 = vmax.f32 %v1408_v6, 0.0  ;;  %v1356_v32 = vmax.f32 %v1164_v45, %v1270_v10  ;;  %v1272_v14 = vpop.f32.mrb[29].mxu0  ;;  %v1426_v20 = vmax.f32 %v1410_v55, 0.0  ;;  %v1358_v28 = vmax.f32 %v2305_v46, %v1323_v34  ;;  %v1325_v59 = vpop.f32.mrb[29].mxu1 }
 0x172   :  { %v1668_v15 = vpack.c.bf16 %v1421_v7, %v1420_v3  ;;  %v1425_v23 = vmax.f32 %v1409_v43, 0.0  ;;  %v1274_v16 = vpop.f32.mrb[30].mxu0  ;;  %v1669_v31 = vpack.c.bf16 %v1423_v58, %v1422_v42  ;;  %v1427_v17 = vmax.f32 %v1411_v11, 0.0  ;;  %v1327_v24 = vpop.f32.mrb[30].mxu1 }
 0x173   :  { %v2382_v44 = vmax.f32 %v2234_v27, %v2273_v19  ;;  %v1357_v2 = vmax.f32 %v2307_v47, %v1272_v14  ;;  %v1276_v4 = vpop.f32.mrb[31].mxu0  ;;  %v2383_v46 = vmax.f32 %v2236_v60, %v2277_v21  ;;  %v1359_v8 = vmax.f32 %v2309_v48, %v1325_v59  ;;  %v1329_v12 = vpop.f32.mrb[31].mxu1 }
 0x174   :  { %1484 = vst [vmem:[%s2380_s3] sm:$0xff] %v1668_v15  ;;  %v1670_v45 = vpack.c.bf16 %v1425_v23, %v1424_v35  ;;  %v1360_v9 = vmax.f32 %v2311_v49, %v1274_v16  ;;  %1485 = vst [vmem:[%s2380_s3 + $0x8] sm:$0xff] %v1669_v31  ;;  %v1671_v27 = vpack.c.bf16 %v1427_v17, %v1426_v20  ;;  %v1402_v56 = vpop.permute.xlu1 %1401 }
 0x175   :  { %v1372_v53 = vmax.f32 %v2382_v44, %v1356_v32  ;;  %v1374_v5 = vmax.f32 %v2383_v46, %v1358_v28  ;;  %v2384_v47 = vmax.f32 %v2238_v39, %v2279_v22  ;;  %v1362_v36 = vmax.f32 %v2313_v50, %v1327_v24 }
 0x176   :  { %1486 = vst [vmem:[%s2380_s3 + $0x10] sm:$0xff] %v1670_v45  ;;  %v2385_v21 = vmax.f32 %v2240_v61, %v2285_v25  ;;  %v2386_v49 = vmax.f32 %v2242_v62, %v2287_v26  ;;  %v1361_v37 = vmax.f32 %v2315_v51, %v1276_v4  ;;  %1487 = vst [vmem:[%s2380_s3 + $0x18] sm:$0xff] %v1671_v27 }
 0x177   :  { %v1412_v19 = vadd.f32 %v1397_v18, %v1372_v53  ;;  %v1373_v13 = vmax.f32 %v2384_v47, %v1357_v2  ;;  %v1414_v60 = vadd.f32 %v1397_v18, %v1374_v5  ;;  %v2387_v50 = vmax.f32 %v2244_v63, %v2293_v29 }
 0x178   :  { %v1375_v48 = vmax.f32 %v2385_v21, %v1359_v8  ;;  %v1376_v54 = vmax.f32 %v2386_v49, %v1360_v9  ;;  %v1363_v61 = vmax.f32 %v2317_v52, %v1329_v12  ;;  %v2388_v62 = vmax.f32 %v2246_v0, %v2295_v30 }
 0x179   :  { %v1428_v39 = vmax.f32 %v1412_v19, 0.0  ;;  %v1413_v22 = vadd.f32 %v1397_v18, %v1373_v13  ;;  %v1378_v38 = vmax.f32 %v2387_v50, %v1362_v36  ;;  %v1430_v25 = vmax.f32 %v1414_v60, 0.0 }
 0x17a   :  { %v1415_v57 = vadd.f32 %v1397_v18, %v1375_v48  ;;  %v1416_v3 = vadd.f32 %v1402_v56, %v1376_v54  ;;  %v1377_v26 = vmax.f32 %v2388_v62, %v1361_v37  ;;  %v2389_v41 = vmax.f32 %v2248_v1, %v2301_v33 }
 0x17b   :  { %v1429_v51 = vmax.f32 %v1413_v22, 0.0  ;;  %v1418_v40 = vadd.f32 %v1402_v56, %v1378_v38 }
 0x17c   :  { %v1379_v6 = vmax.f32 %v2389_v41, %v1363_v61  ;;  %v1431_v7 = vmax.f32 %v1415_v57, 0.0  ;;  %v1432_v42 = vmax.f32 %v1416_v3, 0.0  ;;  %v1417_v63 = vadd.f32 %v1402_v56, %v1377_v26 }
 0x17d   :  { %v1672_v29 = vpack.c.bf16 %v1429_v51, %v1428_v39  ;;  %v1434_v43 = vmax.f32 %v1418_v40, 0.0 }
 0x17e   :  { %v1419_v55 = vadd.f32 %v1402_v56, %v1379_v6  ;;  %v1673_v52 = vpack.c.bf16 %v1431_v7, %v1430_v25  ;;  %v1433_v10 = vmax.f32 %v1417_v63, 0.0 }
 0x17f   :  { %1488 = vst [vmem:[%s2380_s3 + $0x20] sm:$0xff] %v1672_v29 }
 0x180   :  { %v1435_v0 = vmax.f32 %v1419_v55, 0.0  ;;  %1489 = vst [vmem:[%s2380_s3 + $0x28] sm:$0xff] %v1673_v52  ;;  %v1674_v30 = vpack.c.bf16 %v1433_v10, %v1432_v42 }
 0x182   :  { %v1675_v1 = vpack.c.bf16 %v1435_v0, %v1434_v43  ;;  %1490 = vst [vmem:[%s2380_s3 + $0x30] sm:$0xff] %v1674_v30 }
 0x184   :  { %1491 = vst [vmem:[%s2380_s3 + $0x38] sm:$0xff] %v1675_v1 }

// kernel: convnet_forward.7
= control target key start
LH: loop header
LB: loop body
LE: loop exit
PB: predicated region body
PF: predicated region fallthrough
CT: control target
= control target key end

     0   :  { %s728_s1 = inlined_call_operand.vmem [shape: bf16[512,128], index: 1, kind: input, shape index: {}]   ;;  %s729_s0 = inlined_call_operand.vmem [shape: bf16[32,512], index: 0, kind: input, shape index: {}]   ;;  %s730_s2 = inlined_call_operand.vmem [shape: f32[1,128], index: 2, kind: input, shape index: {}]   ;;  %s731_s3 = inlined_call_operand.vmem [shape: f32[32,128], index: 3, kind: output, shape index: {}]  }
   0x1   :  { %v529_v0 = vld [vmem:[%s728_s1 + $0x40] sm:$0xff]   ;;  %v533_v4 = vld [vmem:[%s728_s1 + $0x48] sm:$0xff]   ;;  %v537_v8 = vld [vmem:[%s728_s1 + $0x50] sm:$0xff]  }
   0x2   :  { %v530_v1 = vld [vmem:[%s728_s1 + $0xc0] sm:$0xff]   ;;  %473 = vmatprep.subr.bf16.mxu0 %v529_v0  ;;  %v534_v5 = vld [vmem:[%s728_s1 + $0xc8] sm:$0xff]   ;;  %v538_v9 = vld [vmem:[%s728_s1 + $0xd0] sm:$0xff]  }
   0x3   :  { %v531_v2 = vld [vmem:[%s728_s1] sm:$0xff]   ;;  %501 = vmatprep.subr.bf16.mxu1 %v530_v1  ;;  %v535_v6 = vld [vmem:[%s728_s1 + $0x8] sm:$0xff]   ;;  %v539_v10 = vld [vmem:[%s728_s1 + $0x10] sm:$0xff]  }
   0x4   :  { %v532_v3 = vld [vmem:[%s728_s1 + $0x80] sm:$0xff]   ;;  %474 = vmatpush3.bf16.msra.mxu0 %v531_v2  ;;  %v536_v7 = vld [vmem:[%s728_s1 + $0x88] sm:$0xff]   ;;  %v540_v11 = vld [vmem:[%s728_s1 + $0x90] sm:$0xff]  }
   0x5   :  { %502 = vmatpush3.bf16.msra.mxu1 %v532_v3  ;;  %475 = vmatprep.subr.bf16.mxu0 %v533_v4  ;;  %v541_v12 = vld [vmem:[%s728_s1 + $0x58] sm:$0xff]   ;;  %v545_v16 = vld [vmem:[%s728_s1 + $0x60] sm:$0xff]   ;;  %v549_v20 = vld [vmem:[%s728_s1 + $0x68] sm:$0xff]  }
   0x6   :  { %503 = vmatprep.subr.bf16.mxu1 %v534_v5  ;;  %v542_v13 = vld [vmem:[%s728_s1 + $0xd8] sm:$0xff]   ;;  %v546_v17 = vld [vmem:[%s728_s1 + $0xe0] sm:$0xff]   ;;  %v550_v21 = vld [vmem:[%s728_s1 + $0xe8] sm:$0xff]  }
   0x7   :  { %v543_v14 = vld [vmem:[%s728_s1 + $0x18] sm:$0xff]   ;;  %v547_v18 = vld [vmem:[%s728_s1 + $0x20] sm:$0xff]   ;;  %v551_v22 = vld [vmem:[%s728_s1 + $0x28] sm:$0xff]  }
   0x8   :  { %476 = vmatpush3.bf16.msra.mxu0 %v535_v6  ;;  %v544_v15 = vld [vmem:[%s728_s1 + $0x98] sm:$0xff]   ;;  %v548_v19 = vld [vmem:[%s728_s1 + $0xa0] sm:$0xff]   ;;  %v552_v23 = vld [vmem:[%s728_s1 + $0xa8] sm:$0xff]  }
   0x9   :  { %504 = vmatpush3.bf16.msra.mxu1 %v536_v7  ;;  %477 = vmatprep.subr.bf16.mxu0 %v537_v8  ;;  %v553_v24 = vld [vmem:[%s728_s1 + $0x70] sm:$0xff]   ;;  %v557_v28 = vld [vmem:[%s728_s1 + $0x78] sm:$0xff]   ;;  %v432_v42 = vld [vmem:[%s730_s2] ss:$0 sm:$0xff] }
   0xa   :  { %505 = vmatprep.subr.bf16.mxu1 %v538_v9  ;;  %v554_v25 = vld [vmem:[%s728_s1 + $0xf0] sm:$0xff]   ;;  %v558_v29 = vld [vmem:[%s728_s1 + $0xf8] sm:$0xff]  }
   0xb   :  { %v555_v26 = vld [vmem:[%s728_s1 + $0x30] sm:$0xff]   ;;  %v559_v30 = vld [vmem:[%s728_s1 + $0x38] sm:$0xff]  }
   0xc   :  { %478 = vmatpush3.bf16.msra.mxu0 %v539_v10  ;;  %v556_v27 = vld [vmem:[%s728_s1 + $0xb0] sm:$0xff]   ;;  %v560_v31 = vld [vmem:[%s728_s1 + $0xb8] sm:$0xff]  }
   0xd   :  { %506 = vmatpush3.bf16.msra.mxu1 %v540_v11  ;;  %479 = vmatprep.subr.bf16.mxu0 %v541_v12  ;;  %v561_v32 = vld [vmem:[%s729_s0] ss:$16 sps:$4 sm:$0xff]   ;;  %v563_v33 = vld [vmem:[%s729_s0 + $0x4] ss:$16 sps:$4 sm:$0xff]   ;;  %v564_v34 = vld [vmem:[%s729_s0 + $0x8] ss:$16 sps:$4 sm:$0xff]  }
   0xe   :  { %507 = vmatprep.subr.bf16.mxu1 %v542_v13  ;;  %v566_v35 = vld [vmem:[%s729_s0 + $0xc] ss:$16 sps:$4 sm:$0xff]   ;;  %358 = vmatprep.mubr.bf16.mxu0 %v563_v33  ;;  %v567_v36 = vld [vmem:[%s729_s0 + $0x24] ss:$16 sps:$4 sm:$0xff]   ;;  %v571_v38 = vld [vmem:[%s729_s0 + $0x20] ss:$16 sps:$4 sm:$0xff]  }
   0xf   :  { %407 = vmatprep.mubr.bf16.mxu1 %v566_v35  ;;  %v569_v37 = vld [vmem:[%s729_s0 + $0x2c] ss:$16 sps:$4 sm:$0xff]   ;;  %v572_v39 = vld [vmem:[%s729_s0 + $0x28] ss:$16 sps:$4 sm:$0xff]  }
  0x10   :  { %480 = vmatpush3.bf16.msra.mxu0 %v543_v14 }
  0x11   :  { %508 = vmatpush3.bf16.msra.mxu1 %v544_v15  ;;  %481 = vmatprep.subr.bf16.mxu0 %v545_v16 }
  0x12   :  { %509 = vmatprep.subr.bf16.mxu1 %v546_v17 }
  0x14   :  { %482 = vmatpush3.bf16.msra.mxu0 %v547_v18 }
  0x15   :  { %510 = vmatpush3.bf16.msra.mxu1 %v548_v19  ;;  %483 = vmatprep.subr.bf16.mxu0 %v549_v20 }
  0x16   :  { %511 = vmatprep.subr.bf16.mxu1 %v550_v21 }
  0x18   :  { %484 = vmatpush3.bf16.msra.mxu0 %v551_v22 }
  0x19   :  { %512 = vmatpush3.bf16.msra.mxu1 %v552_v23  ;;  %485 = vmatprep.subr.bf16.mxu0 %v553_v24 }
  0x1a   :  { %513 = vmatprep.subr.bf16.mxu1 %v554_v25 }
  0x1c   :  { %486 = vmatpush3.bf16.msra.mxu0 %v555_v26 }
  0x1d   :  { %514 = vmatpush3.bf16.msra.mxu1 %v556_v27  ;;  %487 = vmatprep.subr.bf16.mxu0 %v557_v28 }
  0x1e   :  { %515 = vmatprep.subr.bf16.mxu1 %v558_v29 }
  0x20   :  { %488 = vmatpush3.bf16.msra.mxu0 %v559_v30 }
  0x21   :  { %516 = vmatpush3.bf16.msra.mxu1 %v560_v31 }
  0x23   :  { %359 = vmatmul.mubr.bf16.vlgmr.msra.gmra.mrb[0].mxu0 %v561_v32 }
  0x24   :  { %408 = vmatmul.mubr.bf16.vlgmr.msra.gmra.mrb[0].mxu1 %v564_v34  ;;  %366 = vmatprep.mubr.bf16.mxu0 %v567_v36 }
  0x25   :  { %415 = vmatprep.mubr.bf16.mxu1 %v569_v37 }
  0x2b   :  { %367 = vmatmul.mubr.bf16.gmra.mrb[4].mxu0 %v571_v38 }
  0x2c   :  { %416 = vmatmul.mubr.bf16.gmra.mrb[4].mxu1 %v572_v39 }
  0xf6   :  { %v489_v40 = vpop.f32.mrb[0].mxu0 }
  0xf7   :  { %v517_v41 = vpop.f32.mrb[0].mxu1  ;;  %v490_v43 = vpop.f32.mrb[1].mxu0 }
  0xf8   :  { %v491_v44 = vadd.f32 %v490_v43, %v489_v40  ;;  %v518_v45 = vpop.f32.mrb[1].mxu1  ;;  %v492_v46 = vpop.f32.mrb[2].mxu0 }
  0xf9   :  { %v519_v47 = vadd.f32 %v518_v45, %v517_v41  ;;  %v520_v48 = vpop.f32.mrb[2].mxu1  ;;  %v493_v49 = vpop.f32.mrb[3].mxu0 }
  0xfa   :  { %v361_v50 = vadd.f32 %v491_v44, %v432_v42  ;;  %v494_v51 = vadd.f32 %v493_v49, %v492_v46  ;;  %v521_v52 = vpop.f32.mrb[3].mxu1 }
  0xfb   :  { %v522_v53 = vadd.f32 %v521_v52, %v520_v48 }
  0xfc   :  { %v410_v54 = vadd.f32 %v519_v47, %v361_v50  ;;  %v364_v55 = vadd.f32 %v494_v51, %v432_v42 }
  0xfe   :  { %424 = vst [vmem:[%s731_s3] sm:$0xff] %v410_v54  ;;  %v413_v56 = vadd.f32 %v522_v53, %v364_v55  ;;  %v495_v57 = vpop.f32.mrb[4].mxu0 }
  0xff   :  { %v523_v58 = vpop.f32.mrb[4].mxu1  ;;  %v496_v59 = vpop.f32.mrb[5].mxu0 }
 0x100   :  { %425 = vst [vmem:[%s731_s3 + $0x8] sm:$0xff] %v413_v56  ;;  %v497_v60 = vadd.f32 %v496_v59, %v495_v57  ;;  %v524_v61 = vpop.f32.mrb[5].mxu1  ;;  %v498_v62 = vpop.f32.mrb[6].mxu0 }
 0x101   :  { %v525_v63 = vadd.f32 %v524_v61, %v523_v58  ;;  %v526_v0 = vpop.f32.mrb[6].mxu1  ;;  %v499_v1 = vpop.f32.mrb[7].mxu0 }
 0x102   :  { %v369_v2 = vadd.f32 %v497_v60, %v432_v42  ;;  %v500_v3 = vadd.f32 %v499_v1, %v498_v62  ;;  %v527_v4 = vpop.f32.mrb[7].mxu1 }
 0x103   :  { %v528_v5 = vadd.f32 %v527_v4, %v526_v0 }
 0x104   :  { %v418_v6 = vadd.f32 %v525_v63, %v369_v2  ;;  %v372_v7 = vadd.f32 %v500_v3, %v432_v42 }
 0x106   :  { %426 = vst [vmem:[%s731_s3 + $0x10] sm:$0xff] %v418_v6  ;;  %v421_v8 = vadd.f32 %v528_v5, %v372_v7 }
 0x108   :  { %427 = vst [vmem:[%s731_s3 + $0x18] sm:$0xff] %v421_v8 }

</bundles_post_ra>
